<compile_context>
chip_gen: v5e
topology: v5e:2x2
jax: 0.10.0
libtpu: 0.0.40
codegen_flags: <defaults>
</compile_context>

<pallas_src>
import math

import jax
import jax.numpy as jnp
from jax.experimental import pallas as pl
from jax.experimental.pallas import tpu as pltpu

NUM_HEADS = 4
FF_SIZE = 1024
LN_EPS = 1e-5


# ----------------------------- kernel helpers ------------------------------

def _layer_norm(x, w, b):
    mean = jnp.mean(x, axis=-1, keepdims=True)
    var = jnp.mean(jnp.square(x - mean), axis=-1, keepdims=True)
    return (x - mean) * jax.lax.rsqrt(var + LN_EPS) * w + b


def _gelu_exact(x):
    # PyTorch activation='gelu' default is exact (erf) gelu.
    return 0.5 * x * (1.0 + jax.lax.erf(x * (1.0 / math.sqrt(2.0))))


def _mm(a_f32, w_bf16):
    # bf16 MXU operands, f32 accumulation.
    return jnp.dot(a_f32.astype(jnp.bfloat16), w_bf16,
                   preferred_element_type=jnp.float32)


# --------------------------- fused forward kernel ---------------------------
# One grid step == one batch element.  Post-norm (norm_first=False)
# nn.TransformerEncoderLayer, eval mode, layer loop statically unrolled.

def _fused_kernel(cur_ref, oth_ref, cc_ref, oc_ref,
                  aggc_ref, aggo_ref, aggb_ref,
                  cagc_ref, cago_ref, cagb_ref,
                  wq_ref, bq_ref, wk_ref, bk_ref, wv_ref, bv_ref,
                  wo_ref, bo_ref,
                  n1w_ref, n1b_ref, n2w_ref, n2b_ref,
                  w1_ref, b1_ref, w2_ref, b2_ref,
                  cow_ref, cob_ref,
                  out_ref, canon_ref):
    S, D = cur_ref.shape
    T = S + 1                                  # sequence tokens + canon token
    H = NUM_HEADS
    Hd = D // H
    L = wq_ref.shape[0]
    f32 = jnp.float32
    bf16 = jnp.bfloat16

    # ---- 'in_both' aggregation: concat(cur, other) @ W.T == cur@Wc + oth@Wo --
    seq_x = (_mm(cur_ref[...], aggc_ref[...])
             + _mm(oth_ref[...], aggo_ref[...])
             + aggb_ref[...])                                     # (S, D) f32

    # ---- predict_6dof: canonical token ----
    canon_tok = (_mm(cc_ref[...], cagc_ref[...])
                 + _mm(oc_ref[...], cago_ref[...])
                 + cagb_ref[...])                                 # (1, D) f32

    # Sequence tokens first, canon token last (row S, a sublane-tile boundary
    # for S % 8 == 0).  Self-attention here has no mask / positional encoding,
    # so the token permutation is exactly equivalent to PyTorch's canon-first
    # ordering while keeping the concat and the epilogue split tile-aligned.
    x = jnp.concatenate([seq_x, canon_tok], axis=0)               # (T, D) f32

    # ---- transformer encoder layers (static unroll) ----
    for l in range(L):
        # Separate Q/K/V projections (no lane-slicing of a fused qkv slab);
        # 1/sqrt(Hd) is pre-folded into wq / bq.
        q = (_mm(x, wq_ref[l]) + bq_ref[l]).reshape(T, H, Hd).astype(bf16)
        k = (_mm(x, wk_ref[l]) + bk_ref[l]).reshape(T, H, Hd).astype(bf16)
        v = (_mm(x, wv_ref[l]) + bv_ref[l]).reshape(T, H, Hd).astype(bf16)

        # All heads batched in one einsum pair; softmax in f32.
        s = jnp.einsum('qhd,khd->hqk', q, k, preferred_element_type=f32)
        s = s - jnp.max(s, axis=-1, keepdims=True)
        p = jnp.exp(s)
        p = p * pl.reciprocal(jnp.sum(p, axis=-1, keepdims=True), approx=True)
        a = jnp.einsum('hqk,khd->qhd', p.astype(bf16), v,
                       preferred_element_type=f32).reshape(T, D)

        # output projection + residual + layernorm1 (f32)
        a = _mm(a, wo_ref[l]) + bo_ref[l]
        x = _layer_norm(x + a, n1w_ref[l], n1b_ref[l])

        # feed-forward (exact gelu) + residual + layernorm2 (f32)
        h1 = _gelu_exact(_mm(x, w1_ref[l]) + b1_ref[l])
        ff = _mm(h1, w2_ref[l]) + b2_ref[l]
        x = _layer_norm(x + ff, n2w_ref[l], n2b_ref[l])

    # ---- epilogue: aligned splits (rows [0,S) and row S) ----
    out_ref[...] = x[:S].astype(out_ref.dtype)
    canon_ref[...] = (_mm(x[S:T], cow_ref[...])
                      + cob_ref[...]).astype(canon_ref.dtype)


# --------------------------- parameter preparation ---------------------------
# One-time conversion of torch-layout params into kernel layout:
# pre-transposed bf16 matmul weights, stacked per-layer tensors, f32 biases,
# and the attention q-scale folded into the Q projection.

def prepare_params(params, num_heads=NUM_HEADS):
    D = params['agg_w'].shape[0]
    Hd = D // num_heads
    q_scale = 1.0 / math.sqrt(Hd)
    bf16, f32 = jnp.bfloat16, jnp.float32

    agg_wT = params['agg_w'].T            # (2D, D)
    cag_wT = params['canon_agg_w'].T      # (18, D)
    layers = params['layers']

    def stack(fn, dtype):
        return jnp.stack([fn(lp) for lp in layers]).astype(dtype)

    return {
        'agg_wT_cur': agg_wT[:D].astype(bf16),
        'agg_wT_oth': agg_wT[D:].astype(bf16),
        'agg_b': params['agg_b'].reshape(1, D).astype(f32),
        'canon_wT_c': cag_wT[:9].astype(bf16),
        'canon_wT_o': cag_wT[9:].astype(bf16),
        'canon_agg_b': params['canon_agg_b'].reshape(1, D).astype(f32),
        'wq': stack(lambda lp: lp['in_proj_w'][:D].T * q_scale, bf16),
        'bq': stack(lambda lp: (lp['in_proj_b'][:D] * q_scale).reshape(1, D), f32),
        'wk': stack(lambda lp: lp['in_proj_w'][D:2 * D].T, bf16),
        'bk': stack(lambda lp: lp['in_proj_b'][D:2 * D].reshape(1, D), f32),
        'wv': stack(lambda lp: lp['in_proj_w'][2 * D:].T, bf16),
        'bv': stack(lambda lp: lp['in_proj_b'][2 * D:].reshape(1, D), f32),
        'wo': stack(lambda lp: lp['out_proj_w'].T, bf16),
        'bo': stack(lambda lp: lp['out_proj_b'].reshape(1, D), f32),
        'n1w': stack(lambda lp: lp['norm1_w'].reshape(1, D), f32),
        'n1b': stack(lambda lp: lp['norm1_b'].reshape(1, D), f32),
        'n2w': stack(lambda lp: lp['norm2_w'].reshape(1, D), f32),
        'n2b': stack(lambda lp: lp['norm2_b'].reshape(1, D), f32),
        'w1': stack(lambda lp: lp['lin1_w'].T, bf16),           # (L, D, FF)
        'b1': stack(lambda lp: lp['lin1_b'].reshape(1, -1), f32),
        'w2': stack(lambda lp: lp['lin2_w'].T, bf16),           # (L, FF, D)
        'b2': stack(lambda lp: lp['lin2_b'].reshape(1, D), f32),
        'canon_out_wT': params['canon_out_w'].T.astype(bf16),   # (D, 9)
        'canon_out_b': params['canon_out_b'].reshape(1, 9).astype(f32),
    }


# ------------------------------ full forward --------------------------------

@jax.jit
def multi_person_block_forward(prep, other, cur, cur_canon, other_canon):
    S, B, D = other.shape
    FF = prep['w1'].shape[-1]
    L = prep['wq'].shape[0]
    T = S + 1

    # batch-major layout so the grid can tile the leading dim only
    cur_b = jnp.transpose(cur, (1, 0, 2))                     # (B, S, D)
    oth_b = jnp.transpose(other, (1, 0, 2))                   # (B, S, D)
    # squeeze(-1).permute(2,0,1)[..., :9]  ==  [:, :9, 0, 0]
    cc = cur_canon[:, :9, 0, 0].reshape(B, 1, 9)
    oc = other_canon[:, :9, 0, 0].reshape(B, 1, 9)

    args = (cur_b, oth_b, cc, oc,
            prep['agg_wT_cur'], prep['agg_wT_oth'], prep['agg_b'],
            prep['canon_wT_c'], prep['canon_wT_o'], prep['canon_agg_b'],
            prep['wq'], prep['bq'], prep['wk'], prep['bk'],
            prep['wv'], prep['bv'], prep['wo'], prep['bo'],
            prep['n1w'], prep['n1b'], prep['n2w'], prep['n2b'],
            prep['w1'], prep['b1'], prep['w2'], prep['b2'],
            prep['canon_out_wT'], prep['canon_out_b'])

    def resident(a):
        nd = a.ndim
        return pl.BlockSpec(a.shape, lambda b: (0,) * nd)     # DMA'd once, VMEM-resident

    in_specs = [
        pl.BlockSpec((None, S, D), lambda b: (b, 0, 0)),      # cur
        pl.BlockSpec((None, S, D), lambda b: (b, 0, 0)),      # other
        pl.BlockSpec((None, 1, 9), lambda b: (b, 0, 0)),      # cur canon
        pl.BlockSpec((None, 1, 9), lambda b: (b, 0, 0)),      # other canon
    ] + [resident(a) for a in args[4:]]

    out_specs = (pl.BlockSpec((None, S, D), lambda b: (b, 0, 0)),
                 pl.BlockSpec((None, 1, 9), lambda b: (b, 0, 0)))

    # advisory cost estimate for XLA scheduling around the kernel
    flops = 2 * B * (S * D * (2 * D)                    # aggregation
                     + 18 * D                           # canon_agg
                     + L * (4 * T * D * D               # q, k, v, out projections
                            + 2 * T * T * D             # scores + attn @ v
                            + 2 * T * D * FF)           # feed-forward
                     + D * 9)                           # canon_out
    transcendentals = B * L * (NUM_HEADS * T * T + T * FF)
    bytes_accessed = (sum(int(a.size) * a.dtype.itemsize for a in args)
                      + (B * S * D + B * 9) * 4)

    out_b, canon3d = pl.pallas_call(
        _fused_kernel,
        grid=(B,),
        out_shape=(jax.ShapeDtypeStruct((B, S, D), other.dtype),
                   jax.ShapeDtypeStruct((B, 1, 9), other.dtype)),
        in_specs=in_specs,
        out_specs=out_specs,
        compiler_params=pltpu.CompilerParams(
            dimension_semantics=("parallel",),
            vmem_limit_bytes=32 * 1024 * 1024),
        cost_estimate=pl.CostEstimate(flops=flops,
                                      transcendentals=transcendentals,
                                      bytes_accessed=bytes_accessed),
    )(*args)

    out = jnp.transpose(out_b, (1, 0, 2))                      # (S, B, D)
    canon = canon3d.reshape(B, 9, 1, 1)
    pad = jnp.zeros((B, 138 - 9, 1, 1), canon.dtype)
    canon = jnp.concatenate([canon, pad], axis=1)              # (B, 138, 1, 1)
    return out, canon


# --------------------------- pure-JAX reference ------------------------------

def reference_forward(params, other, cur, cur_canon, other_canon):
    def lin(x, w, b):
        return x @ w.T + b

    def ln(u, w_, b_):
        m = u.mean(-1, keepdims=True)
        var = ((u - m) ** 2).mean(-1, keepdims=True)
        return (u - m) / jnp.sqrt(var + LN_EPS) * w_ + b_

    S, B, D = other.shape
    H, Hd = NUM_HEADS, D // NUM_HEADS

    x = lin(jnp.concatenate([cur, other], -1), params['agg_w'], params['agg_b'])
    cc = jnp.transpose(jnp.squeeze(cur_canon, -1), (2, 0, 1))[..., :9]
    oc = jnp.transpose(jnp.squeeze(other_canon, -1), (2, 0, 1))[..., :9]
    canon_tok = lin(jnp.concatenate([cc, oc], -1),
                    params['canon_agg_w'], params['canon_agg_b'])
    x = jnp.concatenate([canon_tok, x], axis=0)

    for lp in params['layers']:
        T = x.shape[0]
        qkv = lin(x, lp['in_proj_w'], lp['in_proj_b'])
        q, k, v = qkv[..., :D], qkv[..., D:2 * D], qkv[..., 2 * D:]
        q = q.reshape(T, B, H, Hd).transpose(1, 2, 0, 3) / math.sqrt(Hd)
        k = k.reshape(T, B, H, Hd).transpose(1, 2, 0, 3)
        v = v.reshape(T, B, H, Hd).transpose(1, 2, 0, 3)
        p = jax.nn.softmax(q @ jnp.swapaxes(k, -1, -2), axis=-1)
        a = (p @ v).transpose(2, 0, 1, 3).reshape(T, B, D)
        a = lin(a, lp['out_proj_w'], lp['out_proj_b'])
        x = ln(x + a, lp['norm1_w'], lp['norm1_b'])
        ffh = _gelu_exact(lin(x, lp['lin1_w'], lp['lin1_b']))
        x = ln(x + lin(ffh, lp['lin2_w'], lp['lin2_b']),
               lp['norm2_w'], lp['norm2_b'])

    canon_h, out = x[:1], x[1:]
    canon = lin(canon_h, params['canon_out_w'], params['canon_out_b'])
    canon = jnp.transpose(canon, (1, 2, 0))[..., None]
    pad = jnp.zeros((B, 138 - 9, 1, 1), canon.dtype)
    canon = jnp.concatenate([canon, pad], axis=1)
    return out, canon


# ------------------------------- params init --------------------------------

def init_params(key, num_layers, latent_dim, ff_size=FF_SIZE):
    keys = iter(jax.random.split(key, 8 + num_layers * 12))

    def w(shape, scale=0.05):
        return scale * jax.random.normal(next(keys), shape, jnp.float32)

    params = {
        'agg_w': w((latent_dim, 2 * latent_dim)),     # aggregation: Linear(2D -> D)
        'agg_b': w((latent_dim,)),
        'canon_agg_w': w((latent_dim, 18)),           # canon_agg: Linear(18 -> D)
        'canon_agg_b': w((latent_dim,)),
        'canon_out_w': w((9, latent_dim)),            # canon_out: Linear(D -> 9)
        'canon_out_b': w((9,)),
        'layers': [],
    }
    for _ in range(num_layers):
        params['layers'].append({
            'in_proj_w': w((3 * latent_dim, latent_dim)),
            'in_proj_b': w((3 * latent_dim,)),
            'out_proj_w': w((latent_dim, latent_dim)),
            'out_proj_b': w((latent_dim,)),
            'norm1_w': jnp.ones((latent_dim,), jnp.float32),
            'norm1_b': jnp.zeros((latent_dim,), jnp.float32),
            'norm2_w': jnp.ones((latent_dim,), jnp.float32),
            'norm2_b': jnp.zeros((latent_dim,), jnp.float32),
            'lin1_w': w((ff_size, latent_dim)),
            'lin1_b': w((ff_size,)),
            'lin2_w': w((latent_dim, ff_size)),
            'lin2_b': w((latent_dim,)),
        })
    return params


# ---------------------------------- main -------------------------------------

if __name__ == "__main__":
    SEQ, BATCH, LATENT, CANON_FEATS = 8, 2, 32, 16   # CANON_FEATS >= 9
    NUM_LAYERS = 2

    key = jax.random.PRNGKey(0)
    kp, k1, k2, k3, k4 = jax.random.split(key, 5)

    params = init_params(kp, NUM_LAYERS, LATENT)
    prep = prepare_params(params)                    # one-time weight prep (bf16)

    other = jax.random.normal(k1, (SEQ, BATCH, LATENT), jnp.float32)
    cur = jax.random.normal(k2, (SEQ, BATCH, LATENT), jnp.float32)
    cur_canon = jax.random.normal(k3, (BATCH, CANON_FEATS, 1, 1), jnp.float32)
    other_canon = jax.random.normal(k4, (BATCH, CANON_FEATS, 1, 1), jnp.float32)

    out, canon = multi_person_block_forward(prep, other, cur, cur_canon, other_canon)
    jax.block_until_ready((out, canon))

    assert out.shape == (SEQ, BATCH, LATENT), out.shape
    assert canon.shape == (BATCH, 138, 1, 1), canon.shape

    ref_out, ref_canon = reference_forward(params, other, cur, cur_canon, other_canon)
    # bf16 MXU operands + approx reciprocal in softmax -> slightly looser check.
    assert jnp.allclose(out, ref_out, atol=3e-2, rtol=3e-2), "out mismatch vs reference"
    assert jnp.allclose(canon, ref_canon, atol=3e-2, rtol=3e-2), "canon mismatch vs reference"

    print("KERNEL_OK")
</pallas_src>

<mosaic_0001>
module attributes {stable_mosaic.version = 11 : i64} {
  func.func @_fused_kernel(%arg0: i32, %arg1: memref<1x8x32xf32, #tpu.memory_space<vmem>>, %arg2: memref<1x8x32xf32, #tpu.memory_space<vmem>>, %arg3: memref<1x1x9xf32, #tpu.memory_space<vmem>>, %arg4: memref<1x1x9xf32, #tpu.memory_space<vmem>>, %arg5: memref<32x32xbf16, #tpu.memory_space<vmem>>, %arg6: memref<32x32xbf16, #tpu.memory_space<vmem>>, %arg7: memref<1x32xf32, #tpu.memory_space<vmem>>, %arg8: memref<9x32xbf16, #tpu.memory_space<vmem>>, %arg9: memref<9x32xbf16, #tpu.memory_space<vmem>>, %arg10: memref<1x32xf32, #tpu.memory_space<vmem>>, %arg11: memref<2x32x32xbf16, #tpu.memory_space<vmem>>, %arg12: memref<2x1x32xf32, #tpu.memory_space<vmem>>, %arg13: memref<2x32x32xbf16, #tpu.memory_space<vmem>>, %arg14: memref<2x1x32xf32, #tpu.memory_space<vmem>>, %arg15: memref<2x32x32xbf16, #tpu.memory_space<vmem>>, %arg16: memref<2x1x32xf32, #tpu.memory_space<vmem>>, %arg17: memref<2x32x32xbf16, #tpu.memory_space<vmem>>, %arg18: memref<2x1x32xf32, #tpu.memory_space<vmem>>, %arg19: memref<2x1x32xf32, #tpu.memory_space<vmem>>, %arg20: memref<2x1x32xf32, #tpu.memory_space<vmem>>, %arg21: memref<2x1x32xf32, #tpu.memory_space<vmem>>, %arg22: memref<2x1x32xf32, #tpu.memory_space<vmem>>, %arg23: memref<2x32x1024xbf16, #tpu.memory_space<vmem>>, %arg24: memref<2x1x1024xf32, #tpu.memory_space<vmem>>, %arg25: memref<2x1024x32xbf16, #tpu.memory_space<vmem>>, %arg26: memref<2x1x32xf32, #tpu.memory_space<vmem>>, %arg27: memref<32x9xbf16, #tpu.memory_space<vmem>>, %arg28: memref<1x9xf32, #tpu.memory_space<vmem>>, %arg29: memref<1x8x32xf32, #tpu.memory_space<vmem>>, %arg30: memref<1x1x9xf32, #tpu.memory_space<vmem>>) attributes {dimension_semantics = [#tpu.dimension_semantics<parallel>], iteration_bounds = array<i64: 2>, scalar_prefetch = 0 : i64, scratch_operands = 0 : i64, tpu.core_type = #tpu.core_type<tc>, window_params = [{transform_indices = @transform_0, window_bounds = array<i64: 1, 8, 32>}, {transform_indices = @transform_1, window_bounds = array<i64: 1, 8, 32>}, {transform_indices = @transform_2, window_bounds = array<i64: 1, 1, 9>}, {transform_indices = @transform_3, window_bounds = array<i64: 1, 1, 9>}, {pipeline_mode = #tpu.pipeline_mode<synchronous>, transform_indices = @transform_4, window_bounds = array<i64: 32, 32>}, {pipeline_mode = #tpu.pipeline_mode<synchronous>, transform_indices = @transform_5, window_bounds = array<i64: 32, 32>}, {pipeline_mode = #tpu.pipeline_mode<synchronous>, transform_indices = @transform_6, window_bounds = array<i64: 1, 32>}, {pipeline_mode = #tpu.pipeline_mode<synchronous>, transform_indices = @transform_7, window_bounds = array<i64: 9, 32>}, {pipeline_mode = #tpu.pipeline_mode<synchronous>, transform_indices = @transform_8, window_bounds = array<i64: 9, 32>}, {pipeline_mode = #tpu.pipeline_mode<synchronous>, transform_indices = @transform_9, window_bounds = array<i64: 1, 32>}, {pipeline_mode = #tpu.pipeline_mode<synchronous>, transform_indices = @transform_10, window_bounds = array<i64: 2, 32, 32>}, {pipeline_mode = #tpu.pipeline_mode<synchronous>, transform_indices = @transform_11, window_bounds = array<i64: 2, 1, 32>}, {pipeline_mode = #tpu.pipeline_mode<synchronous>, transform_indices = @transform_12, window_bounds = array<i64: 2, 32, 32>}, {pipeline_mode = #tpu.pipeline_mode<synchronous>, transform_indices = @transform_13, window_bounds = array<i64: 2, 1, 32>}, {pipeline_mode = #tpu.pipeline_mode<synchronous>, transform_indices = @transform_14, window_bounds = array<i64: 2, 32, 32>}, {pipeline_mode = #tpu.pipeline_mode<synchronous>, transform_indices = @transform_15, window_bounds = array<i64: 2, 1, 32>}, {pipeline_mode = #tpu.pipeline_mode<synchronous>, transform_indices = @transform_16, window_bounds = array<i64: 2, 32, 32>}, {pipeline_mode = #tpu.pipeline_mode<synchronous>, transform_indices = @transform_17, window_bounds = array<i64: 2, 1, 32>}, {pipeline_mode = #tpu.pipeline_mode<synchronous>, transform_indices = @transform_18, window_bounds = array<i64: 2, 1, 32>}, {pipeline_mode = #tpu.pipeline_mode<synchronous>, transform_indices = @transform_19, window_bounds = array<i64: 2, 1, 32>}, {pipeline_mode = #tpu.pipeline_mode<synchronous>, transform_indices = @transform_20, window_bounds = array<i64: 2, 1, 32>}, {pipeline_mode = #tpu.pipeline_mode<synchronous>, transform_indices = @transform_21, window_bounds = array<i64: 2, 1, 32>}, {pipeline_mode = #tpu.pipeline_mode<synchronous>, transform_indices = @transform_22, window_bounds = array<i64: 2, 32, 1024>}, {pipeline_mode = #tpu.pipeline_mode<synchronous>, transform_indices = @transform_23, window_bounds = array<i64: 2, 1, 1024>}, {pipeline_mode = #tpu.pipeline_mode<synchronous>, transform_indices = @transform_24, window_bounds = array<i64: 2, 1024, 32>}, {pipeline_mode = #tpu.pipeline_mode<synchronous>, transform_indices = @transform_25, window_bounds = array<i64: 2, 1, 32>}, {pipeline_mode = #tpu.pipeline_mode<synchronous>, transform_indices = @transform_26, window_bounds = array<i64: 32, 9>}, {pipeline_mode = #tpu.pipeline_mode<synchronous>, transform_indices = @transform_27, window_bounds = array<i64: 1, 9>}, {transform_indices = @transform_28, window_bounds = array<i64: 1, 8, 32>}, {transform_indices = @transform_29, window_bounds = array<i64: 1, 1, 9>}]} {
    %c0 = arith.constant 0 : index
    %c0_0 = arith.constant 0 : index
    %c0_1 = arith.constant 0 : index
    %0 = vector.load %arg1[%c0, %c0_0, %c0_1] : memref<1x8x32xf32, #tpu.memory_space<vmem>>, vector<1x8x32xf32>
    %1 = vector.shape_cast %0 : vector<1x8x32xf32> to vector<8x32xf32>
    %c0_2 = arith.constant 0 : index
    %c0_3 = arith.constant 0 : index
    %2 = vector.load %arg5[%c0_2, %c0_3] : memref<32x32xbf16, #tpu.memory_space<vmem>>, vector<32x32xbf16>
    %3 = arith.truncf %1 : vector<8x32xf32> to vector<8x32xbf16>
    %cst = arith.constant dense<0.000000e+00> : vector<8x32xf32>
    %4 = tpu.matmul %3, %2, %cst {dimension_numbers = #tpu.dot_dimension_numbers<[1], [0], [0], [1], [0, 0, 1, 1], [], []>} : vector<8x32xbf16>, vector<32x32xbf16>, vector<8x32xf32> -> vector<8x32xf32>
    %c0_4 = arith.constant 0 : index
    %c0_5 = arith.constant 0 : index
    %c0_6 = arith.constant 0 : index
    %5 = vector.load %arg2[%c0_4, %c0_5, %c0_6] : memref<1x8x32xf32, #tpu.memory_space<vmem>>, vector<1x8x32xf32>
    %6 = vector.shape_cast %5 : vector<1x8x32xf32> to vector<8x32xf32>
    %c0_7 = arith.constant 0 : index
    %c0_8 = arith.constant 0 : index
    %7 = vector.load %arg6[%c0_7, %c0_8] : memref<32x32xbf16, #tpu.memory_space<vmem>>, vector<32x32xbf16>
    %8 = arith.truncf %6 : vector<8x32xf32> to vector<8x32xbf16>
    %cst_9 = arith.constant dense<0.000000e+00> : vector<8x32xf32>
    %9 = tpu.matmul %8, %7, %cst_9 {dimension_numbers = #tpu.dot_dimension_numbers<[1], [0], [0], [1], [0, 0, 1, 1], [], []>} : vector<8x32xbf16>, vector<32x32xbf16>, vector<8x32xf32> -> vector<8x32xf32>
    %10 = arith.addf %4, %9 : vector<8x32xf32>
    %c0_10 = arith.constant 0 : index
    %c0_11 = arith.constant 0 : index
    %11 = vector.load %arg7[%c0_10, %c0_11] : memref<1x32xf32, #tpu.memory_space<vmem>>, vector<1x32xf32>
    %12 = vector.broadcast %11 : vector<1x32xf32> to vector<8x32xf32>
    %13 = arith.addf %10, %12 : vector<8x32xf32>
    %c0_12 = arith.constant 0 : index
    %c0_13 = arith.constant 0 : index
    %c0_14 = arith.constant 0 : index
    %14 = vector.load %arg3[%c0_12, %c0_13, %c0_14] : memref<1x1x9xf32, #tpu.memory_space<vmem>>, vector<1x1x9xf32>
    %15 = vector.shape_cast %14 : vector<1x1x9xf32> to vector<1x9xf32>
    %c0_15 = arith.constant 0 : index
    %c0_16 = arith.constant 0 : index
    %16 = vector.load %arg8[%c0_15, %c0_16] : memref<9x32xbf16, #tpu.memory_space<vmem>>, vector<9x32xbf16>
    %17 = arith.truncf %15 : vector<1x9xf32> to vector<1x9xbf16>
    %cst_17 = arith.constant dense<0.000000e+00> : vector<1x32xf32>
    %18 = tpu.matmul %17, %16, %cst_17 {dimension_numbers = #tpu.dot_dimension_numbers<[1], [0], [0], [1], [0, 0, 1, 1], [], []>} : vector<1x9xbf16>, vector<9x32xbf16>, vector<1x32xf32> -> vector<1x32xf32>
    %c0_18 = arith.constant 0 : index
    %c0_19 = arith.constant 0 : index
    %c0_20 = arith.constant 0 : index
    %19 = vector.load %arg4[%c0_18, %c0_19, %c0_20] : memref<1x1x9xf32, #tpu.memory_space<vmem>>, vector<1x1x9xf32>
    %20 = vector.shape_cast %19 : vector<1x1x9xf32> to vector<1x9xf32>
    %c0_21 = arith.constant 0 : index
    %c0_22 = arith.constant 0 : index
    %21 = vector.load %arg9[%c0_21, %c0_22] : memref<9x32xbf16, #tpu.memory_space<vmem>>, vector<9x32xbf16>
    %22 = arith.truncf %20 : vector<1x9xf32> to vector<1x9xbf16>
    %cst_23 = arith.constant dense<0.000000e+00> : vector<1x32xf32>
    %23 = tpu.matmul %22, %21, %cst_23 {dimension_numbers = #tpu.dot_dimension_numbers<[1], [0], [0], [1], [0, 0, 1, 1], [], []>} : vector<1x9xbf16>, vector<9x32xbf16>, vector<1x32xf32> -> vector<1x32xf32>
    %24 = arith.addf %18, %23 : vector<1x32xf32>
    %c0_24 = arith.constant 0 : index
    %c0_25 = arith.constant 0 : index
    %25 = vector.load %arg10[%c0_24, %c0_25] : memref<1x32xf32, #tpu.memory_space<vmem>>, vector<1x32xf32>
    %26 = arith.addf %24, %25 : vector<1x32xf32>
    %27 = tpu.concatenate %13, %26 in 0 : vector<8x32xf32>, vector<1x32xf32> -> vector<9x32xf32>
    %c0_26 = arith.constant 0 : index
    %c0_27 = arith.constant 0 : index
    %c0_28 = arith.constant 0 : index
    %28 = vector.load %arg11[%c0_26, %c0_27, %c0_28] : memref<2x32x32xbf16, #tpu.memory_space<vmem>>, vector<1x32x32xbf16>
    %29 = vector.shape_cast %28 : vector<1x32x32xbf16> to vector<32x32xbf16>
    %30 = arith.truncf %27 : vector<9x32xf32> to vector<9x32xbf16>
    %cst_29 = arith.constant dense<0.000000e+00> : vector<9x32xf32>
    %31 = tpu.matmul %30, %29, %cst_29 {dimension_numbers = #tpu.dot_dimension_numbers<[1], [0], [0], [1], [0, 0, 1, 1], [], []>} : vector<9x32xbf16>, vector<32x32xbf16>, vector<9x32xf32> -> vector<9x32xf32>
    %c0_30 = arith.constant 0 : index
    %c0_31 = arith.constant 0 : index
    %c0_32 = arith.constant 0 : index
    %32 = vector.load %arg12[%c0_30, %c0_31, %c0_32] : memref<2x1x32xf32, #tpu.memory_space<vmem>>, vector<1x1x32xf32>
    %33 = vector.shape_cast %32 : vector<1x1x32xf32> to vector<1x32xf32>
    %34 = vector.broadcast %33 : vector<1x32xf32> to vector<9x32xf32>
    %35 = arith.addf %31, %34 : vector<9x32xf32>
    %36 = vector.shape_cast %35 : vector<9x32xf32> to vector<9x4x8xf32>
    %37 = arith.truncf %36 : vector<9x4x8xf32> to vector<9x4x8xbf16>
    %c0_33 = arith.constant 0 : index
    %c0_34 = arith.constant 0 : index
    %c0_35 = arith.constant 0 : index
    %38 = vector.load %arg13[%c0_33, %c0_34, %c0_35] : memref<2x32x32xbf16, #tpu.memory_space<vmem>>, vector<1x32x32xbf16>
    %39 = vector.shape_cast %38 : vector<1x32x32xbf16> to vector<32x32xbf16>
    %40 = arith.truncf %27 : vector<9x32xf32> to vector<9x32xbf16>
    %cst_36 = arith.constant dense<0.000000e+00> : vector<9x32xf32>
    %41 = tpu.matmul %40, %39, %cst_36 {dimension_numbers = #tpu.dot_dimension_numbers<[1], [0], [0], [1], [0, 0, 1, 1], [], []>} : vector<9x32xbf16>, vector<32x32xbf16>, vector<9x32xf32> -> vector<9x32xf32>
    %c0_37 = arith.constant 0 : index
    %c0_38 = arith.constant 0 : index
    %c0_39 = arith.constant 0 : index
    %42 = vector.load %arg14[%c0_37, %c0_38, %c0_39] : memref<2x1x32xf32, #tpu.memory_space<vmem>>, vector<1x1x32xf32>
    %43 = vector.shape_cast %42 : vector<1x1x32xf32> to vector<1x32xf32>
    %44 = vector.broadcast %43 : vector<1x32xf32> to vector<9x32xf32>
    %45 = arith.addf %41, %44 : vector<9x32xf32>
    %46 = vector.shape_cast %45 : vector<9x32xf32> to vector<9x4x8xf32>
    %47 = arith.truncf %46 : vector<9x4x8xf32> to vector<9x4x8xbf16>
    %c0_40 = arith.constant 0 : index
    %c0_41 = arith.constant 0 : index
    %c0_42 = arith.constant 0 : index
    %48 = vector.load %arg15[%c0_40, %c0_41, %c0_42] : memref<2x32x32xbf16, #tpu.memory_space<vmem>>, vector<1x32x32xbf16>
    %49 = vector.shape_cast %48 : vector<1x32x32xbf16> to vector<32x32xbf16>
    %50 = arith.truncf %27 : vector<9x32xf32> to vector<9x32xbf16>
    %cst_43 = arith.constant dense<0.000000e+00> : vector<9x32xf32>
    %51 = tpu.matmul %50, %49, %cst_43 {dimension_numbers = #tpu.dot_dimension_numbers<[1], [0], [0], [1], [0, 0, 1, 1], [], []>} : vector<9x32xbf16>, vector<32x32xbf16>, vector<9x32xf32> -> vector<9x32xf32>
    %c0_44 = arith.constant 0 : index
    %c0_45 = arith.constant 0 : index
    %c0_46 = arith.constant 0 : index
    %52 = vector.load %arg16[%c0_44, %c0_45, %c0_46] : memref<2x1x32xf32, #tpu.memory_space<vmem>>, vector<1x1x32xf32>
    %53 = vector.shape_cast %52 : vector<1x1x32xf32> to vector<1x32xf32>
    %54 = vector.broadcast %53 : vector<1x32xf32> to vector<9x32xf32>
    %55 = arith.addf %51, %54 : vector<9x32xf32>
    %56 = vector.shape_cast %55 : vector<9x32xf32> to vector<9x4x8xf32>
    %57 = arith.truncf %56 : vector<9x4x8xf32> to vector<9x4x8xbf16>
    "tpu.trace_start"() <{level = 10 : i32, message = "qhd,khd->hqk"}> : () -> ()
    %cst_47 = arith.constant dense<0.000000e+00> : vector<4x9x9xf32>
    %58 = tpu.matmul %37, %47, %cst_47 {dimension_numbers = #tpu.dot_dimension_numbers<[2], [2], [0], [0], [0, 1, 0, 0, 1, 0], [1], [1]>} : vector<9x4x8xbf16>, vector<9x4x8xbf16>, vector<4x9x9xf32> -> vector<4x9x9xf32>
    "tpu.trace_stop"() : () -> ()
    %cst_48 = arith.constant dense<0xFF800000> : vector<4x9xf32>
    %59 = vector.multi_reduction <maximumf>, %58, %cst_48 [2] : vector<4x9x9xf32> to vector<4x9xf32>
    %60 = vector.shape_cast %59 : vector<4x9xf32> to vector<4x9x1xf32>
    %61 = vector.broadcast %60 : vector<4x9x1xf32> to vector<4x9x9xf32>
    %62 = arith.subf %58, %61 : vector<4x9x9xf32>
    %63 = math.exp %62 : vector<4x9x9xf32>
    %cst_49 = arith.constant dense<0.000000e+00> : vector<4x9xf32>
    %64 = vector.multi_reduction <add>, %63, %cst_49 [2] : vector<4x9x9xf32> to vector<4x9xf32>
    %65 = vector.shape_cast %64 : vector<4x9xf32> to vector<4x9x1xf32>
    %66 = tpu.reciprocal %65 {approx = true} : vector<4x9x1xf32> -> vector<4x9x1xf32>
    %67 = vector.broadcast %66 : vector<4x9x1xf32> to vector<4x9x9xf32>
    %68 = arith.mulf %63, %67 : vector<4x9x9xf32>
    %69 = arith.truncf %68 : vector<4x9x9xf32> to vector<4x9x9xbf16>
    "tpu.trace_start"() <{level = 10 : i32, message = "hqk,khd->qhd"}> : () -> ()
    %cst_50 = arith.constant dense<0.000000e+00> : vector<4x8x9xf32>
    %70 = tpu.matmul %57, %69, %cst_50 {dimension_numbers = #tpu.dot_dimension_numbers<[0], [2], [2], [1], [0, 1, 0, 2, 1, 1], [1], [0]>} : vector<9x4x8xbf16>, vector<4x9x9xbf16>, vector<4x8x9xf32> -> vector<4x8x9xf32>
    %71 = tpu.transpose %70, [2, 0, 1] : vector<4x8x9xf32> -> vector<9x4x8xf32>
    "tpu.trace_stop"() : () -> ()
    %72 = vector.shape_cast %71 : vector<9x4x8xf32> to vector<9x32xf32>
    %c0_51 = arith.constant 0 : index
    %c0_52 = arith.constant 0 : index
    %c0_53 = arith.constant 0 : index
    %73 = vector.load %arg17[%c0_51, %c0_52, %c0_53] : memref<2x32x32xbf16, #tpu.memory_space<vmem>>, vector<1x32x32xbf16>
    %74 = vector.shape_cast %73 : vector<1x32x32xbf16> to vector<32x32xbf16>
    %75 = arith.truncf %72 : vector<9x32xf32> to vector<9x32xbf16>
    %cst_54 = arith.constant dense<0.000000e+00> : vector<9x32xf32>
    %76 = tpu.matmul %75, %74, %cst_54 {dimension_numbers = #tpu.dot_dimension_numbers<[1], [0], [0], [1], [0, 0, 1, 1], [], []>} : vector<9x32xbf16>, vector<32x32xbf16>, vector<9x32xf32> -> vector<9x32xf32>
    %c0_55 = arith.constant 0 : index
    %c0_56 = arith.constant 0 : index
    %c0_57 = arith.constant 0 : index
    %77 = vector.load %arg18[%c0_55, %c0_56, %c0_57] : memref<2x1x32xf32, #tpu.memory_space<vmem>>, vector<1x1x32xf32>
    %78 = vector.shape_cast %77 : vector<1x1x32xf32> to vector<1x32xf32>
    %79 = vector.broadcast %78 : vector<1x32xf32> to vector<9x32xf32>
    %80 = arith.addf %76, %79 : vector<9x32xf32>
    %81 = arith.addf %27, %80 : vector<9x32xf32>
    %c0_58 = arith.constant 0 : index
    %c0_59 = arith.constant 0 : index
    %c0_60 = arith.constant 0 : index
    %82 = vector.load %arg19[%c0_58, %c0_59, %c0_60] : memref<2x1x32xf32, #tpu.memory_space<vmem>>, vector<1x1x32xf32>
    %83 = vector.shape_cast %82 : vector<1x1x32xf32> to vector<1x32xf32>
    %c0_61 = arith.constant 0 : index
    %c0_62 = arith.constant 0 : index
    %c0_63 = arith.constant 0 : index
    %84 = vector.load %arg20[%c0_61, %c0_62, %c0_63] : memref<2x1x32xf32, #tpu.memory_space<vmem>>, vector<1x1x32xf32>
    %85 = vector.shape_cast %84 : vector<1x1x32xf32> to vector<1x32xf32>
    %cst_64 = arith.constant dense<0.000000e+00> : vector<9xf32>
    %86 = vector.multi_reduction <add>, %81, %cst_64 [1] : vector<9x32xf32> to vector<9xf32>
    %87 = vector.shape_cast %86 : vector<9xf32> to vector<9x1xf32>
    %cst_65 = arith.constant 3.200000e+01 : f32
    %88 = vector.broadcast %cst_65 : f32 to vector<9x1xf32>
    %89 = arith.divf %87, %88 : vector<9x1xf32>
    %90 = vector.broadcast %89 : vector<9x1xf32> to vector<9x32xf32>
    %91 = arith.subf %81, %90 : vector<9x32xf32>
    %92 = arith.mulf %91, %91 : vector<9x32xf32>
    %cst_66 = arith.constant dense<0.000000e+00> : vector<9xf32>
    %93 = vector.multi_reduction <add>, %92, %cst_66 [1] : vector<9x32xf32> to vector<9xf32>
    %94 = vector.shape_cast %93 : vector<9xf32> to vector<9x1xf32>
    %cst_67 = arith.constant 3.200000e+01 : f32
    %95 = vector.broadcast %cst_67 : f32 to vector<9x1xf32>
    %96 = arith.divf %94, %95 : vector<9x1xf32>
    %97 = vector.broadcast %89 : vector<9x1xf32> to vector<9x32xf32>
    %98 = arith.subf %81, %97 : vector<9x32xf32>
    %cst_68 = arith.constant 9.99999974E-6 : f32
    %99 = vector.broadcast %cst_68 : f32 to vector<9x1xf32>
    %100 = arith.addf %96, %99 : vector<9x1xf32>
    %101 = math.rsqrt %100 : vector<9x1xf32>
    %102 = vector.broadcast %101 : vector<9x1xf32> to vector<9x32xf32>
    %103 = arith.mulf %98, %102 : vector<9x32xf32>
    %104 = vector.broadcast %83 : vector<1x32xf32> to vector<9x32xf32>
    %105 = arith.mulf %103, %104 : vector<9x32xf32>
    %106 = vector.broadcast %85 : vector<1x32xf32> to vector<9x32xf32>
    %107 = arith.addf %105, %106 : vector<9x32xf32>
    %c0_69 = arith.constant 0 : index
    %c0_70 = arith.constant 0 : index
    %c0_71 = arith.constant 0 : index
    %108 = vector.load %arg23[%c0_69, %c0_70, %c0_71] : memref<2x32x1024xbf16, #tpu.memory_space<vmem>>, vector<1x32x1024xbf16>
    %109 = vector.shape_cast %108 : vector<1x32x1024xbf16> to vector<32x1024xbf16>
    %110 = arith.truncf %107 : vector<9x32xf32> to vector<9x32xbf16>
    %cst_72 = arith.constant dense<0.000000e+00> : vector<9x1024xf32>
    %111 = tpu.matmul %110, %109, %cst_72 {dimension_numbers = #tpu.dot_dimension_numbers<[1], [0], [0], [1], [0, 0, 1, 1], [], []>} : vector<9x32xbf16>, vector<32x1024xbf16>, vector<9x1024xf32> -> vector<9x1024xf32>
    %c0_73 = arith.constant 0 : index
    %c0_74 = arith.constant 0 : index
    %c0_75 = arith.constant 0 : index
    %112 = vector.load %arg24[%c0_73, %c0_74, %c0_75] : memref<2x1x1024xf32, #tpu.memory_space<vmem>>, vector<1x1x1024xf32>
    %113 = vector.shape_cast %112 : vector<1x1x1024xf32> to vector<1x1024xf32>
    %114 = vector.broadcast %113 : vector<1x1024xf32> to vector<9x1024xf32>
    %115 = arith.addf %111, %114 : vector<9x1024xf32>
    %cst_76 = arith.constant 5.000000e-01 : f32
    %116 = vector.broadcast %cst_76 : f32 to vector<9x1024xf32>
    %117 = arith.mulf %116, %115 : vector<9x1024xf32>
    %cst_77 = arith.constant 0.707106769 : f32
    %118 = vector.broadcast %cst_77 : f32 to vector<9x1024xf32>
    %119 = arith.mulf %115, %118 : vector<9x1024xf32>
    %120 = math.erf %119 : vector<9x1024xf32>
    %cst_78 = arith.constant 1.000000e+00 : f32
    %121 = vector.broadcast %cst_78 : f32 to vector<9x1024xf32>
    %122 = arith.addf %121, %120 : vector<9x1024xf32>
    %123 = arith.mulf %117, %122 : vector<9x1024xf32>
    %c0_79 = arith.constant 0 : index
    %c0_80 = arith.constant 0 : index
    %c0_81 = arith.constant 0 : index
    %124 = vector.load %arg25[%c0_79, %c0_80, %c0_81] : memref<2x1024x32xbf16, #tpu.memory_space<vmem>>, vector<1x1024x32xbf16>
    %125 = vector.shape_cast %124 : vector<1x1024x32xbf16> to vector<1024x32xbf16>
    %126 = arith.truncf %123 : vector<9x1024xf32> to vector<9x1024xbf16>
    %cst_82 = arith.constant dense<0.000000e+00> : vector<9x32xf32>
    %127 = tpu.matmul %126, %125, %cst_82 {dimension_numbers = #tpu.dot_dimension_numbers<[1], [0], [0], [1], [0, 0, 1, 1], [], []>} : vector<9x1024xbf16>, vector<1024x32xbf16>, vector<9x32xf32> -> vector<9x32xf32>
    %c0_83 = arith.constant 0 : index
    %c0_84 = arith.constant 0 : index
    %c0_85 = arith.constant 0 : index
    %128 = vector.load %arg26[%c0_83, %c0_84, %c0_85] : memref<2x1x32xf32, #tpu.memory_space<vmem>>, vector<1x1x32xf32>
    %129 = vector.shape_cast %128 : vector<1x1x32xf32> to vector<1x32xf32>
    %130 = vector.broadcast %129 : vector<1x32xf32> to vector<9x32xf32>
    %131 = arith.addf %127, %130 : vector<9x32xf32>
    %132 = arith.addf %107, %131 : vector<9x32xf32>
    %c0_86 = arith.constant 0 : index
    %c0_87 = arith.constant 0 : index
    %c0_88 = arith.constant 0 : index
    %133 = vector.load %arg21[%c0_86, %c0_87, %c0_88] : memref<2x1x32xf32, #tpu.memory_space<vmem>>, vector<1x1x32xf32>
    %134 = vector.shape_cast %133 : vector<1x1x32xf32> to vector<1x32xf32>
    %c0_89 = arith.constant 0 : index
    %c0_90 = arith.constant 0 : index
    %c0_91 = arith.constant 0 : index
    %135 = vector.load %arg22[%c0_89, %c0_90, %c0_91] : memref<2x1x32xf32, #tpu.memory_space<vmem>>, vector<1x1x32xf32>
    %136 = vector.shape_cast %135 : vector<1x1x32xf32> to vector<1x32xf32>
    %cst_92 = arith.constant dense<0.000000e+00> : vector<9xf32>
    %137 = vector.multi_reduction <add>, %132, %cst_92 [1] : vector<9x32xf32> to vector<9xf32>
    %138 = vector.shape_cast %137 : vector<9xf32> to vector<9x1xf32>
    %cst_93 = arith.constant 3.200000e+01 : f32
    %139 = vector.broadcast %cst_93 : f32 to vector<9x1xf32>
    %140 = arith.divf %138, %139 : vector<9x1xf32>
    %141 = vector.broadcast %140 : vector<9x1xf32> to vector<9x32xf32>
    %142 = arith.subf %132, %141 : vector<9x32xf32>
    %143 = arith.mulf %142, %142 : vector<9x32xf32>
    %cst_94 = arith.constant dense<0.000000e+00> : vector<9xf32>
    %144 = vector.multi_reduction <add>, %143, %cst_94 [1] : vector<9x32xf32> to vector<9xf32>
    %145 = vector.shape_cast %144 : vector<9xf32> to vector<9x1xf32>
    %cst_95 = arith.constant 3.200000e+01 : f32
    %146 = vector.broadcast %cst_95 : f32 to vector<9x1xf32>
    %147 = arith.divf %145, %146 : vector<9x1xf32>
    %148 = vector.broadcast %140 : vector<9x1xf32> to vector<9x32xf32>
    %149 = arith.subf %132, %148 : vector<9x32xf32>
    %cst_96 = arith.constant 9.99999974E-6 : f32
    %150 = vector.broadcast %cst_96 : f32 to vector<9x1xf32>
    %151 = arith.addf %147, %150 : vector<9x1xf32>
    %152 = math.rsqrt %151 : vector<9x1xf32>
    %153 = vector.broadcast %152 : vector<9x1xf32> to vector<9x32xf32>
    %154 = arith.mulf %149, %153 : vector<9x32xf32>
    %155 = vector.broadcast %134 : vector<1x32xf32> to vector<9x32xf32>
    %156 = arith.mulf %154, %155 : vector<9x32xf32>
    %157 = vector.broadcast %136 : vector<1x32xf32> to vector<9x32xf32>
    %158 = arith.addf %156, %157 : vector<9x32xf32>
    %c1 = arith.constant 1 : index
    %c0_97 = arith.constant 0 : index
    %c0_98 = arith.constant 0 : index
    %159 = vector.load %arg11[%c1, %c0_97, %c0_98] : memref<2x32x32xbf16, #tpu.memory_space<vmem>>, vector<1x32x32xbf16>
    %160 = vector.shape_cast %159 : vector<1x32x32xbf16> to vector<32x32xbf16>
    %161 = arith.truncf %158 : vector<9x32xf32> to vector<9x32xbf16>
    %cst_99 = arith.constant dense<0.000000e+00> : vector<9x32xf32>
    %162 = tpu.matmul %161, %160, %cst_99 {dimension_numbers = #tpu.dot_dimension_numbers<[1], [0], [0], [1], [0, 0, 1, 1], [], []>} : vector<9x32xbf16>, vector<32x32xbf16>, vector<9x32xf32> -> vector<9x32xf32>
    %c1_100 = arith.constant 1 : index
    %c0_101 = arith.constant 0 : index
    %c0_102 = arith.constant 0 : index
    %163 = vector.load %arg12[%c1_100, %c0_101, %c0_102] : memref<2x1x32xf32, #tpu.memory_space<vmem>>, vector<1x1x32xf32>
    %164 = vector.shape_cast %163 : vector<1x1x32xf32> to vector<1x32xf32>
    %165 = vector.broadcast %164 : vector<1x32xf32> to vector<9x32xf32>
    %166 = arith.addf %162, %165 : vector<9x32xf32>
    %167 = vector.shape_cast %166 : vector<9x32xf32> to vector<9x4x8xf32>
    %168 = arith.truncf %167 : vector<9x4x8xf32> to vector<9x4x8xbf16>
    %c1_103 = arith.constant 1 : index
    %c0_104 = arith.constant 0 : index
    %c0_105 = arith.constant 0 : index
    %169 = vector.load %arg13[%c1_103, %c0_104, %c0_105] : memref<2x32x32xbf16, #tpu.memory_space<vmem>>, vector<1x32x32xbf16>
    %170 = vector.shape_cast %169 : vector<1x32x32xbf16> to vector<32x32xbf16>
    %171 = arith.truncf %158 : vector<9x32xf32> to vector<9x32xbf16>
    %cst_106 = arith.constant dense<0.000000e+00> : vector<9x32xf32>
    %172 = tpu.matmul %171, %170, %cst_106 {dimension_numbers = #tpu.dot_dimension_numbers<[1], [0], [0], [1], [0, 0, 1, 1], [], []>} : vector<9x32xbf16>, vector<32x32xbf16>, vector<9x32xf32> -> vector<9x32xf32>
    %c1_107 = arith.constant 1 : index
    %c0_108 = arith.constant 0 : index
    %c0_109 = arith.constant 0 : index
    %173 = vector.load %arg14[%c1_107, %c0_108, %c0_109] : memref<2x1x32xf32, #tpu.memory_space<vmem>>, vector<1x1x32xf32>
    %174 = vector.shape_cast %173 : vector<1x1x32xf32> to vector<1x32xf32>
    %175 = vector.broadcast %174 : vector<1x32xf32> to vector<9x32xf32>
    %176 = arith.addf %172, %175 : vector<9x32xf32>
    %177 = vector.shape_cast %176 : vector<9x32xf32> to vector<9x4x8xf32>
    %178 = arith.truncf %177 : vector<9x4x8xf32> to vector<9x4x8xbf16>
    %c1_110 = arith.constant 1 : index
    %c0_111 = arith.constant 0 : index
    %c0_112 = arith.constant 0 : index
    %179 = vector.load %arg15[%c1_110, %c0_111, %c0_112] : memref<2x32x32xbf16, #tpu.memory_space<vmem>>, vector<1x32x32xbf16>
    %180 = vector.shape_cast %179 : vector<1x32x32xbf16> to vector<32x32xbf16>
    %181 = arith.truncf %158 : vector<9x32xf32> to vector<9x32xbf16>
    %cst_113 = arith.constant dense<0.000000e+00> : vector<9x32xf32>
    %182 = tpu.matmul %181, %180, %cst_113 {dimension_numbers = #tpu.dot_dimension_numbers<[1], [0], [0], [1], [0, 0, 1, 1], [], []>} : vector<9x32xbf16>, vector<32x32xbf16>, vector<9x32xf32> -> vector<9x32xf32>
    %c1_114 = arith.constant 1 : index
    %c0_115 = arith.constant 0 : index
    %c0_116 = arith.constant 0 : index
    %183 = vector.load %arg16[%c1_114, %c0_115, %c0_116] : memref<2x1x32xf32, #tpu.memory_space<vmem>>, vector<1x1x32xf32>
    %184 = vector.shape_cast %183 : vector<1x1x32xf32> to vector<1x32xf32>
    %185 = vector.broadcast %184 : vector<1x32xf32> to vector<9x32xf32>
    %186 = arith.addf %182, %185 : vector<9x32xf32>
    %187 = vector.shape_cast %186 : vector<9x32xf32> to vector<9x4x8xf32>
    %188 = arith.truncf %187 : vector<9x4x8xf32> to vector<9x4x8xbf16>
    "tpu.trace_start"() <{level = 10 : i32, message = "qhd,khd->hqk"}> : () -> ()
    %cst_117 = arith.constant dense<0.000000e+00> : vector<4x9x9xf32>
    %189 = tpu.matmul %168, %178, %cst_117 {dimension_numbers = #tpu.dot_dimension_numbers<[2], [2], [0], [0], [0, 1, 0, 0, 1, 0], [1], [1]>} : vector<9x4x8xbf16>, vector<9x4x8xbf16>, vector<4x9x9xf32> -> vector<4x9x9xf32>
    "tpu.trace_stop"() : () -> ()
    %cst_118 = arith.constant dense<0xFF800000> : vector<4x9xf32>
    %190 = vector.multi_reduction <maximumf>, %189, %cst_118 [2] : vector<4x9x9xf32> to vector<4x9xf32>
    %191 = vector.shape_cast %190 : vector<4x9xf32> to vector<4x9x1xf32>
    %192 = vector.broadcast %191 : vector<4x9x1xf32> to vector<4x9x9xf32>
    %193 = arith.subf %189, %192 : vector<4x9x9xf32>
    %194 = math.exp %193 : vector<4x9x9xf32>
    %cst_119 = arith.constant dense<0.000000e+00> : vector<4x9xf32>
    %195 = vector.multi_reduction <add>, %194, %cst_119 [2] : vector<4x9x9xf32> to vector<4x9xf32>
    %196 = vector.shape_cast %195 : vector<4x9xf32> to vector<4x9x1xf32>
    %197 = tpu.reciprocal %196 {approx = true} : vector<4x9x1xf32> -> vector<4x9x1xf32>
    %198 = vector.broadcast %197 : vector<4x9x1xf32> to vector<4x9x9xf32>
    %199 = arith.mulf %194, %198 : vector<4x9x9xf32>
    %200 = arith.truncf %199 : vector<4x9x9xf32> to vector<4x9x9xbf16>
    "tpu.trace_start"() <{level = 10 : i32, message = "hqk,khd->qhd"}> : () -> ()
    %cst_120 = arith.constant dense<0.000000e+00> : vector<4x8x9xf32>
    %201 = tpu.matmul %188, %200, %cst_120 {dimension_numbers = #tpu.dot_dimension_numbers<[0], [2], [2], [1], [0, 1, 0, 2, 1, 1], [1], [0]>} : vector<9x4x8xbf16>, vector<4x9x9xbf16>, vector<4x8x9xf32> -> vector<4x8x9xf32>
    %202 = tpu.transpose %201, [2, 0, 1] : vector<4x8x9xf32> -> vector<9x4x8xf32>
    "tpu.trace_stop"() : () -> ()
    %203 = vector.shape_cast %202 : vector<9x4x8xf32> to vector<9x32xf32>
    %c1_121 = arith.constant 1 : index
    %c0_122 = arith.constant 0 : index
    %c0_123 = arith.constant 0 : index
    %204 = vector.load %arg17[%c1_121, %c0_122, %c0_123] : memref<2x32x32xbf16, #tpu.memory_space<vmem>>, vector<1x32x32xbf16>
    %205 = vector.shape_cast %204 : vector<1x32x32xbf16> to vector<32x32xbf16>
    %206 = arith.truncf %203 : vector<9x32xf32> to vector<9x32xbf16>
    %cst_124 = arith.constant dense<0.000000e+00> : vector<9x32xf32>
    %207 = tpu.matmul %206, %205, %cst_124 {dimension_numbers = #tpu.dot_dimension_numbers<[1], [0], [0], [1], [0, 0, 1, 1], [], []>} : vector<9x32xbf16>, vector<32x32xbf16>, vector<9x32xf32> -> vector<9x32xf32>
    %c1_125 = arith.constant 1 : index
    %c0_126 = arith.constant 0 : index
    %c0_127 = arith.constant 0 : index
    %208 = vector.load %arg18[%c1_125, %c0_126, %c0_127] : memref<2x1x32xf32, #tpu.memory_space<vmem>>, vector<1x1x32xf32>
    %209 = vector.shape_cast %208 : vector<1x1x32xf32> to vector<1x32xf32>
    %210 = vector.broadcast %209 : vector<1x32xf32> to vector<9x32xf32>
    %211 = arith.addf %207, %210 : vector<9x32xf32>
    %212 = arith.addf %158, %211 : vector<9x32xf32>
    %c1_128 = arith.constant 1 : index
    %c0_129 = arith.constant 0 : index
    %c0_130 = arith.constant 0 : index
    %213 = vector.load %arg19[%c1_128, %c0_129, %c0_130] : memref<2x1x32xf32, #tpu.memory_space<vmem>>, vector<1x1x32xf32>
    %214 = vector.shape_cast %213 : vector<1x1x32xf32> to vector<1x32xf32>
    %c1_131 = arith.constant 1 : index
    %c0_132 = arith.constant 0 : index
    %c0_133 = arith.constant 0 : index
    %215 = vector.load %arg20[%c1_131, %c0_132, %c0_133] : memref<2x1x32xf32, #tpu.memory_space<vmem>>, vector<1x1x32xf32>
    %216 = vector.shape_cast %215 : vector<1x1x32xf32> to vector<1x32xf32>
    %cst_134 = arith.constant dense<0.000000e+00> : vector<9xf32>
    %217 = vector.multi_reduction <add>, %212, %cst_134 [1] : vector<9x32xf32> to vector<9xf32>
    %218 = vector.shape_cast %217 : vector<9xf32> to vector<9x1xf32>
    %cst_135 = arith.constant 3.200000e+01 : f32
    %219 = vector.broadcast %cst_135 : f32 to vector<9x1xf32>
    %220 = arith.divf %218, %219 : vector<9x1xf32>
    %221 = vector.broadcast %220 : vector<9x1xf32> to vector<9x32xf32>
    %222 = arith.subf %212, %221 : vector<9x32xf32>
    %223 = arith.mulf %222, %222 : vector<9x32xf32>
    %cst_136 = arith.constant dense<0.000000e+00> : vector<9xf32>
    %224 = vector.multi_reduction <add>, %223, %cst_136 [1] : vector<9x32xf32> to vector<9xf32>
    %225 = vector.shape_cast %224 : vector<9xf32> to vector<9x1xf32>
    %cst_137 = arith.constant 3.200000e+01 : f32
    %226 = vector.broadcast %cst_137 : f32 to vector<9x1xf32>
    %227 = arith.divf %225, %226 : vector<9x1xf32>
    %228 = vector.broadcast %220 : vector<9x1xf32> to vector<9x32xf32>
    %229 = arith.subf %212, %228 : vector<9x32xf32>
    %cst_138 = arith.constant 9.99999974E-6 : f32
    %230 = vector.broadcast %cst_138 : f32 to vector<9x1xf32>
    %231 = arith.addf %227, %230 : vector<9x1xf32>
    %232 = math.rsqrt %231 : vector<9x1xf32>
    %233 = vector.broadcast %232 : vector<9x1xf32> to vector<9x32xf32>
    %234 = arith.mulf %229, %233 : vector<9x32xf32>
    %235 = vector.broadcast %214 : vector<1x32xf32> to vector<9x32xf32>
    %236 = arith.mulf %234, %235 : vector<9x32xf32>
    %237 = vector.broadcast %216 : vector<1x32xf32> to vector<9x32xf32>
    %238 = arith.addf %236, %237 : vector<9x32xf32>
    %c1_139 = arith.constant 1 : index
    %c0_140 = arith.constant 0 : index
    %c0_141 = arith.constant 0 : index
    %239 = vector.load %arg23[%c1_139, %c0_140, %c0_141] : memref<2x32x1024xbf16, #tpu.memory_space<vmem>>, vector<1x32x1024xbf16>
    %240 = vector.shape_cast %239 : vector<1x32x1024xbf16> to vector<32x1024xbf16>
    %241 = arith.truncf %238 : vector<9x32xf32> to vector<9x32xbf16>
    %cst_142 = arith.constant dense<0.000000e+00> : vector<9x1024xf32>
    %242 = tpu.matmul %241, %240, %cst_142 {dimension_numbers = #tpu.dot_dimension_numbers<[1], [0], [0], [1], [0, 0, 1, 1], [], []>} : vector<9x32xbf16>, vector<32x1024xbf16>, vector<9x1024xf32> -> vector<9x1024xf32>
    %c1_143 = arith.constant 1 : index
    %c0_144 = arith.constant 0 : index
    %c0_145 = arith.constant 0 : index
    %243 = vector.load %arg24[%c1_143, %c0_144, %c0_145] : memref<2x1x1024xf32, #tpu.memory_space<vmem>>, vector<1x1x1024xf32>
    %244 = vector.shape_cast %243 : vector<1x1x1024xf32> to vector<1x1024xf32>
    %245 = vector.broadcast %244 : vector<1x1024xf32> to vector<9x1024xf32>
    %246 = arith.addf %242, %245 : vector<9x1024xf32>
    %cst_146 = arith.constant 5.000000e-01 : f32
    %247 = vector.broadcast %cst_146 : f32 to vector<9x1024xf32>
    %248 = arith.mulf %247, %246 : vector<9x1024xf32>
    %cst_147 = arith.constant 0.707106769 : f32
    %249 = vector.broadcast %cst_147 : f32 to vector<9x1024xf32>
    %250 = arith.mulf %246, %249 : vector<9x1024xf32>
    %251 = math.erf %250 : vector<9x1024xf32>
    %cst_148 = arith.constant 1.000000e+00 : f32
    %252 = vector.broadcast %cst_148 : f32 to vector<9x1024xf32>
    %253 = arith.addf %252, %251 : vector<9x1024xf32>
    %254 = arith.mulf %248, %253 : vector<9x1024xf32>
    %c1_149 = arith.constant 1 : index
    %c0_150 = arith.constant 0 : index
    %c0_151 = arith.constant 0 : index
    %255 = vector.load %arg25[%c1_149, %c0_150, %c0_151] : memref<2x1024x32xbf16, #tpu.memory_space<vmem>>, vector<1x1024x32xbf16>
    %256 = vector.shape_cast %255 : vector<1x1024x32xbf16> to vector<1024x32xbf16>
    %257 = arith.truncf %254 : vector<9x1024xf32> to vector<9x1024xbf16>
    %cst_152 = arith.constant dense<0.000000e+00> : vector<9x32xf32>
    %258 = tpu.matmul %257, %256, %cst_152 {dimension_numbers = #tpu.dot_dimension_numbers<[1], [0], [0], [1], [0, 0, 1, 1], [], []>} : vector<9x1024xbf16>, vector<1024x32xbf16>, vector<9x32xf32> -> vector<9x32xf32>
    %c1_153 = arith.constant 1 : index
    %c0_154 = arith.constant 0 : index
    %c0_155 = arith.constant 0 : index
    %259 = vector.load %arg26[%c1_153, %c0_154, %c0_155] : memref<2x1x32xf32, #tpu.memory_space<vmem>>, vector<1x1x32xf32>
    %260 = vector.shape_cast %259 : vector<1x1x32xf32> to vector<1x32xf32>
    %261 = vector.broadcast %260 : vector<1x32xf32> to vector<9x32xf32>
    %262 = arith.addf %258, %261 : vector<9x32xf32>
    %263 = arith.addf %238, %262 : vector<9x32xf32>
    %c1_156 = arith.constant 1 : index
    %c0_157 = arith.constant 0 : index
    %c0_158 = arith.constant 0 : index
    %264 = vector.load %arg21[%c1_156, %c0_157, %c0_158] : memref<2x1x32xf32, #tpu.memory_space<vmem>>, vector<1x1x32xf32>
    %265 = vector.shape_cast %264 : vector<1x1x32xf32> to vector<1x32xf32>
    %c1_159 = arith.constant 1 : index
    %c0_160 = arith.constant 0 : index
    %c0_161 = arith.constant 0 : index
    %266 = vector.load %arg22[%c1_159, %c0_160, %c0_161] : memref<2x1x32xf32, #tpu.memory_space<vmem>>, vector<1x1x32xf32>
    %267 = vector.shape_cast %266 : vector<1x1x32xf32> to vector<1x32xf32>
    %cst_162 = arith.constant dense<0.000000e+00> : vector<9xf32>
    %268 = vector.multi_reduction <add>, %263, %cst_162 [1] : vector<9x32xf32> to vector<9xf32>
    %269 = vector.shape_cast %268 : vector<9xf32> to vector<9x1xf32>
    %cst_163 = arith.constant 3.200000e+01 : f32
    %270 = vector.broadcast %cst_163 : f32 to vector<9x1xf32>
    %271 = arith.divf %269, %270 : vector<9x1xf32>
    %272 = vector.broadcast %271 : vector<9x1xf32> to vector<9x32xf32>
    %273 = arith.subf %263, %272 : vector<9x32xf32>
    %274 = arith.mulf %273, %273 : vector<9x32xf32>
    %cst_164 = arith.constant dense<0.000000e+00> : vector<9xf32>
    %275 = vector.multi_reduction <add>, %274, %cst_164 [1] : vector<9x32xf32> to vector<9xf32>
    %276 = vector.shape_cast %275 : vector<9xf32> to vector<9x1xf32>
    %cst_165 = arith.constant 3.200000e+01 : f32
    %277 = vector.broadcast %cst_165 : f32 to vector<9x1xf32>
    %278 = arith.divf %276, %277 : vector<9x1xf32>
    %279 = vector.broadcast %271 : vector<9x1xf32> to vector<9x32xf32>
    %280 = arith.subf %263, %279 : vector<9x32xf32>
    %cst_166 = arith.constant 9.99999974E-6 : f32
    %281 = vector.broadcast %cst_166 : f32 to vector<9x1xf32>
    %282 = arith.addf %278, %281 : vector<9x1xf32>
    %283 = math.rsqrt %282 : vector<9x1xf32>
    %284 = vector.broadcast %283 : vector<9x1xf32> to vector<9x32xf32>
    %285 = arith.mulf %280, %284 : vector<9x32xf32>
    %286 = vector.broadcast %265 : vector<1x32xf32> to vector<9x32xf32>
    %287 = arith.mulf %285, %286 : vector<9x32xf32>
    %288 = vector.broadcast %267 : vector<1x32xf32> to vector<9x32xf32>
    %289 = arith.addf %287, %288 : vector<9x32xf32>
    %290 = vector.extract_strided_slice %289 {offsets = [0, 0], sizes = [8, 32], strides = [1, 1]} : vector<9x32xf32> to vector<8x32xf32>
    %c0_167 = arith.constant 0 : index
    %c0_168 = arith.constant 0 : index
    %c0_169 = arith.constant 0 : index
    %291 = vector.load %arg29[%c0_167, %c0_168, %c0_169] : memref<1x8x32xf32, #tpu.memory_space<vmem>>, vector<1x8x32xf32>
    %292 = vector.shape_cast %291 : vector<1x8x32xf32> to vector<8x32xf32>
    %293 = vector.shape_cast %290 : vector<8x32xf32> to vector<1x8x32xf32>
    tpu.vector_store %arg29[%c0_167, %c0_168, %c0_169], %293 {strides = array<i32>} : memref<1x8x32xf32, #tpu.memory_space<vmem>>, vector<1x8x32xf32>,
    %294 = vector.extract_strided_slice %289 {offsets = [8, 0], sizes = [1, 32], strides = [1, 1]} : vector<9x32xf32> to vector<1x32xf32>
    %c0_170 = arith.constant 0 : index
    %c0_171 = arith.constant 0 : index
    %295 = vector.load %arg27[%c0_170, %c0_171] : memref<32x9xbf16, #tpu.memory_space<vmem>>, vector<32x9xbf16>
    %296 = arith.truncf %294 : vector<1x32xf32> to vector<1x32xbf16>
    %cst_172 = arith.constant dense<0.000000e+00> : vector<1x9xf32>
    %297 = tpu.matmul %296, %295, %cst_172 {dimension_numbers = #tpu.dot_dimension_numbers<[1], [0], [0], [1], [0, 0, 1, 1], [], []>} : vector<1x32xbf16>, vector<32x9xbf16>, vector<1x9xf32> -> vector<1x9xf32>
    %c0_173 = arith.constant 0 : index
    %c0_174 = arith.constant 0 : index
    %298 = vector.load %arg28[%c0_173, %c0_174] : memref<1x9xf32, #tpu.memory_space<vmem>>, vector<1x9xf32>
    %299 = arith.addf %297, %298 : vector<1x9xf32>
    %c0_175 = arith.constant 0 : index
    %c0_176 = arith.constant 0 : index
    %c0_177 = arith.constant 0 : index
    %300 = vector.load %arg30[%c0_175, %c0_176, %c0_177] : memref<1x1x9xf32, #tpu.memory_space<vmem>>, vector<1x1x9xf32>
    %301 = vector.shape_cast %300 : vector<1x1x9xf32> to vector<1x9xf32>
    %302 = vector.shape_cast %299 : vector<1x9xf32> to vector<1x1x9xf32>
    tpu.vector_store %arg30[%c0_175, %c0_176, %c0_177], %302 {strides = array<i32>} : memref<1x1x9xf32, #tpu.memory_space<vmem>>, vector<1x1x9xf32>,
    return
  }
  func.func @transform_0(%arg0: i32) -> (i32, i32, i32) {
    %c0_i32 = arith.constant 0 : i32
    %c0_i32_0 = arith.constant 0 : i32
    %c0_i32_1 = arith.constant 0 : i32
    return %arg0, %c0_i32, %c0_i32_0 : i32, i32, i32
  }
  func.func @transform_1(%arg0: i32) -> (i32, i32, i32) {
    %c0_i32 = arith.constant 0 : i32
    %c0_i32_0 = arith.constant 0 : i32
    %c0_i32_1 = arith.constant 0 : i32
    return %arg0, %c0_i32, %c0_i32_0 : i32, i32, i32
  }
  func.func @transform_2(%arg0: i32) -> (i32, i32, i32) {
    %c0_i32 = arith.constant 0 : i32
    %c0_i32_0 = arith.constant 0 : i32
    %c0_i32_1 = arith.constant 0 : i32
    return %arg0, %c0_i32, %c0_i32_0 : i32, i32, i32
  }
  func.func @transform_3(%arg0: i32) -> (i32, i32, i32) {
    %c0_i32 = arith.constant 0 : i32
    %c0_i32_0 = arith.constant 0 : i32
    %c0_i32_1 = arith.constant 0 : i32
    return %arg0, %c0_i32, %c0_i32_0 : i32, i32, i32
  }
  func.func @transform_4(%arg0: i32) -> (i32, i32) {
    %c0_i32 = arith.constant 0 : i32
    %c0_i32_0 = arith.constant 0 : i32
    %c0_i32_1 = arith.constant 0 : i32
    return %c0_i32, %c0_i32_0 : i32, i32
  }
  func.func @transform_5(%arg0: i32) -> (i32, i32) {
    %c0_i32 = arith.constant 0 : i32
    %c0_i32_0 = arith.constant 0 : i32
    %c0_i32_1 = arith.constant 0 : i32
    return %c0_i32, %c0_i32_0 : i32, i32
  }
  func.func @transform_6(%arg0: i32) -> (i32, i32) {
    %c0_i32 = arith.constant 0 : i32
    %c0_i32_0 = arith.constant 0 : i32
    %c0_i32_1 = arith.constant 0 : i32
    return %c0_i32, %c0_i32_0 : i32, i32
  }
  func.func @transform_7(%arg0: i32) -> (i32, i32) {
    %c0_i32 = arith.constant 0 : i32
    %c0_i32_0 = arith.constant 0 : i32
    %c0_i32_1 = arith.constant 0 : i32
    return %c0_i32, %c0_i32_0 : i32, i32
  }
  func.func @transform_8(%arg0: i32) -> (i32, i32) {
    %c0_i32 = arith.constant 0 : i32
    %c0_i32_0 = arith.constant 0 : i32
    %c0_i32_1 = arith.constant 0 : i32
    return %c0_i32, %c0_i32_0 : i32, i32
  }
  func.func @transform_9(%arg0: i32) -> (i32, i32) {
    %c0_i32 = arith.constant 0 : i32
    %c0_i32_0 = arith.constant 0 : i32
    %c0_i32_1 = arith.constant 0 : i32
    return %c0_i32, %c0_i32_0 : i32, i32
  }
  func.func @transform_10(%arg0: i32) -> (i32, i32, i32) {
    %c0_i32 = arith.constant 0 : i32
    %c0_i32_0 = arith.constant 0 : i32
    %c0_i32_1 = arith.constant 0 : i32
    %c0_i32_2 = arith.constant 0 : i32
    return %c0_i32, %c0_i32_0, %c0_i32_1 : i32, i32, i32
  }
  func.func @transform_11(%arg0: i32) -> (i32, i32, i32) {
    %c0_i32 = arith.constant 0 : i32
    %c0_i32_0 = arith.constant 0 : i32
    %c0_i32_1 = arith.constant 0 : i32
    %c0_i32_2 = arith.constant 0 : i32
    return %c0_i32, %c0_i32_0, %c0_i32_1 : i32, i32, i32
  }
  func.func @transform_12(%arg0: i32) -> (i32, i32, i32) {
    %c0_i32 = arith.constant 0 : i32
    %c0_i32_0 = arith.constant 0 : i32
    %c0_i32_1 = arith.constant 0 : i32
    %c0_i32_2 = arith.constant 0 : i32
    return %c0_i32, %c0_i32_0, %c0_i32_1 : i32, i32, i32
  }
  func.func @transform_13(%arg0: i32) -> (i32, i32, i32) {
    %c0_i32 = arith.constant 0 : i32
    %c0_i32_0 = arith.constant 0 : i32
    %c0_i32_1 = arith.constant 0 : i32
    %c0_i32_2 = arith.constant 0 : i32
    return %c0_i32, %c0_i32_0, %c0_i32_1 : i32, i32, i32
  }
  func.func @transform_14(%arg0: i32) -> (i32, i32, i32) {
    %c0_i32 = arith.constant 0 : i32
    %c0_i32_0 = arith.constant 0 : i32
    %c0_i32_1 = arith.constant 0 : i32
    %c0_i32_2 = arith.constant 0 : i32
    return %c0_i32, %c0_i32_0, %c0_i32_1 : i32, i32, i32
  }
  func.func @transform_15(%arg0: i32) -> (i32, i32, i32) {
    %c0_i32 = arith.constant 0 : i32
    %c0_i32_0 = arith.constant 0 : i32
    %c0_i32_1 = arith.constant 0 : i32
    %c0_i32_2 = arith.constant 0 : i32
    return %c0_i32, %c0_i32_0, %c0_i32_1 : i32, i32, i32
  }
  func.func @transform_16(%arg0: i32) -> (i32, i32, i32) {
    %c0_i32 = arith.constant 0 : i32
    %c0_i32_0 = arith.constant 0 : i32
    %c0_i32_1 = arith.constant 0 : i32
    %c0_i32_2 = arith.constant 0 : i32
    return %c0_i32, %c0_i32_0, %c0_i32_1 : i32, i32, i32
  }
  func.func @transform_17(%arg0: i32) -> (i32, i32, i32) {
    %c0_i32 = arith.constant 0 : i32
    %c0_i32_0 = arith.constant 0 : i32
    %c0_i32_1 = arith.constant 0 : i32
    %c0_i32_2 = arith.constant 0 : i32
    return %c0_i32, %c0_i32_0, %c0_i32_1 : i32, i32, i32
  }
  func.func @transform_18(%arg0: i32) -> (i32, i32, i32) {
    %c0_i32 = arith.constant 0 : i32
    %c0_i32_0 = arith.constant 0 : i32
    %c0_i32_1 = arith.constant 0 : i32
    %c0_i32_2 = arith.constant 0 : i32
    return %c0_i32, %c0_i32_0, %c0_i32_1 : i32, i32, i32
  }
  func.func @transform_19(%arg0: i32) -> (i32, i32, i32) {
    %c0_i32 = arith.constant 0 : i32
    %c0_i32_0 = arith.constant 0 : i32
    %c0_i32_1 = arith.constant 0 : i32
    %c0_i32_2 = arith.constant 0 : i32
    return %c0_i32, %c0_i32_0, %c0_i32_1 : i32, i32, i32
  }
  func.func @transform_20(%arg0: i32) -> (i32, i32, i32) {
    %c0_i32 = arith.constant 0 : i32
    %c0_i32_0 = arith.constant 0 : i32
    %c0_i32_1 = arith.constant 0 : i32
    %c0_i32_2 = arith.constant 0 : i32
    return %c0_i32, %c0_i32_0, %c0_i32_1 : i32, i32, i32
  }
  func.func @transform_21(%arg0: i32) -> (i32, i32, i32) {
    %c0_i32 = arith.constant 0 : i32
    %c0_i32_0 = arith.constant 0 : i32
    %c0_i32_1 = arith.constant 0 : i32
    %c0_i32_2 = arith.constant 0 : i32
    return %c0_i32, %c0_i32_0, %c0_i32_1 : i32, i32, i32
  }
  func.func @transform_22(%arg0: i32) -> (i32, i32, i32) {
    %c0_i32 = arith.constant 0 : i32
    %c0_i32_0 = arith.constant 0 : i32
    %c0_i32_1 = arith.constant 0 : i32
    %c0_i32_2 = arith.constant 0 : i32
    return %c0_i32, %c0_i32_0, %c0_i32_1 : i32, i32, i32
  }
  func.func @transform_23(%arg0: i32) -> (i32, i32, i32) {
    %c0_i32 = arith.constant 0 : i32
    %c0_i32_0 = arith.constant 0 : i32
    %c0_i32_1 = arith.constant 0 : i32
    %c0_i32_2 = arith.constant 0 : i32
    return %c0_i32, %c0_i32_0, %c0_i32_1 : i32, i32, i32
  }
  func.func @transform_24(%arg0: i32) -> (i32, i32, i32) {
    %c0_i32 = arith.constant 0 : i32
    %c0_i32_0 = arith.constant 0 : i32
    %c0_i32_1 = arith.constant 0 : i32
    %c0_i32_2 = arith.constant 0 : i32
    return %c0_i32, %c0_i32_0, %c0_i32_1 : i32, i32, i32
  }
  func.func @transform_25(%arg0: i32) -> (i32, i32, i32) {
    %c0_i32 = arith.constant 0 : i32
    %c0_i32_0 = arith.constant 0 : i32
    %c0_i32_1 = arith.constant 0 : i32
    %c0_i32_2 = arith.constant 0 : i32
    return %c0_i32, %c0_i32_0, %c0_i32_1 : i32, i32, i32
  }
  func.func @transform_26(%arg0: i32) -> (i32, i32) {
    %c0_i32 = arith.constant 0 : i32
    %c0_i32_0 = arith.constant 0 : i32
    %c0_i32_1 = arith.constant 0 : i32
    return %c0_i32, %c0_i32_0 : i32, i32
  }
  func.func @transform_27(%arg0: i32) -> (i32, i32) {
    %c0_i32 = arith.constant 0 : i32
    %c0_i32_0 = arith.constant 0 : i32
    %c0_i32_1 = arith.constant 0 : i32
    return %c0_i32, %c0_i32_0 : i32, i32
  }
  func.func @transform_28(%arg0: i32) -> (i32, i32, i32) {
    %c0_i32 = arith.constant 0 : i32
    %c0_i32_0 = arith.constant 0 : i32
    %c0_i32_1 = arith.constant 0 : i32
    return %arg0, %c0_i32, %c0_i32_0 : i32, i32, i32
  }
  func.func @transform_29(%arg0: i32) -> (i32, i32, i32) {
    %c0_i32 = arith.constant 0 : i32
    %c0_i32_0 = arith.constant 0 : i32
    %c0_i32_1 = arith.constant 0 : i32
    return %arg0, %c0_i32, %c0_i32_0 : i32, i32, i32
  }
}

</mosaic_0001>

<bundles_post_ra>
// kernel: multi_person_block_forward.1
= control target key start
LH: loop header
LB: loop body
LE: loop exit
PB: predicated region body
PF: predicated region fallthrough
CT: control target
= control target key end

     0   :  { %s10264_s6 = smov 1   ;;  %s10265_s10 = smov 2   ;;  %s13376_s0 = inlined_call_operand.smem [shape: u32[30], index: -1, kind: input, shape index: {}] }
   0x1   :  { %s10311_s5 = sld [smem:[%s13376_s0]]   ;;  %s10266_s14 = smov 3  }
   0x2   :  { %s10316_s9 = sld [smem:[%s13376_s0 + %s10264_s6]]   ;;  %s10267_s18 = smov 4  }
   0x3   :  { %s10321_s13 = sld [smem:[%s13376_s0 + %s10265_s10]]   ;;  %s10268_s22 = smov 5  }
   0x4   :  { %s10326_s17 = sld [smem:[%s13376_s0 + %s10266_s14]]   ;;  %s10269_s26 = smov 6  }
   0x5   :  { %s10331_s21 = sld [smem:[%s13376_s0 + %s10267_s18]]   ;;  %s10270_s30 = smov 7  }
   0x6   :  { %s10336_s25 = sld [smem:[%s13376_s0 + %s10268_s22]]   ;;  %s10271_s4 = smov 8  }
   0x7   :  { %13403 = sst [smem:[#allocation2_spill]] %s10311_s5  ;;  %s10272_s10 = smov 9  }
   0x8   :  { %13404 = sst [smem:[#allocation3_spill]] %s10316_s9  ;;  %s10273_s15 = smov 10  }
   0x9   :  { %s10341_s29 = sld [smem:[%s13376_s0 + %s10269_s26]]   ;;  %s10274_s20 = smov 11  }
   0xa   :  { %s10346_s3 = sld [smem:[%s13376_s0 + %s10270_s30]]   ;;  %s10275_s26 = smov 12  }
   0xb   :  { %s10351_s8 = sld [smem:[%s13376_s0 + %s10271_s4]]   ;;  %s10276_s1 = smov 13  }
   0xc   :  { %s10356_s14 = sld [smem:[%s13376_s0 + %s10272_s10]]   ;;  %s10277_s7 = smov 14  }
   0xd   :  { %s10361_s19 = sld [smem:[%s13376_s0 + %s10273_s15]]   ;;  %s10278_s15 = smov 15  }
   0xe   :  { %s10366_s24 = sld [smem:[%s13376_s0 + %s10274_s20]]   ;;  %s10279_s22 = smov 16  }
   0xf   :  { %s10371_s30 = sld [smem:[%s13376_s0 + %s10275_s26]]   ;;  %s10280_s28 = smov 17  }
  0x10   :  { %13405 = sst [smem:[#allocation4_spill]] %s10346_s3 }
  0x11   :  { %13406 = sst [smem:[#allocation5_spill]] %s10351_s8 }
  0x12   :  { %s10376_s6 = sld [smem:[%s13376_s0 + %s10276_s1]]  }
  0x13   :  { %s10381_s12 = sld [smem:[%s13376_s0 + %s10277_s7]]   ;;  %s10281_s7 = smov 18  }
  0x14   :  { %13407 = sst [smem:[#allocation6_spill]] %s10366_s24 }
  0x15   :  { %s10386_s20 = sld [smem:[%s13376_s0 + %s10278_s15]]   ;;  %s10282_s15 = smov 19  }
  0x16   :  { %s10391_s27 = sld [smem:[%s13376_s0 + %s10279_s22]]   ;;  %s10283_s22 = smov 20  }
  0x17   :  { %s10396_s4 = sld [smem:[%s13376_s0 + %s10280_s28]]   ;;  %s10284_s28 = smov 21  }
  0x18   :  { %13408 = sst [smem:[#allocation7_spill]] %s10376_s6 }
  0x19   :  { %13409 = sst [smem:[#allocation8_spill]] %s10381_s12 }
  0x1a   :  { %s10401_s24 = sld [smem:[%s13376_s0 + %s10281_s7]]   ;;  %s10285_s7 = smov 22  }
  0x1b   :  { %s10406_s6 = sld [smem:[%s13376_s0 + %s10282_s15]]   ;;  %s10286_s15 = smov 23  }
  0x1c   :  { %13410 = sst [smem:[#allocation9_spill]] %s10391_s27 }
  0x1d   :  { %13411 = sst [smem:[#allocation10_spill]] %s10396_s4 }
  0x1e   :  { %s10411_s27 = sld [smem:[%s13376_s0 + %s10283_s22]]   ;;  %s10287_s22 = smov 24  }
  0x1f   :  { %s10416_s4 = sld [smem:[%s13376_s0 + %s10284_s28]]   ;;  %s10288_s28 = smov 25  }
  0x20   :  { %13412 = sst [smem:[#allocation11_spill]] %s10401_s24 }
  0x21   :  { %13413 = sst [smem:[#allocation12_spill]] %s10406_s6 }
  0x22   :  { %s10421_s24 = sld [smem:[%s13376_s0 + %s10285_s7]]   ;;  %s10289_s7 = smov 26  }
  0x23   :  { %s10426_s6 = sld [smem:[%s13376_s0 + %s10286_s15]]   ;;  %s10290_s15 = smov 27  }
  0x24   :  { %13414 = sst [smem:[#allocation13_spill]] %s10411_s27 }
  0x25   :  { %13415 = sst [smem:[#allocation14_spill]] %s10416_s4 }
  0x26   :  { %s10431_s27 = sld [smem:[%s13376_s0 + %s10287_s22]]   ;;  %s10291_s22 = smov 28  }
  0x27   :  { %s10436_s4 = sld [smem:[%s13376_s0 + %s10288_s28]]   ;;  %s10292_s28 = smov 29  }
  0x28   :  { %13416 = sst [smem:[#allocation15_spill]] %s10421_s24 }
  0x29   :  { %13417 = sst [smem:[#allocation16_spill]] %s10426_s6 }
  0x2a   :  { %s10441_s24 = sld [smem:[%s13376_s0 + %s10289_s7]]   ;;  %s10458_s7 = smov 0  }
  0x2b   :  { %s10446_s6 = sld [smem:[%s13376_s0 + %s10290_s15]]  }
  0x2c   :  { %13418 = sst [smem:[#allocation17_spill]] %s10431_s27 }
  0x2d   :  { %13419 = sst [smem:[#allocation18_spill]] %s10436_s4 }
  0x2e   :  { %s10451_s27 = sld [smem:[%s13376_s0 + %s10291_s22]]  }
  0x2f   :  { %s10456_s4 = sld [smem:[%s13376_s0 + %s10292_s28]]  }
  0x30 LB: > { %s13420_s12 = sld [smem:[#allocation8_spill]]  ;;  %s8601_s10 = sadd.s32 4294967295, %s10262_s7   ;;  %s10262_s7 = sphi %s10458_s7, %s70_s7  }
  0x31   : > { %s13421_s8 = sld [smem:[#allocation5_spill]]  ;;  %p8605_p0 = scmp.ge.s32.totalorder %s10262_s7, 1 }
  0x32   : > { %s13422_s3 = sld [smem:[#allocation4_spill]]  ;;  %p844_p1 = scmp.lt.s32.totalorder %s10262_s7, 3 }
  0x34   : > { %p845_p2 = pnand %p8605_p0, %p844_p1 }
  0x35   : > { %p931_p3 = scmp.lt.s32.totalorder (!%p845_p2), %s8601_s10, 1  ;;  %s13423_s9 = sld [smem:[#allocation3_spill]] (!%p845_p2) }
  0x36   : > { %848 = sbr.rel (%p845_p2) target bundleno = 6813 (0x1a9d), region = 132  ;;  %s13424_s5 = sld [smem:[#allocation2_spill]] (!%p845_p2) }
  0x37   : > { %s13425_s22 = sld [smem:[#allocation7_spill]] (!%p845_p2)  ;;  %s13392_s26 = smov (!%p845_p2), 104  }
  0x38   : > { %s13426_s23 = sld [smem:[#allocation6_spill]] (!%p845_p2)  ;;  %s13398_s28 = smov (!%p845_p2), 120  }
  0x39   : > { %s13394_s1 = smov (!%p845_p2), 112   ;;  %s13427_s2 = sld [smem:[#allocation9_spill]] (!%p845_p2) }
  0x3b   : > { %v9597_v0 = vld [vmem:[%s10336_s25 + $0x8] sm:$0xff]  ;;  %v8629_v2 = vld [vmem:[%s13421_s8] sm:$0xf]  ;;  %vm1044_vm0 = vcmask 1043456   ;;  %vm1045_vm1 = vcmask 1044480   ;;  %v10293_v6 = vmov 65535  }
  0x3c   : > { %v9595_v1 = vld [vmem:[%s10331_s21 + $0x8] sm:$0xff]  ;;  %v9599_v3 = vld [vmem:[%s13421_s8] sm:$0x10]  ;;  %v8634_v4 = vld [vmem:[%s13422_s3] sm:$0xf]  ;;  %987 = vmatpush.bf16.msra.mxu0 %v9597_v0  ;;  %v1046_v7 = vsel %vm1044_vm0, 4294967295, %v10293_v6 }
  0x3d   : > { %1015 = vmatpush.bf16.msra.mxu1 %v9595_v1  ;;  %v8630_v5 = vor.u32 %v9599_v3, %v8629_v2  ;;  %v9598_v8 = vld [vmem:[%s13422_s3] sm:$0x10]  ;;  %v1047_v10 = vsel %vm1045_vm1, %v1046_v7, 0  ;;  %s13520_s10 = smov (!%p931_p3, %s8601_s10), 1  ;;  %vm1040_vm2 = vcmask 72704   ;;  %vm977_vm3 = vcmask 261120  }
  0x3e   : > { %v9596_v9 = vld [vmem:[%s10336_s25] sm:$0xff]  ;;  %v8635_v11 = vor.u32 %v9598_v8, %v8634_v4  ;;  %s944_s0 = scalar_lea.vmem %s10326_s17, %s13520_s10  ;;  %s941_s11 = scalar_lea.vmem %s10321_s13, %s13520_s10  ;;  %v9601_v23 = vld [vmem:[%s10361_s19 + $0x8] sm:$0xff]  ;;  %v10297_v2 = vmov 1983009808   ;;  %vm1149_vm4 = vcmask 1047556   ;;  %vm2008_vm5 = vcmask 64512  }
  0x3f   : > { %v9594_v12 = vld [vmem:[%s10331_s21] sm:$0xff]  ;;  %v1049_v13 = vand.u32 %v8630_v5, %v1047_v10  ;;  %s10482_s15 = sshll.u32 %s13520_s10, 3  ;;  %v9603_v24 = vld [vmem:[%s10371_s30 + $0x8] sm:$0xff]  ;;  %v1154_v3 = vunpack.c.l.s4 %v10297_v2  ;;  %vm2101_vm6 = vcmask 65536   ;;  %vm3021_vm7 = vcmask 130048   ;;  %s13473_s3 = sld [smem:[#allocation13_spill]] }
  0x40   : > { %v1073_v14 = vand.u32 %v8635_v11, %v1047_v10  ;;  %988 = vmatpush.bf16.msra.mxu0 %v9596_v9  ;;  %v1031_v15 = vld [vmem:[%s944_s0] sm:$0x1]  ;;  %s938_s16 = scalar_lea.vmem %s13423_s9, %s10482_s15  ;;  %s934_s18 = scalar_lea.vmem %s13424_s5, %s10482_s15  ;;  %v9605_v25 = vld [vmem:[%s13420_s12 + $0x8] sm:$0xff]  ;;  %v10298_v10 = vmov 1934713408   ;;  %vm13397_vm8 = vcmask 195584  }
  0x41   : > { %1058 = vmatpush.bf16.msra.mxu2 %v1049_v13  ;;  %1016 = vmatpush.bf16.msra.mxu1 %v9594_v12  ;;  %v1027_v16 = vld [vmem:[%s941_s11] sm:$0x1]  ;;  %v1034_v17 = vpack.c.bf16 %v1031_v15, %v1031_v15  ;;  %v10542_v8 = vunpack.c.0.s8 %v1154_v3  ;;  %v1178_v11 = vunpack.c.l.s4 %v10298_v10  ;;  %s13390_s0 = smov 16   ;;  %s13391_s11 = smov 8   ;;  %vm3072_vm9 = vcmask 253952  }
  0x42   : > { %1082 = vmatpush.bf16.msra.mxu3 %v1073_v14  ;;  %v1030_v18 = vpack.c.bf16 %v1027_v16, %v1027_v16  ;;  %v959_v19 = vld [vmem:[%s938_s16] sm:$0xff]  ;;  %s13389_s16 = smov 24   ;;  %s13474_s5 = sld [smem:[#allocation14_spill]] }
  0x43   : > { %v964_v20 = vpack.c.bf16 %v959_v19, %v959_v19  ;;  %v953_v21 = vld [vmem:[%s934_s18] sm:$0xff]  ;;  %v10548_v19 = vunpack.c.0.s8 %v1178_v11  ;;  %s13428_s18 = sld [smem:[#allocation10_spill]]  ;;  %s13475_s8 = smov 120  }
  0x44   : > { %8631 = vmatmul.msk.bf16.vlgmr.msra.gmra.mxu2 %vm1040_vm2, %v1034_v17  ;;  %v958_v22 = vpack.c.bf16 %v953_v21, %v953_v21  ;;  %1394 = vmatpush.bf16.msrb.mxu0 %v9605_v25  ;;  %v9600_v26 = vld [vmem:[%s10361_s19] sm:$0xff]  ;;  %s13476_s9 = smov 112  }
  0x45   : > { %8636 = vmatmul.msk.bf16.vlgmr.msra.gmra.mxu3 %vm1040_vm2, %v1030_v18  ;;  %8617 = vmatmul.msk.bf16.vlgmr.msra.gmra.mxu0 %vm977_vm3, %v964_v20  ;;  %v9602_v27 = vld [vmem:[%s10371_s30] sm:$0xff] }
  0x46   : > { %8626 = vmatmul.msk.bf16.vlgmr.msra.gmra.mxu1 %vm977_vm3, %v958_v22  ;;  %1120 = vmatpush.bf16.msrb.mxu2 %v9601_v23  ;;  %v9604_v28 = vld [vmem:[%s13420_s12] sm:$0xff] }
  0x47   : > { %1257 = vmatpush.bf16.msrb.mxu3 %v9603_v24  ;;  %v10091_v31 = vld [vmem:[%s10341_s29] ss:$0 sm:$0xff] }
  0x48   : > { %1395 = vmatpush.bf16.msrb.mxu0 %v9604_v28  ;;  %v1088_v35 = vld [vmem:[%s10356_s14] sm:$0x1] }
  0x49   : > { %v10092_v45 = vld [vmem:[%s10386_s20] ss:$0 sm:$0xff] }
  0x4a   : > { %1121 = vmatpush.bf16.msrb.mxu2 %v9600_v26  ;;  %v10094_v51 = vld [vmem:[%s13425_s22] ss:$0 sm:$0xff] }
  0x4b   : > { %1258 = vmatpush.bf16.msrb.mxu3 %v9602_v27  ;;  %v10093_v53 = vld [vmem:[%s13426_s23] ss:$0 sm:$0xff] }
  0xc2   : > { %v990_v29 = vpop.f32.mrf.mxu0 }
  0xc3   : > { %v1018_v30 = vpop.f32.mrf.mxu1 }
  0xc4   : > { %v1019_v32 = vadd.f32 %v1018_v30, %v990_v29 }
  0xc6   : > { %v10500_v36 = vadd.f32 %v10091_v31, %v1019_v32 }
  0xc7   : > { %v1060_v33 = vpop.f32.mrf.mxu2 }
  0xc8   : > { %v1084_v34 = vpop.f32.mrf.mxu3 }
  0xc9   : > { %v1085_v37 = vadd.f32 %v1084_v34, %v1060_v33 }
  0xca   : > { %v992_v39 = vpop.f32.mrf.mxu0 }
  0xcb   : > { %v10502_v38 = vadd.f32 %v1088_v35, %v1085_v37  ;;  %v1020_v41 = vpop.f32.mrf.mxu1 }
  0xcd   : > { %v1094_v40 = vpack.c.bf16 %v10502_v38, %v10500_v36 }
  0xcf   : > { %8645 = vmatmul.msk.bf16.vlgmr.msrb.gmra.mxu2 %vm977_vm3, %v1094_v40  ;;  %8654 = vmatmul.msk.bf16.vlgmr.msrb.gmra.mxu3 %vm977_vm3, %v1094_v40  ;;  %v1062_v42 = vpop.f32.mrf.mxu2 }
  0xd0   : > { %8663 = vmatmul.msk.bf16.vlgmr.msrb.gmra.mxu0 %vm977_vm3, %v1094_v40  ;;  %v1086_v43 = vpop.f32.mrf.mxu3 }
 0x14d   : > { %v1397_v44 = vpop.f32.mrf.mxu0 }
 0x14e   : > { %v10510_v49 = vadd.f32 %v10092_v45, %v1397_v44 }
 0x152   : > { %v1123_v46 = vpop.f32.mrf.mxu2  ;;  %v1260_v47 = vpop.f32.mrf.mxu3 }
 0x153   : > { %v1261_v56 = vadd.f32 %v10094_v51, %v1260_v47  ;;  %v10529_v60 = vadd.f32 %v10093_v53, %v1123_v46 }
 0x155   : > { %v1399_v48 = vpop.f32.mrf.mxu0  ;;  %v1287_v4 = vrot.slane %v1261_v56, 4 }
 0x156   : > { %v10512_v50 = vadd.f32 %v10092_v45, %v1399_v48 }
 0x158   : > { %v10517_v52 = vpack.i.bf16 %v10512_v50, %v10510_v49 }
 0x15a   : > { %9833 = vrot.lane.b32.xlu2 %v10517_v52, %s13392_s26  ;;  %9828 = vrot.lane.b32.xlu0 %v10517_v52, %s13398_s28  ;;  %v1125_v54 = vpop.f32.mrf.mxu2  ;;  %v1262_v55 = vpop.f32.mrf.mxu3 }
 0x15b   : > { %v10524_v57 = vadd.f32 %v10094_v51, %v1262_v55  ;;  %v10526_v58 = vadd.f32 %v10093_v53, %v1125_v54 }
 0x15d   : > { %v9847_v59 = vpack.i.bf16 %v10524_v57, %v1261_v56  ;;  %v9852_v61 = vpack.i.bf16 %v10526_v58, %v10529_v60 }
 0x15f   : > { %9848 = vrot.lane.b32.xlu1 %v9847_v59, %s13394_s1 }
 0x162   : > { %9838 = vrot.lane.b32.xlu0 %v9847_v59, %s13398_s28  ;;  %9853 = vrot.lane.b32.xlu2 %v9852_v61, %s13398_s28  ;;  %s13472_s28 = sld [smem:[#allocation18_spill]] }
 0x167   : > { %9863 = vrot.lane.b32.xlu1 %v9852_v61, %s13392_s26 }
 0x16a   : > { %9843 = vrot.lane.b32.xlu0 %v9847_v59, %s13392_s26  ;;  %s13432_s26 = sld [smem:[#allocation16_spill]] }
 0x172   : > { %9858 = vrot.lane.b32.xlu0 %v9852_v61, %s13394_s1 }
 0x1b4   : > { %v10572_v10 = vpop.permute.xlu2 %9833 }
 0x1bc   : > { %v10574_v11 = vpop.permute.xlu2 %9853 }
 0x1cc   : > { %v10539_v62 = vpop.permute.xlu0 %9828 }
 0x1d1   : > { %v9849_v63 = vpop.permute.xlu1 %9848 }
 0x1d2   : > { %v9850_v1 = vunpack.i.l.bf16 %v9849_v63  ;;  %v9851_v54 = vunpack.i.h.bf16 %v9849_v63 }
 0x1d4   : > { %v9839_v0 = vpop.permute.xlu0 %9838  ;;  %v1285_v5 = vrot.slane %v9850_v1, 4  ;;  %v1288_v6 = vsel %vm1149_vm4, %v9850_v1, %v1287_v4  ;;  %v1341_v1 = vrot.slane %v9851_v54, 4 }
 0x1d5   : > { %v9840_v7 = vunpack.i.l.bf16 %v9839_v0  ;;  %v1296_v13 = vperm.slane %v1288_v6, %v10542_v8  ;;  %v9841_v55 = vunpack.i.h.bf16 %v9839_v0 }
 0x1d6   : > { %v1286_v12 = vsel %vm1149_vm4, %v1285_v5, %v1261_v56  ;;  %v1342_v5 = vsel %vm1149_vm4, %v1341_v1, %v10524_v57 }
 0x1d7   : > { %v1299_v15 = vrot.slane %v9840_v7, 4  ;;  %v1292_v16 = vperm.slane %v1286_v12, %v10542_v8  ;;  %v1323_v20 = vrot.slane %v1296_v13, 4 }
 0x1d9   : > { %v1311_v27 = vrot.slane %v1292_v16, 4 }
 0x1dc   : > { %v9844_v9 = vpop.permute.xlu0 %9843 }
 0x1dd   : > { %v9845_v14 = vunpack.i.l.bf16 %v9844_v9  ;;  %v9846_v45 = vunpack.i.h.bf16 %v9844_v9 }
 0x1df   : > { %v1297_v17 = vrot.slane %v9845_v14, 4  ;;  %v1300_v18 = vsel %vm1149_vm4, %v9845_v14, %v1299_v15  ;;  %v1347_v48 = vrot.slane %v9846_v45, 4 }
 0x1e0   : > { %v1308_v21 = vperm.slane %v1300_v18, %v10542_v8 }
 0x1e1   : > { %v1298_v22 = vsel %vm1149_vm4, %v1297_v17, %v9840_v7  ;;  %v1348_v59 = vsel %vm1149_vm4, %v1347_v48, %v9841_v55  ;;  %v1346_v7 = vperm.slane %v1342_v5, %v10542_v8 }
 0x1e2   : > { %v1304_v23 = vperm.slane %v1298_v22, %v10542_v8  ;;  %v1321_v24 = vrot.slane %v1308_v21, 4  ;;  %v1324_v25 = vsel %vm1149_vm4, %v1308_v21, %v1323_v20  ;;  %v1352_v4 = vperm.slane %v1348_v59, %v10542_v8 }
 0x1e3   : > { %v1332_v26 = vperm.slane %v1324_v25, %v10548_v19 }
 0x1e4   : > { %v1322_v28 = vsel %vm1149_vm4, %v1321_v24, %v1296_v13  ;;  %v1312_v31 = vsel %vm1149_vm4, %v1304_v23, %v1311_v27  ;;  %v1309_v46 = vrot.slane %v1304_v23, 4  ;;  %v1353_v6 = vrot.slane %v1352_v4, 4  ;;  %v10576_v13 = vpop.permute.xlu1 %9863  ;;  %v10578_v15 = vpop.permute.xlu0 %9858 }
 0x1e5   : > { %v1339_v29 = vrot.slane %v1332_v26, 4  ;;  %v1328_v30 = vperm.slane %v1322_v28, %v10548_v19  ;;  %v1320_v32 = vperm.slane %v1312_v31, %v10548_v19  ;;  %v1365_v35 = vpack.c.bf16 %v1332_v26, %v1332_v26 }
 0x1e6   : > { %v1310_v51 = vsel %vm1149_vm4, %v1309_v46, %v1292_v16  ;;  %v1354_v63 = vsel %vm1149_vm4, %v1353_v6, %v1346_v7 }
 0x1e7   : > { %v1340_v33 = vsel %vm1149_vm4, 0.0, %v1339_v29  ;;  %v1337_v34 = vrot.slane %v1328_v30, 4  ;;  %v1335_v39 = vrot.slane %v1320_v32, 4  ;;  %v1363_v42 = vpack.c.bf16 %v1328_v30, %v1328_v30 }
 0x1e8   : > { %v1366_v37 = vpack.c.bf16 %v1340_v33, %v1340_v33  ;;  %v1361_v47 = vpack.c.bf16 %v1320_v32, %v1320_v32  ;;  %v1316_v53 = vperm.slane %v1310_v51, %v10548_v19  ;;  %v1358_v0 = vperm.slane %v1354_v63, %v10548_v19 }
 0x1e9   : > { %v1338_v40 = vsel %vm1149_vm4, 0.0, %v1337_v34  ;;  %v1336_v41 = vsel %vm1149_vm4, 0.0, %v1335_v39 }
 0x1ea   : > { %9867 = vxpose.binary.xlu2.c.b16.start.end [1/2] (short) (narrow) %v1366_v37, %v1365_v35, 16  ;;  %v1364_v43 = vpack.c.bf16 %v1338_v40, %v1338_v40  ;;  %v1362_v44 = vpack.c.bf16 %v1336_v41, %v1336_v41  ;;  %v1333_v56 = vrot.slane %v1316_v53, 4  ;;  %v1359_v2 = vpack.c.bf16 %v1316_v53, %v1316_v53 }
 0x1eb   : > { %v1367_v9 = vpack.c.bf16 %v1358_v0, %v1358_v0 }
 0x1ec   : > { %9870 = vxpose.binary.xlu1.c.b16.start.end [1/2] (short) (narrow) %v1364_v43, %v1363_v42, 16  ;;  %v1334_v61 = vsel %vm1149_vm4, 0.0, %v1333_v56 }
 0x1ed   : > { %9876 = vxpose.binary.xlu0.c.b16.start.end [1/2] (short) (narrow) %v1362_v44, %v1361_v47, 16  ;;  %v1360_v3 = vpack.c.bf16 %v1334_v61, %v1334_v61 }
 0x1fa   : > { %9873 = vxpose.binary.xlu2.c.b16.start.end [1/2] (short) (narrow) %v1360_v3, %v1359_v2, 16 }
 0x20a   : > { %1703 = vxpose.xlu2.c.b16.start.end [1/1] (short) (narrow) %v1367_v9, 16 }
 0x28b   : > { %v9868_v12 = vpop.trf.xlu2 }
 0x28c   : > { %v1725_v57 = vrot.slane %v9868_v12, 4 }
 0x293   : > { %v9869_v14 = vpop.trf.xlu2 }
 0x294   : > { %v1771_v26 = vrot.slane %v9869_v14, 4 }
 0x298   : > { %v9871_v16 = vpop.trf.xlu1 }
 0x299   : > { %v9877_v18 = vpop.trf.xlu0  ;;  %v1719_v20 = vrot.slane %v9871_v16, 4 }
 0x29a   : > { %v1726_v21 = vsel %vm1149_vm4, %v1725_v57, %v9877_v18 }
 0x29b   : > { %v9874_v17 = vpop.trf.xlu2  ;;  %v1730_v23 = vperm.slane %v1726_v21, %v10542_v8 }
 0x29c   : > { %v1720_v22 = vsel %vm1149_vm4, %v1719_v20, %v9874_v17 }
 0x29d   : > { %v1724_v24 = vperm.slane %v1720_v22, %v10542_v8  ;;  %v1735_v27 = vrot.slane %v1730_v23, 4 }
 0x29f   : > { %v1737_v25 = vrot.slane %v1724_v24, 4  ;;  %v1736_v37 = vsel %vm1149_vm4, %v1735_v27, %v1724_v24 }
 0x2a0   : > { %v9872_v29 = vpop.trf.xlu1  ;;  %v1742_v42 = vperm.slane %v1736_v37, %v10548_v19 }
 0x2a1   : > { %v1738_v28 = vsel %vm1149_vm4, %v1730_v23, %v1737_v25  ;;  %v9878_v31 = vpop.trf.xlu0  ;;  %v1765_v32 = vrot.slane %v9872_v29, 4 }
 0x2a2   : > { %v1772_v33 = vsel %vm1149_vm4, %v1771_v26, %v9878_v31  ;;  %v1746_v53 = vperm.slane %v1738_v28, %v10548_v19  ;;  %v1759_v56 = vrot.slane %v1742_v42, 4  ;;  %v9830_v31 = vunpack.i.l.bf16 %v10539_v62 }
 0x2a3   : > { %v9875_v30 = vpop.trf.xlu2  ;;  %v1776_v34 = vperm.slane %v1772_v33, %v10542_v8  ;;  %v9835_v33 = vunpack.i.l.bf16 %v10572_v10 }
 0x2a4   : > { %v1766_v35 = vsel %vm1149_vm4, %v1765_v32, %v9875_v30  ;;  %v1763_v12 = vrot.slane %v1746_v53, 4 }
 0x2a5   : > { %v1770_v39 = vperm.slane %v1766_v35, %v10542_v8  ;;  %v1777_v40 = vrot.slane %v1776_v34, 4  ;;  %v1434_v35 = vrot.slane %v9835_v33, 4 }
 0x2a7   : > { %v1779_v41 = vrot.slane %v1770_v39, 4  ;;  %v1778_v43 = vsel %vm1149_vm4, %v1777_v40, %v1770_v39  ;;  %v1435_v39 = vsel %vm1149_vm4, %v1434_v35, %v9830_v31  ;;  %v9860_v35 = vunpack.i.l.bf16 %v10578_v15 }
 0x2a8   : > { %v10594_v45 = vperm.slane %v1778_v43, %v10548_v19  ;;  %v1441_v43 = vperm.slane %v1435_v39, %v10542_v8  ;;  %v9855_v39 = vunpack.i.l.bf16 %v10574_v11 }
 0x2a9   : > { %v1780_v44 = vsel %vm1149_vm4, %v1776_v34, %v1779_v41  ;;  %v1436_v34 = vrot.slane %v9830_v31, 4 }
 0x2aa   : > { %v10598_v48 = vperm.slane %v1780_v44, %v10548_v19  ;;  %v1789_v51 = vrot.slane %v10594_v45, 4  ;;  %v1798_v9 = vshrl.u32 %v10594_v45, 16 }
 0x2ab   : > { %v1711_v46 = vpop.trf.xlu2  ;;  %v1437_v37 = vsel %vm1149_vm4, %v9835_v33, %v1436_v34 }
 0x2ac   : > { %v1734_v47 = vperm.slane %v1711_v46, %v10542_v8  ;;  %v1791_v59 = vrot.slane %v10598_v48, 4  ;;  %v1790_v61 = vsel %vm1149_vm4, 0, %v1789_v51  ;;  %v1814_v27 = vshrl.u32 %v10598_v48, 16 }
 0x2ad   : > { %v1806_v6 = vshrl.u32 %v1790_v61, 16  ;;  %v1445_v40 = vperm.slane %v1437_v37, %v10542_v8  ;;  %v1151_v37 = vrot.slane %v10529_v60, 4 }
 0x2ae   : > { %v1747_v54 = vrot.slane %v1734_v47, 4  ;;  %v1752_v55 = vperm.slane %v1734_v47, %v10548_v19  ;;  %v10609_v7 = vsel %vm1149_vm4, 0, %v1791_v59 }
 0x2af   : > { %v1822_v20 = vshrl.u32 %v10609_v7, 16  ;;  %v1458_v47 = vrot.slane %v1445_v40, 4 }
 0x2b0   : > { %v1748_v1 = vsel %vm1149_vm4, 0, %v1747_v54  ;;  %v1757_v2 = vrot.slane %v1752_v55, 4  ;;  %v1760_v3 = vsel %vm1149_vm4, %v1752_v55, %v1759_v56 }
 0x2b1   : > { %v1756_v4 = vperm.slane %v1748_v1, %v10548_v19  ;;  %v1805_v5 = vshrl.u32 %v1760_v3, 16  ;;  %v1803_v63 = vpack.i.b16 %v1790_v61, %v1760_v3 }
 0x2b2   : > { %v10612_v0 = vsel %vm1149_vm4, %v1757_v2, %v1742_v42 }
 0x2b3   : > { %v1761_v14 = vrot.slane %v1756_v4, 4  ;;  %v1807_v57 = vpack.i.b16 %v1806_v6, %v1805_v5  ;;  %v1795_v16 = vpack.i.b16 %v10594_v45, %v10612_v0  ;;  %v1797_v17 = vshrl.u32 %v10612_v0, 16 }
 0x2b4   : > { %v10619_v18 = vsel %vm1149_vm4, %v1756_v4, %v1763_v12 }
 0x2b5   : > { %9879 = vxpose.binary.xlu1.c.b16.start.end [1/2] (short) (narrow) %v1807_v57, %v1803_v63, 16  ;;  %v1762_v21 = vsel %vm1149_vm4, %v1761_v14, %v1746_v53  ;;  %v1799_v22 = vpack.i.b16 %v1798_v9, %v1797_v17  ;;  %v1819_v23 = vpack.i.b16 %v10609_v7, %v10619_v18  ;;  %v1821_v24 = vshrl.u32 %v10619_v18, 16 }
 0x2b6   : > { %v1811_v25 = vpack.i.b16 %v10598_v48, %v1762_v21  ;;  %v1813_v26 = vshrl.u32 %v1762_v21, 16  ;;  %v1446_v53 = vrot.slane %v1441_v43, 4 }
 0x2b7   : > { %v1823_v28 = vpack.i.b16 %v1822_v20, %v1821_v24 }
 0x2b8   : > { %v1815_v29 = vpack.i.b16 %v1814_v27, %v1813_v26 }
 0x30f   : > { %9883 = vrot.lane.b32.xlu1 %v10517_v52, %s13394_s1  ;;  %v1424_v52 = vrot.slane %v10510_v49, 4  ;;  %s13433_s1 = sld [smem:[#allocation17_spill]] }
 0x361   : > { %v10630_v30 = vpop.trf.xlu1 }
 0x369   : > { %v10633_v32 = vpop.trf.xlu1 }
 0x381   : > { %v10639_v41 = vpop.permute.xlu1 %9883 }
 0x382   : > { %v9885_v42 = vunpack.i.l.bf16 %v10639_v41 }
 0x384   : > { %v1422_v44 = vrot.slane %v9885_v42, 4  ;;  %v1425_v46 = vsel %vm1149_vm4, %v9885_v42, %v1424_v52  ;;  %v1152_v52 = vsel %vm1149_vm4, %v9860_v35, %v1151_v37  ;;  %v9865_v42 = vunpack.i.l.bf16 %v10576_v13 }
 0x385   : > { %v1433_v48 = vperm.slane %v1425_v46, %v10542_v8  ;;  %v9861_v37 = vunpack.i.h.bf16 %v10578_v15 }
 0x386   : > { %v1423_v51 = vsel %vm1149_vm4, %v1422_v44, %v10510_v49  ;;  %v1161_v0 = vrot.slane %v9865_v42, 4 }
 0x387   : > { %v1429_v54 = vperm.slane %v1423_v51, %v10542_v8  ;;  %v1460_v55 = vrot.slane %v1433_v48, 4  ;;  %v1459_v56 = vsel %vm1149_vm4, %v1458_v47, %v1433_v48 }
 0x388   : > { %v1465_v59 = vperm.slane %v1459_v56, %v10548_v19 }
 0x389   : > { %v1461_v61 = vsel %vm1149_vm4, %v1445_v40, %v1460_v55  ;;  %v1447_v1 = vsel %vm1149_vm4, %v1446_v53, %v1429_v54  ;;  %v1448_v2 = vrot.slane %v1429_v54, 4  ;;  %v1148_v40 = vrot.slane %v9860_v35, 4 }
 0x38a   : > { %v1474_v3 = vrot.slane %v1465_v59, 4  ;;  %v1469_v4 = vperm.slane %v1461_v61, %v10548_v19  ;;  %v1453_v5 = vperm.slane %v1447_v1, %v10548_v19  ;;  %v1500_v63 = vpack.c.bf16 %v1465_v59, %v1465_v59 }
 0x38b   : > { %v1449_v57 = vsel %vm1149_vm4, %v1441_v43, %v1448_v2  ;;  %v1150_v45 = vsel %vm1149_vm4, %v1148_v40, %v10529_v60  ;;  %v1162_v53 = vsel %vm1149_vm4, %v1161_v0, %v9855_v39  ;;  %v9856_v0 = vunpack.i.h.bf16 %v10574_v11 }
 0x38c   : > { %v1475_v49 = vsel %vm1149_vm4, 0.0, %v1474_v3  ;;  %v1476_v6 = vrot.slane %v1469_v4, 4  ;;  %v1470_v7 = vrot.slane %v1453_v5, 4  ;;  %v1502_v17 = vpack.c.bf16 %v1469_v4, %v1469_v4 }
 0x38d   : > { %v1501_v9 = vpack.c.bf16 %v1475_v49, %v1475_v49  ;;  %v1496_v21 = vpack.c.bf16 %v1453_v5, %v1453_v5  ;;  %v1457_v24 = vperm.slane %v1449_v57, %v10548_v19  ;;  %v1168_v2 = vperm.slane %v1162_v53, %v10542_v8 }
 0x38e   : > { %v1477_v12 = vsel %vm1149_vm4, 0.0, %v1476_v6  ;;  %v1471_v14 = vsel %vm1149_vm4, 0.0, %v1470_v7 }
 0x38f   : > { %9887 = vxpose.binary.xlu2.c.b16.start.end [1/2] (short) (narrow) %v1501_v9, %v1500_v63, 16  ;;  %v1503_v18 = vpack.c.bf16 %v1477_v12, %v1477_v12  ;;  %v1497_v20 = vpack.c.bf16 %v1471_v14, %v1471_v14  ;;  %v1472_v26 = vrot.slane %v1457_v24, 4  ;;  %v1498_v31 = vpack.c.bf16 %v1457_v24, %v1457_v24 }
 0x391   : > { %9893 = vxpose.binary.xlu1.c.b16.start.end [1/2] (short) (narrow) %v1503_v18, %v1502_v17, 16  ;;  %v1473_v27 = vsel %vm1149_vm4, 0.0, %v1472_v26  ;;  %v9866_v26 = vunpack.i.h.bf16 %v10576_v13 }
 0x392   : > { %9890 = vxpose.binary.xlu0.c.b16.start.end [1/2] (short) (narrow) %v1497_v20, %v1496_v21, 16  ;;  %v1499_v33 = vpack.c.bf16 %v1473_v27, %v1473_v27  ;;  %v1173_v27 = vrot.slane %v1168_v2, 4 }
 0x393   : > { %v1211_v13 = vrot.slane %v9866_v26, 4 }
 0x39f   : > { %9896 = vxpose.binary.xlu2.c.b16.start.end [1/2] (short) (narrow) %v1499_v33, %v1498_v31, 16 }
 0x3a2   : > { %9905 = vxpose.binary.xlu0.c.b16.start.end [1/2] (short) (narrow) %v1815_v29, %v1811_v25, 16  ;;  %v1160_v25 = vperm.slane %v1152_v52, %v10542_v8  ;;  %v1163_v29 = vrot.slane %v9855_v39, 4 }
 0x3af   : > { %9899 = vxpose.binary.xlu2.c.b16.start.end [1/2] (short) (narrow) %v1799_v22, %v1795_v16, 16  ;;  %v1164_v16 = vsel %vm1149_vm4, %v9865_v42, %v1163_v29  ;;  %v1156_v22 = vperm.slane %v1150_v45, %v10542_v8 }
 0x3b0   : > { %v1172_v48 = vperm.slane %v1164_v16, %v10542_v8  ;;  %v1205_v16 = vrot.slane %v9861_v37, 4 }
 0x3b1   : > { %v1175_v60 = vrot.slane %v1156_v22, 4  ;;  %v1174_v39 = vsel %vm1149_vm4, %v1173_v27, %v1156_v22 }
 0x3b2   : > { %v1185_v49 = vrot.slane %v1172_v48, 4 }
 0x3b3   : > { %v1176_v6 = vsel %vm1149_vm4, %v1168_v2, %v1175_v60 }
 0x3b4   : > { %v1186_v57 = vsel %vm1149_vm4, %v1185_v49, %v1160_v25  ;;  %v1184_v18 = vperm.slane %v1176_v6, %v10548_v19 }
 0x3b5   : > { %v1192_v33 = vperm.slane %v1186_v57, %v10548_v19 }
 0x3b6   : > { %v1199_v40 = vrot.slane %v1184_v18, 4 }
 0x3b7   : > { %v1201_v29 = vrot.slane %v1192_v33, 4 }
 0x3b8   : > { %v1200_v22 = vsel %vm1149_vm4, 0.0, %v1199_v40 }
 0x3bf   : > { %9902 = vxpose.binary.xlu2.c.b16.start.end [1/2] (short) (narrow) %v1823_v28, %v1819_v23, 16  ;;  %v1187_v23 = vrot.slane %v1160_v25, 4  ;;  %v1180_v25 = vperm.slane %v1174_v39, %v10548_v19 }
 0x3c1   : > { %v1188_v56 = vsel %vm1149_vm4, %v1172_v48, %v1187_v23  ;;  %v1206_v48 = vsel %vm1149_vm4, %v1205_v16, %v10526_v58 }
 0x3c2   : > { %v1196_v3 = vperm.slane %v1188_v56, %v10548_v19  ;;  %v1210_v56 = vperm.slane %v1206_v48, %v10542_v8 }
 0x3c4   : > { %v1203_v20 = vrot.slane %v1196_v3, 4 }
 0x3c6   : > { %v1204_v52 = vsel %vm1149_vm4, 0.0, %v1203_v20 }
 0x3c7   : > { %v1230_v15 = vpack.c.bf16 %v1204_v52, %v1204_v52 }
 0x3c9   : > { %v1532_v53 = vrot.slane %v1230_v15, 4 }
 0x430   : > { %v9888_v34 = vpop.trf.xlu2 }
 0x431   : > { %v2339_v28 = vrot.slane %v9888_v34, 4 }
 0x438   : > { %v9889_v43 = vpop.trf.xlu2 }
 0x439   : > { %v2385_v7 = vrot.slane %v9889_v43, 4 }
 0x43d   : > { %v9894_v44 = vpop.trf.xlu1 }
 0x43e   : > { %v9891_v46 = vpop.trf.xlu0  ;;  %v2345_v47 = vrot.slane %v9894_v44, 4  ;;  %v1229_v44 = vpack.c.bf16 %v1196_v3, %v1196_v3 }
 0x43f   : > { %v2340_v51 = vsel %vm1149_vm4, %v2339_v28, %v9891_v46  ;;  %v1212_v28 = vsel %vm1149_vm4, %v1211_v13, %v9856_v0  ;;  %v1197_v46 = vrot.slane %v1180_v25, 4 }
 0x440   : > { %v2344_v54 = vperm.slane %v2340_v51, %v10542_v8  ;;  %v9897_v55 = vpop.trf.xlu2  ;;  %v1226_v51 = vpack.c.bf16 %v1200_v22, %v1200_v22  ;;  %v1512_v60 = vrot.slane %v1229_v44, 4 }
 0x441   : > { %v2346_v59 = vsel %vm1149_vm4, %v2345_v47, %v9897_v55  ;;  %v1202_v47 = vsel %vm1149_vm4, 0.0, %v1201_v29  ;;  %v1225_v55 = vpack.c.bf16 %v1184_v18, %v1184_v18 }
 0x442   : > { %v2357_v61 = vrot.slane %v2344_v54, 4  ;;  %v2350_v1 = vperm.slane %v2346_v59, %v10542_v8  ;;  %v1228_v11 = vpack.c.bf16 %v1202_v47, %v1202_v47  ;;  %v1198_v59 = vsel %vm1149_vm4, 0.0, %v1197_v46 }
 0x443   : > { %v1513_v58 = vsel %vm1149_vm4, %v1512_v60, %v1225_v55 }
 0x444   : > { %v2355_v4 = vrot.slane %v2350_v1, 4  ;;  %v10684_v5 = vsel %vm1149_vm4, %v2350_v1, %v2357_v61  ;;  %v1227_v61 = vpack.c.bf16 %v1192_v33, %v1192_v33  ;;  %v1533_v1 = vsel %vm1149_vm4, %v1532_v53, %v1226_v51 }
 0x445   : > { %v9895_v63 = vpop.trf.xlu1  ;;  %v1526_v49 = vrot.slane %v1228_v11, 4  ;;  %v1517_v57 = vperm.slane %v1513_v58, %v10542_v8 }
 0x446   : > { %v10688_v9 = vsel %vm1149_vm4, %v2355_v4, %v2344_v54  ;;  %v9892_v12 = vpop.trf.xlu0  ;;  %v2391_v14 = vrot.slane %v9895_v63, 4  ;;  %v1216_v54 = vperm.slane %v1212_v28, %v10542_v8  ;;  %v1224_v4 = vpack.c.bf16 %v1198_v59, %v1198_v59 }
 0x447   : > { %v2386_v17 = vsel %vm1149_vm4, %v2385_v7, %v9892_v12  ;;  %v1537_v63 = vperm.slane %v1533_v1, %v10542_v8  ;;  %v1223_v12 = vpack.c.bf16 %v1180_v25, %v1180_v25  ;;  %v1518_v27 = vrot.slane %v1517_v57, 4 }
 0x448   : > { %v2390_v21 = vperm.slane %v2386_v17, %v10542_v8  ;;  %v9898_v24 = vpop.trf.xlu2  ;;  %v1217_v2 = vrot.slane %v1216_v54, 4  ;;  %v1527_v18 = vsel %vm1149_vm4, %v1526_v49, %v1224_v4 }
 0x449   : > { %v2392_v31 = vsel %vm1149_vm4, %v2391_v14, %v9898_v24  ;;  %v1505_v14 = vrot.slane %v1227_v61, 4  ;;  %v1538_v20 = vrot.slane %v1537_v63, 4 }
 0x44a   : > { %v2399_v34 = vrot.slane %v2390_v21, 4  ;;  %v2396_v35 = vperm.slane %v2392_v31, %v10542_v8  ;;  %v1218_v6 = vsel %vm1149_vm4, %v1217_v2, %v1210_v56  ;;  %v1531_v31 = vperm.slane %v1527_v18, %v10542_v8 }
 0x44b   : > { %v1222_v17 = vperm.slane %v1218_v6, %v10548_v19 }
 0x44c   : > { %v2397_v42 = vrot.slane %v2396_v35, 4  ;;  %v10702_v43 = vsel %vm1149_vm4, %v2396_v35, %v2399_v34  ;;  %v1539_v37 = vsel %vm1149_vm4, %v1538_v20, %v1531_v31 }
 0x44d   : > { %v1546_v33 = vpack.c.bf16 %v1222_v17, %v1222_v17  ;;  %v1543_v25 = vperm.slane %v1539_v37, %v10548_v19 }
 0x44e   : > { %v10706_v45 = vsel %vm1149_vm4, %v2397_v42, %v2390_v21  ;;  %v9906_v7 = vpop.trf.xlu0  ;;  %v1507_v21 = vsel %vm1149_vm4, %v1505_v14, %v1223_v12 }
 0x44f   : > { %v1953_v24 = vrot.slane %v9906_v7, 4  ;;  %v1511_v35 = vperm.slane %v1507_v21, %v10542_v8  ;;  %v1550_v29 = vperm.slane %v1546_v33, %v10548_v19  ;;  %v1557_v55 = vshrl.u32 %v1543_v25, 16 }
 0x450   : > { %v9900_v23 = vpop.trf.xlu2 }
 0x451   : > { %v1954_v39 = vsel %vm1149_vm4, %v1953_v24, %v9900_v23  ;;  %v1519_v13 = vsel %vm1149_vm4, %v1518_v27, %v1511_v35  ;;  %v1551_v46 = vrot.slane %v1550_v29, 4  ;;  %v1567_v11 = vpack.i.b16 0, %v1550_v29 }
 0x452   : > { %v1958_v0 = vperm.slane %v1954_v39, %v10542_v8  ;;  %v1523_v22 = vperm.slane %v1519_v13, %v10548_v19  ;;  %v1568_v60 = vshrl.u32 %v1550_v29, 16 }
 0x453   : > { %v1552_v59 = vsel %vm1149_vm4, 0, %v1551_v46  ;;  %v2006_v12 = vunpack.c.l.b16 %v1567_v11 }
 0x454   : > { %v1524_v53 = vrot.slane %v1523_v22, 4  ;;  %v1555_v2 = vpack.i.b16 %v1543_v25, %v1523_v22  ;;  %v1573_v7 = vshrl.u32 %v1552_v59, 16  ;;  %v1570_v18 = vpack.i.b16 0, %v1568_v60 }
 0x455   : > { %v1572_v33 = vpack.i.b16 0, %v1552_v59 }
 0x456   : > { %v9907_v52 = vpop.trf.xlu0  ;;  %v2005_v17 = vunpack.c.l.b16 %v1555_v2  ;;  %v1574_v35 = vpack.i.b16 0, %v1573_v7  ;;  %v9886_v7 = vunpack.i.h.bf16 %v10639_v41 }
 0x457   : > { %v1973_v15 = vrot.slane %v9907_v52, 4 }
 0x458   : > { %v9901_v3 = vpop.trf.xlu2 }
 0x459   : > { %v1974_v47 = vsel %vm1149_vm4, %v1973_v15, %v9901_v3  ;;  %v1556_v3 = vshrl.u32 %v1523_v22, 16 }
 0x45a   : > { %v1978_v61 = vperm.slane %v1974_v47, %v10542_v8  ;;  %v2076_v47 = vunpack.c.l.b16 %v1574_v35 }
 0x45b   : > { %v1558_v58 = vpack.i.b16 %v1557_v55, %v1556_v3 }
 0x45d   : > { %v2029_v31 = vunpack.c.l.b16 %v1558_v58 }
 0x460   : > { %v9903_v26 = vpop.trf.xlu2 }
 0x461   : > { %v1959_v34 = vrot.slane %v9903_v26, 4 }
 0x463   : > { %v1960_v40 = vsel %vm1149_vm4, %v1959_v34, %v10630_v30  ;;  %v1544_v30 = vrot.slane %v1543_v25, 4 }
 0x464   : > { %v1964_v42 = vperm.slane %v1960_v40, %v10542_v8 }
 0x465   : > { %v1545_v56 = vsel %vm1149_vm4, 0, %v1544_v30 }
 0x466   : > { %v1965_v16 = vrot.slane %v1964_v42, 4  ;;  %v1563_v6 = vshrl.u32 %v1545_v56, 16 }
 0x468   : > { %v9904_v28 = vpop.trf.xlu2  ;;  %v1966_v23 = vsel %vm1149_vm4, %v1965_v16, %v1958_v0  ;;  %v2007_v0 = vpack.c.b16 %v2006_v12, %v2005_v17  ;;  %v2030_v16 = vunpack.c.l.b16 %v1570_v18 }
 0x469   : > { %v1979_v44 = vrot.slane %v9904_v28, 4  ;;  %v1970_v51 = vperm.slane %v1966_v23, %v10548_v19  ;;  %v2053_v28 = vunpack.c.l.b16 %v1572_v33 }
 0x46b   : > { %v1980_v48 = vsel %vm1149_vm4, %v1979_v44, %v10633_v32  ;;  %v1971_v4 = vrot.slane %v1970_v51, 4  ;;  %v1525_v32 = vsel %vm1149_vm4, 0, %v1524_v53  ;;  %v1996_v57 = vshrl.u32 %v1970_v51, 16 }
 0x46c   : > { %v1984_v54 = vperm.slane %v1980_v48, %v10542_v8  ;;  %v1561_v14 = vpack.i.b16 %v1545_v56, %v1525_v32  ;;  %v1562_v20 = vshrl.u32 %v1525_v32, 16  ;;  %v2031_v44 = vpack.c.b16 %v2030_v16, %v2029_v31 }
 0x46d   : > { %v1972_v26 = vsel %vm1149_vm4, 0, %v1971_v4 }
 0x46e   : > { %v1985_v1 = vrot.slane %v1984_v54, 4  ;;  %v1564_v34 = vpack.i.b16 %v1563_v6, %v1562_v20  ;;  %v2052_v52 = vunpack.c.l.b16 %v1561_v14  ;;  %v2002_v13 = vshrl.u32 %v1972_v26, 16 }
 0x46f   : > { %v9836_v6 = vunpack.i.h.bf16 %v10572_v10  ;;  %v1478_v14 = vrot.slane %v9886_v7, 4 }
 0x470   : > { %v1986_v49 = vsel %vm1149_vm4, %v1985_v1, %v1978_v61  ;;  %v2075_v23 = vunpack.c.l.b16 %v1564_v34  ;;  %v2054_v46 = vpack.c.b16 %v2053_v28, %v2052_v52 }
 0x471   : > { %v1990_v63 = vperm.slane %v1986_v49, %v10548_v19  ;;  %v1484_v12 = vrot.slane %v9836_v6, 4  ;;  %v1479_v17 = vsel %vm1149_vm4, %v1478_v14, %v10512_v50 }
 0x472   : > { %v2077_v48 = vpack.c.b16 %v2076_v47, %v2075_v23  ;;  %v1483_v20 = vperm.slane %v1479_v17, %v10542_v8 }
 0x473   : > { %v1995_v21 = vpack.i.b16 %v1990_v63, %v1970_v51  ;;  %v1997_v24 = vshrl.u32 %v1990_v63, 16  ;;  %v1991_v27 = vrot.slane %v1990_v63, 4  ;;  %v9831_v63 = vunpack.i.h.bf16 %v10539_v62 }
 0x475   : > { %v2013_v37 = vsel %vm1044_vm0, %v1995_v21, 0  ;;  %v1998_v39 = vpack.i.b16 %v1997_v24, %v1996_v57  ;;  %v1992_v40 = vsel %vm1149_vm4, 0, %v1991_v27  ;;  %v1485_v57 = vsel %vm1149_vm4, %v1484_v12, %v9831_v63 }
 0x476   : > { %2022 = vmatpush.bf16.msrb.mxu1 %v2013_v37  ;;  %v2001_v42 = vpack.i.b16 %v1992_v40, %v1972_v26  ;;  %v2003_v25 = vshrl.u32 %v1992_v40, 16  ;;  %v1489_v18 = vperm.slane %v1485_v57, %v10542_v8 }
 0x477   : > { %v2036_v29 = vsel %vm1044_vm0, %v1998_v39, 0 }
 0x478   : > { %2045 = vmatpush.bf16.msra.mxu2 %v2036_v29  ;;  %v2059_v15 = vsel %vm1044_vm0, %v2001_v42, 0  ;;  %v2004_v22 = vpack.i.b16 %v2003_v25, %v2002_v13  ;;  %v1490_v21 = vrot.slane %v1489_v18, 4 }
 0x479   : > { %8664 = vmatmul.msk.bf16.vlgmr.msrb.gmra.mxu1 %vm2008_vm5, %v2007_v0  ;;  %2068 = vmatpush.bf16.msra.mxu3 %v2059_v15 }
 0x47a   : > { %v2082_v30 = vsel %vm1044_vm0, %v2004_v22, 0  ;;  %v1491_v24 = vsel %vm1149_vm4, %v1490_v21, %v1483_v20 }
 0x47b   : > { %8665 = vmatmul.msk.bf16.vlgmr.msra.gmra.mxu2 %vm2008_vm5, %v2031_v44  ;;  %2091 = vmatpush.bf16.msra.mxu0 %v2082_v30  ;;  %v1495_v10 = vperm.slane %v1491_v24, %v10548_v19 }
 0x47c   : > { %8666 = vmatmul.msk.bf16.vlgmr.msra.gmra.mxu3 %vm2008_vm5, %v2054_v46 }
 0x47d   : > { %v1504_v26 = vpack.c.bf16 %v1495_v10, %v1495_v10 }
 0x47e   : > { %8667 = vmatmul.msk.bf16.vlgmr.msra.gmra.mxu0 %vm2008_vm5, %v2077_v48 }
 0x4f6   : > { %v2024_v51 = vpop.f32.mrf.mxu1 }
 0x4f7   : > { %v2098_v53 = vsel %vm1040_vm2, %v2024_v51, -inf }
 0x4f8   : > { %2099 = vmax.xlane.f32.xlu1 %v2098_v53 }
 0x4fb   : > { %v10760_v54 = vpop.f32.mrf.mxu0 }
 0x4fc   : > { %v2117_v55 = vsel %vm1040_vm2, %v10760_v54, -inf }
 0x4fd   : > { %2118 = vmax.xlane.f32.xlu0 %v2117_v55 }
 0x4fe   : > { %v2047_v11 = vpop.f32.mrf.mxu2  ;;  %v10769_v61 = vpop.f32.mrf.mxu1 }
 0x4ff   : > { %v10764_v60 = vpop.f32.mrf.mxu3  ;;  %v2105_v56 = vsel %vm1040_vm2, %v2047_v11, -inf  ;;  %v2102_v3 = vsel %vm2101_vm6, %v10769_v61, -inf }
 0x500   : > { %2106 = vmax.xlane.f32.xlu2 %v2105_v56  ;;  %v2111_v59 = vsel %vm1040_vm2, %v10764_v60, -inf  ;;  %v2408_v56 = vperm.slane %v10702_v43, %v10548_v19 }
 0x501   : > { %2112 = vmax.xlane.f32.xlu1 %v2111_v59  ;;  %v10818_v59 = vperm.slane %v10688_v9, %v10548_v19 }
 0x503   : > { %v2095_v1 = vpop.f32.mrf.mxu0 }
 0x504   : > { %v2120_v4 = vsel %vm2101_vm6, %v2095_v1, -inf }
 0x506   : > { %v2049_v49 = vpop.f32.mrf.mxu2 }
 0x507   : > { %v2072_v2 = vpop.f32.mrf.mxu3  ;;  %v2108_v58 = vsel %vm2101_vm6, %v2049_v49, -inf }
 0x508   : > { %2103 = vmax.xlane.f32.xlu2 %v2102_v3  ;;  %v2114_v32 = vsel %vm2101_vm6, %v2072_v2, -inf  ;;  %v2366_v3 = vperm.slane %v10684_v5, %v10548_v19 }
 0x509   : > { %2121 = vmax.xlane.f32.xlu1 %v2120_v4  ;;  %2115 = vmax.xlane.f32.xlu0 %v2114_v32  ;;  %v2411_v32 = vrot.slane %v2408_v56, 4 }
 0x50a   : > { %v2383_v6 = vrot.slane %v2366_v3, 4 }
 0x50b   : > { %v2412_v14 = vsel %vm1149_vm4, 0, %v2411_v32 }
 0x50c   : > { %v2442_v10 = vshrl.u32 %v2412_v14, 16 }
 0x511   : > { %2109 = vmax.xlane.f32.xlu1 %v2108_v58 }
 0x532   : > { %2323 = vxpose.xlu0.c.b16.start.end [1/1] (short) (narrow) %v1504_v26, 16 }
 0x56b   : > { %v2100_v41 = vpop.xlane.xlu1 %2099 }
 0x56c   : > { %v2123_v62 = vsub.f32 %v2024_v51, %v2100_v41 }
 0x56e   : > { %v2131_v27 = vmul.f32 1.442695, %v2123_v62 }
 0x570   : > { %10110 = vpow2.f32 %v2131_v27  ;;  %v2119_v22 = vpop.xlane.xlu0 %2118 }
 0x571   : > { %v2129_v44 = vsub.f32 %v10760_v54, %v2119_v22  ;;  %v10812_v54 = vperm.slane %v10706_v45, %v10548_v19 }
 0x573   : > { %v2107_v31 = vpop.xlane.xlu2 %2106  ;;  %v2143_v30 = vmul.f32 1.442695, %v2129_v44 }
 0x574   : > { %v2125_v33 = vsub.f32 %v2047_v11, %v2107_v31  ;;  %v10786_v34 = vpop.xlane.xlu1 %2112  ;;  %v2434_v31 = vshrl.u32 %v2408_v56, 16 }
 0x576   : > { %v10788_v50 = vpop.eup %10110  ;;  %v2135_v35 = vmul.f32 1.442695, %v2125_v33 }
 0x577   : > { %v2147_v37 = vsel %vm1040_vm2, %v10788_v50, 0.0 }
 0x578   : > { %10112 = vpow2.f32 %v2135_v35  ;;  %2148 = vadd.xlane.f32.xlu1 %v2147_v37 }
 0x57c   : > { %v2122_v39 = vpop.xlane.xlu1 %2121  ;;  %v2116_v46 = vpop.xlane.xlu0 %2115 }
 0x57d   : > { %v2130_v40 = vsub.f32 %v2095_v1, %v2122_v39  ;;  %v2128_v47 = vsub.f32 %v2072_v2, %v2116_v46  ;;  %v2409_v1 = vrot.slane %v10812_v54, 4 }
 0x57e   : > { %v10792_v52 = vpop.eup %10112 }
 0x57f   : > { %v2145_v42 = vmul.f32 1.442695, %v2130_v40  ;;  %v2153_v13 = vsel %vm1040_vm2, %v10792_v52, 0.0  ;;  %v2141_v48 = vmul.f32 1.442695, %v2128_v47  ;;  %v2410_v43 = vsel %vm1149_vm4, 0, %v2409_v1 }
 0x580   : > { %2154 = vadd.xlane.f32.xlu1 %v2153_v13  ;;  %v2426_v12 = vshrl.u32 %v2410_v43, 16 }
 0x581   : > { %10114 = vpow2.f32 %v2145_v42 }
 0x584   : > { %v2110_v25 = vpop.xlane.xlu1 %2109 }
 0x585   : > { %v2126_v29 = vsub.f32 %v2049_v49, %v2110_v25  ;;  %v2379_v49 = vrot.slane %v10818_v59, 4 }
 0x587   : > { %v10796_v0 = vpop.eup %10114  ;;  %v2137_v16 = vmul.f32 1.442695, %v2126_v29 }
 0x588   : > { %v2168_v15 = vsel %vm2101_vm6, %v10796_v0, 0.0 }
 0x589   : > { %10116 = vpow2.f32 %v2137_v16  ;;  %2169 = vadd.xlane.f32.xlu1 %v2168_v15 }
 0x58a   : > { %10118 = vpow2.f32 %v2143_v30 }
 0x58b   : > { %10120 = vpow2.f32 %v2141_v48 }
 0x58f   : > { %v10117_v28 = vpop.eup %10116 }
 0x590   : > { %v2156_v23 = vsel %vm2101_vm6, %v10117_v28, 0.0  ;;  %v10802_v51 = vpop.eup %10118 }
 0x591   : > { %2157 = vadd.xlane.f32.xlu1 %v2156_v23  ;;  %v2165_v53 = vsel %vm1040_vm2, %v10802_v51, 0.0  ;;  %v10806_v55 = vpop.eup %10120 }
 0x592   : > { %v2162_v11 = vsel %vm2101_vm6, %v10806_v55, 0.0 }
 0x5a3   : > { %2166 = vadd.xlane.f32.xlu0 %v2165_v53 }
 0x5ab   : > { %2163 = vadd.xlane.f32.xlu0 %v2162_v11 }
 0x5de   : > { %v2331_v2 = vpop.trf.xlu0 }
 0x5df   : > { %v2354_v4 = vperm.slane %v2331_v2, %v10542_v8 }
 0x5e1   : > { %v2367_v45 = vrot.slane %v2354_v4, 4  ;;  %v10826_v58 = vperm.slane %v2354_v4, %v10548_v19  ;;  %v2104_v4 = vpop.xlane.xlu2 %2103 }
 0x5e2   : > { %v2124_v32 = vsub.f32 %v10769_v61, %v2104_v4 }
 0x5e3   : > { %v2368_v9 = vsel %vm1149_vm4, 0, %v2367_v45  ;;  %v2380_v7 = vsel %vm1149_vm4, %v10826_v58, %v2379_v49  ;;  %v2127_v45 = vsub.f32 %v10764_v60, %v10786_v34 }
 0x5e4   : > { %v2376_v63 = vperm.slane %v2368_v9, %v10548_v19  ;;  %v2425_v5 = vshrl.u32 %v2380_v7, 16  ;;  %v2423_v17 = vpack.i.b16 %v2410_v43, %v2380_v7  ;;  %v2133_v49 = vmul.f32 1.442695, %v2124_v32 }
 0x5e5   : > { %v2377_v7 = vrot.slane %v10826_v58, 4 }
 0x5e6   : > { %v2381_v57 = vrot.slane %v2376_v63, 4  ;;  %v2427_v18 = vpack.i.b16 %v2426_v12, %v2425_v5  ;;  %v2384_v20 = vsel %vm1149_vm4, %v2376_v63, %v2383_v6  ;;  %v2418_v5 = vshrl.u32 %v10812_v54, 16 }
 0x5e7   : > { %v2439_v21 = vpack.i.b16 %v2412_v14, %v2384_v20  ;;  %v2441_v24 = vshrl.u32 %v2384_v20, 16  ;;  %v2378_v61 = vsel %vm1149_vm4, %v2377_v7, %v10818_v59 }
 0x5e8   : > { %9911 = vxpose.binary.xlu0.c.b16.start.end [1/2] (short) (narrow) %v2427_v18, %v2423_v17, 16  ;;  %v2382_v26 = vsel %vm1149_vm4, %v2381_v57, %v2366_v3  ;;  %v2417_v63 = vshrl.u32 %v2378_v61, 16  ;;  %v2415_v60 = vpack.i.b16 %v10812_v54, %v2378_v61 }
 0x5e9   : > { %v2443_v41 = vpack.i.b16 %v2442_v10, %v2441_v24  ;;  %v2431_v62 = vpack.i.b16 %v2408_v56, %v2382_v26  ;;  %v2433_v27 = vshrl.u32 %v2382_v26, 16 }
 0x5ea   : > { %v2419_v34 = vpack.i.b16 %v2418_v5, %v2417_v63 }
 0x5eb   : > { %v2149_v33 = vpop.xlane.xlu1 %2148  ;;  %9908 = vxpose.binary.xlu2.c.b16.start.end [1/2] (short) (narrow) %v2443_v41, %v2439_v21, 16  ;;  %v2435_v35 = vpack.i.b16 %v2434_v31, %v2433_v27 }
 0x5ed   : > { %9914 = vxpose.binary.xlu1.c.b16.start.end [1/2] (short) (narrow) %v2435_v35, %v2431_v62, 16 }
 0x5f3   : > { %v2155_v37 = vpop.xlane.xlu1 %2154 }
 0x5f4   : > { %10122 = vrcp.f32 %v2155_v37 }
 0x5fa   : > { %v10123_v42 = vpop.eup %10122 }
 0x5fb   : > { %v2181_v13 = vmul.f32 %v10123_v42, %v10792_v52 }
 0x5fc   : > { %v2170_v39 = vpop.xlane.xlu1 %2169 }
 0x5fd   : > { %v2189_v16 = vpack.c.bf16 %v2181_v13, %v2181_v13 }
 0x5ff   : > { %v2651_v22 = vunpack.c.l.b16 %v2189_v16 }
 0x604   : > { %v2158_v40 = vpop.xlane.xlu1 %2157 }
 0x605   : > { %10124 = vrcp.f32 %v2158_v40 }
 0x606   : > { %10126 = vrcp.f32 %v2170_v39 }
 0x60b   : > { %v10125_v25 = vpop.eup %10124 }
 0x60c   : > { %v2182_v29 = vmul.f32 %v10125_v25, %v10117_v28  ;;  %v10127_v47 = vpop.eup %10126 }
 0x60d   : > { %v2186_v48 = vmul.f32 %v10127_v47, %v10796_v0  ;;  %v2139_v0 = vmul.f32 1.442695, %v2127_v45 }
 0x60e   : > { %v2190_v15 = vpack.c.bf16 %v2182_v29, %v2182_v29 }
 0x60f   : > { %v2194_v52 = vpack.c.bf16 %v2186_v48, %v2186_v48 }
 0x610   : > { %v2652_v23 = vunpack.c.l.b16 %v2190_v15 }
 0x611   : > { %v2700_v1 = vunpack.c.l.b16 %v2194_v52 }
 0x612   : > { %v2653_v44 = vpack.c.b16 %v2652_v23, %v2651_v22 }
 0x614   : > { %v2658_v30 = vsel %vm1040_vm2, %v2653_v44, 0 }
 0x615   : > { %2667 = vmatpush.bf16.xpose.msrb.mxu2 %v2658_v30 }
 0x616   : > { %v2167_v46 = vpop.xlane.xlu0 %2166 }
 0x617   : > { %10128 = vrcp.f32 %v2167_v46 }
 0x618   : > { %10130 = vpow2.f32 %v2133_v49 }
 0x619   : > { %10132 = vpow2.f32 %v2139_v0 }
 0x61a   : > { %10134 = vrcp.f32 %v2149_v33 }
 0x61d   : > { %v10129_v53 = vpop.eup %10128 }
 0x61e   : > { %v2185_v11 = vmul.f32 %v10129_v53, %v10802_v51  ;;  %v10131_v43 = vpop.eup %10130  ;;  %v2164_v57 = vpop.xlane.xlu0 %2163 }
 0x61f   : > { %v2150_v51 = vsel %vm2101_vm6, %v10131_v43, 0.0  ;;  %v10133_v6 = vpop.eup %10132 }
 0x620   : > { %v2193_v56 = vpack.c.bf16 %v2185_v11, %v2185_v11  ;;  %v2159_v9 = vsel %vm1040_vm2, %v10133_v6, 0.0  ;;  %v10135_v18 = vpop.eup %10134 }
 0x621   : > { %v2179_v58 = vmul.f32 %v10135_v18, %v10788_v50 }
 0x622   : > { %v2699_v28 = vunpack.c.l.b16 %v2193_v56 }
 0x623   : > { %v2187_v24 = vpack.c.bf16 %v2179_v58, %v2179_v58 }
 0x624   : > { %v2701_v2 = vpack.c.b16 %v2700_v1, %v2699_v28 }
 0x625   : > { %v2627_v41 = vunpack.c.l.b16 %v2187_v24 }
 0x626   : > { %v2706_v3 = vsel %vm1040_vm2, %v2701_v2, 0 }
 0x627   : > { %2715 = vmatpush.bf16.xpose.msrb.mxu0 %v2706_v3 }
 0x65c   : > { %2151 = vadd.xlane.f32.xlu2 %v2150_v51 }
 0x664   : > { %2160 = vadd.xlane.f32.xlu2 %v2159_v9 }
 0x68c   : > { %v9909_v12 = vpop.trf.xlu2 }
 0x68d   : > { %9917 = vxpose.binary.xlu2.c.b16.start.end [1/2] (short) (narrow) %v2419_v34, %v2415_v60, 16  ;;  %v2579_v29 = vrot.slane %v9909_v12, 4 }
 0x694   : > { %v9910_v14 = vpop.trf.xlu2  ;;  %v9912_v25 = vpop.trf.xlu0 }
 0x695   : > { %v2599_v23 = vrot.slane %v9910_v14, 4 }
 0x699   : > { %v9915_v16 = vpop.trf.xlu1 }
 0x69a   : > { %v2573_v15 = vrot.slane %v9915_v16, 4 }
 0x69c   : > { %v9913_v44 = vpop.trf.xlu0 }
 0x69d   : > { %v2600_v11 = vsel %vm1149_vm4, %v2599_v23, %v9913_v44 }
 0x69e   : > { %v2604_v28 = vperm.slane %v2600_v11, %v10542_v8 }
 0x6a0   : > { %v2605_v4 = vrot.slane %v2604_v28, 4 }
 0x6a1   : > { %v9916_v53 = vpop.trf.xlu1 }
 0x6a2   : > { %v2593_v56 = vrot.slane %v9916_v53, 4 }
 0x6cf   : > { %v2152_v17 = vpop.xlane.xlu2 %2151 }
 0x6d0   : > { %10136 = vrcp.f32 %v2152_v17 }
 0x6d1   : > { %10138 = vrcp.f32 %v2164_v57 }
 0x6d6   : > { %v10137_v20 = vpop.eup %10136 }
 0x6d7   : > { %v2180_v21 = vmul.f32 %v10137_v20, %v10131_v43  ;;  %v2161_v59 = vpop.xlane.xlu2 %2160  ;;  %v10139_v10 = vpop.eup %10138 }
 0x6d8   : > { %10140 = vrcp.f32 %v2161_v59  ;;  %v2184_v54 = vmul.f32 %v10139_v10, %v10806_v55  ;;  %v2580_v55 = vsel %vm1149_vm4, %v2579_v29, %v9912_v25 }
 0x6d9   : > { %v2188_v26 = vpack.c.bf16 %v2180_v21, %v2180_v21  ;;  %v2584_v22 = vperm.slane %v2580_v55, %v10542_v8 }
 0x6da   : > { %v2192_v37 = vpack.c.bf16 %v2184_v54, %v2184_v54 }
 0x6db   : > { %v2628_v62 = vunpack.c.l.b16 %v2188_v26  ;;  %v2585_v47 = vrot.slane %v2584_v22, 4 }
 0x6dc   : > { %v2676_v40 = vunpack.c.l.b16 %v2192_v37 }
 0x6dd   : > { %v2629_v27 = vpack.c.b16 %v2628_v62, %v2627_v41 }
 0x6de   : > { %v10141_v31 = vpop.eup %10140 }
 0x6df   : > { %v2183_v33 = vmul.f32 %v10141_v31, %v10133_v6  ;;  %v2634_v35 = vsel %vm1040_vm2, %v2629_v27, 0 }
 0x6e0   : > { %2643 = vmatpush.bf16.xpose.msra.mxu1 %v2634_v35 }
 0x6e1   : > { %v2191_v39 = vpack.c.bf16 %v2183_v33, %v2183_v33 }
 0x6e3   : > { %v2675_v50 = vunpack.c.l.b16 %v2191_v39 }
 0x6e5   : > { %v2677_v42 = vpack.c.b16 %v2676_v40, %v2675_v50 }
 0x6e7   : > { %v2682_v13 = vsel %vm1040_vm2, %v2677_v42, 0 }
 0x6e8   : > { %2691 = vmatpush.bf16.xpose.msrb.mxu3 %v2682_v13 }
 0x72e   : > { %v9918_v30 = vpop.trf.xlu2 }
 0x72f   : > { %v2574_v46 = vsel %vm1149_vm4, %v2573_v15, %v9918_v30 }
 0x730   : > { %v2578_v48 = vperm.slane %v2574_v46, %v10542_v8 }
 0x732   : > { %v2586_v52 = vsel %vm1149_vm4, %v2585_v47, %v2578_v48 }
 0x733   : > { %v2590_v1 = vperm.slane %v2586_v52, %v10548_v19 }
 0x735   : > { %v2591_v49 = vrot.slane %v2590_v1, 4  ;;  %v2616_v43 = vshrl.u32 %v2590_v1, 16 }
 0x736   : > { %v9919_v2 = vpop.trf.xlu2 }
 0x737   : > { %v2594_v3 = vsel %vm1149_vm4, %v2593_v56, %v9919_v2  ;;  %v2592_v7 = vsel %vm1149_vm4, 0, %v2591_v49 }
 0x738   : > { %v2598_v32 = vperm.slane %v2594_v3, %v10542_v8  ;;  %v2622_v60 = vshrl.u32 %v2592_v7, 16 }
 0x73a   : > { %v2606_v45 = vsel %vm1149_vm4, %v2605_v4, %v2598_v32 }
 0x73b   : > { %v2610_v0 = vperm.slane %v2606_v45, %v10548_v19 }
 0x73d   : > { %v2611_v51 = vrot.slane %v2610_v0, 4  ;;  %v2617_v6 = vshrl.u32 %v2610_v0, 16  ;;  %v2615_v9 = vpack.i.b16 %v2610_v0, %v2590_v1 }
 0x73f   : > { %8668 = vmatmul.msk.bf16.vlgmr.msra.gmra.mxu1 %vm1040_vm2, %v2615_v9  ;;  %v2618_v61 = vpack.i.b16 %v2617_v6, %v2616_v43  ;;  %v2612_v63 = vsel %vm1149_vm4, 0, %v2611_v51 }
 0x740   : > { %v2621_v5 = vpack.i.b16 %v2612_v63, %v2592_v7  ;;  %v2623_v34 = vshrl.u32 %v2612_v63, 16 }
 0x741   : > { %8669 = vmatmul.msk.bf16.vlgmr.msrb.gmra.mxu2 %vm1040_vm2, %v2618_v61 }
 0x742   : > { %8670 = vmatmul.msk.bf16.vlgmr.msrb.gmra.mxu3 %vm1040_vm2, %v2621_v5  ;;  %v2624_v12 = vpack.i.b16 %v2623_v34, %v2622_v60 }
 0x744   : > { %8671 = vmatmul.msk.bf16.vlgmr.msrb.gmra.mxu0 %vm1040_vm2, %v2624_v12 }
 0x7bc   : > { %v2645_v14 = vpop.f32.mrf.mxu1 }
 0x7c1   : > { %v2717_v57 = vpop.f32.mrf.mxu0 }
 0x7c4   : > { %v2647_v17 = vpop.f32.mrf.mxu1  ;;  %v2669_v18 = vpop.f32.mrf.mxu2 }
 0x7c5   : > { %v9920_v58 = vpack.i.bf16 %v2669_v18, %v2717_v57  ;;  %v2693_v20 = vpop.f32.mrf.mxu3 }
 0x7c6   : > { %v9932_v21 = vpack.i.bf16 %v2645_v14, %v2693_v20 }
 0x7c7   : > { %9921 = vxpose.xlu2.b32.start.end [1/1] (short) (narrow) %v9920_v58, 16 }
 0x7c8   : > { %9933 = vxpose.xlu0.b32.start.end [1/1] (short) (narrow) %v9932_v21, 16 }
 0x7c9   : > { %v2719_v59 = vpop.f32.mrf.mxu0 }
 0x7cc   : > { %v2671_v24 = vpop.f32.mrf.mxu2 }
 0x7cd   : > { %v2695_v10 = vpop.f32.mrf.mxu3 }
 0x860   : > { %v9922_v26 = vpop.trf.xlu2 }
 0x861   : > { %v9926_v54 = vunpack.i.h.bf16 %v9922_v26  ;;  %v9923_v41 = vunpack.i.l.bf16 %v9922_v26 }
 0x863   : > { %v2861_v62 = vrot.slane %v9923_v41, 4  ;;  %v2863_v27 = vrot.slane %v9926_v54, 4 }
 0x865   : > { %v2862_v31 = vsel %vm1149_vm4, %v2861_v62, %v9926_v54  ;;  %v2864_v35 = vsel %vm1149_vm4, %v9923_v41, %v2863_v27 }
 0x866   : > { %v2868_v39 = vperm.slane %v2862_v31, %v10542_v8  ;;  %v2872_v50 = vperm.slane %v2864_v35, %v10542_v8 }
 0x868   : > { %v9927_v33 = vpop.trf.xlu2  ;;  %v2873_v15 = vrot.slane %v2868_v39, 4  ;;  %v2885_v22 = vrot.slane %v2872_v50, 4 }
 0x869   : > { %v9928_v37 = vunpack.i.l.bf16 %v9927_v33  ;;  %v9931_v42 = vunpack.i.h.bf16 %v9927_v33 }
 0x86b   : > { %v2911_v13 = vrot.slane %v9928_v37, 4 }
 0x86c   : > { %v9934_v40 = vpop.trf.xlu0 }
 0x86d   : > { %v9938_v25 = vunpack.i.h.bf16 %v9934_v40  ;;  %v9935_v29 = vunpack.i.l.bf16 %v9934_v40  ;;  %v2912_v23 = vsel %vm1149_vm4, %v2911_v13, %v9931_v42 }
 0x86e   : > { %v2916_v48 = vperm.slane %v2912_v23, %v10542_v8 }
 0x86f   : > { %v2851_v16 = vrot.slane %v9938_v25, 4  ;;  %v2849_v55 = vrot.slane %v9935_v29, 4 }
 0x870   : > { %v2917_v43 = vrot.slane %v2916_v48, 4 }
 0x871   : > { %v2850_v44 = vsel %vm1149_vm4, %v2849_v55, %v9938_v25  ;;  %v2852_v30 = vsel %vm1149_vm4, %v9935_v29, %v2851_v16 }
 0x872   : > { %v2856_v46 = vperm.slane %v2850_v44, %v10542_v8  ;;  %v2860_v47 = vperm.slane %v2852_v30, %v10542_v8 }
 0x874   : > { %v2874_v53 = vsel %vm1149_vm4, %v2873_v15, %v2856_v46  ;;  %v2875_v11 = vrot.slane %v2856_v46, 4  ;;  %v2886_v52 = vsel %vm1149_vm4, %v2885_v22, %v2860_v47  ;;  %v2887_v56 = vrot.slane %v2860_v47, 4  ;;  %v9939_v28 = vpop.trf.xlu0 }
 0x875   : > { %v2880_v1 = vperm.slane %v2874_v53, %v10548_v19  ;;  %v2892_v2 = vperm.slane %v2886_v52, %v10548_v19  ;;  %v9943_v3 = vunpack.i.h.bf16 %v9939_v28  ;;  %v9940_v49 = vunpack.i.l.bf16 %v9939_v28 }
 0x876   : > { %v2876_v4 = vsel %vm1149_vm4, %v2868_v39, %v2875_v11  ;;  %v2888_v32 = vsel %vm1149_vm4, %v2872_v50, %v2887_v56 }
 0x877   : > { %v2884_v45 = vperm.slane %v2876_v4, %v10548_v19  ;;  %v2896_v0 = vperm.slane %v2888_v32, %v10548_v19  ;;  %v2905_v51 = vrot.slane %v9940_v49, 4  ;;  %v2897_v6 = vrot.slane %v2880_v1, 4  ;;  %v9607_v32 = vld [vmem:[%s13427_s2 + $0x8] sm:$0xff]  ;;  %v9606_v49 = vld [vmem:[%s13427_s2] sm:$0xff] }
 0x878   : > { %v2901_v7 = vrot.slane %v2892_v2, 4  ;;  %3057 = vmatpush.bf16.msrb.mxu1 %v9607_v32 }
 0x879   : > { %v2899_v9 = vrot.slane %v2884_v45, 4  ;;  %v2903_v61 = vrot.slane %v2896_v0, 4  ;;  %v2906_v63 = vsel %vm1149_vm4, %v2905_v51, %v9943_v3  ;;  %v2898_v58 = vsel %vm1149_vm4, 0.0, %v2897_v6 }
 0x87a   : > { %v2910_v60 = vperm.slane %v2906_v63, %v10542_v8  ;;  %v2902_v20 = vsel %vm1149_vm4, 0.0, %v2901_v7 }
 0x87b   : > { %v2904_v5 = vsel %vm1149_vm4, 0.0, %v2903_v61  ;;  %v2900_v34 = vsel %vm1149_vm4, 0.0, %v2899_v9  ;;  %v2919_v12 = vsel %vm1149_vm4, %v2899_v9, %v2880_v1  ;;  %v2930_v18 = vsel %vm1149_vm4, %v2903_v61, %v2892_v2 }
 0x87c   : > { %v2935_v14 = vrot.slane %v2904_v5, 4  ;;  %v2923_v57 = vperm.slane %v2919_v12, %v10542_v8  ;;  %v2924_v17 = vrot.slane %v2900_v34, 4  ;;  %v2918_v21 = vsel %vm1149_vm4, %v2917_v43, %v2910_v60  ;;  %3058 = vmatpush.bf16.msrb.mxu1 %v9606_v49 }
 0x87d   : > { %v2934_v59 = vperm.slane %v2930_v18, %v10542_v8  ;;  %v2976_v54 = vperm.slane %v2918_v21, %v10548_v19  ;;  %v10095_v18 = vld [vmem:[%s13428_s18] ss:$0 sm:$0xff] }
 0x87e   : > { %v2925_v24 = vsel %vm1149_vm4, %v2924_v17, %v2898_v58  ;;  %v2936_v10 = vsel %vm1149_vm4, %v2935_v14, %v2902_v20  ;;  %v2943_v26 = vrot.slane %v2923_v57, 4 }
 0x87f   : > { %v2929_v41 = vperm.slane %v2925_v24, %v10542_v8  ;;  %v2940_v62 = vperm.slane %v2936_v10, %v10542_v8  ;;  %v2955_v27 = vrot.slane %v2934_v59, 4  ;;  %v2980_v31 = vperm.slane %v2976_v54, %v10542_v8 }
 0x881   : > { %v2944_v33 = vsel %vm1149_vm4, %v2929_v41, %v2943_v26  ;;  %v2956_v35 = vsel %vm1149_vm4, %v2940_v62, %v2955_v27  ;;  %v2941_v37 = vrot.slane %v2929_v41, 4  ;;  %v2953_v39 = vrot.slane %v2940_v62, 4 }
 0x882   : > { %v2952_v50 = vperm.slane %v2944_v33, %v10548_v19  ;;  %v2964_v40 = vperm.slane %v2956_v35, %v10548_v19  ;;  %v2981_v42 = vrot.slane %v2980_v31, 4  ;;  %v2986_v13 = vperm.slane %v2980_v31, %v10548_v19 }
 0x883   : > { %v2942_v25 = vsel %vm1149_vm4, %v2941_v37, %v2923_v57  ;;  %v2954_v29 = vsel %vm1149_vm4, %v2953_v39, %v2934_v59  ;;  %v10302_v41 = vmov 32.0  }
 0x884   : > { %v2969_v16 = vrot.slane %v2964_v40, 4  ;;  %v2982_v55 = vsel %vm1149_vm4, 0.0, %v2981_v42  ;;  %v2948_v15 = vperm.slane %v2942_v25, %v10548_v19  ;;  %v2971_v23 = vrot.slane %v2952_v50, 4 }
 0x885   : > { %v2990_v22 = vperm.slane %v2982_v55, %v10548_v19  ;;  %v2960_v44 = vperm.slane %v2954_v29, %v10548_v19  ;;  %v2991_v30 = vrot.slane %v2986_v13, 4  ;;  %10142 = vrcp.f32 %v10302_v41 }
 0x886   : > { %v2970_v46 = vsel %vm1149_vm4, %v2969_v16, %v2952_v50  ;;  %v2967_v47 = vrot.slane %v2948_v15, 4  ;;  %v2972_v28 = vsel %vm1149_vm4, %v2964_v40, %v2971_v23 }
 0x887   : > { %v9949_v48 = vpack.i.bf16 %v2990_v22, %v2970_v46  ;;  %v2993_v53 = vrot.slane %v2990_v22, 4  ;;  %v2965_v11 = vrot.slane %v2960_v44, 4  ;;  %v2992_v56 = vsel %vm1149_vm4, 0.0, %v2991_v30 }
 0x888   : > { %v2968_v52 = vsel %vm1149_vm4, %v2960_v44, %v2967_v47 }
 0x889   : > { %9950 = vrot.lane.b32.xlu1 %v9949_v48, %s13390_s0  ;;  %v2994_v1 = vsel %vm1149_vm4, 0.0, %v2993_v53  ;;  %v9944_v2 = vpack.i.bf16 %v2992_v56, %v2968_v52  ;;  %v2966_v3 = vsel %vm1149_vm4, %v2965_v11, %v2948_v15  ;;  %s13430_s0 = sld [smem:[#allocation11_spill]] }
 0x88a   : > { %v9954_v4 = vpack.i.bf16 %v2994_v1, %v2972_v28 }
 0x88b   : > { %9945 = vrot.lane.b32.xlu0 %v9944_v2, %s13391_s11  ;;  %v10143_v62 = vpop.eup %10142  ;;  %s13431_s11 = sld [smem:[#allocation12_spill]] }
 0x88c   : > { %9955 = vrot.lane.b32.xlu2 %v9954_v4, %s13389_s16  ;;  %v3077_v27 = vmul.f32 32.0, %v10143_v62  ;;  %vm3081_vm10 = vweird.f32 %v10143_v62  ;;  %s13429_s16 = sld [smem:[#allocation15_spill]] }
 0x88e   : > { %v3078_v31 = vsub.f32 1.0, %v3077_v27 }
 0x890   : > { %v3079_v33 = vmul.f32 %v10143_v62, %v3078_v31 }
 0x892   : > { %v3080_v35 = vadd.f32 %v10143_v62, %v3079_v33  ;;  %v8715_v23 = vld [vmem:[%s13429_s16 + $0x40] sm:$0xf]  ;;  %v9616_v30 = vld [vmem:[%s13429_s16 + $0x44] sm:$0xf]  ;;  %v8723_v48 = vld [vmem:[%s13429_s16 + $0x48] sm:$0xf] }
 0x893   : > { %v9620_v44 = vld [vmem:[%s13429_s16 + $0x5c] sm:$0xf0]  ;;  %v8717_v47 = vld [vmem:[%s13429_s16 + $0x60] sm:$0xf0]  ;;  %v9621_v53 = vld [vmem:[%s13429_s16 + $0x64] sm:$0xf0] }
 0x894   : > { %v8716_v46 = vor.u32 %v9620_v44, %v8715_v23  ;;  %v8720_v11 = vor.u32 %v9616_v30, %v8717_v47  ;;  %v8724_v52 = vor.u32 %v9621_v53, %v8723_v48  ;;  %v9617_v56 = vld [vmem:[%s13429_s16 + $0x4c] sm:$0xf]  ;;  %v8683_v1 = vld [vmem:[%s13429_s16] sm:$0xf]  ;;  %v9608_v32 = vld [vmem:[%s13429_s16 + $0x4] sm:$0xf] }
 0x895   : > { %v8725_v28 = vld [vmem:[%s13429_s16 + $0x68] sm:$0xf0]  ;;  %v9612_v4 = vld [vmem:[%s13429_s16 + $0x1c] sm:$0xf0]  ;;  %v8685_v49 = vld [vmem:[%s13429_s16 + $0x20] sm:$0xf0] }
 0x896   : > { %3255 = vmatpush.bf16.msra.mxu2 %v8716_v46  ;;  %3269 = vmatpush.bf16.msra.mxu3 %v8720_v11  ;;  %v9610_v27 = vld [vmem:[%s13429_s16 + $0x14] sm:$0xf]  ;;  %v10096_v48 = vld [vmem:[%s13430_s0] ss:$0 sm:$0xff] }
 0x897   : > { %3283 = vmatpush.bf16.msra.mxu0 %v8724_v52  ;;  %v8701_v31 = vld [vmem:[%s13429_s16 + $0x30] sm:$0xf0] }
 0x8e6   : > { %v9956_v0 = vpop.permute.xlu2 %9955 }
 0x8e7   : > { %v9958_v61 = vunpack.i.h.bf16 %v9956_v0  ;;  %v9957_v63 = vunpack.i.l.bf16 %v9956_v0  ;;  %v8684_v0 = vor.u32 %v9612_v4, %v8683_v1 }
 0x8e9   : > { %3256 = vmatpush.bf16.msra.mxu2 %v8684_v0 }
 0x8fb   : > { %v9951_v45 = vpop.permute.xlu1 %9950 }
 0x8fc   : > { %v9953_v9 = vunpack.i.h.bf16 %v9951_v45  ;;  %v9952_v7 = vunpack.i.l.bf16 %v9951_v45 }
 0x8fd   : > { %v9946_v43 = vpop.permute.xlu0 %9945 }
 0x8fe   : > { %v9948_v51 = vunpack.i.h.bf16 %v9946_v43  ;;  %v9947_v6 = vunpack.i.l.bf16 %v9946_v43  ;;  %v8688_v43 = vor.u32 %v9608_v32, %v8685_v49 }
 0x900   : > { %v3020_v5 = vsel %vm2008_vm5, %v2986_v13, %v9948_v51  ;;  %v3019_v60 = vsel %vm2008_vm5, %v2966_v3, %v9947_v6  ;;  %v8728_v3 = vor.u32 %v9617_v56, %v8725_v28  ;;  %v8691_v51 = vld [vmem:[%s13429_s16 + $0x8] sm:$0xf]  ;;  %3270 = vmatpush.bf16.msra.mxu3 %v8688_v43  ;;  %v10097_v56 = vld [vmem:[%s13431_s11] ss:$0 sm:$0xff] }
 0x901   : > { %v3023_v34 = vsel %vm3021_vm7, %v3020_v5, %v9953_v9  ;;  %v3022_v12 = vsel %vm3021_vm7, %v3019_v60, %v9952_v7  ;;  %v9613_v6 = vld [vmem:[%s13429_s16 + $0x24] sm:$0xf0]  ;;  %v9609_v9 = vld [vmem:[%s13429_s16 + $0xc] sm:$0xf]  ;;  %v9622_v5 = vld [vmem:[%s13429_s16 + $0x6c] sm:$0xf0] }
 0x902   : > { %v3026_v14 = vsel %vm13397_vm8, %v3023_v34, %v9958_v61  ;;  %v3025_v57 = vsel %vm13397_vm8, %v3022_v12, %v9957_v63  ;;  %3297 = vmatpush.bf16.msra.mxu1 %v8728_v3  ;;  %v8692_v7 = vor.u32 %v9613_v6, %v8691_v51  ;;  %v8693_v61 = vld [vmem:[%s13429_s16 + $0x28] sm:$0xf0]  ;;  %v8731_v63 = vld [vmem:[%s13429_s16 + $0x50] sm:$0xf] }
 0x903   : > { %v3031_v17 = vpack.c.bf16 %v3026_v14, %v3025_v57  ;;  %v8696_v12 = vor.u32 %v9609_v9, %v8693_v61  ;;  %v8732_v14 = vor.u32 %v9622_v5, %v8731_v63  ;;  %v9618_v57 = vld [vmem:[%s13429_s16 + $0x54] sm:$0xf] }
 0x904   : > { %3284 = vmatpush.bf16.msra.mxu0 %v8692_v7 }
 0x905   : > { %8680 = vmatmul.msk.bf16.vlgmr.msrb.gmra.mxu1 %vm977_vm3, %v3031_v17  ;;  %v8733_v17 = vld [vmem:[%s13429_s16 + $0x70] sm:$0xf0]  ;;  %3311 = vmatpush.bf16.msrb.mxu2 %v8732_v14 }
 0x906   : > { %3298 = vmatpush.bf16.msra.mxu1 %v8696_v12 }
 0x982   : > { %v3060_v58 = vpop.f32.mrf.mxu1 }
 0x983   : > { %v3061_v20 = vadd.f32 %v10095_v18, %v3060_v58  ;;  %v8736_v58 = vor.u32 %v9618_v57, %v8733_v17 }
 0x985   : > { %v3065_v21 = vadd.f32 %v3061_v20, %v10500_v36  ;;  %v10942_v36 = vsel %vm3081_vm10, %v10143_v62, %v3080_v35  ;;  %v8739_v20 = vld [vmem:[%s13429_s16 + $0x58] sm:$0xf]  ;;  %v9614_v62 = vld [vmem:[%s13429_s16 + $0x2c] sm:$0xf0]  ;;  %3325 = vmatpush.bf16.msrb.mxu3 %v8736_v58  ;;  %v8704_v35 = vor.u32 %v9610_v27, %v8701_v31 }
 0x987   : > { %v3069_v59 = vsel %vm977_vm3, %v3065_v21, 0.0 }
 0x988   : > { %3070 = vadd.xlane.f32.xlu1 %v3069_v59  ;;  %v9619_v59 = vld [vmem:[%s13429_s16 + $0x5c] sm:$0xf] }
 0x989   : > { %3326 = vmatpush.bf16.msrb.mxu3 %v8704_v35 }
 0x98a   : > { %v3062_v24 = vpop.f32.mrf.mxu1 }
 0x98b   : > { %v3063_v10 = vadd.f32 %v10095_v18, %v3062_v24 }
 0x98d   : > { %v3066_v26 = vadd.f32 %v3063_v10, %v10502_v38  ;;  %v8741_v10 = vld [vmem:[%s13429_s16 + $0x78] sm:$0xf0] }
 0x98e   : > { %v8744_v41 = vor.u32 %v9619_v59, %v8741_v10 }
 0x98f   : > { %v3073_v54 = vsel %vm3072_vm9, %v3066_v26, 0.0 }
 0x990   : > { %3074 = vadd.xlane.f32.xlu0 %v3073_v54  ;;  %3353 = vmatpush.bf16.msrb.mxu1 %v8744_v41 }
 0x9fb   : > { %v3071_v37 = vpop.xlane.xlu1 %3070 }
 0x9fc   : > { %v3083_v39 = vmul.f32 %v10942_v36, %v3071_v37  ;;  %v8707_v37 = vld [vmem:[%s13429_s16 + $0x18] sm:$0xf] }
 0x9fe   : > { %v10945_v50 = vsub.f32 %v3065_v21, %v3083_v39  ;;  %v9623_v21 = vld [vmem:[%s13429_s16 + $0x74] sm:$0xf0] }
 0x9ff   : > { %v8740_v24 = vor.u32 %v9623_v21, %v8739_v20  ;;  %v9615_v39 = vld [vmem:[%s13429_s16 + $0x34] sm:$0xf0] }
 0xa00   : > { %v3087_v38 = vmul.f32 %v10945_v50, %v10945_v50 }
 0xa01   : > { %3339 = vmatpush.bf16.msrb.mxu0 %v8740_v24 }
 0xa02   : > { %v3089_v40 = vsel %vm977_vm3, %v3087_v38, 0.0  ;;  %v9611_v38 = vld [vmem:[%s13429_s16 + $0x1c] sm:$0xf] }
 0xa03   : > { %v3075_v42 = vpop.xlane.xlu0 %3074  ;;  %3090 = vadd.xlane.f32.xlu2 %v3089_v40 }
 0xa04   : > { %v3084_v13 = vmul.f32 %v10942_v36, %v3075_v42  ;;  %v8708_v42 = vor.u32 %v9615_v39, %v8707_v37 }
 0xa06   : > { %v10951_v25 = vsub.f32 %v3066_v26, %v3084_v13  ;;  %v8699_v26 = vld [vmem:[%s13429_s16 + $0x10] sm:$0xf]  ;;  %v8709_v13 = vld [vmem:[%s13429_s16 + $0x38] sm:$0xf0]  ;;  %3340 = vmatpush.bf16.msrb.mxu0 %v8708_v42 }
 0xa07   : > { %v8700_v33 = vor.u32 %v9614_v62, %v8699_v26 }
 0xa08   : > { %v3088_v29 = vmul.f32 %v10951_v25, %v10951_v25 }
 0xa09   : > { %3312 = vmatpush.bf16.msrb.mxu2 %v8700_v33 }
 0xa0a   : > { %v3092_v16 = vsel %vm3072_vm9, %v3088_v29, 0.0  ;;  %v8712_v29 = vor.u32 %v9611_v38, %v8709_v13 }
 0xa0b   : > { %3093 = vadd.xlane.f32.xlu1 %v3092_v16 }
 0xa0c   : > { %3354 = vmatpush.bf16.msrb.mxu1 %v8712_v29 }
 0xa76   : > { %v3091_v55 = vpop.xlane.xlu2 %3090 }
 0xa77   : > { %v3095_v15 = vmul.f32 %v3091_v55, %v10942_v36 }
 0xa79   : > { %v10957_v22 = vadd.f32 1e-05, %v3095_v15 }
 0xa7b   : > { %10144 = vrsqrt.f32 %v10957_v22  ;;  %vm3105_vm12 = vweird.f32 %v10957_v22 }
 0xa7e   : > { %v3094_v2 = vpop.xlane.xlu1 %3093 }
 0xa7f   : > { %v3096_v45 = vmul.f32 %v3094_v2, %v10942_v36 }
 0xa81   : > { %v10145_v60 = vpop.eup %10144  ;;  %v3098_v34 = vadd.f32 1e-05, %v3096_v45 }
 0xa82   : > { %v3100_v18 = vmul.f32 %v10145_v60, %v10957_v22  ;;  %vm3106_vm11 = vweird.f32 %v10145_v60 }
 0xa83   : > { %10146 = vrsqrt.f32 %v3098_v34  ;;  %vm3107_vm13 = vmor %vm3105_vm12, %vm3106_vm11  ;;  %vm3115_vm15 = vweird.f32 %v3098_v34 }
 0xa84   : > { %v3101_v54 = vmul.f32 %v10145_v60, %v3100_v18 }
 0xa86   : > { %v3102_v40 = vmul.f32 0.5, %v3101_v54 }
 0xa88   : > { %v3103_v16 = vsub.f32 1.5, %v3102_v40 }
 0xa89   : > { %v10147_v55 = vpop.eup %10146 }
 0xa8a   : > { %v3104_v15 = vmul.f32 %v10145_v60, %v3103_v16  ;;  %v3110_v23 = vmul.f32 %v10147_v55, %v3098_v34  ;;  %vm3116_vm14 = vweird.f32 %v10147_v55 }
 0xa8b   : > { %vm3117_vm1 = vmor %vm3115_vm15, %vm3116_vm14 }
 0xa8c   : > { %v3111_v44 = vmul.f32 %v10147_v55, %v3110_v23  ;;  %v3108_v30 = vsel %vm3107_vm13, %v10145_v60, %v3104_v15 }
 0xa8d   : > { %v3119_v53 = vmul.f32 %v3108_v30, %v10945_v50  ;;  %v11014_v50 = vld [vmem:[%s13432_s26] sm:$0xff] }
 0xa8e   : > { %v3112_v46 = vmul.f32 0.5, %v3111_v44  ;;  %v3153_v32 = vperm.slane %v11014_v50, 3  ;;  %v3150_v51 = vperm.slane %v11014_v50, 0  ;;  %v3151_v6 = vperm.slane %v11014_v50, 1 }
 0xa8f   : > { %v3124_v28 = vmul.f32 %v10096_v48, %v3119_v53 }
 0xa90   : > { %v3113_v47 = vsub.f32 1.5, %v3112_v46 }
 0xa91   : > { %v10999_v22 = vadd.f32 %v10097_v56, %v3124_v28 }
 0xa92   : > { %v3114_v11 = vmul.f32 %v10147_v55, %v3113_v47 }
 0xa94   : > { %v3118_v52 = vsel %vm3117_vm1, %v10147_v55, %v3114_v11 }
 0xa95   : > { %v3120_v1 = vmul.f32 %v3118_v52, %v10951_v25  ;;  %v3152_v25 = vperm.slane %v11014_v50, 2 }
 0xa97   : > { %v3125_v2 = vmul.f32 %v10096_v48, %v3120_v1 }
 0xa99   : > { %v11001_v3 = vadd.f32 %v10097_v56, %v3125_v2 }
 0xa9b   : > { %v3147_v4 = vpack.c.bf16 %v11001_v3, %v10999_v22 }
 0xa9d   : > { %8745 = vmatmul.msk.bf16.vlgmr.msra.gmra.mxu2 %vm977_vm3, %v3147_v4  ;;  %8746 = vmatmul.msk.bf16.vlgmr.msra.gmra.mxu3 %vm977_vm3, %v3147_v4 }
 0xa9e   : > { %8747 = vmatmul.msk.bf16.vlgmr.msra.gmra.mxu0 %vm977_vm3, %v3147_v4  ;;  %8748 = vmatmul.msk.bf16.vlgmr.msra.gmra.mxu1 %vm977_vm3, %v3147_v4 }
 0xaad   : > { %8749 = vmatmul.msk.bf16.vlgmr.msrb.gmra.mxu2 %vm977_vm3, %v3147_v4  ;;  %8750 = vmatmul.msk.bf16.vlgmr.msrb.gmra.mxu3 %vm977_vm3, %v3147_v4 }
 0xaae   : > { %8751 = vmatmul.msk.bf16.vlgmr.msrb.gmra.mxu0 %vm977_vm3, %v3147_v4  ;;  %8752 = vmatmul.msk.bf16.vlgmr.msrb.gmra.mxu1 %vm977_vm3, %v3147_v4 }
 0xb1b   : > { %v3286_v49 = vpop.f32.mrf.mxu0  ;;  %v3300_v45 = vpop.f32.mrf.mxu1 }
 0xb1c   : > { %v11018_v0 = vadd.f32 %v3286_v49, %v3152_v25  ;;  %v11022_v43 = vadd.f32 %v3300_v45, %v3153_v32 }
 0xb1e   : > { %v11027_v9 = vmul.f32 0.70710677, %v11018_v0  ;;  %v11030_v7 = vmul.f32 0.70710677, %v11022_v43 }
 0xb20   : > { %v3473_v61 = vmul.f32 %v11027_v9, %v11027_v9  ;;  %v3513_v63 = vmul.f32 %v11030_v7, %v11030_v7  ;;  %v3258_v5 = vpop.f32.mrf.mxu2  ;;  %v3272_v60 = vpop.f32.mrf.mxu3 }
 0xb21   : > { %v11038_v34 = vadd.f32 %v3258_v5, %v3150_v51  ;;  %v11042_v12 = vadd.f32 %v3272_v60, %v3151_v6 }
 0xb22   : > { %v11044_v14 = vmin.f32 %v3473_v61, 16.0  ;;  %v11046_v57 = vmin.f32 %v3513_v63, 16.0 }
 0xb23   : > { %v11049_v17 = vmul.f32 0.70710677, %v11038_v34  ;;  %v11052_v18 = vmul.f32 0.70710677, %v11042_v12  ;;  %v3288_v23 = vpop.f32.mrf.mxu0 }
 0xb24   : > { %v3475_v58 = vmul.f32 2.1237322e-06, %v11044_v14  ;;  %v3486_v20 = vmul.f32 3.8918573e-05, %v11044_v14  ;;  %v3526_v21 = vmul.f32 3.8918573e-05, %v11046_v57  ;;  %v11077_v11 = vadd.f32 %v3288_v23, %v3152_v25 }
 0xb25   : > { %v3393_v59 = vmul.f32 %v11049_v17, %v11049_v17  ;;  %v3433_v24 = vmul.f32 %v11052_v18, %v11052_v18  ;;  %v3515_v26 = vmul.f32 2.1237322e-06, %v11046_v57 }
 0xb26   : > { %v3487_v10 = vadd.f32 0.001143296, %v3486_v20  ;;  %v3527_v54 = vadd.f32 0.001143296, %v3526_v21  ;;  %v3476_v62 = vadd.f32 0.00028619796, %v3475_v58 }
 0xb27   : > { %v11062_v41 = vmin.f32 %v3393_v59, 16.0  ;;  %v11067_v35 = vmin.f32 %v3433_v24, 16.0  ;;  %v3516_v39 = vadd.f32 0.00028619796, %v3515_v26  ;;  %v11085_v5 = vmul.f32 0.70710677, %v11077_v11 }
 0xb28   : > { %v3488_v27 = vmul.f32 %v3487_v10, %v11044_v14  ;;  %v3528_v31 = vmul.f32 %v3527_v54, %v11046_v57  ;;  %v3477_v42 = vmul.f32 %v3476_v62, %v11044_v14 }
 0xb29   : > { %v3406_v33 = vmul.f32 3.8918573e-05, %v11062_v41  ;;  %v3395_v16 = vmul.f32 2.1237322e-06, %v11062_v41  ;;  %v3446_v15 = vmul.f32 3.8918573e-05, %v11067_v35  ;;  %v3517_v30 = vmul.f32 %v3516_v39, %v11046_v57  ;;  %v3302_v39 = vpop.f32.mrf.mxu1 }
 0xb2a   : > { %v3489_v37 = vadd.f32 0.014752088, %v3488_v27  ;;  %v3529_v38 = vadd.f32 0.014752088, %v3528_v31  ;;  %v3478_v48 = vadd.f32 0.0036580483, %v3477_v42  ;;  %v3793_v54 = vmul.f32 %v11085_v5, %v11085_v5 }
 0xb2b   : > { %v3407_v40 = vadd.f32 0.001143296, %v3406_v33  ;;  %v3396_v56 = vadd.f32 0.00028619796, %v3395_v16  ;;  %v3447_v1 = vadd.f32 0.001143296, %v3446_v15 }
 0xb2c   : > { %v3490_v13 = vmul.f32 %v3489_v37, %v11044_v14  ;;  %v3530_v29 = vmul.f32 %v3529_v38, %v11046_v57  ;;  %v3518_v4 = vadd.f32 0.0036580483, %v3517_v30  ;;  %v3435_v45 = vmul.f32 2.1237322e-06, %v11067_v35 }
 0xb2d   : > { %v3408_v55 = vmul.f32 %v3407_v40, %v11062_v41  ;;  %v3448_v61 = vmul.f32 %v3447_v1, %v11067_v35  ;;  %v3479_v63 = vmul.f32 %v3478_v48, %v11044_v14  ;;  %v3397_v58 = vmul.f32 %v3396_v56, %v11062_v41  ;;  %v3260_v48 = vpop.f32.mrf.mxu2 }
 0xb2e   : > { %v3491_v44 = vadd.f32 0.112945676, %v3490_v13  ;;  %v3531_v46 = vadd.f32 0.112945676, %v3530_v29  ;;  %v3519_v21 = vmul.f32 %v3518_v4, %v11046_v57  ;;  %v3436_v24 = vadd.f32 0.00028619796, %v3435_v45 }
 0xb2f   : > { %v3409_v47 = vadd.f32 0.014752088, %v3408_v55  ;;  %v3449_v20 = vadd.f32 0.014752088, %v3448_v61  ;;  %v3480_v10 = vadd.f32 0.05243302, %v3479_v63  ;;  %v11107_v55 = vadd.f32 %v3302_v39, %v3153_v32 }
 0xb30   : > { %v3492_v53 = vmul.f32 %v3491_v44, %v11044_v14  ;;  %v3532_v52 = vmul.f32 %v3531_v46, %v11046_v57  ;;  %v3398_v31 = vadd.f32 0.0036580483, %v3397_v58  ;;  %v3520_v33 = vadd.f32 0.05243302, %v3519_v21 }
 0xb31   : > { %v3410_v28 = vmul.f32 %v3409_v47, %v11062_v41  ;;  %v3450_v26 = vmul.f32 %v3449_v20, %v11067_v35  ;;  %v3437_v38 = vmul.f32 %v3436_v24, %v11067_v35  ;;  %v3481_v40 = vmul.f32 %v3480_v10, %v11044_v14 }
 0xb32   : > { %v3493_v2 = vadd.f32 0.4994258, %v3492_v53  ;;  %v3533_v60 = vadd.f32 0.4994258, %v3532_v52  ;;  %v11099_v13 = vmin.f32 %v3793_v54, 16.0  ;;  %v3399_v16 = vmul.f32 %v3398_v31, %v11062_v41 }
 0xb33   : > { %v3411_v49 = vadd.f32 0.112945676, %v3410_v28  ;;  %v3451_v42 = vadd.f32 0.112945676, %v3450_v26  ;;  %v3521_v15 = vmul.f32 %v3520_v33, %v11046_v57  ;;  %v3438_v44 = vadd.f32 0.0036580483, %v3437_v38 }
 0xb34   : > { %v3494_v25 = vmul.f32 %v3493_v2, %v11044_v14  ;;  %v3534_v27 = vmul.f32 %v3533_v60, %v11046_v57  ;;  %v3806_v30 = vmul.f32 3.8918573e-05, %v11099_v13  ;;  %v3482_v46 = vadd.f32 0.18741608, %v3481_v40 }
 0xb35   : > { %v3412_v59 = vmul.f32 %v3411_v49, %v11062_v41  ;;  %v3452_v47 = vmul.f32 %v3451_v42, %v11067_v35  ;;  %v3400_v53 = vadd.f32 0.05243302, %v3399_v16  ;;  %v11115_v52 = vmul.f32 0.70710677, %v11107_v55 }
 0xb36   : > { %v11094_v62 = vadd.f32 1.0, %v3494_v25  ;;  %v11102_v29 = vadd.f32 1.0, %v3534_v27  ;;  %v3522_v56 = vadd.f32 0.18741608, %v3521_v15  ;;  %v3439_v1 = vmul.f32 %v3438_v44, %v11067_v35 }
 0xb37   : > { %v3413_v37 = vadd.f32 0.4994258, %v3412_v59  ;;  %v3807_v2 = vadd.f32 0.001143296, %v3806_v30  ;;  %v11124_v4 = vadd.f32 %v3260_v48, %v3150_v51  ;;  %v3483_v49 = vmul.f32 %v3482_v46, %v11044_v14 }
 0xb38   : > { %10148 = vrcp.f32 %v11094_v62  ;;  %v3453_v45 = vadd.f32 0.4994258, %v3452_v47  ;;  %v3401_v61 = vmul.f32 %v3400_v53, %v11062_v41  ;;  %v3833_v63 = vmul.f32 %v11115_v52, %v11115_v52 }
 0xb39   : > { %v3414_v23 = vmul.f32 %v3413_v37, %v11062_v41  ;;  %10150 = vrcp.f32 %v11102_v29  ;;  %v3523_v60 = vmul.f32 %v3522_v56, %v11046_v57  ;;  %v3808_v58 = vmul.f32 %v3807_v2, %v11099_v13 }
 0xb3a   : > { %v3440_v51 = vadd.f32 0.05243302, %v3439_v1  ;;  %v3795_v14 = vmul.f32 2.1237322e-06, %v11099_v13  ;;  %v11139_v21 = vmul.f32 0.70710677, %v11124_v4  ;;  %v3454_v57 = vmul.f32 %v3453_v45, %v11067_v35 }
 0xb3b   : > { %v11117_v32 = vadd.f32 1.0, %v3414_v23  ;;  %v11142_v59 = vmul.f32 0.5, %v11018_v0  ;;  %v3484_v24 = vadd.f32 1.1283791, %v3483_v49  ;;  %v11145_v10 = vmul.f32 0.5, %v11022_v43 }
 0xb3c   : > { %v11149_v26 = vmul.f32 0.5, %v11038_v34  ;;  %v3402_v54 = vadd.f32 0.18741608, %v3401_v61  ;;  %v11152_v27 = vmul.f32 0.5, %v11042_v12  ;;  %v11154_v31 = vmin.f32 %v3833_v63, 16.0 }
 0xb3d   : > { %10152 = vrcp.f32 %v11117_v32  ;;  %v3524_v37 = vadd.f32 1.1283791, %v3523_v60  ;;  %v3809_v39 = vadd.f32 0.014752088, %v3808_v58  ;;  %v3441_v43 = vmul.f32 %v3440_v51, %v11067_v35 }
 0xb3e   : > { %v11119_v28 = vpop.eup %10148  ;;  %v11160_v38 = vmul.f32 0.5, %v11077_v11  ;;  %v3796_v40 = vadd.f32 0.00028619796, %v3795_v14  ;;  %v3713_v34 = vmul.f32 %v11139_v21, %v11139_v21  ;;  %v11167_v12 = vmul.f32 %v3484_v24, %v11027_v9 }
 0xb3f   : > { %v3497_v25 = vmul.f32 %v11119_v28, %v11094_v62  ;;  %v11135_v20 = vpop.eup %10150  ;;  %v3507_v16 = vand.u32 2147483648, %v11094_v62  ;;  %v11170_v15 = vadd.f32 1.0, %v3454_v57  ;;  %v3810_v23 = vmul.f32 %v3809_v39, %v11099_v13 }
 0xb40   : > { %v3537_v0 = vmul.f32 %v11135_v20, %v11102_v29  ;;  %vm3501_vm10 = vweird.f32 %v11094_v62  ;;  %v3505_v11 = vand.u32 2147483647, %v11094_v62  ;;  %v3547_v44 = vand.u32 2147483648, %v11102_v29 }
 0xb41   : > { %v3498_v33 = vsub.f32 1.0, %v3497_v25  ;;  %v3403_v30 = vmul.f32 %v3402_v54, %v11062_v41  ;;  %v3846_v46 = vmul.f32 3.8918573e-05, %v11154_v31  ;;  %v11180_v9 = vmul.f32 %v3524_v37, %v11030_v7 }
 0xb42   : > { %v3538_v48 = vsub.f32 1.0, %v3537_v0  ;;  %v11182_v53 = vmin.f32 %v3713_v34, 16.0  ;;  %v3545_v56 = vand.u32 2147483647, %v11102_v29  ;;  %v3797_v2 = vmul.f32 %v3796_v40, %v11099_v13  ;;  %v9647_v40 = vld [vmem:[%s13433_s1 + $0xb8] sm:$0xff] }
 0xb43   : > { %v11164_v42 = vpop.eup %10152  ;;  %v3499_v47 = vmul.f32 %v11119_v28, %v3498_v33  ;;  %v3811_v49 = vadd.f32 0.112945676, %v3810_v23  ;;  %v3508_v45 = vor.u32 1.1754944e-38, %v3507_v16  ;;  %v3442_v41 = vadd.f32 0.18741608, %v3441_v43  ;;  %v9655_v34 = vld [vmem:[%s13433_s1 + $0xf8] sm:$0xff]  ;;  %4617 = vmatpush.bf16.msra.mxu0 %v9647_v40 }
 0xb44   : > { %v3417_v1 = vmul.f32 %v11164_v42, %v11117_v32  ;;  %10154 = vrcp.f32 %v11170_v15  ;;  %v3835_v61 = vmul.f32 2.1237322e-06, %v11154_v31  ;;  %v11190_v63 = vor.u32 1.1754944e-38, %v3547_v44  ;;  %4631 = vmatpush.bf16.msra.mxu1 %v9655_v34 }
 0xb45   : > { %v3404_v7 = vadd.f32 1.1283791, %v3403_v30  ;;  %v3812_v25 = vmul.f32 %v3811_v49, %v11099_v13  ;;  %v3847_v60 = vadd.f32 0.001143296, %v3846_v46  ;;  %v3500_v58 = vadd.f32 %v11119_v28, %v3499_v47  ;;  %v3274_v46 = vpop.f32.mrf.mxu3 }
 0xb46   : > { %vm3502_vm11 = vweird.f32 %v11119_v28  ;;  %vm11195_vm12 = vcmp.eq.f32.partialorder %v3505_v11, 8.507059e+37  ;;  %v3539_v14 = vmul.f32 %v11135_v20, %v3538_v48  ;;  %v3726_v24 = vmul.f32 3.8918573e-05, %v11182_v53 }
 0xb47   : > { %v3418_v57 = vsub.f32 1.0, %v3417_v1  ;;  %v3798_v54 = vadd.f32 0.0036580483, %v3797_v2  ;;  %v3813_v33 = vadd.f32 0.4994258, %v3812_v25  ;;  %v3848_v37 = vmul.f32 %v3847_v60, %v11154_v31  ;;  %vm11219_vm14 = vmor %vm3501_vm10, %vm3502_vm11 }
 0xb48   : > { %vm3541_vm13 = vweird.f32 %v11102_v29  ;;  %v3443_v0 = vmul.f32 %v3442_v41, %v11067_v35  ;;  %v3836_v39 = vadd.f32 0.00028619796, %v3835_v61  ;;  %v3727_v43 = vadd.f32 0.001143296, %v3726_v24 }
 0xb49   : > { %v11207_v16 = vmul.f32 %v3404_v7, %v11049_v17  ;;  %v3814_v23 = vmul.f32 %v3813_v33, %v11099_v13  ;;  %v11211_v11 = vmul.f32 0.5, %v11107_v55  ;;  %v3849_v44 = vadd.f32 0.014752088, %v3848_v37 }
 0xb4a   : > { %v11213_v30 = vpop.eup %10154  ;;  %vm3542_vm15 = vweird.f32 %v11135_v20  ;;  %vm3421_vm1 = vweird.f32 %v11117_v32  ;;  %v3715_v17 = vmul.f32 2.1237322e-06, %v11182_v53  ;;  %v3728_v55 = vmul.f32 %v3727_v43, %v11182_v53 }
 0xb4b   : > { %v3504_v47 = vsel %vm11219_vm14, %v11119_v28, %v3500_v58  ;;  %v3540_v62 = vadd.f32 %v11135_v20, %v3539_v14  ;;  %vm11231_vm10 = vcmp.eq.f32.partialorder %v3545_v56, 8.507059e+37  ;;  %v11235_v1 = vadd.f32 1.0, %v3814_v23  ;;  %vm11253_vm11 = vmor %vm3541_vm13, %vm3542_vm15 }
 0xb4c   : > { %v3850_v2 = vmul.f32 %v3849_v44, %v11154_v31  ;;  %v3419_v49 = vmul.f32 %v11164_v42, %v3418_v57  ;;  %v3799_v41 = vmul.f32 %v3798_v54, %v11099_v13  ;;  %v3837_v61 = vmul.f32 %v3836_v39, %v11154_v31 }
 0xb4d   : > { %v3729_v7 = vadd.f32 0.014752088, %v3728_v55  ;;  %v3425_v25 = vand.u32 2147483647, %v11117_v32  ;;  %v3427_v28 = vand.u32 2147483648, %v11117_v32  ;;  %v3457_v56 = vmul.f32 %v11213_v30, %v11170_v15 }
 0xb4e   : > { %v11247_v60 = vadd.f32 %v3274_v46, %v3151_v6  ;;  %vm3422_vm14 = vweird.f32 %v11164_v42  ;;  %v3444_v14 = vadd.f32 1.1283791, %v3443_v0  ;;  %v3851_v24 = vadd.f32 0.112945676, %v3850_v2  ;;  %v3342_v0 = vpop.f32.mrf.mxu0 }
 0xb4f   : > { %v3716_v57 = vadd.f32 0.00028619796, %v3715_v17  ;;  %v3509_v54 = vsel %vm11195_vm12, %v3508_v45, %v3504_v47  ;;  %v3544_v6 = vsel %vm11253_vm11, %v11135_v20, %v3540_v62  ;;  %10156 = vrcp.f32 %v11235_v1  ;;  %vm11284_vm13 = vmor %vm3421_vm1, %vm3422_vm14 }
 0xb50   : > { %v3730_v29 = vmul.f32 %v3729_v7, %v11182_v53  ;;  %v3420_v33 = vadd.f32 %v11164_v42, %v3419_v49  ;;  %v3800_v37 = vadd.f32 0.05243302, %v3799_v41  ;;  %v3838_v39 = vadd.f32 0.0036580483, %v3837_v61 }
 0xb51   : > { %v3852_v43 = vmul.f32 %v3851_v24, %v11154_v31  ;;  %v3458_v40 = vsub.f32 1.0, %v3457_v56  ;;  %v11268_v51 = vmul.f32 0.70710677, %v11247_v60  ;;  %v3156_v45 = vperm.slane %v11014_v50, 6 }
 0xb52   : > { %v3731_v34 = vadd.f32 0.112945676, %v3730_v29  ;;  %vm11271_vm12 = vcmp.eq.f32.partialorder %v3425_v25, 8.507059e+37  ;;  %v3428_v23 = vor.u32 1.1754944e-38, %v3427_v28  ;;  %v11276_v44 = vmul.f32 %v3444_v14, %v11052_v18 }
 0xb53   : > { %v3717_v35 = vmul.f32 %v3716_v57, %v11182_v53  ;;  %v3510_v17 = vmul.f32 %v3509_v54, %v11167_v12  ;;  %v11289_v46 = vmul.f32 0.5, %v11124_v4  ;;  %v3753_v47 = vmul.f32 %v11268_v51, %v11268_v51  ;;  %v3356_v54 = vpop.f32.mrf.mxu1 }
 0xb54   : > { %v11295_v18 = vadd.f32 %v3342_v0, %v3156_v45  ;;  %v3549_v12 = vsel %vm11231_vm10, %v11190_v63, %v3544_v6  ;;  %v3424_v32 = vsel %vm11284_vm13, %v11164_v42, %v3420_v33  ;;  %v3801_v62 = vmul.f32 %v3800_v37, %v11099_v13 }
 0xb55   : > { %v3853_v2 = vadd.f32 0.4994258, %v3852_v43  ;;  %v11304_v4 = vpop.eup %10156  ;;  %v3459_v49 = vmul.f32 %v11213_v30, %v3458_v40  ;;  %v3839_v41 = vmul.f32 %v3838_v39, %v11154_v31  ;;  %v3732_v61 = vmul.f32 %v3731_v34, %v11182_v53 }
 0xb56   : > { %v11309_v7 = vmin.f32 %v3753_v47, 16.0  ;;  %vm3461_vm15 = vweird.f32 %v11170_v15  ;;  %v3465_v63 = vand.u32 2147483647, %v11170_v15  ;;  %v3718_v48 = vadd.f32 0.0036580483, %v3717_v35 }
 0xb57   : > { %v11314_v42 = vmul.f32 0.70710677, %v11295_v18  ;;  %v8755_v25 = vclamps-f32 %v3510_v17, 1.0  ;;  %v3550_v28 = vmul.f32 %v3549_v12, %v11180_v9  ;;  %v3157_v58 = vperm.slane %v11014_v50, 7 }
 0xb58   : > { %v3766_v56 = vmul.f32 3.8918573e-05, %v11309_v7  ;;  %v3429_v14 = vsel %vm11271_vm12, %v3428_v23, %v3424_v32  ;;  %vm3462_vm1 = vweird.f32 %v11213_v30  ;;  %v3817_v24 = vmul.f32 %v11304_v4, %v11235_v1 }
 0xb59   : > { %v3854_v57 = vmul.f32 %v3853_v2, %v11154_v31  ;;  %v3460_v6 = vadd.f32 %v11213_v30, %v3459_v49  ;;  %v3802_v29 = vadd.f32 0.18741608, %v3801_v62  ;;  %v3840_v33 = vadd.f32 0.05243302, %v3839_v41  ;;  %vm11346_vm11 = vmor %vm3461_vm15, %vm3462_vm1 }
 0xb5a   : > { %v3733_v9 = vadd.f32 0.4994258, %v3732_v61  ;;  %v3719_v37 = vmul.f32 %v3718_v48, %v11182_v53  ;;  %v3755_v39 = vmul.f32 2.1237322e-06, %v11309_v7  ;;  %v3767_v43 = vadd.f32 0.001143296, %v3766_v56 }
 0xb5b   : > { %v3633_v0 = vmul.f32 %v11314_v42, %v11314_v42  ;;  %v3430_v40 = vmul.f32 %v3429_v14, %v11207_v16  ;;  %vm11331_vm10 = vcmp.eq.f32.partialorder %v3465_v63, 8.507059e+37  ;;  %v3467_v20 = vand.u32 2147483648, %v11170_v15 }
 0xb5c   : > { %v11338_v23 = vadd.f32 %v3356_v54, %v3157_v58  ;;  %v4035_v35 = vadd.f32 1.0, %v8755_v25  ;;  %v8756_v17 = vclamps-f32 %v3550_v28, 1.0  ;;  %v3818_v55 = vsub.f32 1.0, %v3817_v24 }
 0xb5d   : > { %v11340_v47 = vadd.f32 1.0, %v3854_v57  ;;  %v3803_v12 = vmul.f32 %v3802_v29, %v11099_v13  ;;  %v3734_v32 = vmul.f32 %v3733_v9, %v11182_v53  ;;  %v3768_v62 = vmul.f32 %v3767_v43, %v11309_v7 }
 0xb5e   : > { %v11353_v2 = vmin.f32 %v3633_v0, 16.0  ;;  %v3464_v49 = vsel %vm11346_vm11, %v11213_v30, %v3460_v6  ;;  %v3841_v41 = vmul.f32 %v3840_v33, %v11154_v31  ;;  %v3720_v61 = vadd.f32 0.05243302, %v3719_v37 }
 0xb5f   : > { %v3756_v15 = vadd.f32 0.00028619796, %v3755_v39  ;;  %v8753_v63 = vclamps-f32 %v3430_v40, 1.0  ;;  %v3468_v48 = vor.u32 1.1754944e-38, %v3467_v20  ;;  %v3769_v25 = vadd.f32 0.014752088, %v3768_v62 }
 0xb60   : > { %v11360_v28 = vmul.f32 0.70710677, %v11338_v23  ;;  %v4036_v13 = vadd.f32 1.0, %v8756_v17  ;;  %v3819_v56 = vmul.f32 %v11304_v4, %v3818_v55  ;;  %10158 = vrcp.f32 %v11340_v47 }
 0xb61   : > { %v3646_v14 = vmul.f32 3.8918573e-05, %v11353_v2  ;;  %v11366_v24 = vmul.f32 %v4035_v35, %v11142_v59  ;;  %v3469_v30 = vsel %vm11331_vm10, %v3468_v48, %v3464_v49  ;;  %v11370_v57 = vadd.f32 1.0, %v3734_v32 }
 0xb62   : > { %v3770_v54 = vmul.f32 %v3769_v25, %v11309_v7  ;;  %v3804_v6 = vadd.f32 1.1283791, %v3803_v12  ;;  %v3842_v29 = vadd.f32 0.18741608, %v3841_v41  ;;  %v3721_v33 = vmul.f32 %v3720_v61, %v11182_v53 }
 0xb63   : > { %v3757_v9 = vmul.f32 %v3756_v15, %v11309_v7  ;;  %v4033_v37 = vadd.f32 1.0, %v8753_v63  ;;  %v3647_v43 = vadd.f32 0.001143296, %v3646_v14  ;;  %v3673_v59 = vmul.f32 %v11360_v28, %v11360_v28 }
 0xb64   : > { %v3771_v39 = vadd.f32 0.112945676, %v3770_v54  ;;  %v3470_v0 = vmul.f32 %v3469_v30, %v11276_v44  ;;  %v3820_v40 = vadd.f32 %v11304_v4, %v3819_v56  ;;  %vm3821_vm14 = vweird.f32 %v11235_v1 }
 0xb65   : > { %vm3822_vm12 = vweird.f32 %v11304_v4  ;;  %v3825_v34 = vand.u32 2147483647, %v11235_v1  ;;  %10160 = vrcp.f32 %v11370_v57  ;;  %v3648_v35 = vmul.f32 %v3647_v43, %v11353_v2 }
 0xb66   : > { %v3772_v20 = vmul.f32 %v3771_v39, %v11309_v7  ;;  %v11385_v17 = vpop.eup %10158  ;;  %v3827_v55 = vand.u32 2147483648, %v11235_v1  ;;  %v3843_v44 = vmul.f32 %v3842_v29, %v11154_v31  ;;  %v3722_v16 = vadd.f32 0.18741608, %v3721_v33  ;;  %vm11392_vm13 = vmor %vm3821_vm14, %vm3822_vm12 }
 0xb67   : > { %v3758_v12 = vadd.f32 0.0036580483, %v3757_v9  ;;  %v11390_v32 = vmul.f32 %v4036_v13, %v11145_v10  ;;  %v3649_v41 = vadd.f32 0.014752088, %v3648_v35  ;;  %v11396_v61 = vmin.f32 %v3673_v59, 16.0 }
 0xb68   : > { %v3773_v49 = vadd.f32 0.4994258, %v3772_v20  ;;  %v11399_v15 = vmul.f32 %v4033_v37, %v11149_v26  ;;  %v8754_v63 = vclamps-f32 %v3470_v0, 1.0  ;;  %v3805_v1 = vmul.f32 %v3804_v6, %v11085_v5 }
 0xb69   : > { %v3824_v31 = vsel %vm11392_vm13, %v11304_v4, %v3820_v40  ;;  %v3857_v10 = vmul.f32 %v11385_v17, %v11340_v47  ;;  %v3635_v25 = vmul.f32 2.1237322e-06, %v11353_v2  ;;  %v3650_v13 = vmul.f32 %v3649_v41, %v11353_v2 }
 0xb6a   : > { %v3774_v48 = vmul.f32 %v3773_v49, %v11309_v7  ;;  %vm3826_vm15 = vcmp.eq.f32.partialorder %v3825_v34, 8.507059e+37  ;;  %v3828_v56 = vor.u32 1.1754944e-38, %v3827_v55  ;;  %v3844_v26 = vadd.f32 1.1283791, %v3843_v44  ;;  %v3314_v34 = vpop.f32.mrf.mxu2 }
 0xb6b   : > { %v11411_v14 = vmul.f32 0.5, %v11247_v60  ;;  %v11413_v5 = vpop.eup %10160  ;;  %v3723_v30 = vmul.f32 %v3722_v16, %v11182_v53  ;;  %v3759_v4 = vmul.f32 %v3758_v12, %v11309_v7  ;;  %v3686_v6 = vmul.f32 3.8918573e-05, %v11396_v61 }
 0xb6c   : > { %v11417_v54 = vadd.f32 1.0, %v3774_v48  ;;  %v11420_v29 = vadd.f32 1.0, %v8754_v63  ;;  %v3829_v33 = vsel %vm3826_vm15, %v3828_v56, %v3824_v31  ;;  %v3867_v9 = vand.u32 2147483648, %v11340_v47 }
 0xb6d   : > { %v3651_v37 = vadd.f32 0.112945676, %v3650_v13  ;;  %v3858_v39 = vsub.f32 1.0, %v3857_v10  ;;  %v3636_v60 = vadd.f32 0.00028619796, %v3635_v25  ;;  %v3154_v43 = vperm.slane %v11014_v50, 4 }
 0xb6e   : > { %10162 = vrcp.f32 %v11417_v54  ;;  %v3865_v53 = vand.u32 2147483647, %v11340_v47  ;;  %v3737_v59 = vmul.f32 %v11413_v5, %v11370_v57  ;;  %v3675_v40 = vmul.f32 2.1237322e-06, %v11396_v61 }
 0xb6f   : > { %v3652_v0 = vmul.f32 %v3651_v37, %v11353_v2  ;;  %v11431_v20 = vmul.f32 %v3844_v26, %v11115_v52  ;;  %v3724_v35 = vadd.f32 1.1283791, %v3723_v30  ;;  %v3760_v55 = vadd.f32 0.05243302, %v3759_v4 }
 0xb70   : > { %v3687_v44 = vadd.f32 0.001143296, %v3686_v6  ;;  %v3830_v16 = vmul.f32 %v3829_v33, %v3805_v1  ;;  %vm3861_vm1 = vweird.f32 %v11340_v47  ;;  %v11434_v12 = vor.u32 1.1754944e-38, %v3867_v9  ;;  %v3328_v6 = vpop.f32.mrf.mxu3  ;;  %v9646_v33 = vld [vmem:[%s13433_s1 + $0xb0] sm:$0xff] }
 0xb71   : > { %v3653_v62 = vadd.f32 0.4994258, %v3652_v0  ;;  %v3859_v49 = vmul.f32 %v11385_v17, %v3858_v39  ;;  %v3637_v41 = vmul.f32 %v3636_v60, %v11353_v2  ;;  %v11441_v52 = vadd.f32 %v3314_v34, %v3154_v43  ;;  %v9654_v60 = vld [vmem:[%s13433_s1 + $0xf0] sm:$0xff]  ;;  %4618 = vmatpush.bf16.msra.mxu0 %v9646_v33  ;;  %v9631_v34 = vld [vmem:[%s13433_s1 + $0x38] sm:$0xff] }
 0xb72   : > { %v3688_v63 = vmul.f32 %v3687_v44, %v11396_v61  ;;  %v3738_v31 = vsub.f32 1.0, %v3737_v59  ;;  %v3676_v1 = vadd.f32 0.00028619796, %v3675_v40  ;;  %v13396_v48 = vperm.slane %v11014_v50, 5  ;;  %4632 = vmatpush.bf16.msra.mxu1 %v9654_v60  ;;  %4589 = vmatpush.bf16.msra.mxu2 %v9631_v34 }
 0xb73   : > { %v3654_v10 = vmul.f32 %v3653_v62, %v11353_v2  ;;  %vm11447_vm10 = vcmp.eq.f32.partialorder %v3865_v53, 8.507059e+37  ;;  %v11452_v56 = vmul.f32 %v3724_v35, %v11139_v21  ;;  %v3761_v26 = vmul.f32 %v3760_v55, %v11309_v7  ;;  %v3344_v21 = vpop.f32.mrf.mxu0  ;;  %v9639_v35 = vld [vmem:[%s13433_s1 + $0x78] sm:$0xff] }
 0xb74   : > { %v11445_v25 = vpop.eup %10162  ;;  %v3689_v30 = vadd.f32 0.014752088, %v3688_v63  ;;  %v11456_v4 = vmul.f32 0.70710677, %v11441_v52  ;;  %v8763_v9 = vclamps-f32 %v3830_v16, 1.0  ;;  %vm3862_vm11 = vweird.f32 %v11385_v17  ;;  %4603 = vmatpush.bf16.msra.mxu3 %v9639_v35 }
 0xb75   : > { %v3745_v37 = vand.u32 2147483647, %v11370_v57  ;;  %v3777_v39 = vmul.f32 %v11445_v25, %v11417_v54  ;;  %v3860_v53 = vadd.f32 %v11385_v17, %v3859_v49  ;;  %v3638_v59 = vadd.f32 0.0036580483, %v3637_v41  ;;  %vm11490_vm12 = vmor %vm3861_vm1, %vm3862_vm11 }
 0xb76   : > { %v3690_v0 = vmul.f32 %v3689_v30, %v11396_v61  ;;  %v3553_v40 = vmul.f32 %v11456_v4, %v11456_v4  ;;  %v3739_v55 = vmul.f32 %v11413_v5, %v3738_v31  ;;  %v11471_v44 = vadd.f32 1.0, %v3654_v10  ;;  %v9645_v31 = vld [vmem:[%s13433_s1 + $0xa8] sm:$0xff] }
 0xb77   : > { %v3677_v16 = vmul.f32 %v3676_v1, %v11396_v61  ;;  %v11476_v62 = vadd.f32 %v3328_v6, %v13396_v48  ;;  %vm3741_vm14 = vweird.f32 %v11370_v57  ;;  %v3747_v49 = vand.u32 2147483648, %v11370_v57  ;;  %v9653_v10 = vld [vmem:[%s13433_s1 + $0xe8] sm:$0xff]  ;;  %4619 = vmatpush.bf16.msra.mxu0 %v9645_v31 }
 0xb78   : > { %v3762_v41 = vadd.f32 0.18741608, %v3761_v26  ;;  %v11482_v63 = vadd.f32 %v3344_v21, %v3156_v45  ;;  %v4043_v30 = vadd.f32 1.0, %v8763_v9  ;;  %v3778_v6 = vsub.f32 1.0, %v3777_v39  ;;  %4633 = vmatpush.bf16.msra.mxu1 %v9653_v10 }
 0xb79   : > { %v3691_v33 = vadd.f32 0.112945676, %v3690_v0  ;;  %v11494_v26 = vmin.f32 %v3553_v40, 16.0  ;;  %v3864_v45 = vsel %vm11490_vm12, %v11385_v17, %v3860_v53  ;;  %vm3742_vm13 = vweird.f32 %v11413_v5 }
 0xb7a   : > { %v3639_v9 = vmul.f32 %v3638_v59, %v11353_v2  ;;  %v11502_v21 = vmul.f32 0.70710677, %v11476_v62  ;;  %v3740_v47 = vadd.f32 %v11413_v5, %v3739_v55  ;;  %10164 = vrcp.f32 %v11471_v44  ;;  %vm11527_vm1 = vmor %vm3741_vm14, %vm3742_vm13  ;;  %v9630_v55 = vld [vmem:[%s13433_s1 + $0x30] sm:$0xff] }
 0xb7b   : > { %v3678_v39 = vadd.f32 0.0036580483, %v3677_v16  ;;  %v3692_v60 = vmul.f32 %v3691_v33, %v11396_v61  ;;  %v3763_v0 = vmul.f32 %v3762_v41, %v11309_v7  ;;  %v3566_v17 = vmul.f32 3.8918573e-05, %v11494_v26  ;;  %4590 = vmatpush.bf16.msra.mxu2 %v9630_v55 }
 0xb7c   : > { %v3593_v53 = vmul.f32 %v11502_v21, %v11502_v21  ;;  %v11512_v59 = vmul.f32 0.70710677, %v11482_v63  ;;  %v3869_v40 = vsel %vm11447_vm10, %v11434_v12, %v3864_v45  ;;  %vm11517_vm15 = vcmp.eq.f32.partialorder %v3745_v37, 8.507059e+37 }
 0xb7d   : > { %v3779_v35 = vmul.f32 %v11445_v25, %v3778_v6  ;;  %v3555_v7 = vmul.f32 2.1237322e-06, %v11494_v26  ;;  %v3748_v16 = vor.u32 1.1754944e-38, %v3747_v49  ;;  %v3693_v41 = vadd.f32 0.4994258, %v3692_v60 }
 0xb7e   : > { %v3567_v13 = vadd.f32 0.001143296, %v3566_v17  ;;  %v11531_v12 = vmin.f32 %v3593_v53, 16.0  ;;  %v11534_v37 = vmul.f32 %v4043_v30, %v11160_v38  ;;  %v3744_v31 = vsel %vm11527_vm1, %v11413_v5, %v3740_v47 }
 0xb7f   : > { %v3640_v10 = vadd.f32 0.05243302, %v3639_v9  ;;  %v3679_v1 = vmul.f32 %v3678_v39, %v11396_v61  ;;  %v3870_v57 = vmul.f32 %v3869_v40, %v11431_v20  ;;  %v3764_v6 = vadd.f32 1.1283791, %v3763_v0 }
 0xb80   : > { %v3568_v33 = vmul.f32 %v3567_v13, %v11494_v26  ;;  %v3953_v49 = vmul.f32 %v11512_v59, %v11512_v59  ;;  %v11544_v45 = vpop.eup %10164  ;;  %v3780_v38 = vadd.f32 %v11445_v25, %v3779_v35  ;;  %vm3782_vm10 = vweird.f32 %v11445_v25 }
 0xb81   : > { %v3556_v30 = vadd.f32 0.00028619796, %v3555_v7  ;;  %v3606_v5 = vmul.f32 3.8918573e-05, %v11531_v12  ;;  %v3749_v20 = vsel %vm11517_vm15, %v3748_v16, %v3744_v31  ;;  %v3787_v9 = vand.u32 2147483648, %v11417_v54  ;;  %v9638_v16 = vld [vmem:[%s13433_s1 + $0x70] sm:$0xff] }
 0xb82   : > { %v3694_v47 = vmul.f32 %v3693_v41, %v11396_v61  ;;  %v3569_v39 = vadd.f32 0.014752088, %v3568_v33  ;;  %vm3781_vm11 = vweird.f32 %v11417_v54  ;;  %v3785_v60 = vand.u32 2147483647, %v11417_v54  ;;  %4604 = vmatpush.bf16.msra.mxu3 %v9638_v16  ;;  %v9651_v16 = vld [vmem:[%s13433_s1 + $0xd8] sm:$0xff] }
 0xb83   : > { %v3641_v0 = vmul.f32 %v3640_v10, %v11353_v2  ;;  %v3680_v17 = vadd.f32 0.05243302, %v3679_v1  ;;  %v8764_v53 = vclamps-f32 %v3870_v57, 1.0  ;;  %vm11556_vm14 = vmor %vm3781_vm11, %vm3782_vm10  ;;  %v3657_v34 = vmul.f32 %v11544_v45, %v11471_v44 }
 0xb84   : > { %v3570_v35 = vmul.f32 %v3569_v39, %v11494_v26  ;;  %v11563_v7 = vmin.f32 %v3953_v49, 16.0  ;;  %v3784_v54 = vsel %vm11556_vm14, %v11445_v25, %v3780_v38  ;;  %v3557_v41 = vmul.f32 %v3556_v30, %v11494_v26  ;;  %v9644_v38 = vld [vmem:[%s13433_s1 + $0xa0] sm:$0xff] }
 0xb85   : > { %v3595_v13 = vmul.f32 2.1237322e-06, %v11531_v12  ;;  %v3607_v31 = vadd.f32 0.001143296, %v3606_v5  ;;  %v3750_v10 = vmul.f32 %v3749_v20, %v11452_v56  ;;  %v3788_v1 = vor.u32 1.1754944e-38, %v3787_v9  ;;  %v9652_v30 = vld [vmem:[%s13433_s1 + $0xe0] sm:$0xff]  ;;  %4620 = vmatpush.bf16.msra.mxu0 %v9644_v38  ;;  %v3358_v38 = vpop.f32.mrf.mxu1 }
 0xb86   : > { %v11573_v57 = vadd.f32 1.0, %v3694_v47  ;;  %v3571_v33 = vadd.f32 0.112945676, %v3570_v35  ;;  %v3765_v49 = vmul.f32 %v3764_v6, %v11268_v51  ;;  %vm3786_vm12 = vcmp.eq.f32.partialorder %v3785_v60, 8.507059e+37  ;;  %v9629_v9 = vld [vmem:[%s13433_s1 + $0x28] sm:$0xff]  ;;  %4634 = vmatpush.bf16.msra.mxu1 %v9652_v30  ;;  %v9628_v30 = vld [vmem:[%s13433_s1 + $0x20] sm:$0xff] }
 0xb87   : > { %v3642_v39 = vadd.f32 0.18741608, %v3641_v0  ;;  %v3681_v25 = vmul.f32 %v3680_v17, %v11396_v61  ;;  %v3789_v40 = vsel %vm3786_vm12, %v3788_v1, %v3784_v54  ;;  %v3658_v5 = vsub.f32 1.0, %v3657_v34  ;;  %v9637_v47 = vld [vmem:[%s13433_s1 + $0x68] sm:$0xff]  ;;  %4591 = vmatpush.bf16.msra.mxu2 %v9629_v9  ;;  %v9643_v34 = vld [vmem:[%s13433_s1 + $0x98] sm:$0xff] }
 0xb88   : > { %v3572_v56 = vmul.f32 %v3571_v33, %v11494_v26  ;;  %v3955_v20 = vmul.f32 2.1237322e-06, %v11563_v7  ;;  %v3558_v35 = vadd.f32 0.0036580483, %v3557_v41  ;;  %v3596_v55 = vadd.f32 0.00028619796, %v3595_v13  ;;  %4605 = vmatpush.bf16.msra.mxu3 %v9637_v47 }
 0xb89   : > { %v3608_v51 = vmul.f32 %v3607_v31, %v11531_v12  ;;  %v3966_v6 = vmul.f32 3.8918573e-05, %v11563_v7  ;;  %v4044_v60 = vadd.f32 1.0, %v8764_v53  ;;  %v8761_v0 = vclamps-f32 %v3750_v10, 1.0  ;;  %4621 = vmatpush.bf16.msra.mxu0 %v9643_v34  ;;  %v9635_v34 = vld [vmem:[%s13433_s1 + $0x58] sm:$0xff] }
 0xb8a   : > { %10166 = vrcp.f32 %v11573_v57  ;;  %v3573_v17 = vadd.f32 0.4994258, %v3572_v56  ;;  %v11590_v54 = vmul.f32 %v11420_v29, %v11152_v27  ;;  %v11593_v41 = vmul.f32 0.5, %v11295_v18  ;;  %v9636_v56 = vld [vmem:[%s13433_s1 + $0x60] sm:$0xff]  ;;  %4635 = vmatpush.bf16.msra.mxu1 %v9651_v16 }
 0xb8b   : > { %v3643_v13 = vmul.f32 %v3642_v39, %v11353_v2  ;;  %v3956_v53 = vadd.f32 0.00028619796, %v3955_v20  ;;  %v4195_v31 = vpack.c.bf16 %v11534_v37, %v11366_v24  ;;  %v3790_v10 = vmul.f32 %v3789_v40, %v3765_v49  ;;  %v3316_v2 = vpop.f32.mrf.mxu2  ;;  %4592 = vmatpush.bf16.msra.mxu2 %v9628_v30  ;;  %v9650_v20 = vld [vmem:[%s13433_s1 + $0xd0] sm:$0xff] }
 0xb8c   : > { %v3682_v1 = vadd.f32 0.18741608, %v3681_v25  ;;  %v3967_v33 = vadd.f32 0.001143296, %v3966_v6  ;;  %v3659_v27 = vmul.f32 %v11544_v45, %v3658_v5  ;;  %v3559_v29 = vmul.f32 %v3558_v35, %v11494_v26  ;;  %4606 = vmatpush.bf16.msra.mxu3 %v9636_v56  ;;  %v9642_v5 = vld [vmem:[%s13433_s1 + $0x90] sm:$0xff] }
 0xb8d   : > { %v3597_v18 = vmul.f32 %v3596_v55, %v11531_v12  ;;  %v3609_v9 = vadd.f32 0.014752088, %v3608_v51  ;;  %v11604_v39 = vmul.f32 %v4044_v60, %v11211_v11  ;;  %v4041_v49 = vadd.f32 1.0, %v8761_v0  ;;  %4622 = vmatpush.bf16.msra.mxu0 %v9642_v5 }
 0xb8e   : > { %v3574_v25 = vmul.f32 %v3573_v17, %v11494_v26  ;;  %v3968_v40 = vmul.f32 %v3967_v33, %v11563_v7  ;;  %v3644_v47 = vadd.f32 1.1283791, %v3643_v13  ;;  %v3667_v35 = vand.u32 2147483648, %v11471_v44  ;;  %v9627_v17 = vld [vmem:[%s13433_s1 + $0x18] sm:$0xff]  ;;  %4636 = vmatpush.bf16.msra.mxu1 %v9650_v20  ;;  %v9641_v33 = vld [vmem:[%s13433_s1 + $0x88] sm:$0xff] }
 0xb8f   : > { %v3957_v55 = vmul.f32 %v3956_v53, %v11563_v7  ;;  %v11614_v11 = vadd.f32 %v3358_v38, %v3157_v58  ;;  %v8762_v6 = vclamps-f32 %v3790_v10, 1.0  ;;  %vm3662_vm13 = vweird.f32 %v11544_v45  ;;  %4593 = vmatpush.bf16.msra.mxu2 %v9627_v17  ;;  %v9649_v38 = vld [vmem:[%s13433_s1 + $0xc8] sm:$0xff] }
 0xb90   : > { %v11616_v51 = vpop.eup %10166  ;;  %v3683_v60 = vmul.f32 %v3682_v1, %v11396_v61  ;;  %v11622_v0 = vadd.f32 %v3316_v2, %v3154_v43  ;;  %v3660_v16 = vadd.f32 %v11544_v45, %v3659_v27  ;;  %v3560_v13 = vadd.f32 0.05243302, %v3559_v29  ;;  %4607 = vmatpush.bf16.msra.mxu3 %v9635_v34 }
 0xb91   : > { %v3598_v58 = vadd.f32 0.0036580483, %v3597_v18  ;;  %v3610_v53 = vmul.f32 %v3609_v9, %v11531_v12  ;;  %v4196_v10 = vpack.c.bf16 %v11604_v39, %v11390_v32  ;;  %v11631_v61 = vmul.f32 %v4041_v49, %v11289_v46  ;;  %v9626_v49 = vld [vmem:[%s13433_s1 + $0x10] sm:$0xff]  ;;  %4623 = vmatpush.bf16.msra.mxu0 %v9641_v33  ;;  %v9633_v46 = vld [vmem:[%s13433_s1 + $0x48] sm:$0xff] }
 0xb92   : > { %v11633_v43 = vadd.f32 1.0, %v3574_v25  ;;  %v3969_v1 = vadd.f32 0.014752088, %v3968_v40  ;;  %vm3661_vm15 = vweird.f32 %v11471_v44  ;;  %v3665_v30 = vand.u32 2147483647, %v11471_v44  ;;  %v9634_v25 = vld [vmem:[%s13433_s1 + $0x50] sm:$0xff]  ;;  %4637 = vmatpush.bf16.msra.mxu1 %v9649_v38 }
 0xb93   : > { %v3697_v56 = vmul.f32 %v11616_v51, %v11573_v57  ;;  %v3958_v27 = vadd.f32 0.0036580483, %v3957_v55  ;;  %v4042_v29 = vadd.f32 1.0, %v8762_v6  ;;  %vm11643_vm1 = vmor %vm3661_vm15, %vm3662_vm13  ;;  %v3668_v18 = vor.u32 1.1754944e-38, %v3667_v35  ;;  %4594 = vmatpush.bf16.msra.mxu2 %v9626_v49 }
 0xb94   : > { %v3684_v9 = vadd.f32 1.1283791, %v3683_v60  ;;  %v3970_v2 = vmul.f32 %v3969_v1, %v11563_v7  ;;  %v3664_v44 = vsel %vm11643_vm1, %v11544_v45, %v3660_v16  ;;  %v3611_v40 = vadd.f32 0.112945676, %v3610_v53  ;;  %4608 = vmatpush.bf16.msra.mxu3 %v9634_v25  ;;  %v9640_v45 = vld [vmem:[%s13433_s1 + $0x80] sm:$0xff]  ;;  %v9679_v53 = vld [vmem:[%s13433_s1 + $0x1b8] sm:$0xff] }
 0xb95   : > { %v11654_v5 = vmul.f32 0.70710677, %v11614_v11  ;;  %v11657_v20 = vmul.f32 0.70710677, %v11622_v0  ;;  %v3561_v35 = vmul.f32 %v3560_v13, %v11494_v26  ;;  %10168 = vrcp.f32 %v11633_v43  ;;  %v9648_v60 = vld [vmem:[%s13433_s1 + $0xc0] sm:$0xff]  ;;  %v9687_v1 = vld [vmem:[%s13433_s1 + $0x1f8] sm:$0xff]  ;;  %4624 = vmatpush.bf16.msra.mxu0 %v9640_v45 }
 0xb96   : > { %v3599_v55 = vmul.f32 %v3598_v58, %v11531_v12  ;;  %v3971_v6 = vadd.f32 0.112945676, %v3970_v2  ;;  %v3698_v17 = vsub.f32 1.0, %v3697_v56  ;;  %v3959_v34 = vmul.f32 %v3958_v27, %v11563_v7  ;;  %v9625_v56 = vld [vmem:[%s13433_s1 + $0x8] sm:$0xff]  ;;  %4638 = vmatpush.bf16.msra.mxu1 %v9648_v60 }
 0xb97   : > { %v3993_v16 = vmul.f32 %v11654_v5, %v11654_v5  ;;  %v3873_v13 = vmul.f32 %v11657_v20, %v11657_v20  ;;  %v11674_v33 = vmul.f32 %v4042_v29, %v11411_v14  ;;  %v3645_v38 = vmul.f32 %v3644_v47, %v11314_v42  ;;  %4595 = vmatpush.bf16.msra.mxu2 %v9625_v56 }
 0xb98   : > { %vm3666_vm10 = vcmp.eq.f32.partialorder %v3665_v30, 8.507059e+37  ;;  %v3705_v2 = vand.u32 2147483647, %v11573_v57  ;;  %v3612_v49 = vmul.f32 %v3611_v40, %v11531_v12  ;;  %v3972_v25 = vmul.f32 %v3971_v6, %v11563_v7  ;;  %4609 = vmatpush.bf16.msra.mxu3 %v9633_v46  ;;  %v9686_v40 = vld [vmem:[%s13433_s1 + $0x1f0] sm:$0xff]  ;;  %4625 = vmatmul.bf16.vlgmr.msra.gmra.mxu0 %v4195_v31 }
 0xb99   : > { %v3669_v27 = vsel %vm3666_vm10, %v3668_v18, %v3664_v44  ;;  %v3562_v58 = vadd.f32 0.18741608, %v3561_v35  ;;  %v3600_v48 = vadd.f32 0.05243302, %v3599_v55  ;;  %v11682_v14 = vmin.f32 %v3993_v16, 16.0  ;;  %4673 = vmatpush.bf16.msrb.mxu0 %v9679_v53  ;;  %v9678_v44 = vld [vmem:[%s13433_s1 + $0x1b0] sm:$0xff]  ;;  %4639 = vmatmul.bf16.vlgmr.msra.gmra.mxu1 %v4196_v10  ;;  %v3330_v53 = vpop.f32.mrf.mxu3 }
 0xb9a   : > { %v11684_v29 = vmin.f32 %v3873_v13, 16.0  ;;  %4687 = vmatpush.bf16.msrb.mxu1 %v9687_v1  ;;  %v11687_v42 = vmul.f32 %v3684_v9, %v11360_v28  ;;  %v3699_v47 = vmul.f32 %v11616_v51, %v3698_v17  ;;  %v3960_v30 = vadd.f32 0.05243302, %v3959_v34  ;;  %v9624_v34 = vld [vmem:[%s13433_s1] sm:$0xff]  ;;  %v9671_v1 = vld [vmem:[%s13433_s1 + $0x178] sm:$0xff] }
 0xb9b   : > { %v3973_v18 = vadd.f32 0.4994258, %v3972_v25  ;;  %v11692_v35 = vpop.eup %10168  ;;  %vm3701_vm11 = vweird.f32 %v11573_v57  ;;  %v3995_v55 = vmul.f32 2.1237322e-06, %v11682_v14  ;;  %v4006_v6 = vmul.f32 3.8918573e-05, %v11682_v14  ;;  %4596 = vmatpush.bf16.msra.mxu2 %v9624_v34 }
 0xb9c   : > { %v3875_v28 = vmul.f32 2.1237322e-06, %v11684_v29  ;;  %v3670_v9 = vmul.f32 %v3669_v27, %v3645_v38  ;;  %v3613_v45 = vadd.f32 0.4994258, %v3612_v49  ;;  %v3886_v17 = vmul.f32 3.8918573e-05, %v11684_v29 }
 0xb9d   : > { %v3974_v60 = vmul.f32 %v3973_v18, %v11563_v7  ;;  %v9632_v16 = vld [vmem:[%s13433_s1 + $0x40] sm:$0xff]  ;;  %v4194_v13 = vpack.c.bf16 %v11674_v33, %v11590_v54  ;;  %v3996_v24 = vadd.f32 0.00028619796, %v3995_v55  ;;  %v4007_v37 = vadd.f32 0.001143296, %v4006_v6  ;;  %4674 = vmatpush.bf16.msrb.mxu0 %v9678_v44  ;;  %v9663_v54 = vld [vmem:[%s13433_s1 + $0x138] sm:$0xff] }
 0xb9e   : > { %v3876_v31 = vadd.f32 0.00028619796, %v3875_v28  ;;  %4688 = vmatpush.bf16.msrb.mxu1 %v9686_v40  ;;  %v3700_v32 = vadd.f32 %v11616_v51, %v3699_v47  ;;  %vm3702_vm14 = vweird.f32 %v11616_v51  ;;  %v3577_v39 = vmul.f32 %v11692_v35, %v11633_v43  ;;  %4610 = vmatpush.bf16.msra.mxu3 %v9632_v16  ;;  %v9677_v33 = vld [vmem:[%s13433_s1 + $0x1a8] sm:$0xff]  ;;  %v9662_v44 = vld [vmem:[%s13433_s1 + $0x130] sm:$0xff] }
 0xb9f   : > { %v3961_v10 = vmul.f32 %v3960_v30, %v11563_v7  ;;  %v3707_v38 = vand.u32 2147483648, %v11573_v57  ;;  %v11719_v56 = vadd.f32 1.0, %v3974_v60  ;;  %v3997_v46 = vmul.f32 %v3996_v24, %v11682_v14  ;;  %v9685_v49 = vld [vmem:[%s13433_s1 + $0x1e8] sm:$0xff]  ;;  %4645 = vmatpush.bf16.msrb.mxu2 %v9663_v54  ;;  %v9670_v40 = vld [vmem:[%s13433_s1 + $0x170] sm:$0xff]  ;;  %vm11732_vm12 = vmor %vm3701_vm11, %vm3702_vm14 }
 0xba0   : > { %v4008_v27 = vmul.f32 %v4007_v37, %v11682_v14  ;;  %v8759_v25 = vclamps-f32 %v3670_v9, 1.0  ;;  %v3563_v47 = vmul.f32 %v3562_v58, %v11494_v26  ;;  %v3614_v30 = vmul.f32 %v3613_v45, %v11531_v12  ;;  %v9684_v37 = vld [vmem:[%s13433_s1 + $0x1e0] sm:$0xff]  ;;  %v9669_v57 = vld [vmem:[%s13433_s1 + $0x168] sm:$0xff] }
 0xba1   : > { %v3887_v18 = vadd.f32 0.001143296, %v3886_v17  ;;  %v3601_v6 = vmul.f32 %v3600_v48, %v11531_v12  ;;  %10170 = vrcp.f32 %v11719_v56  ;;  %v3877_v26 = vmul.f32 %v3876_v31, %v11684_v29  ;;  %4675 = vmatpush.bf16.msrb.mxu0 %v9677_v33  ;;  %v9676_v48 = vld [vmem:[%s13433_s1 + $0x1a0] sm:$0xff]  ;;  %4611 = vmatmul.bf16.vlgmr.msra.gmra.mxu3 %v4194_v13 }
 0xba2   : > { %4659 = vmatpush.bf16.msrb.mxu3 %v9671_v1  ;;  %v13466_v58 = vperm.slane %v11014_v50, 5  ;;  %4689 = vmatpush.bf16.msrb.mxu1 %v9685_v49  ;;  %v3704_v9 = vsel %vm11732_vm12, %v11616_v51, %v3700_v32  ;;  %v3578_v45 = vsub.f32 1.0, %v3577_v39  ;;  %v3962_v60 = vadd.f32 0.18741608, %v3961_v10 }
 0xba3   : > { %v4009_v17 = vadd.f32 0.014752088, %v4008_v27  ;;  %v13467_v34 = vpack.c.bf16 %v11631_v61, %v11399_v15  ;;  %vm3706_vm13 = vcmp.eq.f32.partialorder %v3705_v2, 8.507059e+37  ;;  %v3708_v50 = vor.u32 1.1754944e-38, %v3707_v38  ;;  %4646 = vmatpush.bf16.msrb.mxu2 %v9662_v44  ;;  %v9661_v15 = vld [vmem:[%s13433_s1 + $0x128] sm:$0xff]  ;;  %v9675_v38 = vld [vmem:[%s13433_s1 + $0x198] sm:$0xff] }
 0xba4   : > { %v11741_v28 = vadd.f32 %v3330_v53, %v13466_v58  ;;  %v3998_v16 = vadd.f32 0.0036580483, %v3997_v46  ;;  %v3888_v24 = vmul.f32 %v3887_v18, %v11684_v29  ;;  %v11754_v51 = vadd.f32 1.0, %v8759_v25  ;;  %v9683_v46 = vld [vmem:[%s13433_s1 + $0x1d8] sm:$0xff]  ;;  %v9660_v44 = vld [vmem:[%s13433_s1 + $0x120] sm:$0xff] }
 0xba5   : > { %4597 = vmatmul.bf16.vlgmr.msra.gmra.mxu2 %v13467_v34  ;;  %v11756_v31 = vadd.f32 1.1283791, %v3563_v47  ;;  %v11758_v32 = vadd.f32 1.0, %v3614_v30  ;;  %v4010_v39 = vmul.f32 %v4009_v17, %v11682_v14  ;;  %v3709_v61 = vsel %vm3706_vm13, %v3708_v50, %v3704_v9  ;;  %4676 = vmatpush.bf16.msrb.mxu0 %v9676_v48  ;;  %v9674_v17 = vld [vmem:[%s13433_s1 + $0x190] sm:$0xff] }
 0xba6   : > { %4660 = vmatpush.bf16.msrb.mxu3 %v9670_v40  ;;  %v3878_v2 = vadd.f32 0.0036580483, %v3877_v26  ;;  %v3889_v13 = vadd.f32 0.014752088, %v3888_v24  ;;  %v11764_v10 = vmul.f32 0.70710677, %v11741_v28  ;;  %4690 = vmatpush.bf16.msrb.mxu1 %v9684_v37  ;;  %v3579_v53 = vmul.f32 %v11692_v35, %v3578_v45 }
 0xba7   : > { %v11767_v54 = vadd.f32 0.18741608, %v3601_v6  ;;  %v3963_v1 = vmul.f32 %v3962_v60, %v11563_v7  ;;  %v4011_v33 = vadd.f32 0.112945676, %v4010_v39  ;;  %v11772_v27 = vpop.eup %10170  ;;  %v3587_v49 = vand.u32 2147483648, %v11633_v43  ;;  %4647 = vmatpush.bf16.msrb.mxu2 %v9661_v15  ;;  %v9668_v40 = vld [vmem:[%s13433_s1 + $0x160] sm:$0xff] }
 0xba8   : > { %v3999_v25 = vmul.f32 %v3998_v16, %v11682_v14  ;;  %v3890_v47 = vmul.f32 %v3889_v13, %v11684_v29  ;;  %v3913_v30 = vmul.f32 %v11764_v10, %v11764_v10  ;;  %v11780_v18 = vmul.f32 %v3709_v61, %v11687_v42  ;;  %v9682_v48 = vld [vmem:[%s13433_s1 + $0x1d0] sm:$0xff]  ;;  %v9667_v61 = vld [vmem:[%s13433_s1 + $0x158] sm:$0xff] }
 0xba9   : > { %vm3582_vm15 = vweird.f32 %v11692_v35  ;;  %10172 = vrcp.f32 %v11758_v32  ;;  %v3977_v7 = vmul.f32 %v11772_v27, %v11719_v56  ;;  %v4012_v55 = vmul.f32 %v4011_v33, %v11682_v14  ;;  %4677 = vmatpush.bf16.msrb.mxu0 %v9675_v38 }
 0xbaa   : > { %4661 = vmatpush.bf16.msrb.mxu3 %v9669_v57  ;;  %v3879_v6 = vmul.f32 %v3878_v2, %v11684_v29  ;;  %v3891_v26 = vadd.f32 0.112945676, %v3890_v47  ;;  %v11790_v42 = vmin.f32 %v3913_v30, 16.0  ;;  %4691 = vmatpush.bf16.msrb.mxu1 %v9683_v46  ;;  %v11793_v58 = vadd.f32 %v11692_v35, %v3579_v53  ;;  %v9659_v57 = vld [vmem:[%s13433_s1 + $0x118] sm:$0xff]  ;;  %v9673_v47 = vld [vmem:[%s13433_s1 + $0x188] sm:$0xff] }
 0xbab   : > { %v3964_v9 = vadd.f32 1.1283791, %v3963_v1  ;;  %v3978_v45 = vsub.f32 1.0, %v3977_v7  ;;  %v3987_v60 = vand.u32 2147483648, %v11719_v56  ;;  %v4000_v34 = vadd.f32 0.05243302, %v3999_v25  ;;  %4648 = vmatpush.bf16.msrb.mxu2 %v9660_v44 }
 0xbac   : > { %v4013_v50 = vadd.f32 0.4994258, %v4012_v55  ;;  %v3892_v16 = vmul.f32 %v3891_v26, %v11684_v29  ;;  %v3915_v24 = vmul.f32 2.1237322e-06, %v11790_v42  ;;  %vm3982_vm1 = vweird.f32 %v11772_v27  ;;  %v9681_v30 = vld [vmem:[%s13433_s1 + $0x1c8] sm:$0xff]  ;;  %v9658_v26 = vld [vmem:[%s13433_s1 + $0x110] sm:$0xff] }
 0xbad   : > { %v3979_v37 = vmul.f32 %v11772_v27, %v3978_v45  ;;  %v3985_v39 = vand.u32 2147483647, %v11719_v56  ;;  %v3926_v15 = vmul.f32 3.8918573e-05, %v11790_v42  ;;  %v3880_v13 = vadd.f32 0.05243302, %v3879_v6  ;;  %4678 = vmatpush.bf16.msrb.mxu0 %v9674_v17 }
 0xbae   : > { %4662 = vmatpush.bf16.msrb.mxu3 %v9668_v40  ;;  %v4014_v2 = vmul.f32 %v4013_v50, %v11682_v14  ;;  %v3893_v53 = vadd.f32 0.4994258, %v3892_v16  ;;  %v3916_v1 = vadd.f32 0.00028619796, %v3915_v24  ;;  %4692 = vmatpush.bf16.msrb.mxu1 %v9682_v48  ;;  %v3965_v38 = vmul.f32 %v3964_v9, %v11512_v59  ;;  %v9666_v9 = vld [vmem:[%s13433_s1 + $0x150] sm:$0xff]  ;;  %v9672_v50 = vld [vmem:[%s13433_s1 + $0x180] sm:$0xff] }
 0xbaf   : > { %v11807_v33 = vpop.eup %10172  ;;  %v3980_v46 = vadd.f32 %v11772_v27, %v3979_v37  ;;  %vm3981_vm10 = vweird.f32 %v11719_v56  ;;  %v3927_v25 = vadd.f32 0.001143296, %v3926_v15  ;;  %v3988_v7 = vor.u32 1.1754944e-38, %v3987_v60  ;;  %4649 = vmatpush.bf16.msrb.mxu2 %v9659_v57  ;;  %v9680_v16 = vld [vmem:[%s13433_s1 + $0x1c0] sm:$0xff] }
 0xbb0   : > { %vm3983_vm11 = vmor %vm3981_vm10, %vm3982_vm1  ;;  %v4001_v44 = vmul.f32 %v4000_v34, %v11682_v14  ;;  %v11817_v40 = vadd.f32 1.0, %v4014_v2  ;;  %v3894_v55 = vmul.f32 %v3893_v53, %v11684_v29  ;;  %vm3986_vm14 = vcmp.eq.f32.partialorder %v3985_v39, 8.507059e+37  ;;  %v9657_v53 = vld [vmem:[%s13433_s1 + $0x108] sm:$0xff] }
 0xbb1   : > { %v3984_v59 = vsel %vm3983_vm11, %v11772_v27, %v3980_v46  ;;  %v3917_v6 = vmul.f32 %v3916_v1, %v11790_v42  ;;  %v3928_v56 = vmul.f32 %v3927_v25, %v11790_v42  ;;  %v3617_v45 = vmul.f32 %v11807_v33, %v11758_v32  ;;  %4679 = vmatpush.bf16.msrb.mxu0 %v9673_v47  ;;  %v9665_v1 = vld [vmem:[%s13433_s1 + $0x148] sm:$0xff] }
 0xbb2   : > { %4663 = vmatpush.bf16.msrb.mxu3 %v9667_v61  ;;  %v3989_v60 = vsel %vm3986_vm14, %v3988_v7, %v3984_v59  ;;  %10174 = vrcp.f32 %v11817_v40  ;;  %v3881_v17 = vmul.f32 %v3880_v13, %v11684_v29  ;;  %4693 = vmatpush.bf16.msrb.mxu1 %v9681_v30  ;;  %vm3581_vm12 = vweird.f32 %v11633_v43 }
 0xbb3   : > { %v3585_v27 = vand.u32 2147483647, %v11633_v43  ;;  %v3990_v48 = vmul.f32 %v3989_v60, %v3965_v38  ;;  %v11831_v34 = vadd.f32 1.0, %v3894_v55  ;;  %vm11837_vm13 = vmor %vm3581_vm12, %vm3582_vm15  ;;  %v3588_v37 = vor.u32 1.1754944e-38, %v3587_v49  ;;  %4650 = vmatpush.bf16.msrb.mxu2 %v9658_v26 }
 0xbb4   : > { %v3375_v39 = vmul.f32 0.5, %v11482_v63  ;;  %v4002_v15 = vadd.f32 0.18741608, %v4001_v44  ;;  %v3929_v57 = vadd.f32 0.014752088, %v3928_v56  ;;  %v3584_v61 = vsel %vm11837_vm13, %v11692_v35, %v11793_v58 }
 0xbb5   : > { %v8767_v2 = vclamps-f32 %v3990_v48, 1.0  ;;  %10176 = vrcp.f32 %v11831_v34  ;;  %v3918_v13 = vadd.f32 0.0036580483, %v3917_v6  ;;  %v8760_v43 = vclamps-f32 %v11780_v18, 1.0  ;;  %4680 = vmatpush.bf16.msrb.mxu0 %v9672_v50 }
 0xbb6   : > { %4664 = vmatpush.bf16.msrb.mxu3 %v9666_v9  ;;  %v3618_v49 = vsub.f32 1.0, %v3617_v45  ;;  %v3882_v38 = vadd.f32 0.18741608, %v3881_v17  ;;  %v3930_v63 = vmul.f32 %v3929_v57, %v11790_v42  ;;  %4694 = vmatpush.bf16.msrb.mxu1 %v9680_v16  ;;  %v4055_v35 = vmul.f32 %v11754_v51, %v11593_v41 }
 0xbb7   : > { %v3565_v58 = vmul.f32 %v11756_v31, %v11456_v4  ;;  %vm3586_vm15 = vcmp.eq.f32.partialorder %v3585_v27, 8.507059e+37  ;;  %v4047_v46 = vadd.f32 1.0, %v8767_v2  ;;  %v11859_v18 = vmul.f32 %v11767_v54, %v11531_v12  ;;  %4651 = vmatpush.bf16.msrb.mxu2 %v9657_v53  ;;  %v9656_v4 = vld [vmem:[%s13433_s1 + $0x100] sm:$0xff] }
 0xbb8   : > { %v10175_v25 = vpop.eup %10174  ;;  %v3589_v47 = vsel %vm3586_vm15, %v3588_v37, %v3584_v61  ;;  %v4003_v30 = vmul.f32 %v4002_v15, %v11682_v14  ;;  %v3931_v7 = vadd.f32 0.112945676, %v3930_v63  ;;  %v3919_v41 = vmul.f32 %v3918_v13, %v11790_v42  ;;  %v9664_v54 = vld [vmem:[%s13433_s1 + $0x140] sm:$0xff] }
 0xbb9   : > { %v4063_v44 = vmul.f32 %v4047_v46, %v3375_v39  ;;  %v4017_v55 = vmul.f32 %v10175_v25, %v11817_v40  ;;  %v11865_v51 = vadd.f32 1.0, %v8760_v43  ;;  %v3619_v31 = vmul.f32 %v11807_v33, %v3618_v49 }
 0xbba   : > { %4665 = vmatpush.bf16.msrb.mxu3 %v9665_v1  ;;  %v3883_v59 = vmul.f32 %v3882_v38, %v11684_v29  ;;  %v3932_v12 = vmul.f32 %v3931_v7, %v11790_v42  ;;  %vm3622_vm1 = vweird.f32 %v11807_v33  ;;  %v4027_v26 = vand.u32 2147483648, %v11817_v40 }
 0xbbb   : > { %v10177_v6 = vpop.eup %10176  ;;  %v4199_v14 = vpack.c.bf16 %v4063_v44, %v4055_v35  ;;  %v4018_v56 = vsub.f32 1.0, %v4017_v55  ;;  %v3590_v9 = vmul.f32 %v3589_v47, %v3565_v58  ;;  %vm3621_vm10 = vweird.f32 %v11758_v32  ;;  %4652 = vmatpush.bf16.msrb.mxu2 %v9656_v4 }
 0xbbc   : > { %v4004_v45 = vadd.f32 1.1283791, %v4003_v30  ;;  %v3897_v60 = vmul.f32 %v10177_v6, %v11831_v34  ;;  %v3933_v17 = vadd.f32 0.4994258, %v3932_v12  ;;  %vm4022_vm11 = vweird.f32 %v10175_v25 }
 0xbbd   : > { %v4019_v27 = vmul.f32 %v10175_v25, %v4018_v56  ;;  %v4025_v29 = vand.u32 2147483647, %v11817_v40  ;;  %v3920_v48 = vadd.f32 0.05243302, %v3919_v41  ;;  %4681 = vmatmul.bf16.vlgmr.msrb.gmra.mxu0 %v4199_v14  ;;  %v3620_v50 = vadd.f32 %v11807_v33, %v3619_v31 }
 0xbbe   : > { %v3884_v16 = vadd.f32 1.1283791, %v3883_v59  ;;  %v3898_v24 = vsub.f32 1.0, %v3897_v60  ;;  %v3934_v37 = vmul.f32 %v3933_v17, %v11790_v42  ;;  %4666 = vmatpush.bf16.msrb.mxu3 %v9664_v54  ;;  %vm4021_vm14 = vweird.f32 %v11817_v40 }
 0xbbf   : > { %v4020_v39 = vadd.f32 %v10175_v25, %v4019_v27  ;;  %v4028_v15 = vor.u32 1.1754944e-38, %v4027_v26  ;;  %v3907_v57 = vand.u32 2147483648, %v11831_v34  ;;  %vm4023_vm12 = vmor %vm4021_vm14, %vm4022_vm11  ;;  %vm3902_vm13 = vweird.f32 %v10177_v6 }
 0xbc0   : > { %v3899_v61 = vmul.f32 %v10177_v6, %v3898_v24  ;;  %v3905_v2 = vand.u32 2147483647, %v11831_v34  ;;  %v11881_v13 = vadd.f32 1.0, %v3934_v37  ;;  %v4005_v53 = vmul.f32 %v4004_v45, %v11654_v5 }
 0xbc1   : > { %v4024_v1 = vsel %vm4023_vm12, %v10175_v25, %v4020_v39  ;;  %vm4026_vm15 = vcmp.eq.f32.partialorder %v4025_v29, 8.507059e+37  ;;  %v3921_v43 = vmul.f32 %v3920_v48, %v11790_v42  ;;  %vm3901_vm8 = vweird.f32 %v11831_v34  ;;  %vm11894_vm12 = vmor %vm3621_vm10, %vm3622_vm1 }
 0xbc2   : > { %v4029_v49 = vsel %vm4026_vm15, %v4028_v15, %v4024_v1  ;;  %v3900_v38 = vadd.f32 %v10177_v6, %v3899_v61  ;;  %10178 = vrcp.f32 %v11881_v13  ;;  %v3625_v40 = vand.u32 2147483647, %v11758_v32  ;;  %vm3903_vm11 = vmor %vm3901_vm8, %vm3902_vm13 }
 0xbc3   : > { %v3627_v63 = vand.u32 2147483648, %v11758_v32  ;;  %v4030_v35 = vmul.f32 %v4029_v49, %v4005_v53  ;;  %v3908_v58 = vor.u32 1.1754944e-38, %v3907_v57  ;;  %v8757_v46 = vclamps-f32 %v3590_v9, 1.0 }
 0xbc4   : > { %v3885_v5 = vmul.f32 %v3884_v16, %v11657_v20  ;;  %v3904_v25 = vsel %vm3903_vm11, %v10177_v6, %v3900_v38  ;;  %vm3906_vm14 = vcmp.eq.f32.partialorder %v3905_v2, 8.507059e+37  ;;  %v3922_v7 = vadd.f32 0.18741608, %v3921_v43 }
 0xbc5   : > { %v8768_v47 = vclamps-f32 %v4030_v35, 1.0  ;;  %v3909_v30 = vsel %vm3906_vm14, %v3908_v58, %v3904_v25  ;;  %v3368_v44 = vmul.f32 0.5, %v11338_v23  ;;  %v3604_v55 = vadd.f32 1.1283791, %v11859_v18 }
 0xbc6   : > { %v3624_v20 = vsel %vm11894_vm12, %v11807_v33, %v3620_v50  ;;  %v3910_v41 = vmul.f32 %v3909_v30, %v3885_v5  ;;  %v3628_v4 = vor.u32 1.1754944e-38, %v3627_v63  ;;  %v3376_v31 = vmul.f32 0.5, %v11614_v11 }
 0xbc7   : > { %v4048_v32 = vadd.f32 1.0, %v8768_v47  ;;  %v4056_v12 = vmul.f32 %v11865_v51, %v3368_v44  ;;  %v4037_v54 = vadd.f32 1.0, %v8757_v46  ;;  %vm3626_vm8 = vcmp.eq.f32.partialorder %v3625_v40, 8.507059e+37  ;;  %v10098_v40 = vld [vmem:[%s13472_s28] ss:$0 sm:$0xff] }
 0xbc8   : > { %v10179_v59 = vpop.eup %10178  ;;  %v8765_v6 = vclamps-f32 %v3910_v41, 1.0  ;;  %v3629_v14 = vsel %vm3626_vm8, %v3628_v4, %v3624_v20  ;;  %v3923_v23 = vmul.f32 %v3922_v7, %v11790_v42  ;;  %v3365_v26 = vmul.f32 0.5, %v11441_v52 }
 0xbc9   : > { %v4064_v56 = vmul.f32 %v4048_v32, %v3376_v31  ;;  %v3937_v18 = vmul.f32 %v10179_v59, %v11881_v13  ;;  %v3605_v33 = vmul.f32 %v3604_v55, %v11502_v21  ;;  %v3373_v9 = vmul.f32 0.5, %v11622_v0 }
 0xbca   : > { %v4045_v11 = vadd.f32 1.0, %v8765_v6  ;;  %v4053_v17 = vmul.f32 %v4037_v54, %v3365_v26  ;;  %v3947_v29 = vand.u32 2147483648, %v11881_v13  ;;  %v3924_v48 = vadd.f32 1.1283791, %v3923_v23 }
 0xbcb   : > { %v4200_v45 = vpack.c.bf16 %v4064_v56, %v4056_v12  ;;  %v3938_v60 = vsub.f32 1.0, %v3937_v18  ;;  %v3630_v51 = vmul.f32 %v3629_v14, %v3605_v33  ;;  %vm3942_vm1 = vweird.f32 %v10179_v59 }
 0xbcc   : > { %v4061_v27 = vmul.f32 %v4045_v11, %v3373_v9  ;;  %v3945_v42 = vand.u32 2147483647, %v11881_v13  ;;  %vm3941_vm10 = vweird.f32 %v11881_v13  ;;  %v3948_v21 = vor.u32 1.1754944e-38, %v3947_v29 }
 0xbcd   : > { %v3939_v50 = vmul.f32 %v10179_v59, %v3938_v60  ;;  %4695 = vmatmul.bf16.vlgmr.msrb.gmra.mxu1 %v4200_v45  ;;  %vm3943_vm13 = vmor %vm3941_vm10, %vm3942_vm1  ;;  %v8758_v0 = vclamps-f32 %v3630_v51, 1.0  ;;  %v3925_v24 = vmul.f32 %v3924_v48, %v11764_v10  ;;  %v3366_v2 = vmul.f32 0.5, %v11476_v62 }
 0xbce   : > { %v4197_v16 = vpack.c.bf16 %v4061_v27, %v4053_v17  ;;  %vm3946_vm15 = vcmp.eq.f32.partialorder %v3945_v42, 8.507059e+37  ;;  %v3374_v53 = vmul.f32 0.5, %v11741_v28 }
 0xbcf   : > { %v3940_v52 = vadd.f32 %v10179_v59, %v3939_v50  ;;  %v4038_v57 = vadd.f32 1.0, %v8758_v0 }
 0xbd0   : > { %4653 = vmatmul.bf16.vlgmr.msrb.gmra.mxu2 %v4197_v16 }
 0xbd1   : > { %v3944_v37 = vsel %vm3943_vm13, %v10179_v59, %v3940_v52  ;;  %v4054_v43 = vmul.f32 %v4038_v57, %v3366_v2  ;;  %v9688_v57 = vld [vmem:[%s10361_s19 + $0x10] sm:$0xff] }
 0xbd2   : > { %v3949_v39 = vsel %vm3946_vm15, %v3948_v21, %v3944_v37  ;;  %v9691_v37 = vld [vmem:[%s10371_s30 + $0x18] sm:$0xff]  ;;  %v9692_v2 = vld [vmem:[%s13420_s12 + $0x10] sm:$0xff] }
 0xbd3   : > { %v3950_v15 = vmul.f32 %v3949_v39, %v3925_v24  ;;  %v9689_v24 = vld [vmem:[%s10361_s19 + $0x18] sm:$0xff]  ;;  %4929 = vmatpush.bf16.msra.mxu3 %v9691_v37 }
 0xbd4   : > { %v9693_v39 = vld [vmem:[%s13420_s12 + $0x18] sm:$0xff]  ;;  %4791 = vmatpush.bf16.msra.mxu2 %v9689_v24  ;;  %s13477_s12 = smov 104  }
 0xbd5   : > { %v8766_v61 = vclamps-f32 %v3950_v15, 1.0  ;;  %5068 = vmatpush.bf16.msra.mxu0 %v9693_v39 }
 0xbd7   : > { %v4046_v1 = vadd.f32 1.0, %v8766_v61  ;;  %v9690_v61 = vld [vmem:[%s10371_s30 + $0x10] sm:$0xff] }
 0xbd8   : > { %4792 = vmatpush.bf16.msra.mxu2 %v9688_v57  ;;  %4930 = vmatpush.bf16.msra.mxu3 %v9690_v61 }
 0xbd9   : > { %v4062_v13 = vmul.f32 %v4046_v1, %v3374_v53  ;;  %5069 = vmatpush.bf16.msra.mxu0 %v9692_v2 }
 0xbdb   : > { %v4198_v49 = vpack.c.bf16 %v4062_v13, %v4054_v43 }
 0xbdd   : > { %4667 = vmatmul.bf16.vlgmr.msrb.gmra.mxu3 %v4198_v49 }
 0xc15   : > { %v4626_v63 = vpop.f32.mrf.mxu0 }
 0xc16   : > { %v4640_v10 = vpop.f32.mrf.mxu1 }
 0xc1d   : > { %v4628_v25 = vpop.f32.mrf.mxu0 }
 0xc1e   : > { %v4642_v62 = vpop.f32.mrf.mxu1 }
 0xc24   : > { %v4612_v35 = vpop.f32.mrf.mxu3 }
 0xc28   : > { %v4598_v38 = vpop.f32.mrf.mxu2 }
 0xc29   : > { %v4599_v46 = vadd.f32 %v10098_v40, %v4598_v38 }
 0xc2b   : > { %v4613_v5 = vadd.f32 %v4612_v35, %v4599_v46 }
 0xc2c   : > { %v4614_v34 = vpop.f32.mrf.mxu3 }
 0xc2d   : > { %v4627_v47 = vadd.f32 %v4626_v63, %v4613_v5 }
 0xc2f   : > { %v4641_v44 = vadd.f32 %v4640_v10, %v4627_v47  ;;  %v10099_v47 = vld [vmem:[%s13473_s3] ss:$0 sm:$0xff] }
 0xc30   : > { %v4600_v58 = vpop.f32.mrf.mxu2 }
 0xc31   : > { %v4601_v30 = vadd.f32 %v10098_v40, %v4600_v58 }
 0xc33   : > { %v4615_v28 = vadd.f32 %v4614_v34, %v4601_v30 }
 0xc35   : > { %v4629_v20 = vadd.f32 %v4628_v25, %v4615_v28  ;;  %v10100_v28 = vld [vmem:[%s13474_s5] ss:$0 sm:$0xff] }
 0xc37   : > { %v4643_v54 = vadd.f32 %v4642_v62, %v4629_v20 }
 0xc3a   : > { %v4682_v41 = vpop.f32.mrf.mxu0 }
 0xc42   : > { %v4684_v33 = vpop.f32.mrf.mxu0 }
 0xc4a   : > { %v4696_v32 = vpop.f32.mrf.mxu1 }
 0xc52   : > { %v4698_v11 = vpop.f32.mrf.mxu1 }
 0xc53   : > { %v4654_v7 = vpop.f32.mrf.mxu2 }
 0xc54   : > { %v4655_v55 = vadd.f32 %v4654_v7, %v4641_v44 }
 0xc5b   : > { %v4656_v59 = vpop.f32.mrf.mxu2 }
 0xc5c   : > { %v4657_v6 = vadd.f32 %v4656_v59, %v4643_v54  ;;  %v10101_v59 = vld [vmem:[%s10386_s20 + $0x1] ss:$0 sm:$0xff] }
 0xc60   : > { %v4668_v4 = vpop.f32.mrf.mxu3 }
 0xc61   : > { %v4669_v31 = vadd.f32 %v4668_v4, %v4655_v55 }
 0xc63   : > { %v4683_v12 = vadd.f32 %v4682_v41, %v4669_v31 }
 0xc65   : > { %v4697_v14 = vadd.f32 %v4696_v32, %v4683_v12 }
 0xc67   : > { %v4701_v56 = vadd.f32 %v4697_v14, %v10999_v22 }
 0xc68   : > { %v4670_v23 = vpop.f32.mrf.mxu3 }
 0xc69   : > { %v4671_v18 = vadd.f32 %v4670_v23, %v4657_v6  ;;  %v4705_v26 = vsel %vm977_vm3, %v4701_v56, 0.0  ;;  %v10103_v23 = vld [vmem:[%s13425_s22 + $0x1] ss:$0 sm:$0xff] }
 0xc6a   : > { %4706 = vadd.xlane.f32.xlu1 %v4705_v26 }
 0xc6b   : > { %v4685_v9 = vadd.f32 %v4684_v33, %v4671_v18 }
 0xc6d   : > { %v4699_v45 = vadd.f32 %v4698_v11, %v4685_v9 }
 0xc6f   : > { %v4702_v60 = vadd.f32 %v4699_v45, %v11001_v3 }
 0xc71   : > { %v4708_v17 = vsel %vm3072_vm9, %v4702_v60, 0.0 }
 0xc72   : > { %4709 = vadd.xlane.f32.xlu1 %v4708_v17 }
 0xcdd   : > { %v4707_v51 = vpop.xlane.xlu1 %4706 }
 0xcde   : > { %v4711_v22 = vmul.f32 %v4707_v51, %v10942_v36 }
 0xce0   : > { %v4713_v27 = vsub.f32 %v4701_v56, %v4711_v22 }
 0xce2   : > { %v4715_v29 = vmul.f32 %v4713_v27, %v4713_v27 }
 0xce4   : > { %v4717_v48 = vsel %vm977_vm3, %v4715_v29, 0.0 }
 0xce5   : > { %4718 = vadd.xlane.f32.xlu0 %v4717_v48  ;;  %v4710_v50 = vpop.xlane.xlu1 %4709 }
 0xce6   : > { %v4712_v42 = vmul.f32 %v4710_v50, %v10942_v36 }
 0xce8   : > { %v4714_v3 = vsub.f32 %v4702_v60, %v4712_v42  ;;  %v10102_v60 = vld [vmem:[%s13426_s23 + $0x1] ss:$0 sm:$0xff] }
 0xcea   : > { %v4716_v16 = vmul.f32 %v4714_v3, %v4714_v3 }
 0xcec   : > { %v4720_v52 = vsel %vm3072_vm9, %v4716_v16, 0.0 }
 0xced   : > { %4721 = vadd.xlane.f32.xlu1 %v4720_v52 }
 0xd58   : > { %v4719_v21 = vpop.xlane.xlu0 %4718 }
 0xd59   : > { %v4723_v0 = vmul.f32 %v4719_v21, %v10942_v36 }
 0xd5b   : > { %v4725_v15 = vadd.f32 1e-05, %v4723_v0 }
 0xd5d   : > { %10180 = vrsqrt.f32 %v4725_v15  ;;  %vm4733_vm14 = vweird.f32 %v4725_v15 }
 0xd60   : > { %v4722_v53 = vpop.xlane.xlu1 %4721 }
 0xd61   : > { %v4724_v1 = vmul.f32 %v4722_v53, %v10942_v36 }
 0xd63   : > { %v10181_v43 = vpop.eup %10180  ;;  %v4726_v13 = vadd.f32 1e-05, %v4724_v1 }
 0xd64   : > { %v4728_v49 = vmul.f32 %v10181_v43, %v4725_v15  ;;  %vm4734_vm11 = vweird.f32 %v10181_v43 }
 0xd65   : > { %10182 = vrsqrt.f32 %v4726_v13  ;;  %vm4735_vm12 = vmor %vm4733_vm14, %vm4734_vm11  ;;  %vm4743_vm1 = vweird.f32 %v4726_v13 }
 0xd66   : > { %v4729_v38 = vmul.f32 %v10181_v43, %v4728_v49 }
 0xd68   : > { %v4730_v40 = vmul.f32 0.5, %v4729_v38 }
 0xd6a   : > { %v4731_v63 = vsub.f32 1.5, %v4730_v40 }
 0xd6b   : > { %v10183_v35 = vpop.eup %10182 }
 0xd6c   : > { %v4732_v10 = vmul.f32 %v10181_v43, %v4731_v63  ;;  %v4738_v58 = vmul.f32 %v10183_v35, %v4726_v13  ;;  %vm4744_vm8 = vweird.f32 %v10183_v35 }
 0xd6d   : > { %vm4745_vm10 = vmor %vm4743_vm1, %vm4744_vm8 }
 0xd6e   : > { %v4739_v46 = vmul.f32 %v10183_v35, %v4738_v58  ;;  %v4736_v5 = vsel %vm4735_vm12, %v10181_v43, %v4732_v10 }
 0xd6f   : > { %v4747_v30 = vmul.f32 %v4736_v5, %v4713_v27 }
 0xd70   : > { %v4740_v25 = vmul.f32 0.5, %v4739_v46 }
 0xd71   : > { %v4752_v44 = vmul.f32 %v10099_v47, %v4747_v30 }
 0xd72   : > { %v4741_v34 = vsub.f32 1.5, %v4740_v25 }
 0xd73   : > { %v11935_v41 = vadd.f32 %v10100_v28, %v4752_v44 }
 0xd74   : > { %v4742_v62 = vmul.f32 %v10183_v35, %v4741_v34 }
 0xd76   : > { %v4746_v7 = vsel %vm4745_vm10, %v10183_v35, %v4742_v62 }
 0xd77   : > { %v4748_v55 = vmul.f32 %v4746_v7, %v4714_v3 }
 0xd79   : > { %v4753_v20 = vmul.f32 %v10099_v47, %v4748_v55 }
 0xd7b   : > { %v11937_v4 = vadd.f32 %v10100_v28, %v4753_v20 }
 0xd7d   : > { %v4764_v31 = vpack.c.bf16 %v11937_v4, %v11935_v41 }
 0xd7f   : > { %9038 = vmatmul.msk.bf16.vlgmr.msra.gmra.mxu2 %vm977_vm3, %v4764_v31  ;;  %9052 = vmatmul.msk.bf16.vlgmr.msra.gmra.mxu3 %vm977_vm3, %v4764_v31 }
 0xd80   : > { %9066 = vmatmul.msk.bf16.vlgmr.msra.gmra.mxu0 %vm977_vm3, %v4764_v31 }
 0xdfd   : > { %v5071_v32 = vpop.f32.mrf.mxu0 }
 0xdfe   : > { %v11945_v14 = vadd.f32 %v10101_v59, %v5071_v32 }
 0xe02   : > { %v4932_v12 = vpop.f32.mrf.mxu3  ;;  %v4794_v54 = vpop.f32.mrf.mxu2 }
 0xe03   : > { %v4933_v33 = vadd.f32 %v10103_v23, %v4932_v12  ;;  %v11962_v51 = vadd.f32 %v10102_v60, %v4794_v54 }
 0xe05   : > { %v5073_v6 = vpop.f32.mrf.mxu0  ;;  %v4959_v16 = vrot.slane %v4933_v33, 4 }
 0xe06   : > { %v11947_v56 = vadd.f32 %v10101_v59, %v5073_v6 }
 0xe08   : > { %v11952_v18 = vpack.i.bf16 %v11947_v56, %v11945_v14 }
 0xe0a   : > { %9960 = vrot.lane.b32.xlu2 %v11952_v18, %s13475_s8  ;;  %v4934_v26 = vpop.f32.mrf.mxu3  ;;  %v4796_v45 = vpop.f32.mrf.mxu2 }
 0xe0b   : > { %v4935_v9 = vadd.f32 %v10103_v23, %v4934_v26  ;;  %v11959_v17 = vadd.f32 %v10102_v60, %v4796_v45 }
 0xe0d   : > { %v9974_v11 = vpack.i.bf16 %v4935_v9, %v4933_v33  ;;  %v9989_v22 = vpack.i.bf16 %v11959_v17, %v11962_v51 }
 0xe0f   : > { %9975 = vrot.lane.b32.xlu1 %v9974_v11, %s13476_s9  ;;  %9965 = vrot.lane.b32.xlu0 %v9974_v11, %s13475_s8 }
 0xe12   : > { %9970 = vrot.lane.b32.xlu2 %v9974_v11, %s13477_s12 }
 0xe17   : > { %9990 = vrot.lane.b32.xlu1 %v9989_v22, %s13477_s12  ;;  %9980 = vrot.lane.b32.xlu0 %v9989_v22, %s13475_s8  ;;  %s13479_s8 = smov 16  }
 0xe1a   : > { %9985 = vrot.lane.b32.xlu2 %v9989_v22, %s13476_s9 }
 0xe64   : > { %v11969_v27 = vpop.permute.xlu2 %9960 }
 0xe6c   : > { %v9971_v29 = vpop.permute.xlu2 %9970 }
 0xe6d   : > { %v9972_v48 = vunpack.i.l.bf16 %v9971_v29  ;;  %v9973_v5 = vunpack.i.h.bf16 %v9971_v29 }
 0xe6f   : > { %v4969_v21 = vrot.slane %v9972_v48, 4  ;;  %v5019_v28 = vrot.slane %v9973_v5, 4 }
 0xe81   : > { %v9976_v50 = vpop.permute.xlu1 %9975  ;;  %v9966_v42 = vpop.permute.xlu0 %9965 }
 0xe82   : > { %v9977_v3 = vunpack.i.l.bf16 %v9976_v50  ;;  %v9967_v52 = vunpack.i.l.bf16 %v9966_v42  ;;  %v9978_v62 = vunpack.i.h.bf16 %v9976_v50  ;;  %v9968_v7 = vunpack.i.h.bf16 %v9966_v42 }
 0xe84   : > { %v4957_v0 = vrot.slane %v9977_v3, 4  ;;  %v4960_v24 = vsel %vm1149_vm4, %v9977_v3, %v4959_v16  ;;  %v4970_v39 = vsel %vm1149_vm4, %v4969_v21, %v9967_v52  ;;  %v4971_v15 = vrot.slane %v9967_v52, 4  ;;  %v11999_v52 = vpop.permute.xlu2 %9985 }
 0xe85   : > { %v4968_v37 = vperm.slane %v4960_v24, %v10542_v8  ;;  %v4976_v61 = vperm.slane %v4970_v39, %v10542_v8  ;;  %v5013_v20 = vrot.slane %v9978_v62, 4  ;;  %v5020_v31 = vsel %vm1149_vm4, %v5019_v28, %v9968_v7 }
 0xe86   : > { %v4958_v57 = vsel %vm1149_vm4, %v4957_v0, %v4933_v33  ;;  %v4972_v1 = vsel %vm1149_vm4, %v9972_v48, %v4971_v15  ;;  %v5024_v54 = vperm.slane %v5020_v31, %v10542_v8 }
 0xe87   : > { %v4964_v2 = vperm.slane %v4958_v57, %v10542_v8  ;;  %v4995_v53 = vrot.slane %v4968_v37, 4  ;;  %v4980_v43 = vperm.slane %v4972_v1, %v10542_v8  ;;  %v4981_v13 = vrot.slane %v4976_v61, 4 }
 0xe88   : > { %v5014_v23 = vsel %vm1149_vm4, %v5013_v20, %v4935_v9  ;;  %v5025_v45 = vrot.slane %v5024_v54, 4 }
 0xe89   : > { %v4993_v49 = vrot.slane %v4980_v43, 4  ;;  %v4996_v38 = vsel %vm1149_vm4, %v4980_v43, %v4995_v53  ;;  %v4982_v40 = vsel %vm1149_vm4, %v4981_v13, %v4964_v2  ;;  %v4983_v12 = vrot.slane %v4964_v2, 4  ;;  %v12001_v0 = vpop.permute.xlu0 %9980 }
 0xe8a   : > { %v5004_v63 = vperm.slane %v4996_v38, %v10548_v19  ;;  %v4988_v10 = vperm.slane %v4982_v40, %v10548_v19  ;;  %v5018_v11 = vperm.slane %v5014_v23, %v10542_v8 }
 0xe8b   : > { %v4994_v58 = vsel %vm1149_vm4, %v4993_v49, %v4968_v37  ;;  %v4984_v60 = vsel %vm1149_vm4, %v4976_v61, %v4983_v12  ;;  %v12003_v37 = vpop.permute.xlu1 %9990 }
 0xe8c   : > { %v5011_v35 = vrot.slane %v5004_v63, 4  ;;  %v5037_v25 = vpack.c.bf16 %v5004_v63, %v5004_v63  ;;  %v5005_v47 = vrot.slane %v4988_v10, 4  ;;  %v5000_v30 = vperm.slane %v4994_v58, %v10548_v19 }
 0xe8d   : > { %v5031_v32 = vpack.c.bf16 %v4988_v10, %v4988_v10  ;;  %v4992_v22 = vperm.slane %v4984_v60, %v10548_v19  ;;  %v5026_v29 = vsel %vm1149_vm4, %v5025_v45, %v5018_v11 }
 0xe8e   : > { %v5012_v46 = vsel %vm1149_vm4, 0.0, %v5011_v35  ;;  %v5006_v44 = vsel %vm1149_vm4, 0.0, %v5005_v47  ;;  %v5009_v55 = vrot.slane %v5000_v30, 4  ;;  %v5035_v26 = vpack.c.bf16 %v5000_v30, %v5000_v30 }
 0xe8f   : > { %v5038_v34 = vpack.c.bf16 %v5012_v46, %v5012_v46  ;;  %v5032_v59 = vpack.c.bf16 %v5006_v44, %v5006_v44  ;;  %v5030_v48 = vperm.slane %v5026_v29, %v10548_v19  ;;  %v5007_v50 = vrot.slane %v4992_v22, 4 }
 0xe90   : > { %v5010_v6 = vsel %vm1149_vm4, 0.0, %v5009_v55  ;;  %v5033_v9 = vpack.c.bf16 %v4992_v22, %v4992_v22 }
 0xe91   : > { %9994 = vxpose.binary.xlu1.c.b16.start.end [1/2] (short) (narrow) %v5038_v34, %v5037_v25, 16  ;;  %v5036_v33 = vpack.c.bf16 %v5010_v6, %v5010_v6  ;;  %v5039_v42 = vpack.c.bf16 %v5030_v48, %v5030_v48  ;;  %v5008_v3 = vsel %vm1149_vm4, 0.0, %v5007_v50 }
 0xe92   : > { %10000 = vxpose.binary.xlu2.c.b16.start.end [1/2] (short) (narrow) %v5032_v59, %v5031_v32, 16  ;;  %v5034_v16 = vpack.c.bf16 %v5008_v3, %v5008_v3 }
 0xe93   : > { %9997 = vxpose.binary.xlu0.c.b16.start.end [1/2] (short) (narrow) %v5036_v33, %v5035_v26, 16 }
 0xea2   : > { %5374 = vxpose.xlu2.c.b16.start.end [1/1] (short) (narrow) %v5039_v42, 16 }
 0xea3   : > { %10003 = vxpose.binary.xlu0.c.b16.start.end [1/2] (short) (narrow) %v5034_v16, %v5033_v9, 16 }
 0xf11   : > { %10015 = vrot.lane.b32.xlu0 %v11952_v18, %s13476_s9  ;;  %s13478_s9 = smov 8  }
 0xf33   : > { %v10001_v21 = vpop.trf.xlu2 }
 0xf3b   : > { %v10002_v24 = vpop.trf.xlu2 }
 0xf3d   : > { %v9995_v1 = vpop.trf.xlu1 }
 0xf3e   : > { %v5396_v49 = vrot.slane %v9995_v1, 4 }
 0xf3f   : > { %v9998_v39 = vpop.trf.xlu0 }
 0xf40   : > { %v5390_v61 = vrot.slane %v9998_v39, 4 }
 0xf42   : > { %v5391_v43 = vsel %vm1149_vm4, %v5390_v61, %v10001_v21 }
 0xf43   : > { %v5382_v15 = vpop.trf.xlu2  ;;  %v5395_v38 = vperm.slane %v5391_v43, %v10542_v8 }
 0xf44   : > { %v5405_v57 = vperm.slane %v5382_v15, %v10542_v8 }
 0xf45   : > { %v5408_v58 = vrot.slane %v5395_v38, 4  ;;  %v9996_v5 = vpop.trf.xlu1 }
 0xf46   : > { %v5418_v53 = vrot.slane %v5405_v57, 4  ;;  %v5442_v7 = vrot.slane %v9996_v5, 4  ;;  %v5423_v11 = vperm.slane %v5405_v57, %v10548_v19 }
 0xf47   : > { %v9999_v2 = vpop.trf.xlu0 }
 0xf48   : > { %v5419_v13 = vsel %vm1149_vm4, 0, %v5418_v53  ;;  %v5436_v40 = vrot.slane %v9999_v2, 4 }
 0xf49   : > { %v5427_v63 = vperm.slane %v5419_v13, %v10548_v19  ;;  %v5428_v13 = vrot.slane %v5423_v11, 4 }
 0xf4a   : > { %v5437_v25 = vsel %vm1149_vm4, %v5436_v40, %v10002_v24 }
 0xf4b   : > { %v5432_v34 = vrot.slane %v5427_v63, 4  ;;  %v5441_v28 = vperm.slane %v5437_v25, %v10542_v8  ;;  %v5098_v25 = vrot.slane %v11945_v14, 4 }
 0xf4d   : > { %v5450_v59 = vrot.slane %v5441_v28, 4 }
 0xf4f   : > { %v10004_v35 = vpop.trf.xlu0 }
 0xf50   : > { %v5397_v10 = vsel %vm1149_vm4, %v5396_v49, %v10004_v35 }
 0xf51   : > { %v5401_v46 = vperm.slane %v5397_v10, %v10542_v8 }
 0xf53   : > { %v5406_v47 = vrot.slane %v5401_v46, 4  ;;  %v5409_v30 = vsel %vm1149_vm4, %v5401_v46, %v5408_v58 }
 0xf54   : > { %v5417_v62 = vperm.slane %v5409_v30, %v10548_v19 }
 0xf55   : > { %v5407_v44 = vsel %vm1149_vm4, %v5406_v47, %v5395_v38 }
 0xf56   : > { %v12018_v55 = vsel %vm1149_vm4, %v5432_v34, %v5417_v62  ;;  %v5413_v31 = vperm.slane %v5407_v44, %v10548_v19  ;;  %v5434_v54 = vrot.slane %v5417_v62, 4  ;;  %v9962_v34 = vunpack.i.l.bf16 %v11969_v27 }
 0xf57   : > { %v10005_v20 = vpop.trf.xlu0  ;;  %v5484_v42 = vshrl.u32 %v12018_v55, 16 }
 0xf58   : > { %v5443_v32 = vsel %vm1149_vm4, %v5442_v7, %v10005_v20  ;;  %v5430_v26 = vrot.slane %v5413_v31, 4  ;;  %v5435_v60 = vsel %vm1149_vm4, %v5427_v63, %v5434_v54  ;;  %v5429_v49 = vsel %vm1149_vm4, %v5428_v13, %v5413_v31 }
 0xf59   : > { %v5447_v12 = vperm.slane %v5443_v32, %v10542_v8  ;;  %v5492_v21 = vshrl.u32 %v5435_v60, 16  ;;  %v5468_v40 = vshrl.u32 %v5429_v49, 16  ;;  %v5110_v7 = vrot.slane %v9962_v34, 4 }
 0xf5a   : > { %v5431_v9 = vsel %vm1149_vm4, %v5423_v11, %v5430_v26 }
 0xf5b   : > { %v5448_v6 = vrot.slane %v5447_v12, 4  ;;  %v5451_v23 = vsel %vm1149_vm4, %v5447_v12, %v5450_v59  ;;  %v5476_v2 = vshrl.u32 %v5431_v9, 16 }
 0xf5c   : > { %v12025_v33 = vperm.slane %v5451_v23, %v10548_v19 }
 0xf5d   : > { %v5449_v45 = vsel %vm1149_vm4, %v5448_v6, %v5441_v28 }
 0xf5e   : > { %v5455_v22 = vperm.slane %v5449_v45, %v10548_v19  ;;  %v5462_v29 = vrot.slane %v12025_v33, 4  ;;  %v5482_v48 = vpack.i.b16 %v12025_v33, %v12018_v55  ;;  %v5485_v50 = vshrl.u32 %v12025_v33, 16 }
 0xf60   : > { %v5463_v3 = vsel %vm1149_vm4, 0, %v5462_v29  ;;  %v5460_v16 = vrot.slane %v5455_v22, 4  ;;  %v12038_v39 = vpack.i.b16 %v5485_v50, %v5484_v42  ;;  %v5469_v38 = vshrl.u32 %v5455_v22, 16 }
 0xf61   : > { %v5493_v24 = vshrl.u32 %v5463_v3, 16  ;;  %v5490_v57 = vpack.i.b16 %v5463_v3, %v5435_v60  ;;  %v5466_v63 = vpack.i.b16 %v5455_v22, %v5429_v49 }
 0xf62   : > { %v5461_v15 = vsel %vm1149_vm4, 0, %v5460_v16  ;;  %v5470_v35 = vpack.i.b16 %v5469_v38, %v5468_v40 }
 0xf63   : > { %v5494_v61 = vpack.i.b16 %v5493_v24, %v5492_v21  ;;  %v5477_v53 = vshrl.u32 %v5461_v15, 16  ;;  %v5474_v1 = vpack.i.b16 %v5461_v15, %v5431_v9 }
 0xf65   : > { %10006 = vxpose.binary.xlu1.c.b16.start.end [1/2] (short) (narrow) %v5494_v61, %v5490_v57, 16  ;;  %v5478_v43 = vpack.i.b16 %v5477_v53, %v5476_v2 }
 0xf67   : > { %10019 = vxpose.binary.xlu0.c.b16.start.end [1/2] (short) (narrow) %v5478_v43, %v5474_v1, 16 }
 0xf77   : > { %10022 = vxpose.binary.xlu0.c.b16.start.end [1/2] (short) (narrow) %v5470_v35, %v5466_v63, 16  ;;  %v9982_v35 = vunpack.i.l.bf16 %v12001_v0 }
 0xf83   : > { %v12046_v58 = vpop.permute.xlu0 %10015 }
 0xf84   : > { %v10017_v5 = vunpack.i.l.bf16 %v12046_v58 }
 0xf86   : > { %v5099_v47 = vsel %vm1149_vm4, %v10017_v5, %v5098_v25  ;;  %v4821_v25 = vrot.slane %v11962_v51, 4 }
 0xf87   : > { %v5107_v30 = vperm.slane %v5099_v47, %v10542_v8 }
 0xf89   : > { %v5134_v31 = vrot.slane %v5107_v30, 4 }
 0xfbf   : > { %10010 = vrot.lane.b32.xlu1 %v11952_v18, %s13477_s12  ;;  %v5096_v18 = vrot.slane %v10017_v5, 4  ;;  %v9987_v5 = vunpack.i.l.bf16 %v11999_v52  ;;  %s13480_s12 = smov 24  }
 0xfc1   : > { %v5097_v59 = vsel %vm1149_vm4, %v5096_v18, %v11945_v14  ;;  %v4822_v47 = vsel %vm1149_vm4, %v9987_v5, %v4821_v25 }
 0xfc2   : > { %v5103_v11 = vperm.slane %v5097_v59, %v10542_v8  ;;  %v4830_v55 = vperm.slane %v4822_v47, %v10542_v8 }
 0xfc4   : > { %v5122_v2 = vrot.slane %v5103_v11, 4 }
0x1011   : > { %v12044_v10 = vpop.trf.xlu1 }
0x1013   : > { %v12088_v33 = vpop.trf.xlu0 }
0x1019   : > { %v12048_v46 = vpop.trf.xlu1 }
0x1031   : > { %v12055_v62 = vpop.permute.xlu1 %10010 }
0x1032   : > { %v10012_v28 = vunpack.i.l.bf16 %v12055_v62 }
0x1034   : > { %v5108_v44 = vrot.slane %v10012_v28, 4  ;;  %v5111_v20 = vsel %vm1149_vm4, %v10012_v28, %v5110_v7  ;;  %v4819_v7 = vrot.slane %v9987_v5, 4 }
0x1035   : > { %v5119_v32 = vperm.slane %v5111_v20, %v10542_v8 }
0x1036   : > { %v5109_v12 = vsel %vm1149_vm4, %v5108_v44, %v9962_v34  ;;  %v4833_v34 = vrot.slane %v9982_v35, 4  ;;  %v4820_v28 = vsel %vm1149_vm4, %v4819_v7, %v11962_v51  ;;  %v4857_v44 = vrot.slane %v4830_v55, 4 }
0x1037   : > { %v5115_v54 = vperm.slane %v5109_v12, %v10542_v8  ;;  %v5132_v6 = vrot.slane %v5119_v32, 4  ;;  %v5135_v23 = vsel %vm1149_vm4, %v5119_v32, %v5134_v31  ;;  %v4826_v31 = vperm.slane %v4820_v28, %v10542_v8 }
0x1038   : > { %v5143_v26 = vperm.slane %v5135_v23, %v10548_v19  ;;  %v9993_v23 = vunpack.i.h.bf16 %v12003_v37 }
0x1039   : > { %v5120_v45 = vrot.slane %v5115_v54, 4  ;;  %v5133_v60 = vsel %vm1149_vm4, %v5132_v6, %v5107_v30  ;;  %v5123_v43 = vsel %vm1149_vm4, %v5115_v54, %v5122_v2  ;;  %v9992_v30 = vunpack.i.l.bf16 %v12003_v37 }
0x103a   : > { %v5150_v22 = vrot.slane %v5143_v26, 4  ;;  %v5139_v29 = vperm.slane %v5133_v60, %v10548_v19  ;;  %v5176_v9 = vpack.c.bf16 %v5143_v26, %v5143_v26  ;;  %v5131_v13 = vperm.slane %v5123_v43, %v10548_v19 }
0x103b   : > { %v5121_v50 = vsel %vm1149_vm4, %v5120_v45, %v5103_v11  ;;  %v4834_v18 = vsel %vm1149_vm4, %v9992_v30, %v4833_v34  ;;  %v4845_v6 = vrot.slane %v4826_v31, 4  ;;  %v12100_v11 = vpop.trf.xlu0 }
0x103c   : > { %v5151_v14 = vsel %vm1149_vm4, 0.0, %v5150_v22  ;;  %v5148_v42 = vrot.slane %v5139_v29, 4  ;;  %v5127_v3 = vperm.slane %v5121_v50, %v10548_v19  ;;  %v5174_v15 = vpack.c.bf16 %v5139_v29, %v5139_v29 }
0x103d   : > { %v5177_v16 = vpack.c.bf16 %v5151_v14, %v5151_v14  ;;  %v5146_v49 = vrot.slane %v5131_v13, 4  ;;  %v5172_v40 = vpack.c.bf16 %v5131_v13, %v5131_v13  ;;  %v4881_v29 = vrot.slane %v9993_v23, 4 }
0x103e   : > { %v5149_v21 = vsel %vm1149_vm4, 0.0, %v5148_v42  ;;  %v5144_v24 = vrot.slane %v5127_v3, 4  ;;  %v5170_v53 = vpack.c.bf16 %v5127_v3, %v5127_v3  ;;  %v9988_v14 = vunpack.i.h.bf16 %v11999_v52 }
0x103f   : > { %10031 = vxpose.binary.xlu2.c.b16.start.end [1/2] (short) (narrow) %v5177_v16, %v5176_v9, 16  ;;  %v5175_v57 = vpack.c.bf16 %v5149_v21, %v5149_v21  ;;  %v5147_v38 = vsel %vm1149_vm4, 0.0, %v5146_v49  ;;  %v9983_v42 = vunpack.i.h.bf16 %v12001_v0 }
0x1040   : > { %v5145_v61 = vsel %vm1149_vm4, 0.0, %v5144_v24  ;;  %v5173_v63 = vpack.c.bf16 %v5147_v38, %v5147_v38 }
0x1041   : > { %10025 = vxpose.binary.xlu1.c.b16.start.end [1/2] (short) (narrow) %v5175_v57, %v5174_v15, 16  ;;  %v5171_v1 = vpack.c.bf16 %v5145_v61, %v5145_v61  ;;  %v4882_v16 = vsel %vm1149_vm4, %v4881_v29, %v9983_v42  ;;  %v4875_v61 = vrot.slane %v9988_v14, 4 }
0x1043   : > { %10028 = vxpose.binary.xlu0.c.b16.start.end [1/2] (short) (narrow) %v5171_v1, %v5170_v53, 16  ;;  %v10023_v21 = vpop.trf.xlu0  ;;  %v4886_v53 = vperm.slane %v4882_v16, %v10542_v8  ;;  %v4876_v38 = vsel %vm1149_vm4, %v4875_v61, %v11959_v17  ;;  %v5650_v16 = vrot.slane %v12048_v46, 4 }
0x1044   : > { %v4880_v34 = vperm.slane %v4876_v38, %v10542_v8 }
0x104f   : > { %10037 = vxpose.binary.xlu2.c.b16.start.end [1/2] (short) (narrow) %v12038_v39, %v5482_v48, 16  ;;  %v4831_v48 = vrot.slane %v9992_v30, 4  ;;  %v4842_v39 = vperm.slane %v4834_v18, %v10542_v8 }
0x1051   : > { %v4832_v20 = vsel %vm1149_vm4, %v4831_v48, %v9982_v35  ;;  %v4855_v32 = vrot.slane %v4842_v39, 4  ;;  %v4858_v59 = vsel %vm1149_vm4, %v4842_v39, %v4857_v44  ;;  %v4887_v35 = vrot.slane %v4886_v53, 4  ;;  %v10024_v48 = vpop.trf.xlu0 }
0x1052   : > { %v4838_v12 = vperm.slane %v4832_v20, %v10542_v8  ;;  %v4866_v54 = vperm.slane %v4858_v59, %v10548_v19  ;;  %v5651_v53 = vsel %vm1149_vm4, %v5650_v16, %v12100_v11 }
0x1053   : > { %10034 = vxpose.binary.xlu0.c.b16.start.end [1/2] (short) (narrow) %v5173_v63, %v5172_v40, 16  ;;  %v4856_v26 = vsel %vm1149_vm4, %v4855_v32, %v4830_v55  ;;  %v4888_v39 = vsel %vm1149_vm4, %v4887_v35, %v4880_v34 }
0x1054   : > { %v4843_v51 = vrot.slane %v4838_v12, 4  ;;  %v4846_v45 = vsel %vm1149_vm4, %v4838_v12, %v4845_v6  ;;  %v4862_v60 = vperm.slane %v4856_v26, %v10548_v19  ;;  %v4873_v22 = vrot.slane %v4866_v54, 4 }
0x1055   : > { %v4854_v50 = vperm.slane %v4846_v45, %v10548_v19  ;;  %v4899_v57 = vpack.c.bf16 %v4866_v54, %v4866_v54  ;;  %v4892_v59 = vperm.slane %v4888_v39, %v10548_v19  ;;  %v5630_v54 = vrot.slane %v12044_v10, 4 }
0x1056   : > { %v4844_v3 = vsel %vm1149_vm4, %v4843_v51, %v4826_v31  ;;  %v4871_v37 = vrot.slane %v4862_v60, 4  ;;  %v4874_v9 = vsel %vm1149_vm4, 0.0, %v4873_v22  ;;  %v4897_v43 = vpack.c.bf16 %v4862_v60, %v4862_v60 }
0x1057   : > { %v4850_v24 = vperm.slane %v4844_v3, %v10548_v19  ;;  %v4869_v15 = vrot.slane %v4854_v50, 4  ;;  %v4900_v2 = vpack.c.bf16 %v4874_v9, %v4874_v9  ;;  %v5185_v13 = vrot.slane %v4899_v57, 4 }
0x1058   : > { %v4872_v52 = vsel %vm1149_vm4, 0.0, %v4871_v37  ;;  %v4895_v5 = vpack.c.bf16 %v4854_v50, %v4854_v50  ;;  %v5179_v30 = vrot.slane %v4897_v43, 4  ;;  %v5219_v45 = vpack.c.bf16 %v4892_v59, %v4892_v59 }
0x1059   : > { %v4867_v1 = vrot.slane %v4850_v24, 4  ;;  %v4870_v0 = vsel %vm1149_vm4, 0.0, %v4869_v15  ;;  %v4898_v40 = vpack.c.bf16 %v4872_v52, %v4872_v52  ;;  %v5205_v63 = vrot.slane %v4900_v2, 4 }
0x105a   : > { %v4896_v25 = vpack.c.bf16 %v4870_v0, %v4870_v0  ;;  %v5186_v7 = vsel %vm1149_vm4, %v5185_v13, %v4895_v5  ;;  %v4893_v28 = vpack.c.bf16 %v4850_v24, %v4850_v24  ;;  %v5631_v60 = vsel %vm1149_vm4, %v5630_v54, %v12088_v33 }
0x105b   : > { %v4868_v47 = vsel %vm1149_vm4, 0.0, %v4867_v1  ;;  %v5199_v18 = vrot.slane %v4898_v40, 4  ;;  %v5190_v44 = vperm.slane %v5186_v7, %v10542_v8  ;;  %v5635_v42 = vperm.slane %v5631_v60, %v10542_v8 }
0x105c   : > { %v5206_v55 = vsel %vm1149_vm4, %v5205_v63, %v4896_v25  ;;  %v4894_v17 = vpack.c.bf16 %v4868_v47, %v4868_v47  ;;  %v5180_v20 = vsel %vm1149_vm4, %v5179_v30, %v4893_v28  ;;  %v5223_v9 = vperm.slane %v5219_v45, %v10548_v19 }
0x105d   : > { %v5210_v31 = vperm.slane %v5206_v55, %v10542_v8  ;;  %v5184_v6 = vperm.slane %v5180_v20, %v10542_v8  ;;  %v5191_v23 = vrot.slane %v5190_v44, 4  ;;  %v5636_v61 = vrot.slane %v5635_v42, 4 }
0x105e   : > { %v5200_v12 = vsel %vm1149_vm4, %v5199_v18, %v4894_v17  ;;  %v5239_v52 = vpack.i.b16 0, %v5223_v9  ;;  %v5240_v1 = vshrl.u32 %v5223_v9, 16  ;;  %v5224_v13 = vrot.slane %v5223_v9, 4 }
0x105f   : > { %v5211_v26 = vrot.slane %v5210_v31, 4  ;;  %v5204_v51 = vperm.slane %v5200_v12, %v10542_v8  ;;  %v5192_v14 = vsel %vm1149_vm4, %v5191_v23, %v5184_v6  ;;  %v5655_v40 = vperm.slane %v5651_v53, %v10542_v8 }
0x1060   : > { %v5196_v15 = vperm.slane %v5192_v14, %v10548_v19  ;;  %v5677_v25 = vunpack.c.l.b16 %v5239_v52  ;;  %v5241_v34 = vpack.i.b16 0, %v5240_v1  ;;  %v5225_v7 = vsel %vm1149_vm4, 0, %v5224_v13 }
0x1061   : > { %v5212_v37 = vsel %vm1149_vm4, %v5211_v26, %v5204_v51  ;;  %v5656_v17 = vrot.slane %v5655_v40, 4  ;;  %v5243_v12 = vpack.i.b16 0, %v5225_v7  ;;  %v5244_v6 = vshrl.u32 %v5225_v7, 16 }
0x1062   : > { %v5216_v57 = vperm.slane %v5212_v37, %v10548_v19  ;;  %v5197_v43 = vrot.slane %v5196_v15, 4  ;;  %v5229_v31 = vshrl.u32 %v5196_v15, 16  ;;  %v5700_v59 = vunpack.c.l.b16 %v5241_v34 }
0x1064   : > { %v5217_v38 = vrot.slane %v5216_v57, 4  ;;  %v5228_v47 = vpack.i.b16 %v5216_v57, %v5196_v15  ;;  %v5230_v30 = vshrl.u32 %v5216_v57, 16  ;;  %v5198_v11 = vsel %vm1149_vm4, 0, %v5197_v43 }
0x1065   : > { %v5235_v54 = vshrl.u32 %v5198_v11, 16  ;;  %v5245_v57 = vpack.i.b16 0, %v5244_v6 }
0x1066   : > { %v5218_v28 = vsel %vm1149_vm4, 0, %v5217_v38  ;;  %v5231_v51 = vpack.i.b16 %v5230_v30, %v5229_v31 }
0x1068   : > { %v5699_v15 = vunpack.c.l.b16 %v5231_v51 }
0x10e0   : > { %v12114_v49 = vpop.trf.xlu2 }
0x10e1   : > { %v6014_v23 = vrot.slane %v12114_v49, 4 }
0x10e8   : > { %v12126_v32 = vpop.trf.xlu2 }
0x10ed   : > { %v10026_v22 = vpop.trf.xlu1 }
0x10ee   : > { %v6008_v29 = vrot.slane %v10026_v22, 4 }
0x10ef   : > { %v10029_v50 = vpop.trf.xlu0 }
0x10f0   : > { %v10038_v3 = vpop.trf.xlu2  ;;  %v6009_v10 = vsel %vm1149_vm4, %v6008_v29, %v10029_v50  ;;  %v5676_v50 = vunpack.c.l.b16 %v5228_v47 }
0x10f1   : > { %v5624_v24 = vrot.slane %v10038_v3, 4  ;;  %v6013_v55 = vperm.slane %v6009_v10, %v10542_v8  ;;  %v5234_v10 = vpack.i.b16 %v5218_v28, %v5198_v11 }
0x10f3   : > { %v5625_v33 = vsel %vm1149_vm4, %v5624_v24, %v10023_v21  ;;  %v6026_v45 = vrot.slane %v6013_v55, 4  ;;  %v5722_v13 = vunpack.c.l.b16 %v5234_v10 }
0x10f4   : > { %v5629_v2 = vperm.slane %v5625_v33, %v10542_v8 }
0x10f5   : > { %v10027_v21 = vpop.trf.xlu1 }
0x10f6   : > { %v5637_v0 = vsel %vm1149_vm4, %v5636_v61, %v5629_v2  ;;  %v6054_v39 = vrot.slane %v10027_v21, 4  ;;  %v6060_v21 = vrot.slane %v12126_v32, 4 }
0x10f7   : > { %v10030_v46 = vpop.trf.xlu0  ;;  %v5641_v35 = vperm.slane %v5637_v0, %v10548_v19  ;;  %v5678_v0 = vpack.c.b16 %v5677_v25, %v5676_v50 }
0x10f8   : > { %v10039_v63 = vpop.trf.xlu2  ;;  %v6055_v22 = vsel %vm1149_vm4, %v6054_v39, %v10030_v46  ;;  %v5746_v39 = vunpack.c.l.b16 %v5245_v57 }
0x10f9   : > { %v5644_v5 = vrot.slane %v10039_v63, 4  ;;  %v5642_v20 = vrot.slane %v5641_v35, 4  ;;  %v5667_v42 = vshrl.u32 %v5641_v35, 16  ;;  %v6059_v24 = vperm.slane %v6055_v22, %v10542_v8 }
0x10fb   : > { %v5645_v18 = vsel %vm1149_vm4, %v5644_v5, %v10024_v48  ;;  %v5236_v48 = vshrl.u32 %v5218_v28, 16  ;;  %v5643_v3 = vsel %vm1149_vm4, 0, %v5642_v20  ;;  %v5723_v5 = vunpack.c.l.b16 %v5243_v12 }
0x10fc   : > { %v5649_v44 = vperm.slane %v5645_v18, %v10542_v8  ;;  %v5673_v43 = vshrl.u32 %v5643_v3, 16  ;;  %v6068_v34 = vrot.slane %v6059_v24, 4 }
0x10fd   : > { %v5237_v33 = vpack.i.b16 %v5236_v48, %v5235_v54 }
0x10fe   : > { %v5657_v26 = vsel %vm1149_vm4, %v5656_v17, %v5649_v44 }
0x10ff   : > { %v10035_v60 = vpop.trf.xlu0  ;;  %v5661_v29 = vperm.slane %v5657_v26, %v10548_v19  ;;  %v5745_v11 = vunpack.c.l.b16 %v5237_v33 }
0x1100   : > { %v6015_v14 = vsel %vm1149_vm4, %v6014_v23, %v10035_v60 }
0x1101   : > { %v6019_v37 = vperm.slane %v6015_v14, %v10542_v8  ;;  %v5666_v49 = vpack.i.b16 %v5661_v29, %v5641_v35  ;;  %v5668_v9 = vshrl.u32 %v5661_v29, 16  ;;  %v5662_v16 = vrot.slane %v5661_v29, 4 }
0x1102   : > { %v5701_v35 = vpack.c.b16 %v5700_v59, %v5699_v15  ;;  %v5747_v44 = vpack.c.b16 %v5746_v39, %v5745_v11 }
0x1103   : > { %v6024_v61 = vrot.slane %v6019_v37, 4  ;;  %v12165_v2 = vsel %vm1149_vm4, %v6019_v37, %v6026_v45  ;;  %v5683_v53 = vsel %vm1044_vm0, %v5666_v49, 0  ;;  %v5669_v52 = vpack.i.b16 %v5668_v9, %v5667_v42 }
0x1104   : > { %5692 = vmatpush.bf16.msra.mxu1 %v5683_v53  ;;  %v5663_v1 = vsel %vm1149_vm4, 0, %v5662_v16  ;;  %v9963_v37 = vunpack.i.h.bf16 %v11969_v27  ;;  %v10018_v49 = vunpack.i.h.bf16 %v12046_v58 }
0x1105   : > { %v12170_v46 = vsel %vm1149_vm4, %v6024_v61, %v6013_v55  ;;  %v5706_v38 = vsel %vm1044_vm0, %v5669_v52, 0  ;;  %v5672_v40 = vpack.i.b16 %v5663_v1, %v5643_v3  ;;  %v5674_v63 = vshrl.u32 %v5663_v1, 16 }
0x1106   : > { %5715 = vmatpush.bf16.msrb.mxu2 %v5706_v38  ;;  %v5724_v55 = vpack.c.b16 %v5723_v5, %v5722_v13  ;;  %v10013_v3 = vunpack.i.h.bf16 %v12055_v62  ;;  %v5152_v16 = vrot.slane %v10018_v49, 4 }
0x1107   : > { %v5729_v47 = vsel %vm1044_vm0, %v5672_v40, 0  ;;  %v10036_v30 = vpop.trf.xlu0  ;;  %9067 = vmatmul.msk.bf16.vlgmr.msra.gmra.mxu1 %vm2008_vm5, %v5678_v0  ;;  %v5675_v25 = vpack.i.b16 %v5674_v63, %v5673_v43 }
0x1108   : > { %5738 = vmatpush.bf16.msrb.mxu3 %v5729_v47  ;;  %v6061_v7 = vsel %vm1149_vm4, %v6060_v21, %v10036_v30  ;;  %v5158_v10 = vrot.slane %v10013_v3, 4  ;;  %v5153_v15 = vsel %vm1149_vm4, %v5152_v16, %v11947_v56 }
0x1109   : > { %v6065_v18 = vperm.slane %v6061_v7, %v10542_v8  ;;  %9068 = vmatmul.msk.bf16.vlgmr.msrb.gmra.mxu2 %vm2008_vm5, %v5701_v35  ;;  %v5752_v32 = vsel %vm1044_vm0, %v5675_v25, 0  ;;  %v5157_v57 = vperm.slane %v5153_v15, %v10542_v8  ;;  %vm13481_vm0 = vcmask 195584  }
0x110a   : > { %5761 = vmatpush.bf16.msrb.mxu0 %v5752_v32  ;;  %v5159_v9 = vsel %vm1149_vm4, %v5158_v10, %v9963_v37 }
0x110b   : > { %v6066_v28 = vrot.slane %v6065_v18, 4  ;;  %v12181_v17 = vsel %vm1149_vm4, %v6065_v18, %v6068_v34  ;;  %9069 = vmatmul.msk.bf16.vlgmr.msrb.gmra.mxu3 %vm2008_vm5, %v5724_v55 }
0x110d   : > { %v12185_v20 = vsel %vm1149_vm4, %v6066_v28, %v6059_v24  ;;  %9070 = vmatmul.msk.bf16.vlgmr.msrb.gmra.mxu0 %vm2008_vm5, %v5747_v44  ;;  %v5163_v24 = vperm.slane %v5159_v9, %v10542_v8 }
0x110f   : > { %v5164_v33 = vrot.slane %v5163_v24, 4 }
0x1111   : > { %v5165_v61 = vsel %vm1149_vm4, %v5164_v33, %v5157_v57 }
0x1112   : > { %v5169_v62 = vperm.slane %v5165_v61, %v10548_v19 }
0x1114   : > { %v5178_v53 = vpack.c.bf16 %v5169_v62, %v5169_v62 }
0x1184   : > { %v5694_v31 = vpop.f32.mrf.mxu1 }
0x1185   : > { %v5768_v59 = vsel %vm1040_vm2, %v5694_v31, -inf }
0x1186   : > { %5769 = vmax.xlane.f32.xlu1 %v5768_v59 }
0x118a   : > { %v12189_v12 = vpop.f32.mrf.mxu0 }
0x118b   : > { %v5786_v51 = vsel %vm1040_vm2, %v12189_v12, -inf }
0x118c   : > { %v5696_v54 = vpop.f32.mrf.mxu1  ;;  %v12191_v6 = vpop.f32.mrf.mxu2 }
0x118d   : > { %v5774_v23 = vsel %vm1040_vm2, %v12191_v6, -inf  ;;  %v5771_v26 = vsel %vm2101_vm6, %v5696_v54, -inf }
0x118e   : > { %5775 = vmax.xlane.f32.xlu0 %v5774_v23  ;;  %5772 = vmax.xlane.f32.xlu2 %v5771_v26  ;;  %v5740_v48 = vpop.f32.mrf.mxu3 }
0x118f   : > { %5787 = vmax.xlane.f32.xlu1 %v5786_v51  ;;  %v5780_v22 = vsel %vm1040_vm2, %v5740_v48, -inf }
0x1192   : > { %v5765_v45 = vpop.f32.mrf.mxu0 }
0x1193   : > { %v5789_v60 = vsel %vm2101_vm6, %v5765_v45, -inf }
0x1194   : > { %v5719_v50 = vpop.f32.mrf.mxu2 }
0x1195   : > { %v5777_v42 = vsel %vm2101_vm6, %v5719_v50, -inf }
0x1196   : > { %5790 = vmax.xlane.f32.xlu2 %v5789_v60  ;;  %v12200_v29 = vpop.f32.mrf.mxu3 }
0x1197   : > { %5781 = vmax.xlane.f32.xlu1 %v5780_v22  ;;  %v5783_v14 = vsel %vm2101_vm6, %v12200_v29, -inf }
0x119e   : > { %5784 = vmax.xlane.f32.xlu2 %v5783_v14 }
0x119f   : > { %5778 = vmax.xlane.f32.xlu1 %v5777_v42 }
0x11c7   : > { %5992 = vxpose.xlu2.c.b16.start.end [1/1] (short) (narrow) %v5178_v53, 16 }
0x11f9   : > { %v5770_v27 = vpop.xlane.xlu1 %5769 }
0x11fa   : > { %v5792_v52 = vsub.f32 %v5694_v31, %v5770_v27 }
0x11fc   : > { %v5800_v58 = vmul.f32 1.442695, %v5792_v52 }
0x11fe   : > { %10184 = vpow2.f32 %v5800_v58 }
0x1201   : > { %v5773_v1 = vpop.xlane.xlu2 %5772  ;;  %v5776_v32 = vpop.xlane.xlu0 %5775 }
0x1202   : > { %v5793_v0 = vsub.f32 %v5696_v54, %v5773_v1  ;;  %v12215_v43 = vpop.xlane.xlu1 %5787  ;;  %v5794_v55 = vsub.f32 %v12191_v6, %v5776_v32  ;;  %v12246_v6 = vperm.slane %v12185_v20, %v10548_v19 }
0x1204   : > { %v12217_v13 = vpop.eup %10184  ;;  %v5802_v56 = vmul.f32 1.442695, %v5793_v0  ;;  %v5804_v39 = vmul.f32 1.442695, %v5794_v55  ;;  %v6078_v60 = vrot.slane %v12246_v6, 4 }
0x1205   : > { %v5816_v38 = vsel %vm1040_vm2, %v12217_v13, 0.0 }
0x1206   : > { %5817 = vadd.xlane.f32.xlu1 %v5816_v38  ;;  %10186 = vpow2.f32 %v5802_v56 }
0x1209   : > { %v5791_v28 = vpop.xlane.xlu2 %5790 }
0x120a   : > { %v5782_v40 = vpop.xlane.xlu1 %5781  ;;  %v5799_v44 = vsub.f32 %v5765_v45, %v5791_v28  ;;  %v12252_v45 = vperm.slane %v12170_v46, %v10548_v19 }
0x120b   : > { %v5796_v63 = vsub.f32 %v5740_v48, %v5782_v40  ;;  %v6077_v48 = vperm.slane %v12181_v17, %v10548_v19  ;;  %v6079_v17 = vsel %vm1149_vm4, 0, %v6078_v60 }
0x120c   : > { %v12221_v21 = vpop.eup %10186  ;;  %v5814_v31 = vmul.f32 1.442695, %v5799_v44  ;;  %v6048_v3 = vrot.slane %v12252_v45, 4  ;;  %v6095_v16 = vshrl.u32 %v6079_v17, 16 }
0x120d   : > { %v5808_v35 = vmul.f32 1.442695, %v5796_v63  ;;  %v5819_v5 = vsel %vm2101_vm6, %v12221_v21, 0.0  ;;  %v6080_v42 = vrot.slane %v6077_v48, 4  ;;  %v6103_v56 = vshrl.u32 %v6077_v48, 16 }
0x120e   : > { %5820 = vadd.xlane.f32.xlu1 %v5819_v5 }
0x120f   : > { %10188 = vpow2.f32 %v5808_v35  ;;  %v6081_v24 = vsel %vm1149_vm4, 0, %v6080_v42 }
0x1210   : > { %v6111_v27 = vshrl.u32 %v6081_v24, 16 }
0x1211   : > { %v12242_v51 = vpop.xlane.xlu2 %5784 }
0x1212   : > { %v5779_v34 = vpop.xlane.xlu1 %5778 }
0x1213   : > { %v5795_v47 = vsub.f32 %v5719_v50, %v5779_v34  ;;  %v6035_v50 = vperm.slane %v12165_v2, %v10548_v19 }
0x1215   : > { %v12225_v30 = vpop.eup %10188  ;;  %v5806_v25 = vmul.f32 1.442695, %v5795_v47  ;;  %v6052_v37 = vrot.slane %v6035_v50, 4 }
0x1216   : > { %v5828_v11 = vsel %vm1040_vm2, %v12225_v30, 0.0 }
0x1217   : > { %10190 = vpow2.f32 %v5806_v25  ;;  %5829 = vadd.xlane.f32.xlu1 %v5828_v11 }
0x1218   : > { %10192 = vpow2.f32 %v5804_v39 }
0x1219   : > { %10194 = vpow2.f32 %v5814_v31 }
0x121d   : > { %v12229_v7 = vpop.eup %10190 }
0x121e   : > { %v5825_v18 = vsel %vm2101_vm6, %v12229_v7, 0.0  ;;  %v12234_v59 = vpop.eup %10192 }
0x121f   : > { %5826 = vadd.xlane.f32.xlu1 %v5825_v18  ;;  %v5822_v54 = vsel %vm1040_vm2, %v12234_v59, 0.0  ;;  %v12238_v23 = vpop.eup %10194 }
0x1220   : > { %v5837_v26 = vsel %vm2101_vm6, %v12238_v23, 0.0 }
0x1238   : > { %5823 = vadd.xlane.f32.xlu2 %v5822_v54 }
0x1240   : > { %5838 = vadd.xlane.f32.xlu2 %v5837_v26 }
0x1268   : > { %v6000_v22 = vpop.trf.xlu2 }
0x1269   : > { %v6023_v14 = vperm.slane %v6000_v22, %v10542_v8 }
0x126b   : > { %v6036_v20 = vrot.slane %v6023_v14, 4  ;;  %v12260_v10 = vperm.slane %v6023_v14, %v10548_v19 }
0x126d   : > { %v6037_v46 = vsel %vm1149_vm4, 0, %v6036_v20  ;;  %v6049_v49 = vsel %vm1149_vm4, %v12260_v10, %v6048_v3  ;;  %v5798_v3 = vsub.f32 %v12189_v12, %v12215_v43 }
0x126e   : > { %v6045_v9 = vperm.slane %v6037_v46, %v10548_v19  ;;  %v6094_v2 = vshrl.u32 %v6049_v49, 16  ;;  %v6092_v33 = vpack.i.b16 %v6079_v17, %v6049_v49  ;;  %v5797_v17 = vsub.f32 %v12200_v29, %v12242_v51 }
0x126f   : > { %v5812_v20 = vmul.f32 1.442695, %v5798_v3 }
0x1270   : > { %v6050_v15 = vrot.slane %v6045_v9, 4  ;;  %v6096_v57 = vpack.i.b16 %v6095_v16, %v6094_v2  ;;  %v6053_v61 = vsel %vm1149_vm4, %v6045_v9, %v6052_v37  ;;  %v6046_v9 = vrot.slane %v12260_v10, 4 }
0x1271   : > { %v6108_v62 = vpack.i.b16 %v6081_v24, %v6053_v61  ;;  %v6110_v53 = vshrl.u32 %v6053_v61, 16  ;;  %v6087_v2 = vshrl.u32 %v12246_v6, 16 }
0x1272   : > { %10043 = vxpose.binary.xlu0.c.b16.start.end [1/2] (short) (narrow) %v6096_v57, %v6092_v33, 16  ;;  %v6051_v52 = vsel %vm1149_vm4, %v6050_v15, %v6035_v50  ;;  %v6047_v12 = vsel %vm1149_vm4, %v6046_v9, %v12252_v45 }
0x1273   : > { %v6112_v58 = vpack.i.b16 %v6111_v27, %v6110_v53  ;;  %v6100_v1 = vpack.i.b16 %v6077_v48, %v6051_v52  ;;  %v6102_v0 = vshrl.u32 %v6051_v52, 16  ;;  %v6086_v43 = vshrl.u32 %v6047_v12, 16 }
0x1274   : > { %v6084_v29 = vpack.i.b16 %v12246_v6, %v6047_v12 }
0x1275   : > { %10040 = vxpose.binary.xlu1.c.b16.start.end [1/2] (short) (narrow) %v6112_v58, %v6108_v62, 16  ;;  %v6104_v38 = vpack.i.b16 %v6103_v56, %v6102_v0  ;;  %v6088_v51 = vpack.i.b16 %v6087_v2, %v6086_v43 }
0x1277   : > { %10046 = vxpose.binary.xlu2.c.b16.start.end [1/2] (short) (narrow) %v6104_v38, %v6100_v1, 16 }
0x1279   : > { %v5818_v40 = vpop.xlane.xlu1 %5817 }
0x127a   : > { %10196 = vrcp.f32 %v5818_v40 }
0x1280   : > { %v10197_v35 = vpop.eup %10196 }
0x1281   : > { %v5821_v63 = vpop.xlane.xlu1 %5820  ;;  %v5848_v5 = vmul.f32 %v10197_v35, %v12217_v13 }
0x1282   : > { %10198 = vrcp.f32 %v5821_v63 }
0x1283   : > { %v5856_v25 = vpack.c.bf16 %v5848_v5, %v5848_v5 }
0x1285   : > { %v6296_v18 = vunpack.c.l.b16 %v5856_v25 }
0x1288   : > { %v10199_v34 = vpop.eup %10198 }
0x1289   : > { %v5849_v47 = vmul.f32 %v10199_v34, %v12221_v21 }
0x128a   : > { %v5830_v28 = vpop.xlane.xlu1 %5829 }
0x128b   : > { %v5857_v11 = vpack.c.bf16 %v5849_v47, %v5849_v47 }
0x128d   : > { %v6297_v32 = vunpack.c.l.b16 %v5857_v11 }
0x128f   : > { %v6298_v55 = vpack.c.b16 %v6297_v32, %v6296_v18 }
0x1291   : > { %v6303_v39 = vsel %vm1040_vm2, %v6298_v55, 0 }
0x1292   : > { %6312 = vmatpush.bf16.xpose.msrb.mxu1 %v6303_v39  ;;  %v5827_v44 = vpop.xlane.xlu1 %5826 }
0x1293   : > { %10200 = vrcp.f32 %v5827_v44 }
0x1299   : > { %v10201_v54 = vpop.eup %10200 }
0x129a   : > { %v5851_v26 = vmul.f32 %v10201_v54, %v12229_v7  ;;  %v5810_v7 = vmul.f32 1.442695, %v5797_v17 }
0x129c   : > { %v5859_v21 = vpack.c.bf16 %v5851_v26, %v5851_v26 }
0x129e   : > { %v6321_v50 = vunpack.c.l.b16 %v5859_v21 }
0x12ab   : > { %v5824_v31 = vpop.xlane.xlu2 %5823 }
0x12ac   : > { %10202 = vrcp.f32 %v5824_v31 }
0x12ad   : > { %10204 = vpow2.f32 %v5812_v20 }
0x12ae   : > { %10206 = vpow2.f32 %v5810_v7 }
0x12b2   : > { %v10203_v13 = vpop.eup %10202 }
0x12b3   : > { %v5850_v48 = vmul.f32 %v10203_v13, %v12234_v59  ;;  %v10205_v37 = vpop.eup %10204  ;;  %v5839_v15 = vpop.xlane.xlu2 %5838 }
0x12b4   : > { %v5834_v59 = vsel %vm1040_vm2, %v10205_v37, 0.0  ;;  %v10207_v46 = vpop.eup %10206  ;;  %10208 = vrcp.f32 %v5839_v15 }
0x12b5   : > { %v5858_v60 = vpack.c.bf16 %v5850_v48, %v5850_v48  ;;  %v5831_v49 = vsel %vm2101_vm6, %v10207_v46, 0.0 }
0x12b7   : > { %v6320_v22 = vunpack.c.l.b16 %v5858_v60 }
0x12b9   : > { %v6322_v14 = vpack.c.b16 %v6321_v50, %v6320_v22 }
0x12ba   : > { %v10209_v57 = vpop.eup %10208 }
0x12bb   : > { %v6327_v42 = vsel %vm1040_vm2, %v6322_v14, 0  ;;  %v5855_v10 = vmul.f32 %v10209_v57, %v12238_v23 }
0x12bc   : > { %6336 = vmatpush.bf16.xpose.msra.mxu2 %v6327_v42 }
0x12bd   : > { %v5863_v53 = vpack.c.bf16 %v5855_v10, %v5855_v10 }
0x12bf   : > { %v6369_v1 = vunpack.c.l.b16 %v5863_v53 }
0x12e3   : > { %5835 = vadd.xlane.f32.xlu0 %v5834_v59 }
0x12eb   : > { %5832 = vadd.xlane.f32.xlu0 %v5831_v49 }
0x1314   : > { %10049 = vxpose.binary.xlu0.c.b16.start.end [1/2] (short) (narrow) %v6088_v51, %v6084_v29, 16 }
0x1318   : > { %v10047_v18 = vpop.trf.xlu2 }
0x1319   : > { %v6242_v55 = vrot.slane %v10047_v18, 4 }
0x131e   : > { %v10044_v16 = vpop.trf.xlu0 }
0x1320   : > { %v10048_v13 = vpop.trf.xlu2 }
0x1321   : > { %v10041_v25 = vpop.trf.xlu1  ;;  %v6262_v60 = vrot.slane %v10048_v13, 4 }
0x1322   : > { %v6248_v11 = vrot.slane %v10041_v25, 4 }
0x1326   : > { %v10045_v24 = vpop.trf.xlu0 }
0x1329   : > { %v10042_v32 = vpop.trf.xlu1 }
0x1356   : > { %v5836_v33 = vpop.xlane.xlu0 %5835 }
0x1357   : > { %10210 = vrcp.f32 %v5836_v33 }
0x1358   : > { %10212 = vrcp.f32 %v5830_v28  ;;  %v6268_v28 = vrot.slane %v10042_v32, 4 }
0x135a   : > { %v6269_v48 = vsel %vm1149_vm4, %v6268_v28, %v10045_v24 }
0x135b   : > { %v6273_v22 = vperm.slane %v6269_v48, %v10542_v8 }
0x135d   : > { %v10211_v61 = vpop.eup %10210  ;;  %v6274_v3 = vrot.slane %v6273_v22, 4 }
0x135e   : > { %v5854_v62 = vmul.f32 %v10211_v61, %v10205_v37  ;;  %v5833_v45 = vpop.xlane.xlu0 %5832  ;;  %v10213_v27 = vpop.eup %10212 }
0x135f   : > { %10214 = vrcp.f32 %v5833_v45  ;;  %v5852_v6 = vmul.f32 %v10213_v27, %v12225_v30  ;;  %v6249_v30 = vsel %vm1149_vm4, %v6248_v11, %v10044_v16 }
0x1360   : > { %v5862_v52 = vpack.c.bf16 %v5854_v62, %v5854_v62  ;;  %v6253_v39 = vperm.slane %v6249_v30, %v10542_v8 }
0x1361   : > { %v5860_v63 = vpack.c.bf16 %v5852_v6, %v5852_v6 }
0x1362   : > { %v6368_v58 = vunpack.c.l.b16 %v5862_v52  ;;  %v6254_v54 = vrot.slane %v6253_v39, 4 }
0x1363   : > { %v6344_v23 = vunpack.c.l.b16 %v5860_v63 }
0x1364   : > { %v6370_v0 = vpack.c.b16 %v6369_v1, %v6368_v58 }
0x1365   : > { %v10215_v56 = vpop.eup %10214 }
0x1366   : > { %v5853_v38 = vmul.f32 %v10215_v56, %v10207_v46  ;;  %v6375_v40 = vsel %vm1040_vm2, %v6370_v0, 0 }
0x1367   : > { %6384 = vmatpush.bf16.xpose.msra.mxu0 %v6375_v40 }
0x1368   : > { %v5861_v35 = vpack.c.bf16 %v5853_v38, %v5853_v38 }
0x136a   : > { %v6345_v5 = vunpack.c.l.b16 %v5861_v35 }
0x136c   : > { %v6346_v34 = vpack.c.b16 %v6345_v5, %v6344_v23 }
0x136e   : > { %v6351_v47 = vsel %vm1040_vm2, %v6346_v34, 0 }
0x136f   : > { %6360 = vmatpush.bf16.xpose.msra.mxu3 %v6351_v47 }
0x13c0   : > { %v10050_v44 = vpop.trf.xlu0 }
0x13c1   : > { %v6243_v31 = vsel %vm1149_vm4, %v6242_v55, %v10050_v44 }
0x13c2   : > { %v6247_v26 = vperm.slane %v6243_v31, %v10542_v8 }
0x13c4   : > { %v6255_v21 = vsel %vm1149_vm4, %v6254_v54, %v6247_v26 }
0x13c5   : > { %v6259_v50 = vperm.slane %v6255_v21, %v10548_v19 }
0x13c7   : > { %v6260_v17 = vrot.slane %v6259_v50, 4  ;;  %v6285_v59 = vshrl.u32 %v6259_v50, 16 }
0x13c8   : > { %v10051_v14 = vpop.trf.xlu0 }
0x13c9   : > { %v6263_v42 = vsel %vm1149_vm4, %v6262_v60, %v10051_v14  ;;  %v6261_v12 = vsel %vm1149_vm4, 0, %v6260_v17 }
0x13ca   : > { %v6267_v20 = vperm.slane %v6263_v42, %v10542_v8  ;;  %v6291_v51 = vshrl.u32 %v6261_v12, 16 }
0x13cc   : > { %v6275_v7 = vsel %vm1149_vm4, %v6274_v3, %v6267_v20 }
0x13cd   : > { %v6279_v37 = vperm.slane %v6275_v7, %v10548_v19 }
0x13cf   : > { %v6280_v46 = vrot.slane %v6279_v37, 4  ;;  %v6286_v49 = vshrl.u32 %v6279_v37, 16  ;;  %v6284_v9 = vpack.i.b16 %v6279_v37, %v6259_v50 }
0x13d1   : > { %9071 = vmatmul.msk.bf16.vlgmr.msrb.gmra.mxu1 %vm1040_vm2, %v6284_v9  ;;  %v6287_v43 = vpack.i.b16 %v6286_v49, %v6285_v59  ;;  %v6281_v2 = vsel %vm1149_vm4, 0, %v6280_v46 }
0x13d2   : > { %v6290_v29 = vpack.i.b16 %v6281_v2, %v6261_v12  ;;  %v6292_v16 = vshrl.u32 %v6281_v2, 16 }
0x13d3   : > { %9072 = vmatmul.msk.bf16.vlgmr.msra.gmra.mxu2 %vm1040_vm2, %v6287_v43 }
0x13d4   : > { %9073 = vmatmul.msk.bf16.vlgmr.msra.gmra.mxu3 %vm1040_vm2, %v6290_v29  ;;  %v6293_v24 = vpack.i.b16 %v6292_v16, %v6291_v51 }
0x13d6   : > { %9074 = vmatmul.msk.bf16.vlgmr.msra.gmra.mxu0 %vm1040_vm2, %v6293_v24  ;;  %vm13482_vm2 = vmmov %vm13481_vm0 }
0x144e   : > { %v6314_v15 = vpop.f32.mrf.mxu1 }
0x1453   : > { %v6386_v33 = vpop.f32.mrf.mxu0 }
0x1456   : > { %v6316_v57 = vpop.f32.mrf.mxu1  ;;  %v6338_v10 = vpop.f32.mrf.mxu2 }
0x1457   : > { %v10052_v61 = vpack.i.bf16 %v6338_v10, %v6386_v33  ;;  %v6362_v62 = vpop.f32.mrf.mxu3 }
0x1458   : > { %v10064_v45 = vpack.i.bf16 %v6314_v15, %v6362_v62 }
0x1459   : > { %10053 = vxpose.xlu1.b32.start.end [1/1] (short) (narrow) %v10052_v61, 16 }
0x145a   : > { %10065 = vxpose.xlu2.b32.start.end [1/1] (short) (narrow) %v10064_v45, 16 }
0x145b   : > { %v6388_v53 = vpop.f32.mrf.mxu0 }
0x145e   : > { %v6340_v27 = vpop.f32.mrf.mxu2 }
0x145f   : > { %v6364_v52 = vpop.f32.mrf.mxu3 }
0x14f3   : > { %v10066_v6 = vpop.trf.xlu2 }
0x14f4   : > { %v10070_v58 = vunpack.i.h.bf16 %v10066_v6  ;;  %v10067_v1 = vunpack.i.l.bf16 %v10066_v6 }
0x14f6   : > { %v6520_v0 = vrot.slane %v10070_v58, 4  ;;  %v6518_v56 = vrot.slane %v10067_v1, 4 }
0x14f8   : > { %v6519_v38 = vsel %vm1149_vm4, %v6518_v56, %v10070_v58  ;;  %v6521_v40 = vsel %vm1149_vm4, %v10067_v1, %v6520_v0 }
0x14f9   : > { %v6525_v35 = vperm.slane %v6519_v38, %v10542_v8  ;;  %v6529_v23 = vperm.slane %v6521_v40, %v10542_v8 }
0x14fb   : > { %v10071_v63 = vpop.trf.xlu2  ;;  %v6544_v30 = vrot.slane %v6525_v35, 4  ;;  %v6556_v32 = vrot.slane %v6529_v23, 4 }
0x14fc   : > { %v10072_v18 = vunpack.i.l.bf16 %v10071_v63  ;;  %v10075_v31 = vunpack.i.h.bf16 %v10071_v63 }
0x14fd   : > { %v10054_v5 = vpop.trf.xlu1 }
0x14fe   : > { %v10058_v34 = vunpack.i.h.bf16 %v10054_v5  ;;  %v10055_v47 = vunpack.i.l.bf16 %v10054_v5  ;;  %v6574_v54 = vrot.slane %v10072_v18, 4 }
0x1500   : > { %v6532_v25 = vrot.slane %v10058_v34, 4  ;;  %v6530_v11 = vrot.slane %v10055_v47, 4  ;;  %v6575_v49 = vsel %vm1149_vm4, %v6574_v54, %v10075_v31 }
0x1501   : > { %v6579_v61 = vperm.slane %v6575_v49, %v10542_v8 }
0x1502   : > { %v6531_v55 = vsel %vm1149_vm4, %v6530_v11, %v10058_v34  ;;  %v6533_v39 = vsel %vm1149_vm4, %v10055_v47, %v6532_v25 }
0x1503   : > { %v6537_v28 = vperm.slane %v6531_v55, %v10542_v8  ;;  %v6541_v44 = vperm.slane %v6533_v39, %v10542_v8 }
0x1505   : > { %v6542_v26 = vrot.slane %v6537_v28, 4  ;;  %v6545_v13 = vsel %vm1149_vm4, %v6537_v28, %v6544_v30  ;;  %v6554_v48 = vrot.slane %v6541_v44, 4  ;;  %v6557_v21 = vsel %vm1149_vm4, %v6541_v44, %v6556_v32  ;;  %v10059_v60 = vpop.trf.xlu1 }
0x1506   : > { %v6553_v22 = vperm.slane %v6545_v13, %v10548_v19  ;;  %v6565_v50 = vperm.slane %v6557_v21, %v10548_v19  ;;  %v10060_v3 = vunpack.i.l.bf16 %v10059_v60  ;;  %v10063_v59 = vunpack.i.h.bf16 %v10059_v60 }
0x1507   : > { %v6543_v14 = vsel %vm1149_vm4, %v6542_v26, %v6525_v35  ;;  %v6555_v42 = vsel %vm1149_vm4, %v6554_v48, %v6529_v23 }
0x1508   : > { %v6549_v20 = vperm.slane %v6543_v14, %v10548_v19  ;;  %v6561_v17 = vperm.slane %v6555_v42, %v10548_v19  ;;  %v6568_v7 = vrot.slane %v6553_v22, 4  ;;  %v6572_v37 = vrot.slane %v6565_v50, 4 }
0x1509   : > { %v6580_v46 = vrot.slane %v10060_v3, 4 }
0x150a   : > { %v6566_v9 = vrot.slane %v6549_v20, 4  ;;  %v6569_v12 = vsel %vm1149_vm4, 0.0, %v6568_v7  ;;  %v6570_v43 = vrot.slane %v6561_v17, 4  ;;  %v6573_v2 = vsel %vm1149_vm4, 0.0, %v6572_v37 }
0x150b   : > { %v6593_v29 = vrot.slane %v6569_v12, 4  ;;  %v6604_v51 = vrot.slane %v6573_v2, 4  ;;  %v6581_v16 = vsel %vm1149_vm4, %v6580_v46, %v10063_v59  ;;  %v6588_v24 = vsel %vm1149_vm4, %v6568_v7, %v6549_v20 }
0x150c   : > { %v6585_v15 = vperm.slane %v6581_v16, %v10542_v8  ;;  %v6567_v33 = vsel %vm1149_vm4, 0.0, %v6566_v9  ;;  %v6571_v57 = vsel %vm1149_vm4, 0.0, %v6570_v43  ;;  %v6592_v10 = vperm.slane %v6588_v24, %v10542_v8 }
0x150d   : > { %v6594_v62 = vsel %vm1149_vm4, %v6593_v29, %v6567_v33  ;;  %v6599_v45 = vsel %vm1149_vm4, %v6572_v37, %v6561_v17  ;;  %v6605_v53 = vsel %vm1149_vm4, %v6604_v51, %v6571_v57  ;;  %v9695_v17 = vld [vmem:[%s13427_s2 + $0x18] sm:$0xff] }
0x150e   : > { %v6586_v27 = vrot.slane %v6585_v15, 4  ;;  %v6598_v52 = vperm.slane %v6594_v62, %v10542_v8  ;;  %v6603_v6 = vperm.slane %v6599_v45, %v10542_v8  ;;  %v6609_v58 = vperm.slane %v6605_v53, %v10542_v8  ;;  %6726 = vmatpush.bf16.msra.mxu1 %v9695_v17 }
0x150f   : > { %v6612_v1 = vrot.slane %v6592_v10, 4 }
0x1510   : > { %v6587_v0 = vsel %vm1149_vm4, %v6586_v27, %v6579_v61  ;;  %v6610_v56 = vrot.slane %v6598_v52, 4  ;;  %v6622_v38 = vrot.slane %v6609_v58, 4  ;;  %v6624_v40 = vrot.slane %v6603_v6, 4 }
0x1511   : > { %v6645_v63 = vperm.slane %v6587_v0, %v10548_v19  ;;  %v6613_v35 = vsel %vm1149_vm4, %v6598_v52, %v6612_v1 }
0x1512   : > { %v6611_v23 = vsel %vm1149_vm4, %v6610_v56, %v6592_v10  ;;  %v6623_v5 = vsel %vm1149_vm4, %v6622_v38, %v6603_v6  ;;  %v6625_v34 = vsel %vm1149_vm4, %v6609_v58, %v6624_v40  ;;  %v6621_v30 = vperm.slane %v6613_v35, %v10548_v19  ;;  %v10104_v10 = vld [vmem:[%s13428_s18 + $0x1] ss:$0 sm:$0xff] }
0x1513   : > { %v6617_v47 = vperm.slane %v6611_v23, %v10548_v19  ;;  %v6629_v25 = vperm.slane %v6623_v5, %v10548_v19  ;;  %v6649_v11 = vperm.slane %v6645_v63, %v10542_v8  ;;  %v6633_v18 = vperm.slane %v6625_v34, %v10548_v19 }
0x1514   : > { %v6640_v8 = vrot.slane %v6621_v30, 4 }
0x1515   : > { %v6634_v32 = vrot.slane %v6629_v25, 4  ;;  %v6636_v55 = vrot.slane %v6617_v47, 4  ;;  %v6655_v39 = vperm.slane %v6649_v11, %v10548_v19  ;;  %v6650_v28 = vrot.slane %v6649_v11, 4  ;;  %v9704_v11 = vld [vmem:[%s13429_s16 + $0xc4] sm:$0xf] }
0x1516   : > { %v6638_v44 = vrot.slane %v6633_v18, 4  ;;  %v6641_v42 = vsel %vm1149_vm4, %v6633_v18, %v6640_v8  ;;  %v9700_v8 = vld [vmem:[%s13429_s16 + $0x9c] sm:$0xf0] }
0x1517   : > { %v6637_v31 = vsel %vm1149_vm4, %v6629_v25, %v6636_v55  ;;  %v6660_v54 = vrot.slane %v6655_v39, 4  ;;  %v6651_v26 = vsel %vm1149_vm4, 0.0, %v6650_v28  ;;  %v6635_v13 = vsel %vm1149_vm4, %v6634_v32, %v6617_v47  ;;  %v9142_v47 = vld [vmem:[%s13429_s16 + $0xc0] sm:$0xf]  ;;  %v9144_v32 = vld [vmem:[%s13429_s16 + $0xe0] sm:$0xf0] }
0x1518   : > { %v6659_v48 = vperm.slane %v6651_v26, %v10548_v19  ;;  %v6639_v60 = vsel %vm1149_vm4, %v6638_v44, %v6621_v30  ;;  %v9694_v19 = vld [vmem:[%s13427_s2 + $0x10] sm:$0xff]  ;;  %v9708_v25 = vld [vmem:[%s13429_s16 + $0xdc] sm:$0xf0]  ;;  %v9150_v55 = vld [vmem:[%s13429_s16 + $0xc8] sm:$0xf] }
0x1519   : > { %v6661_v21 = vsel %vm1149_vm4, 0.0, %v6660_v54  ;;  %6727 = vmatpush.bf16.msra.mxu1 %v9694_v19  ;;  %v9143_v30 = vor.u32 %v9708_v25, %v9142_v47  ;;  %v9709_v28 = vld [vmem:[%s13429_s16 + $0xe4] sm:$0xf0]  ;;  %v9705_v44 = vld [vmem:[%s13429_s16 + $0xcc] sm:$0xf] }
0x151a   : > { %v10076_v22 = vpack.i.bf16 %v6661_v21, %v6637_v31  ;;  %v6662_v50 = vrot.slane %v6659_v48, 4  ;;  %v10081_v14 = vpack.i.bf16 %v6659_v48, %v6639_v60  ;;  %v9152_v31 = vld [vmem:[%s13429_s16 + $0xe8] sm:$0xf0]  ;;  %v9151_v54 = vor.u32 %v9709_v28, %v9150_v55  ;;  %v9696_v48 = vld [vmem:[%s13429_s16 + $0x84] sm:$0xf] }
0x151b   : > { %6920 = vmatpush.bf16.msrb.mxu2 %v9143_v30  ;;  %v9155_v26 = vor.u32 %v9705_v44, %v9152_v31  ;;  %v9112_v60 = vld [vmem:[%s13429_s16 + $0xa0] sm:$0xf0]  ;;  %v10105_v30 = vld [vmem:[%s13430_s0 + $0x1] ss:$0 sm:$0xff] }
0x151c   : > { %10077 = vrot.lane.b32.xlu0 %v10076_v22, %s13478_s9  ;;  %v6663_v3 = vsel %vm1149_vm4, 0.0, %v6662_v50  ;;  %10082 = vrot.lane.b32.xlu2 %v10081_v14, %s13479_s8  ;;  %v9118_v22 = vld [vmem:[%s13429_s16 + $0x88] sm:$0xf]  ;;  %v9115_v14 = vor.u32 %v9696_v48, %v9112_v60  ;;  %v10106_v28 = vld [vmem:[%s13431_s11 + $0x1] ss:$0 sm:$0xff]  ;;  %s948_s9 = scalar_lea.vmem %s10451_s27, %s10482_s15  ;;  %s951_s8 = scalar_lea.vmem %s10456_s4, %s13520_s10 }
0x151d   : > { %v10086_v20 = vpack.i.bf16 %v6663_v3, %v6641_v42  ;;  %v9701_v50 = vld [vmem:[%s13429_s16 + $0xa4] sm:$0xf0]  ;;  %6948 = vmatpush.bf16.msrb.mxu0 %v9151_v54  ;;  %6962 = vmatpush.bf16.msrb.mxu1 %v9155_v26  ;;  %v9697_v3 = vld [vmem:[%s13429_s16 + $0x8c] sm:$0xf] }
0x151e   : > { %v9119_v42 = vor.u32 %v9701_v50, %v9118_v22 }
0x151f   : > { %10087 = vrot.lane.b32.xlu1 %v10086_v20, %s13480_s12  ;;  %v9120_v20 = vld [vmem:[%s13429_s16 + $0xa8] sm:$0xf0] }
0x1520   : > { %v9123_v19 = vor.u32 %v9697_v3, %v9120_v20 }
0x1521   : > { %6949 = vmatpush.bf16.msrb.mxu0 %v9119_v42 }
0x1522   : > { %6963 = vmatpush.bf16.msrb.mxu1 %v9123_v19 }
0x1576   : > { %v10083_v7 = vpop.permute.xlu2 %10082 }
0x1577   : > { %v10085_v49 = vunpack.i.h.bf16 %v10083_v7  ;;  %v10084_v9 = vunpack.i.l.bf16 %v10083_v7  ;;  %v9158_v7 = vld [vmem:[%s13429_s16 + $0xd0] sm:$0xf] }
0x158e   : > { %v10078_v37 = vpop.permute.xlu0 %10077 }
0x158f   : > { %v10080_v59 = vunpack.i.h.bf16 %v10078_v37  ;;  %v10079_v46 = vunpack.i.l.bf16 %v10078_v37  ;;  %v9710_v37 = vld [vmem:[%s13429_s16 + $0xec] sm:$0xf0] }
0x1591   : > { %v6689_v12 = vsel %vm2008_vm5, %v6655_v39, %v10080_v59  ;;  %v6688_v43 = vsel %vm2008_vm5, %v6635_v13, %v10079_v46  ;;  %v10088_v2 = vpop.permute.xlu1 %10087  ;;  %v9147_v39 = vor.u32 %v9704_v11, %v9144_v32  ;;  %v9110_v13 = vld [vmem:[%s13429_s16 + $0x80] sm:$0xf]  ;;  %v9706_v59 = vld [vmem:[%s13429_s16 + $0xd4] sm:$0xf] }
0x1592   : > { %v10090_v29 = vunpack.i.h.bf16 %v10088_v2  ;;  %v10089_v51 = vunpack.i.l.bf16 %v10088_v2  ;;  %v6690_v16 = vsel %vm3021_vm7, %v6688_v43, %v10084_v9  ;;  %v6691_v24 = vsel %vm3021_vm7, %v6689_v12, %v10085_v49  ;;  %v9160_v9 = vld [vmem:[%s13429_s16 + $0xf0] sm:$0xf0]  ;;  %v9166_v12 = vld [vmem:[%s13429_s16 + $0xd8] sm:$0xf] }
0x1593   : > { %6934 = vmatpush.bf16.msrb.mxu3 %v9147_v39  ;;  %v9111_v21 = vor.u32 %v9700_v8, %v9110_v13  ;;  %v9159_v49 = vor.u32 %v9710_v37, %v9158_v7  ;;  %v9711_v43 = vld [vmem:[%s13429_s16 + $0xf4] sm:$0xf0]  ;;  %v9163_v2 = vor.u32 %v9706_v59, %v9160_v9 }
0x1594   : > { %v6692_v15 = vsel %vm13481_vm0, %v6690_v16, %v10089_v51  ;;  %v6693_v33 = vsel %vm13482_vm2, %v6691_v24, %v10090_v29  ;;  %v9167_v29 = vor.u32 %v9711_v43, %v9166_v12  ;;  %v9707_v51 = vld [vmem:[%s13429_s16 + $0xdc] sm:$0xf]  ;;  %v9126_v24 = vld [vmem:[%s13429_s16 + $0x90] sm:$0xf] }
0x1595   : > { %v6699_v57 = vpack.c.bf16 %v6693_v33, %v6692_v15  ;;  %6921 = vmatpush.bf16.msrb.mxu2 %v9111_v21  ;;  %v9168_v16 = vld [vmem:[%s13429_s16 + $0xf8] sm:$0xf0] }
0x1596   : > { %7004 = vmatpush.bf16.msra.mxu0 %v9167_v29 }
0x1597   : > { %9088 = vmatmul.msk.bf16.vlgmr.msra.gmra.mxu1 %vm977_vm3, %v6699_v57  ;;  %6935 = vmatpush.bf16.msrb.mxu3 %v9115_v14  ;;  %v9171_v57 = vor.u32 %v9707_v51, %v9168_v16 }
0x1599   : > { %6976 = vmatpush.bf16.msra.mxu2 %v9159_v49  ;;  %7018 = vmatpush.bf16.msra.mxu1 %v9171_v57 }
0x159b   : > { %6990 = vmatpush.bf16.msra.mxu3 %v9163_v2 }
0x1614   : > { %v6729_v61 = vpop.f32.mrf.mxu1 }
0x1615   : > { %v6730_v62 = vadd.f32 %v10104_v10, %v6729_v61  ;;  %v9698_v61 = vld [vmem:[%s13429_s16 + $0x94] sm:$0xf] }
0x1617   : > { %v6734_v45 = vadd.f32 %v6730_v62, %v11935_v41 }
0x1619   : > { %v6740_v53 = vsel %vm977_vm3, %v6734_v45, 0.0 }
0x161a   : > { %6741 = vadd.xlane.f32.xlu0 %v6740_v53  ;;  %v9128_v53 = vld [vmem:[%s13429_s16 + $0xb0] sm:$0xf0] }
0x161c   : > { %v6731_v27 = vpop.f32.mrf.mxu1 }
0x161d   : > { %v6732_v52 = vadd.f32 %v10104_v10, %v6731_v27  ;;  %v9702_v10 = vld [vmem:[%s13429_s16 + $0xac] sm:$0xf0]  ;;  %v9134_v27 = vld [vmem:[%s13429_s16 + $0x98] sm:$0xf] }
0x161f   : > { %v6735_v6 = vadd.f32 %v6732_v52, %v11937_v4  ;;  %v9703_v52 = vld [vmem:[%s13429_s16 + $0xb4] sm:$0xf0] }
0x1621   : > { %v6743_v58 = vsel %vm3072_vm9, %v6735_v6, 0.0 }
0x1622   : > { %6744 = vadd.xlane.f32.xlu1 %v6743_v58  ;;  %v9135_v58 = vor.u32 %v9703_v52, %v9134_v27 }
0x1624   : > { %7005 = vmatpush.bf16.msra.mxu0 %v9135_v58 }
0x168d   : > { %v6742_v1 = vpop.xlane.xlu0 %6741 }
0x168e   : > { %v6746_v0 = vmul.f32 %v6742_v1, %v10942_v36  ;;  %v9699_v1 = vld [vmem:[%s13429_s16 + $0x9c] sm:$0xf] }
0x1690   : > { %v12379_v56 = vsub.f32 %v6734_v45, %v6746_v0  ;;  %v9127_v45 = vor.u32 %v9702_v10, %v9126_v24  ;;  %v9136_v0 = vld [vmem:[%s13429_s16 + $0xb8] sm:$0xf0] }
0x1692   : > { %v6750_v41 = vmul.f32 %v12379_v56, %v12379_v56  ;;  %6977 = vmatpush.bf16.msra.mxu2 %v9127_v45 }
0x1694   : > { %v6752_v38 = vsel %vm977_vm3, %v6750_v41, 0.0 }
0x1695   : > { %v6745_v40 = vpop.xlane.xlu1 %6744  ;;  %6753 = vadd.xlane.f32.xlu2 %v6752_v38  ;;  %v9139_v38 = vor.u32 %v9699_v1, %v9136_v0 }
0x1696   : > { %v6747_v4 = vmul.f32 %v6745_v40, %v10942_v36 }
0x1697   : > { %7019 = vmatpush.bf16.msra.mxu1 %v9139_v38 }
0x1698   : > { %v12385_v63 = vsub.f32 %v6735_v6, %v6747_v4  ;;  %v9131_v6 = vor.u32 %v9698_v61, %v9128_v53 }
0x169a   : > { %v6751_v35 = vmul.f32 %v12385_v63, %v12385_v63  ;;  %6991 = vmatpush.bf16.msra.mxu3 %v9131_v6 }
0x169c   : > { %v6755_v23 = vsel %vm3072_vm9, %v6751_v35, 0.0 }
0x169d   : > { %6756 = vadd.xlane.f32.xlu0 %v6755_v23 }
0x1708   : > { %v6754_v5 = vpop.xlane.xlu2 %6753 }
0x1709   : > { %v6758_v34 = vmul.f32 %v6754_v5, %v10942_v36 }
0x170b   : > { %v12394_v18 = vadd.f32 1e-05, %v6758_v34 }
0x170d   : > { %10216 = vrsqrt.f32 %v12394_v18  ;;  %vm6768_vm5 = vweird.f32 %v12394_v18 }
0x1710   : > { %v6757_v17 = vpop.xlane.xlu0 %6756 }
0x1711   : > { %v6759_v46 = vmul.f32 %v6757_v17, %v10942_v36 }
0x1713   : > { %v10217_v15 = vpop.eup %10216  ;;  %v6761_v33 = vadd.f32 1e-05, %v6759_v46 }
0x1714   : > { %v6763_v62 = vmul.f32 %v10217_v15, %v12394_v18  ;;  %vm6769_vm4 = vweird.f32 %v10217_v15 }
0x1715   : > { %10218 = vrsqrt.f32 %v6761_v33  ;;  %vm6770_vm7 = vmor %vm6768_vm5, %vm6769_vm4  ;;  %vm6778_vm15 = vweird.f32 %v6761_v33 }
0x1716   : > { %v6764_v41 = vmul.f32 %v10217_v15, %v6763_v62 }
0x1718   : > { %v6765_v40 = vmul.f32 0.5, %v6764_v41 }
0x171a   : > { %v6766_v4 = vsub.f32 1.5, %v6765_v40 }
0x171b   : > { %v10219_v35 = vpop.eup %10218 }
0x171c   : > { %v6767_v23 = vmul.f32 %v10217_v15, %v6766_v4  ;;  %v6773_v5 = vmul.f32 %v10219_v35, %v6761_v33  ;;  %vm6779_vm13 = vweird.f32 %v10219_v35 }
0x171d   : > { %vm6780_vm11 = vmor %vm6778_vm15, %vm6779_vm13 }
0x171e   : > { %v6774_v34 = vmul.f32 %v10219_v35, %v6773_v5  ;;  %v6771_v47 = vsel %vm6770_vm7, %v10217_v15, %v6767_v23 }
0x171f   : > { %v6782_v32 = vmul.f32 %v6771_v47, %v12379_v56  ;;  %v12448_v56 = vld [vmem:[%s13432_s26 + $0x8] sm:$0xff] }
0x1720   : > { %v6775_v25 = vmul.f32 0.5, %v6774_v34  ;;  %v6818_v8 = vperm.slane %v12448_v56, 3  ;;  %v6815_v50 = vperm.slane %v12448_v56, 0  ;;  %v6816_v14 = vperm.slane %v12448_v56, 1 }
0x1721   : > { %v6787_v44 = vmul.f32 %v10105_v30, %v6782_v32 }
0x1722   : > { %v6776_v11 = vsub.f32 1.5, %v6775_v25 }
0x1723   : > { %v12433_v18 = vadd.f32 %v10106_v28, %v6787_v44 }
0x1724   : > { %v6777_v55 = vmul.f32 %v10219_v35, %v6776_v11 }
0x1726   : > { %v6781_v39 = vsel %vm6780_vm11, %v10219_v35, %v6777_v55 }
0x1727   : > { %v6783_v31 = vmul.f32 %v6781_v39, %v12385_v63  ;;  %v6817_v63 = vperm.slane %v12448_v56, 2 }
0x1729   : > { %v6788_v54 = vmul.f32 %v10105_v30, %v6783_v31 }
0x172b   : > { %v12435_v26 = vadd.f32 %v10106_v28, %v6788_v54 }
0x172d   : > { %v6811_v13 = vpack.c.bf16 %v12435_v26, %v12433_v18 }
0x172f   : > { %9172 = vmatmul.msk.bf16.vlgmr.msrb.gmra.mxu2 %vm977_vm3, %v6811_v13  ;;  %9173 = vmatmul.msk.bf16.vlgmr.msrb.gmra.mxu3 %vm977_vm3, %v6811_v13 }
0x1730   : > { %9174 = vmatmul.msk.bf16.vlgmr.msrb.gmra.mxu0 %vm977_vm3, %v6811_v13  ;;  %9175 = vmatmul.msk.bf16.vlgmr.msrb.gmra.mxu1 %vm977_vm3, %v6811_v13 }
0x173f   : > { %9176 = vmatmul.msk.bf16.vlgmr.msra.gmra.mxu2 %vm977_vm3, %v6811_v13  ;;  %9177 = vmatmul.msk.bf16.vlgmr.msra.gmra.mxu3 %vm977_vm3, %v6811_v13 }
0x1740   : > { %9178 = vmatmul.msk.bf16.vlgmr.msra.gmra.mxu0 %vm977_vm3, %v6811_v13  ;;  %9179 = vmatmul.msk.bf16.vlgmr.msra.gmra.mxu1 %vm977_vm3, %v6811_v13 }
0x17ad   : > { %v6951_v48 = vpop.f32.mrf.mxu0  ;;  %v6965_v21 = vpop.f32.mrf.mxu1 }
0x17ae   : > { %v12452_v60 = vadd.f32 %v6951_v48, %v6817_v63  ;;  %v12456_v22 = vadd.f32 %v6965_v21, %v6818_v8 }
0x17b0   : > { %v12461_v42 = vmul.f32 0.70710677, %v12452_v60  ;;  %v12464_v3 = vmul.f32 0.70710677, %v12456_v22 }
0x17b2   : > { %v7138_v20 = vmul.f32 %v12461_v42, %v12461_v42  ;;  %v7178_v17 = vmul.f32 %v12464_v3, %v12464_v3  ;;  %v6923_v19 = vpop.f32.mrf.mxu2  ;;  %v6937_v7 = vpop.f32.mrf.mxu3 }
0x17b3   : > { %v12472_v37 = vadd.f32 %v6923_v19, %v6815_v50  ;;  %v12476_v59 = vadd.f32 %v6937_v7, %v6816_v14 }
0x17b4   : > { %v12478_v46 = vmin.f32 %v7138_v20, 16.0  ;;  %v12480_v49 = vmin.f32 %v7178_v17, 16.0 }
0x17b5   : > { %v12483_v9 = vmul.f32 0.70710677, %v12472_v37  ;;  %v12486_v12 = vmul.f32 0.70710677, %v12476_v59  ;;  %v6953_v35 = vpop.f32.mrf.mxu0 }
0x17b6   : > { %v7140_v43 = vmul.f32 2.1237322e-06, %v12478_v46  ;;  %v7151_v2 = vmul.f32 3.8918573e-05, %v12478_v46  ;;  %v7191_v29 = vmul.f32 3.8918573e-05, %v12480_v49  ;;  %v12511_v30 = vadd.f32 %v6953_v35, %v6817_v63 }
0x17b7   : > { %v7058_v51 = vmul.f32 %v12483_v9, %v12483_v9  ;;  %v7098_v16 = vmul.f32 %v12486_v12, %v12486_v12  ;;  %v7180_v15 = vmul.f32 2.1237322e-06, %v12480_v49 }
0x17b8   : > { %v7152_v24 = vadd.f32 0.001143296, %v7151_v2  ;;  %v7192_v33 = vadd.f32 0.001143296, %v7191_v29  ;;  %v7141_v10 = vadd.f32 0.00028619796, %v7140_v43 }
0x17b9   : > { %v12496_v57 = vmin.f32 %v7058_v51, 16.0  ;;  %v12501_v53 = vmin.f32 %v7098_v16, 16.0  ;;  %v7181_v52 = vadd.f32 0.00028619796, %v7180_v15  ;;  %v12519_v20 = vmul.f32 0.70710677, %v12511_v30 }
0x17ba   : > { %v7153_v61 = vmul.f32 %v7152_v24, %v12478_v46  ;;  %v7193_v62 = vmul.f32 %v7192_v33, %v12480_v49  ;;  %v7142_v1 = vmul.f32 %v7141_v10, %v12478_v46 }
0x17bb   : > { %v7071_v45 = vmul.f32 3.8918573e-05, %v12496_v57  ;;  %v7060_v38 = vmul.f32 2.1237322e-06, %v12496_v57  ;;  %v7111_v4 = vmul.f32 3.8918573e-05, %v12501_v53  ;;  %v7182_v5 = vmul.f32 %v7181_v52, %v12480_v49 }
0x17bc   : > { %v7154_v27 = vadd.f32 0.014752088, %v7153_v61  ;;  %v7194_v6 = vadd.f32 0.014752088, %v7193_v62  ;;  %v7143_v25 = vadd.f32 0.0036580483, %v7142_v1  ;;  %v7458_v24 = vmul.f32 %v12519_v20, %v12519_v20 }
0x17bd   : > { %v7072_v58 = vadd.f32 0.001143296, %v7071_v45  ;;  %v7061_v55 = vadd.f32 0.00028619796, %v7060_v38  ;;  %v7112_v28 = vadd.f32 0.001143296, %v7111_v4  ;;  %v6967_v45 = vpop.f32.mrf.mxu1 }
0x17be   : > { %v7155_v0 = vmul.f32 %v7154_v27, %v12478_v46  ;;  %v7195_v41 = vmul.f32 %v7194_v6, %v12480_v49  ;;  %v7183_v31 = vadd.f32 0.0036580483, %v7182_v5  ;;  %v7100_v13 = vmul.f32 2.1237322e-06, %v12501_v53 }
0x17bf   : > { %v7073_v40 = vmul.f32 %v7072_v58, %v12496_v57  ;;  %v7113_v48 = vmul.f32 %v7112_v28, %v12501_v53  ;;  %v7144_v21 = vmul.f32 %v7143_v25, %v12478_v46  ;;  %v7062_v19 = vmul.f32 %v7061_v55, %v12496_v57 }
0x17c0   : > { %v7156_v23 = vadd.f32 0.112945676, %v7155_v0  ;;  %v7196_v34 = vadd.f32 0.112945676, %v7195_v41  ;;  %v7184_v43 = vmul.f32 %v7183_v31, %v12480_v49  ;;  %v7101_v29 = vadd.f32 0.00028619796, %v7100_v13 }
0x17c1   : > { %v7074_v47 = vadd.f32 0.014752088, %v7073_v40  ;;  %v7114_v7 = vadd.f32 0.014752088, %v7113_v48  ;;  %v7145_v51 = vadd.f32 0.05243302, %v7144_v21  ;;  %v12541_v41 = vadd.f32 %v6967_v45, %v6818_v8 }
0x17c2   : > { %v7157_v11 = vmul.f32 %v7156_v23, %v12478_v46  ;;  %v7197_v32 = vmul.f32 %v7196_v34, %v12480_v49  ;;  %v7063_v10 = vadd.f32 0.0036580483, %v7062_v19  ;;  %v7185_v61 = vadd.f32 0.05243302, %v7184_v43  ;;  %v6925_v34 = vpop.f32.mrf.mxu2 }
0x17c3   : > { %v7075_v39 = vmul.f32 %v7074_v47, %v12496_v57  ;;  %v7115_v16 = vmul.f32 %v7114_v7, %v12501_v53  ;;  %v7102_v27 = vmul.f32 %v7101_v29, %v12501_v53  ;;  %v7146_v52 = vmul.f32 %v7145_v51, %v12478_v46 }
0x17c4   : > { %v7158_v44 = vadd.f32 0.4994258, %v7157_v11  ;;  %v7198_v17 = vadd.f32 0.4994258, %v7197_v32  ;;  %v12533_v58 = vmin.f32 %v7458_v24, 16.0  ;;  %v7064_v0 = vmul.f32 %v7063_v10, %v12496_v57 }
0x17c5   : > { %v7076_v54 = vadd.f32 0.112945676, %v7075_v39  ;;  %v7116_v6 = vadd.f32 0.112945676, %v7115_v16  ;;  %v7186_v38 = vmul.f32 %v7185_v61, %v12480_v49  ;;  %v7103_v4 = vadd.f32 0.0036580483, %v7102_v27 }
0x17c6   : > { %v7159_v63 = vmul.f32 %v7158_v44, %v12478_v46  ;;  %v7199_v33 = vmul.f32 %v7198_v17, %v12480_v49  ;;  %v7471_v35 = vmul.f32 3.8918573e-05, %v12533_v58  ;;  %v7147_v23 = vadd.f32 0.18741608, %v7146_v52 }
0x17c7   : > { %v7077_v2 = vmul.f32 %v7076_v54, %v12496_v57  ;;  %v7117_v5 = vmul.f32 %v7116_v6, %v12501_v53  ;;  %v7065_v47 = vadd.f32 0.05243302, %v7064_v0  ;;  %v12549_v25 = vmul.f32 0.70710677, %v12541_v41 }
0x17c8   : > { %v12528_v15 = vadd.f32 1.0, %v7159_v63  ;;  %v12536_v1 = vadd.f32 1.0, %v7199_v33  ;;  %v7187_v11 = vadd.f32 0.18741608, %v7186_v38  ;;  %v7104_v55 = vmul.f32 %v7103_v4, %v12501_v53 }
0x17c9   : > { %v7078_v62 = vadd.f32 0.4994258, %v7077_v2  ;;  %v7472_v39 = vadd.f32 0.001143296, %v7471_v35  ;;  %v12558_v28 = vadd.f32 %v6925_v34, %v6815_v50  ;;  %v7148_v44 = vmul.f32 %v7147_v23, %v12478_v46 }
0x17ca   : > { %10220 = vrcp.f32 %v12528_v15  ;;  %v7118_v31 = vadd.f32 0.4994258, %v7117_v5  ;;  %v7066_v54 = vmul.f32 %v7065_v47, %v12496_v57  ;;  %v7498_v13 = vmul.f32 %v12549_v25, %v12549_v25 }
0x17cb   : > { %v7079_v40 = vmul.f32 %v7078_v62, %v12496_v57  ;;  %10222 = vrcp.f32 %v12536_v1  ;;  %v7188_v21 = vmul.f32 %v7187_v11, %v12480_v49  ;;  %v7473_v63 = vmul.f32 %v7472_v39, %v12533_v58 }
0x17cc   : > { %v7105_v50 = vadd.f32 0.05243302, %v7104_v55  ;;  %v7460_v46 = vmul.f32 2.1237322e-06, %v12533_v58  ;;  %v12573_v19 = vmul.f32 0.70710677, %v12558_v28  ;;  %v7119_v49 = vmul.f32 %v7118_v31, %v12501_v53 }
0x17cd   : > { %v12551_v8 = vadd.f32 1.0, %v7079_v40  ;;  %v12576_v7 = vmul.f32 0.5, %v12452_v60  ;;  %v7149_v43 = vadd.f32 1.1283791, %v7148_v44  ;;  %v12579_v2 = vmul.f32 0.5, %v12456_v22 }
0x17ce   : > { %v12583_v29 = vmul.f32 0.5, %v12472_v37  ;;  %v7067_v51 = vadd.f32 0.18741608, %v7066_v54  ;;  %v12586_v16 = vmul.f32 0.5, %v12476_v59  ;;  %v12588_v24 = vmin.f32 %v7498_v13, 16.0 }
0x17cf   : > { %10224 = vrcp.f32 %v12551_v8  ;;  %v7189_v10 = vadd.f32 1.1283791, %v7188_v21  ;;  %v7474_v61 = vadd.f32 0.014752088, %v7473_v63  ;;  %v7106_v22 = vmul.f32 %v7105_v50, %v12501_v53 }
0x17d0   : > { %v12553_v32 = vpop.eup %10220  ;;  %v12594_v62 = vmul.f32 0.5, %v12511_v30  ;;  %v7461_v45 = vadd.f32 0.00028619796, %v7460_v46  ;;  %v7378_v37 = vmul.f32 %v12573_v19, %v12573_v19  ;;  %v12601_v59 = vmul.f32 %v7149_v43, %v12461_v42 }
0x17d1   : > { %v7162_v48 = vmul.f32 %v12553_v32, %v12528_v15  ;;  %v12569_v17 = vpop.eup %10222  ;;  %v7172_v52 = vand.u32 2147483648, %v12528_v15  ;;  %v12604_v6 = vadd.f32 1.0, %v7119_v49  ;;  %v7475_v0 = vmul.f32 %v7474_v61, %v12533_v58  ;;  %v9735_v61 = vld [vmem:[%s13433_s1 + $0x2b8] sm:$0xff] }
0x17d2   : > { %v7202_v60 = vmul.f32 %v12569_v17, %v12536_v1  ;;  %vm7166_vm14 = vweird.f32 %v12528_v15  ;;  %v7170_v30 = vand.u32 2147483647, %v12528_v15  ;;  %v7212_v38 = vand.u32 2147483648, %v12536_v1  ;;  %8284 = vmatpush.bf16.msrb.mxu0 %v9735_v61 }
0x17d3   : > { %v7163_v33 = vsub.f32 1.0, %v7162_v48  ;;  %v7068_v40 = vmul.f32 %v7067_v51, %v12496_v57  ;;  %v7511_v4 = vmul.f32 3.8918573e-05, %v12588_v24  ;;  %v12614_v42 = vmul.f32 %v7189_v10, %v12464_v3 }
0x17d4   : > { %v7203_v23 = vsub.f32 1.0, %v7202_v60  ;;  %v12616_v5 = vmin.f32 %v7378_v37, 16.0  ;;  %v7210_v34 = vand.u32 2147483647, %v12536_v1  ;;  %v7462_v11 = vmul.f32 %v7461_v45, %v12533_v58 }
0x17d5   : > { %v12598_v27 = vpop.eup %10224  ;;  %v7164_v35 = vmul.f32 %v12553_v32, %v7163_v33  ;;  %v7476_v55 = vadd.f32 0.112945676, %v7475_v0  ;;  %v7173_v39 = vor.u32 1.1754944e-38, %v7172_v52  ;;  %v7107_v57 = vadd.f32 0.18741608, %v7106_v22  ;;  %v9743_v22 = vld [vmem:[%s13433_s1 + $0x2f8] sm:$0xff] }
0x17d6   : > { %v7082_v47 = vmul.f32 %v12598_v27, %v12551_v8  ;;  %10226 = vrcp.f32 %v12604_v6  ;;  %v7500_v44 = vmul.f32 2.1237322e-06, %v12588_v24  ;;  %v12624_v31 = vor.u32 1.1754944e-38, %v7212_v38  ;;  %v6939_v38 = vpop.f32.mrf.mxu3  ;;  %8298 = vmatpush.bf16.msrb.mxu1 %v9743_v22 }
0x17d7   : > { %v7069_v3 = vadd.f32 1.1283791, %v7068_v40  ;;  %v7477_v54 = vmul.f32 %v7476_v55, %v12533_v58  ;;  %v7512_v13 = vadd.f32 0.001143296, %v7511_v4  ;;  %v7165_v48 = vadd.f32 %v12553_v32, %v7164_v35 }
0x17d8   : > { %vm7167_vm12 = vweird.f32 %v12553_v32  ;;  %vm12629_vm8 = vcmp.eq.f32.partialorder %v7170_v30, 8.507059e+37  ;;  %v7204_v63 = vmul.f32 %v12569_v17, %v7203_v23  ;;  %v7391_v50 = vmul.f32 3.8918573e-05, %v12616_v5 }
0x17d9   : > { %v7083_v46 = vsub.f32 1.0, %v7082_v47  ;;  %v7463_v43 = vadd.f32 0.0036580483, %v7462_v11  ;;  %v7478_v49 = vadd.f32 0.4994258, %v7477_v54  ;;  %v7513_v51 = vmul.f32 %v7512_v13, %v12588_v24  ;;  %vm12653_vm10 = vmor %vm7166_vm14, %vm7167_vm12 }
0x17da   : > { %vm7206_vm1 = vweird.f32 %v12536_v1  ;;  %v7108_v33 = vmul.f32 %v7107_v57, %v12501_v53  ;;  %v7501_v10 = vadd.f32 0.00028619796, %v7500_v44  ;;  %v7392_v60 = vadd.f32 0.001143296, %v7391_v50 }
0x17db   : > { %v12641_v45 = vmul.f32 %v7069_v3, %v12483_v9  ;;  %v7479_v37 = vmul.f32 %v7478_v49, %v12533_v58  ;;  %v12645_v52 = vmul.f32 0.5, %v12541_v41  ;;  %v7514_v0 = vadd.f32 0.014752088, %v7513_v51 }
0x17dc   : > { %v12647_v30 = vpop.eup %10226  ;;  %vm7207_vm0 = vweird.f32 %v12569_v17  ;;  %vm7086_vm2 = vweird.f32 %v12551_v8  ;;  %v7380_v9 = vmul.f32 2.1237322e-06, %v12616_v5  ;;  %v7393_v41 = vmul.f32 %v7392_v60, %v12616_v5 }
0x17dd   : > { %v7169_v40 = vsel %vm12653_vm10, %v12553_v32, %v7165_v48  ;;  %v7205_v15 = vadd.f32 %v12569_v17, %v7204_v63  ;;  %vm12665_vm4 = vcmp.eq.f32.partialorder %v7210_v34, 8.507059e+37  ;;  %v12669_v35 = vadd.f32 1.0, %v7479_v37  ;;  %vm12687_vm5 = vmor %vm7206_vm1, %vm7207_vm0 }
0x17de   : > { %v7515_v23 = vmul.f32 %v7514_v0, %v12588_v24  ;;  %v7084_v47 = vmul.f32 %v12598_v27, %v7083_v46  ;;  %v7464_v11 = vmul.f32 %v7463_v43, %v12533_v58  ;;  %v7502_v55 = vmul.f32 %v7501_v10, %v12588_v24 }
0x17df   : > { %v7394_v57 = vadd.f32 0.014752088, %v7393_v41  ;;  %v7090_v44 = vand.u32 2147483647, %v12551_v8  ;;  %v7092_v32 = vand.u32 2147483648, %v12551_v8  ;;  %v7122_v34 = vmul.f32 %v12647_v30, %v12604_v6 }
0x17e0   : > { %v12681_v3 = vadd.f32 %v6939_v38, %v6816_v14  ;;  %vm7087_vm7 = vweird.f32 %v12598_v27  ;;  %v7109_v13 = vadd.f32 1.1283791, %v7108_v33  ;;  %v7516_v48 = vadd.f32 0.112945676, %v7515_v23  ;;  %v7007_v33 = vpop.f32.mrf.mxu0 }
0x17e1   : > { %v7381_v63 = vadd.f32 0.00028619796, %v7380_v9  ;;  %v7174_v50 = vsel %vm12629_vm8, %v7173_v39, %v7169_v40  ;;  %v7209_v14 = vsel %vm12687_vm5, %v12569_v17, %v7205_v15  ;;  %10228 = vrcp.f32 %v12669_v35  ;;  %vm12718_vm15 = vmor %vm7086_vm2, %vm7087_vm7 }
0x17e2   : > { %v7395_v1 = vmul.f32 %v7394_v57, %v12616_v5  ;;  %v7085_v46 = vadd.f32 %v12598_v27, %v7084_v47  ;;  %v7465_v43 = vadd.f32 0.05243302, %v7464_v11  ;;  %v7503_v49 = vadd.f32 0.0036580483, %v7502_v55 }
0x17e3   : > { %v7517_v51 = vmul.f32 %v7516_v48, %v12588_v24  ;;  %v7123_v10 = vsub.f32 1.0, %v7122_v34  ;;  %v12702_v21 = vmul.f32 0.70710677, %v12681_v3  ;;  %v6821_v39 = vperm.slane %v12448_v56, 6  ;;  %v7021_v48 = vpop.f32.mrf.mxu1 }
0x17e4   : > { %v7396_v60 = vadd.f32 0.112945676, %v7395_v1  ;;  %vm12705_vm13 = vcmp.eq.f32.partialorder %v7090_v44, 8.507059e+37  ;;  %v7093_v61 = vor.u32 1.1754944e-38, %v7092_v32  ;;  %v12710_v22 = vmul.f32 %v7109_v13, %v12486_v12 }
0x17e5   : > { %v7382_v37 = vmul.f32 %v7381_v63, %v12616_v5  ;;  %v7175_v0 = vmul.f32 %v7174_v50, %v12601_v59  ;;  %v12723_v9 = vmul.f32 0.5, %v12558_v28  ;;  %v7418_v41 = vmul.f32 %v12702_v21, %v12702_v21 }
0x17e6   : > { %v12729_v12 = vadd.f32 %v7007_v33, %v6821_v39  ;;  %v7214_v59 = vsel %vm12665_vm4, %v12624_v31, %v7209_v14  ;;  %v7089_v8 = vsel %vm12718_vm15, %v12598_v27, %v7085_v46  ;;  %v7466_v38 = vmul.f32 %v7465_v43, %v12533_v58 }
0x17e7   : > { %v7518_v40 = vadd.f32 0.4994258, %v7517_v51  ;;  %v12738_v28 = vpop.eup %10228  ;;  %v7124_v15 = vmul.f32 %v12647_v30, %v7123_v10  ;;  %v7504_v23 = vmul.f32 %v7503_v49, %v12588_v24  ;;  %v7397_v47 = vmul.f32 %v7396_v60, %v12616_v5 }
0x17e8   : > { %v12743_v11 = vmin.f32 %v7418_v41, 16.0  ;;  %vm7126_vm11 = vweird.f32 %v12604_v6  ;;  %v7130_v31 = vand.u32 2147483647, %v12604_v6  ;;  %v7383_v4 = vadd.f32 0.0036580483, %v7382_v37 }
0x17e9   : > { %v12748_v27 = vmul.f32 0.70710677, %v12729_v12  ;;  %v9182_v55 = vclamps-f32 %v7175_v0, 1.0  ;;  %v7215_v57 = vmul.f32 %v7214_v59, %v12614_v42  ;;  %v6822_v32 = vperm.slane %v12448_v56, 7 }
0x17ea   : > { %v7431_v44 = vmul.f32 3.8918573e-05, %v12743_v11  ;;  %v7094_v34 = vsel %vm12705_vm13, %v7093_v61, %v7089_v8  ;;  %vm7127_vm14 = vweird.f32 %v12647_v30  ;;  %v7482_v54 = vmul.f32 %v12738_v28, %v12669_v35 }
0x17eb   : > { %v7519_v13 = vmul.f32 %v7518_v40, %v12588_v24  ;;  %v7125_v63 = vadd.f32 %v12647_v30, %v7124_v15  ;;  %v7467_v50 = vadd.f32 0.18741608, %v7466_v38  ;;  %v7505_v14 = vadd.f32 0.05243302, %v7504_v23  ;;  %vm12780_vm8 = vmor %vm7126_vm11, %vm7127_vm14 }
0x17ec   : > { %v7398_v42 = vadd.f32 0.4994258, %v7397_v47  ;;  %v7384_v1 = vmul.f32 %v7383_v4, %v12616_v5  ;;  %v7420_v46 = vmul.f32 2.1237322e-06, %v12743_v11  ;;  %v7432_v43 = vadd.f32 0.001143296, %v7431_v44 }
0x17ed   : > { %v7298_v49 = vmul.f32 %v12748_v27, %v12748_v27  ;;  %v7095_v51 = vmul.f32 %v7094_v34, %v12641_v45  ;;  %vm12765_vm12 = vcmp.eq.f32.partialorder %v7130_v31, 8.507059e+37  ;;  %v7132_v10 = vand.u32 2147483648, %v12604_v6 }
0x17ee   : > { %v12772_v60 = vadd.f32 %v7021_v48, %v6822_v32  ;;  %v7700_v17 = vadd.f32 1.0, %v9182_v55  ;;  %v9183_v61 = vclamps-f32 %v7215_v57, 1.0  ;;  %v7483_v37 = vsub.f32 1.0, %v7482_v54 }
0x17ef   : > { %v12774_v0 = vadd.f32 1.0, %v7519_v13  ;;  %v7468_v53 = vmul.f32 %v7467_v50, %v12533_v58  ;;  %v7399_v41 = vmul.f32 %v7398_v42, %v12616_v5  ;;  %v7433_v59 = vmul.f32 %v7432_v43, %v12743_v11 }
0x17f0   : > { %v12787_v8 = vmin.f32 %v7298_v49, 16.0  ;;  %v7129_v38 = vsel %vm12780_vm8, %v12647_v30, %v7125_v63  ;;  %v7506_v40 = vmul.f32 %v7505_v14, %v12588_v24  ;;  %v7385_v15 = vadd.f32 0.05243302, %v7384_v1 }
0x17f1   : > { %v7421_v6 = vadd.f32 0.00028619796, %v7420_v46  ;;  %v9180_v23 = vclamps-f32 %v7095_v51, 1.0  ;;  %v7133_v47 = vor.u32 1.1754944e-38, %v7132_v10  ;;  %v7434_v31 = vadd.f32 0.014752088, %v7433_v59 }
0x17f2   : > { %v12794_v4 = vmul.f32 0.70710677, %v12772_v60  ;;  %v7701_v58 = vadd.f32 1.0, %v9183_v61  ;;  %v7484_v55 = vmul.f32 %v12738_v28, %v7483_v37  ;;  %10230 = vrcp.f32 %v12774_v0 }
0x17f3   : > { %v7311_v57 = vmul.f32 3.8918573e-05, %v12787_v8  ;;  %v12800_v44 = vmul.f32 %v7700_v17, %v12576_v7  ;;  %v7134_v30 = vsel %vm12765_vm12, %v7133_v47, %v7129_v38  ;;  %v12804_v34 = vadd.f32 1.0, %v7399_v41 }
0x17f4   : > { %v7435_v54 = vmul.f32 %v7434_v31, %v12743_v11  ;;  %v7469_v13 = vadd.f32 1.1283791, %v7468_v53  ;;  %v7507_v48 = vadd.f32 0.18741608, %v7506_v40  ;;  %v7386_v63 = vmul.f32 %v7385_v15, %v12616_v5 }
0x17f5   : > { %v7422_v50 = vmul.f32 %v7421_v6, %v12743_v11  ;;  %v7698_v14 = vadd.f32 1.0, %v9180_v23  ;;  %v7312_v1 = vadd.f32 0.001143296, %v7311_v57  ;;  %v7338_v7 = vmul.f32 %v12794_v4, %v12794_v4 }
0x17f6   : > { %v7436_v42 = vadd.f32 0.112945676, %v7435_v54  ;;  %v7135_v46 = vmul.f32 %v7134_v30, %v12710_v22  ;;  %v7485_v43 = vadd.f32 %v12738_v28, %v7484_v55  ;;  %vm7486_vm1 = vweird.f32 %v12669_v35 }
0x17f7   : > { %vm7487_vm10 = vweird.f32 %v12738_v28  ;;  %v7490_v49 = vand.u32 2147483647, %v12669_v35  ;;  %10232 = vrcp.f32 %v12804_v34  ;;  %v7313_v33 = vmul.f32 %v7312_v1, %v12787_v8 }
0x17f8   : > { %v7437_v51 = vmul.f32 %v7436_v42, %v12743_v11  ;;  %v12819_v10 = vpop.eup %10230  ;;  %v7492_v17 = vand.u32 2147483648, %v12669_v35  ;;  %v7508_v22 = vmul.f32 %v7507_v48, %v12588_v24  ;;  %v7387_v61 = vadd.f32 0.18741608, %v7386_v63  ;;  %vm12826_vm0 = vmor %vm7486_vm1, %vm7487_vm10 }
0x17f9   : > { %v7423_v37 = vadd.f32 0.0036580483, %v7422_v50  ;;  %v12824_v45 = vmul.f32 %v7701_v58, %v12579_v2  ;;  %v7314_v59 = vadd.f32 0.014752088, %v7313_v33  ;;  %v12830_v38 = vmin.f32 %v7338_v7, 16.0 }
0x17fa   : > { %v7438_v41 = vadd.f32 0.4994258, %v7437_v51  ;;  %v12833_v40 = vmul.f32 %v7698_v14, %v12583_v29  ;;  %v9181_v15 = vclamps-f32 %v7135_v46, 1.0  ;;  %v7470_v35 = vmul.f32 %v7469_v13, %v12519_v20  ;;  %v6979_v46 = vpop.f32.mrf.mxu2 }
0x17fb   : > { %v7489_v24 = vsel %vm12826_vm0, %v12738_v28, %v7485_v43  ;;  %v7522_v2 = vmul.f32 %v12819_v10, %v12774_v0  ;;  %v7300_v23 = vmul.f32 2.1237322e-06, %v12787_v8  ;;  %v7315_v47 = vmul.f32 %v7314_v59, %v12787_v8 }
0x17fc   : > { %v7439_v6 = vmul.f32 %v7438_v41, %v12743_v11  ;;  %vm7491_vm2 = vcmp.eq.f32.partialorder %v7490_v49, 8.507059e+37  ;;  %v7493_v31 = vor.u32 1.1754944e-38, %v7492_v17  ;;  %v7509_v29 = vadd.f32 1.1283791, %v7508_v22 }
0x17fd   : > { %v12845_v58 = vmul.f32 0.5, %v12681_v3  ;;  %v12847_v20 = vpop.eup %10232  ;;  %v7388_v55 = vmul.f32 %v7387_v61, %v12616_v5  ;;  %v7424_v28 = vmul.f32 %v7423_v37, %v12743_v11  ;;  %v7351_v30 = vmul.f32 3.8918573e-05, %v12830_v38 }
0x17fe   : > { %v12851_v57 = vadd.f32 1.0, %v7439_v6  ;;  %v12854_v54 = vadd.f32 1.0, %v9181_v15  ;;  %v7494_v13 = vsel %vm7491_vm2, %v7493_v31, %v7489_v24  ;;  %v7532_v48 = vand.u32 2147483648, %v12774_v0 }
0x17ff   : > { %v7316_v63 = vadd.f32 0.112945676, %v7315_v47  ;;  %v7523_v50 = vsub.f32 1.0, %v7522_v2  ;;  %v7301_v3 = vadd.f32 0.00028619796, %v7300_v23  ;;  %v6819_v14 = vperm.slane %v12448_v56, 4 }
0x1800   : > { %10234 = vrcp.f32 %v12851_v57  ;;  %v7530_v5 = vand.u32 2147483647, %v12774_v0  ;;  %v7402_v42 = vmul.f32 %v12847_v20, %v12804_v34  ;;  %v7340_v7 = vmul.f32 2.1237322e-06, %v12830_v38 }
0x1801   : > { %v7317_v1 = vmul.f32 %v7316_v63, %v12787_v8  ;;  %v12865_v43 = vmul.f32 %v7509_v29, %v12549_v25  ;;  %v7389_v49 = vadd.f32 1.1283791, %v7388_v55  ;;  %v7425_v51 = vadd.f32 0.05243302, %v7424_v28  ;;  %v6993_v55 = vpop.f32.mrf.mxu3  ;;  %v9734_v28 = vld [vmem:[%s13433_s1 + $0x2b0] sm:$0xff] }
0x1802   : > { %v7352_v33 = vadd.f32 0.001143296, %v7351_v30  ;;  %v7495_v17 = vmul.f32 %v7494_v13, %v7470_v35  ;;  %vm7526_vm4 = vweird.f32 %v12774_v0  ;;  %v12868_v22 = vor.u32 1.1754944e-38, %v7532_v48  ;;  %v9742_v63 = vld [vmem:[%s13433_s1 + $0x2f0] sm:$0xff]  ;;  %8285 = vmatpush.bf16.msrb.mxu0 %v9734_v28 }
0x1803   : > { %v7318_v61 = vadd.f32 0.4994258, %v7317_v1  ;;  %v7524_v37 = vmul.f32 %v12819_v10, %v7523_v50  ;;  %v7302_v53 = vmul.f32 %v7301_v3, %v12787_v8  ;;  %v12875_v25 = vadd.f32 %v6979_v46, %v6819_v14  ;;  %v9719_v1 = vld [vmem:[%s13433_s1 + $0x238] sm:$0xff]  ;;  %8299 = vmatpush.bf16.msrb.mxu1 %v9742_v63 }
0x1804   : > { %v7353_v41 = vmul.f32 %v7352_v33, %v12830_v38  ;;  %v7403_v59 = vsub.f32 1.0, %v7402_v42  ;;  %v7341_v35 = vadd.f32 0.00028619796, %v7340_v7  ;;  %v6820_v24 = vperm.slane %v12448_v56, 5  ;;  %v9727_v7 = vld [vmem:[%s13433_s1 + $0x278] sm:$0xff]  ;;  %8256 = vmatpush.bf16.msrb.mxu2 %v9719_v1 }
0x1805   : > { %v7319_v15 = vmul.f32 %v7318_v61, %v12787_v8  ;;  %vm12881_vm5 = vcmp.eq.f32.partialorder %v7530_v5, 8.507059e+37  ;;  %v12886_v23 = vmul.f32 %v7389_v49, %v12573_v19  ;;  %v7426_v47 = vmul.f32 %v7425_v51, %v12743_v11  ;;  %v7009_v19 = vpop.f32.mrf.mxu0  ;;  %8270 = vmatpush.bf16.msrb.mxu3 %v9727_v7 }
0x1806   : > { %v12879_v2 = vpop.eup %10234  ;;  %v7354_v31 = vadd.f32 0.014752088, %v7353_v41  ;;  %v12890_v29 = vmul.f32 0.70710677, %v12875_v25  ;;  %v9190_v30 = vclamps-f32 %v7495_v17, 1.0  ;;  %vm7527_vm7 = vweird.f32 %v12819_v10  ;;  %v9741_v41 = vld [vmem:[%s13433_s1 + $0x2e8] sm:$0xff] }
0x1807   : > { %v7410_v13 = vand.u32 2147483647, %v12804_v34  ;;  %v7442_v48 = vmul.f32 %v12879_v2, %v12851_v57  ;;  %v7525_v50 = vadd.f32 %v12819_v10, %v7524_v37  ;;  %v7303_v3 = vadd.f32 0.0036580483, %v7302_v53  ;;  %v9733_v53 = vld [vmem:[%s13433_s1 + $0x2a8] sm:$0xff]  ;;  %vm12924_vm15 = vmor %vm7526_vm4, %vm7527_vm7  ;;  %8300 = vmatpush.bf16.msrb.mxu1 %v9741_v41 }
0x1808   : > { %v7355_v5 = vmul.f32 %v7354_v31, %v12830_v38  ;;  %v7218_v42 = vmul.f32 %v12890_v29, %v12890_v29  ;;  %v7404_v46 = vmul.f32 %v12847_v20, %v7403_v59  ;;  %v12905_v49 = vadd.f32 1.0, %v7319_v15  ;;  %8286 = vmatpush.bf16.msrb.mxu0 %v9733_v53 }
0x1809   : > { %v7342_v51 = vmul.f32 %v7341_v35, %v12830_v38  ;;  %v12910_v33 = vadd.f32 %v6993_v55, %v6820_v24  ;;  %vm7406_vm13 = vweird.f32 %v12804_v34  ;;  %v7412_v17 = vand.u32 2147483648, %v12804_v34 }
0x180a   : > { %v7427_v61 = vadd.f32 0.18741608, %v7426_v47  ;;  %v12916_v37 = vadd.f32 %v7009_v19, %v6821_v39  ;;  %v7708_v59 = vadd.f32 1.0, %v9190_v30  ;;  %v7443_v35 = vsub.f32 1.0, %v7442_v48 }
0x180b   : > { %v7356_v31 = vadd.f32 0.112945676, %v7355_v5  ;;  %v12928_v47 = vmin.f32 %v7218_v42, 16.0  ;;  %v7529_v39 = vsel %vm12924_vm15, %v12819_v10, %v7525_v50  ;;  %vm7407_vm11 = vweird.f32 %v12847_v20 }
0x180c   : > { %v7304_v55 = vmul.f32 %v7303_v3, %v12787_v8  ;;  %v12936_v28 = vmul.f32 0.70710677, %v12910_v33  ;;  %v7405_v0 = vadd.f32 %v12847_v20, %v7404_v46  ;;  %10236 = vrcp.f32 %v12905_v49  ;;  %vm12961_vm12 = vmor %vm7406_vm13, %vm7407_vm11 }
0x180d   : > { %v7343_v30 = vadd.f32 0.0036580483, %v7342_v51  ;;  %v7357_v48 = vmul.f32 %v7356_v31, %v12830_v38  ;;  %v7428_v19 = vmul.f32 %v7427_v61, %v12743_v11  ;;  %v7231_v10 = vmul.f32 3.8918573e-05, %v12928_v47 }
0x180e   : > { %v7258_v63 = vmul.f32 %v12936_v28, %v12936_v28  ;;  %v12946_v50 = vmul.f32 0.70710677, %v12916_v37  ;;  %v7534_v3 = vsel %vm12881_vm5, %v12868_v22, %v7529_v39  ;;  %vm12951_vm14 = vcmp.eq.f32.partialorder %v7410_v13, 8.507059e+37 }
0x180f   : > { %v7444_v42 = vmul.f32 %v12879_v2, %v7443_v35  ;;  %v7220_v11 = vmul.f32 2.1237322e-06, %v12928_v47  ;;  %v7413_v7 = vor.u32 1.1754944e-38, %v7412_v17  ;;  %v7358_v46 = vadd.f32 0.4994258, %v7357_v48 }
0x1810   : > { %v7232_v6 = vadd.f32 0.001143296, %v7231_v10  ;;  %v12965_v22 = vmin.f32 %v7258_v63, 16.0  ;;  %v12968_v13 = vmul.f32 %v7708_v59, %v12594_v62  ;;  %v7409_v51 = vsel %vm12961_vm12, %v12847_v20, %v7405_v0 }
0x1811   : > { %v7305_v61 = vadd.f32 0.05243302, %v7304_v55  ;;  %v7344_v53 = vmul.f32 %v7343_v30, %v12830_v38  ;;  %v7535_v34 = vmul.f32 %v7534_v3, %v12865_v43  ;;  %v7429_v41 = vadd.f32 1.1283791, %v7428_v19 }
0x1812   : > { %v7233_v15 = vmul.f32 %v7232_v6, %v12928_v47  ;;  %v7618_v17 = vmul.f32 %v12946_v50, %v12946_v50  ;;  %v12978_v35 = vpop.eup %10236  ;;  %v7445_v62 = vadd.f32 %v12879_v2, %v7444_v42  ;;  %vm7447_vm8 = vweird.f32 %v12879_v2  ;;  %v9718_v42 = vld [vmem:[%s13433_s1 + $0x230] sm:$0xff] }
0x1813   : > { %v7221_v59 = vadd.f32 0.00028619796, %v7220_v11  ;;  %v7271_v20 = vmul.f32 3.8918573e-05, %v12965_v22  ;;  %v7414_v43 = vsel %vm12951_vm14, %v7413_v7, %v7409_v51  ;;  %v7452_v31 = vand.u32 2147483648, %v12851_v57  ;;  %v9726_v11 = vld [vmem:[%s13433_s1 + $0x270] sm:$0xff]  ;;  %8257 = vmatpush.bf16.msrb.mxu2 %v9718_v42 }
0x1814   : > { %v7359_v39 = vmul.f32 %v7358_v46, %v12830_v38  ;;  %v7234_v55 = vadd.f32 0.014752088, %v7233_v15  ;;  %vm7446_vm1 = vweird.f32 %v12851_v57  ;;  %v7450_v0 = vand.u32 2147483647, %v12851_v57  ;;  %8271 = vmatpush.bf16.msrb.mxu3 %v9726_v11 }
0x1815   : > { %v7306_v30 = vmul.f32 %v7305_v61, %v12787_v8  ;;  %v7345_v48 = vadd.f32 0.05243302, %v7344_v53  ;;  %v9191_v19 = vclamps-f32 %v7535_v34, 1.0  ;;  %vm12990_vm10 = vmor %vm7446_vm1, %vm7447_vm8  ;;  %v7322_v63 = vmul.f32 %v12978_v35, %v12905_v49 }
0x1816   : > { %v7235_v3 = vmul.f32 %v7234_v55, %v12928_v47  ;;  %v12997_v5 = vmin.f32 %v7618_v17, 16.0  ;;  %v7449_v57 = vsel %vm12990_vm10, %v12879_v2, %v7445_v62  ;;  %v7222_v1 = vmul.f32 %v7221_v59, %v12928_v47  ;;  %v9732_v17 = vld [vmem:[%s13433_s1 + $0x2a0] sm:$0xff] }
0x1817   : > { %v7260_v7 = vmul.f32 2.1237322e-06, %v12965_v22  ;;  %v7272_v46 = vadd.f32 0.001143296, %v7271_v20  ;;  %v7415_v6 = vmul.f32 %v7414_v43, %v12886_v23  ;;  %v7453_v51 = vor.u32 1.1754944e-38, %v7452_v31  ;;  %v9740_v62 = vld [vmem:[%s13433_s1 + $0x2e0] sm:$0xff]  ;;  %8287 = vmatpush.bf16.msrb.mxu0 %v9732_v17 }
0x1818   : > { %v13007_v61 = vadd.f32 1.0, %v7359_v39  ;;  %v7236_v53 = vadd.f32 0.112945676, %v7235_v3  ;;  %v7430_v34 = vmul.f32 %v7429_v41, %v12702_v21  ;;  %vm7451_vm0 = vcmp.eq.f32.partialorder %v7450_v0, 8.507059e+37  ;;  %v9717_v31 = vld [vmem:[%s13433_s1 + $0x228] sm:$0xff]  ;;  %8301 = vmatpush.bf16.msrb.mxu1 %v9740_v62  ;;  %v9739_v3 = vld [vmem:[%s13433_s1 + $0x2d8] sm:$0xff] }
0x1819   : > { %v7307_v15 = vadd.f32 0.18741608, %v7306_v30  ;;  %v7346_v2 = vmul.f32 %v7345_v48, %v12830_v38  ;;  %v7454_v59 = vsel %vm7451_vm0, %v7453_v51, %v7449_v57  ;;  %v7323_v20 = vsub.f32 1.0, %v7322_v63  ;;  %v9725_v39 = vld [vmem:[%s13433_s1 + $0x268] sm:$0xff]  ;;  %8258 = vmatpush.bf16.msrb.mxu2 %v9717_v31  ;;  %v9731_v63 = vld [vmem:[%s13433_s1 + $0x298] sm:$0xff]  ;;  %v7023_v51 = vpop.f32.mrf.mxu1  ;;  %v9724_v17 = vld [vmem:[%s13433_s1 + $0x260] sm:$0xff] }
0x181a   : > { %v7237_v23 = vmul.f32 %v7236_v53, %v12928_v47  ;;  %v7620_v43 = vmul.f32 2.1237322e-06, %v12997_v5  ;;  %v7223_v55 = vadd.f32 0.0036580483, %v7222_v1  ;;  %v7261_v10 = vadd.f32 0.00028619796, %v7260_v7  ;;  %8272 = vmatpush.bf16.msrb.mxu3 %v9725_v39 }
0x181b   : > { %v7273_v21 = vmul.f32 %v7272_v46, %v12965_v22  ;;  %v7631_v41 = vmul.f32 3.8918573e-05, %v12997_v5  ;;  %v7709_v0 = vadd.f32 1.0, %v9191_v19  ;;  %v9188_v30 = vclamps-f32 %v7415_v6, 1.0  ;;  %v9716_v53 = vld [vmem:[%s13433_s1 + $0x220] sm:$0xff]  ;;  %8288 = vmatpush.bf16.msrb.mxu0 %v9731_v63 }
0x181c   : > { %10238 = vrcp.f32 %v13007_v61  ;;  %v7238_v48 = vadd.f32 0.4994258, %v7237_v23  ;;  %v13024_v42 = vmul.f32 %v12854_v54, %v12586_v16  ;;  %v13027_v11 = vmul.f32 0.5, %v12729_v12  ;;  %8302 = vmatpush.bf16.msrb.mxu1 %v9739_v3  ;;  %v9738_v23 = vld [vmem:[%s13433_s1 + $0x2d0] sm:$0xff] }
0x181d   : > { %v7308_v57 = vmul.f32 %v7307_v15, %v12787_v8  ;;  %v7621_v19 = vadd.f32 0.00028619796, %v7620_v43  ;;  %v7861_v1 = vpack.c.bf16 %v12968_v13, %v12800_v44  ;;  %v7455_v7 = vmul.f32 %v7454_v59, %v7430_v34  ;;  %v6981_v8 = vpop.f32.mrf.mxu2  ;;  %8259 = vmatpush.bf16.msrb.mxu2 %v9716_v53 }
0x181e   : > { %v7347_v46 = vadd.f32 0.18741608, %v7346_v2  ;;  %v7632_v6 = vadd.f32 0.001143296, %v7631_v41  ;;  %v7324_v16 = vmul.f32 %v12978_v35, %v7323_v20  ;;  %v7224_v54 = vmul.f32 %v7223_v55, %v12928_v47  ;;  %8273 = vmatpush.bf16.msrb.mxu3 %v9724_v17  ;;  %v9730_v20 = vld [vmem:[%s13433_s1 + $0x290] sm:$0xff] }
0x181f   : > { %v7262_v12 = vmul.f32 %v7261_v10, %v12965_v22  ;;  %v7274_v62 = vadd.f32 0.014752088, %v7273_v21  ;;  %v13038_v15 = vmul.f32 %v7709_v0, %v12645_v52  ;;  %v7706_v34 = vadd.f32 1.0, %v9188_v30  ;;  %v9715_v0 = vld [vmem:[%s13433_s1 + $0x218] sm:$0xff]  ;;  %8289 = vmatpush.bf16.msrb.mxu0 %v9730_v20 }
0x1820   : > { %v7239_v2 = vmul.f32 %v7238_v48, %v12928_v47  ;;  %v7633_v59 = vmul.f32 %v7632_v6, %v12997_v5  ;;  %v7309_v43 = vadd.f32 1.1283791, %v7308_v57  ;;  %v7332_v31 = vand.u32 2147483648, %v12905_v49  ;;  %v9723_v30 = vld [vmem:[%s13433_s1 + $0x258] sm:$0xff]  ;;  %8303 = vmatpush.bf16.msrb.mxu1 %v9738_v23 }
0x1821   : > { %v7622_v39 = vmul.f32 %v7621_v19, %v12997_v5  ;;  %v13048_v52 = vadd.f32 %v7023_v51, %v6822_v32  ;;  %v9189_v10 = vclamps-f32 %v7455_v7, 1.0  ;;  %vm7327_vm2 = vweird.f32 %v12978_v35  ;;  %8260 = vmatpush.bf16.msrb.mxu2 %v9715_v0  ;;  %v9729_v7 = vld [vmem:[%s13433_s1 + $0x288] sm:$0xff] }
0x1822   : > { %v13050_v55 = vpop.eup %10238  ;;  %v7348_v21 = vmul.f32 %v7347_v46, %v12830_v38  ;;  %v13056_v41 = vadd.f32 %v6981_v8, %v6819_v14  ;;  %v7325_v48 = vadd.f32 %v12978_v35, %v7324_v16  ;;  %v7225_v63 = vadd.f32 0.05243302, %v7224_v54  ;;  %8274 = vmatpush.bf16.msrb.mxu3 %v9723_v30  ;;  %v9737_v46 = vld [vmem:[%s13433_s1 + $0x2c8] sm:$0xff]  ;;  %v9722_v8 = vld [vmem:[%s13433_s1 + $0x250] sm:$0xff] }
0x1823   : > { %v7263_v32 = vadd.f32 0.0036580483, %v7262_v12  ;;  %v7275_v3 = vmul.f32 %v7274_v62, %v12965_v22  ;;  %v7862_v57 = vpack.c.bf16 %v13038_v15, %v12824_v45  ;;  %v13065_v38 = vmul.f32 %v7706_v34, %v12723_v9  ;;  %v9714_v62 = vld [vmem:[%s13433_s1 + $0x210] sm:$0xff]  ;;  %8290 = vmatpush.bf16.msrb.mxu0 %v9729_v7  ;;  %v9713_v7 = vld [vmem:[%s13433_s1 + $0x208] sm:$0xff] }
0x1824   : > { %v13067_v14 = vadd.f32 1.0, %v7239_v2  ;;  %v7634_v19 = vadd.f32 0.014752088, %v7633_v59  ;;  %vm7326_vm4 = vweird.f32 %v12905_v49  ;;  %v7330_v6 = vand.u32 2147483647, %v12905_v49  ;;  %8304 = vmatpush.bf16.msrb.mxu1 %v9737_v46  ;;  %v9721_v46 = vld [vmem:[%s13433_s1 + $0x248] sm:$0xff] }
0x1825   : > { %v7362_v51 = vmul.f32 %v13050_v55, %v13007_v61  ;;  %v7623_v53 = vadd.f32 0.0036580483, %v7622_v39  ;;  %v7707_v17 = vadd.f32 1.0, %v9189_v10  ;;  %vm13077_vm5 = vmor %vm7326_vm4, %vm7327_vm2  ;;  %v7333_v16 = vor.u32 1.1754944e-38, %v7332_v31  ;;  %8261 = vmatpush.bf16.msrb.mxu2 %v9714_v62  ;;  %v9736_v39 = vld [vmem:[%s13433_s1 + $0x2c0] sm:$0xff] }
0x1826   : > { %v7349_v54 = vadd.f32 1.1283791, %v7348_v21  ;;  %v7635_v12 = vmul.f32 %v7634_v19, %v12997_v5  ;;  %v7329_v49 = vsel %vm13077_vm5, %v12978_v35, %v7325_v48  ;;  %v7276_v34 = vadd.f32 0.112945676, %v7275_v3  ;;  %8275 = vmatpush.bf16.msrb.mxu3 %v9722_v8  ;;  %v9728_v35 = vld [vmem:[%s13433_s1 + $0x280] sm:$0xff]  ;;  %v9767_v48 = vld [vmem:[%s13433_s1 + $0x3b8] sm:$0xff] }
0x1827   : > { %v13088_v2 = vmul.f32 0.70710677, %v13048_v52  ;;  %v13091_v59 = vmul.f32 0.70710677, %v13056_v41  ;;  %v7226_v20 = vmul.f32 %v7225_v63, %v12928_v47  ;;  %10240 = vrcp.f32 %v13067_v14  ;;  %v9775_v63 = vld [vmem:[%s13433_s1 + $0x3f8] sm:$0xff]  ;;  %8291 = vmatpush.bf16.msrb.mxu0 %v9728_v35 }
0x1828   : > { %v7264_v23 = vmul.f32 %v7263_v32, %v12965_v22  ;;  %v7636_v31 = vadd.f32 0.112945676, %v7635_v12  ;;  %v7363_v10 = vsub.f32 1.0, %v7362_v51  ;;  %v7624_v21 = vmul.f32 %v7623_v53, %v12997_v5  ;;  %8305 = vmatpush.bf16.msrb.mxu1 %v9736_v39 }
0x1829   : > { %v7658_v0 = vmul.f32 %v13088_v2, %v13088_v2  ;;  %v7538_v30 = vmul.f32 %v13091_v59, %v13091_v59  ;;  %v7859_v32 = vpack.c.bf16 %v13065_v38, %v12833_v40  ;;  %v13108_v3 = vmul.f32 %v7707_v17, %v12845_v58  ;;  %8262 = vmatpush.bf16.msrb.mxu2 %v9713_v7  ;;  %v9749_v40 = vld [vmem:[%s13433_s1 + $0x328] sm:$0xff] }
0x182a   : > { %v7310_v19 = vmul.f32 %v7309_v43, %v12748_v27  ;;  %vm7331_vm7 = vcmp.eq.f32.partialorder %v7330_v6, 8.507059e+37  ;;  %v7370_v53 = vand.u32 2147483647, %v13007_v61  ;;  %v7277_v9 = vmul.f32 %v7276_v34, %v12965_v22  ;;  %8276 = vmatpush.bf16.msrb.mxu3 %v9721_v46  ;;  %v9774_v34 = vld [vmem:[%s13433_s1 + $0x3f0] sm:$0xff]  ;;  %8292 = vmatmul.bf16.vlgmr.msrb.gmra.mxu0 %v7861_v1 }
0x182b   : > { %v7334_v51 = vsel %vm7331_vm7, %v7333_v16, %v7329_v49  ;;  %v7637_v12 = vmul.f32 %v7636_v31, %v12997_v5  ;;  %v7227_v62 = vadd.f32 0.18741608, %v7226_v20  ;;  %v7265_v8 = vadd.f32 0.05243302, %v7264_v23  ;;  %8340 = vmatpush.bf16.msra.mxu0 %v9767_v48  ;;  %v9766_v49 = vld [vmem:[%s13433_s1 + $0x3b0] sm:$0xff]  ;;  %8306 = vmatmul.bf16.vlgmr.msrb.gmra.mxu1 %v7862_v57  ;;  %v6995_v48 = vpop.f32.mrf.mxu3 }
0x182c   : > { %v13116_v58 = vmin.f32 %v7658_v0, 16.0  ;;  %v13118_v17 = vmin.f32 %v7538_v30, 16.0  ;;  %8354 = vmatpush.bf16.msra.mxu1 %v9775_v63  ;;  %v13121_v27 = vmul.f32 %v7349_v54, %v12794_v4  ;;  %v7364_v43 = vmul.f32 %v13050_v55, %v7363_v10  ;;  %v9720_v0 = vld [vmem:[%s13433_s1 + $0x240] sm:$0xff]  ;;  %v9759_v63 = vld [vmem:[%s13433_s1 + $0x378] sm:$0xff] }
0x182d   : > { %v7625_v6 = vadd.f32 0.05243302, %v7624_v21  ;;  %v7638_v16 = vadd.f32 0.4994258, %v7637_v12  ;;  %v13126_v20 = vpop.eup %10240  ;;  %vm7366_vm13 = vweird.f32 %v13007_v61  ;;  %v7335_v54 = vmul.f32 %v7334_v51, %v7310_v19  ;;  %v9712_v21 = vld [vmem:[%s13433_s1 + $0x200] sm:$0xff] }
0x182e   : > { %v7660_v23 = vmul.f32 2.1237322e-06, %v13116_v58  ;;  %v7671_v31 = vmul.f32 3.8918573e-05, %v13116_v58  ;;  %v7540_v4 = vmul.f32 2.1237322e-06, %v13118_v17  ;;  %v7860_v30 = vpack.c.bf16 %v13108_v3, %v13024_v42  ;;  %8263 = vmatpush.bf16.msrb.mxu2 %v9712_v21  ;;  %8277 = vmatpush.bf16.msrb.mxu3 %v9720_v0 }
0x182f   : > { %v7278_v35 = vadd.f32 0.4994258, %v7277_v9  ;;  %v7639_v39 = vmul.f32 %v7638_v16, %v12997_v5  ;;  %v7551_v10 = vmul.f32 3.8918573e-05, %v13118_v17  ;;  %8341 = vmatpush.bf16.msra.mxu0 %v9766_v49  ;;  %v7365_v45 = vadd.f32 %v13050_v55, %v7364_v43  ;;  %v9751_v42 = vld [vmem:[%s13433_s1 + $0x338] sm:$0xff]  ;;  %v9765_v3 = vld [vmem:[%s13433_s1 + $0x3a8] sm:$0xff] }
0x1830   : > { %v7661_v44 = vadd.f32 0.00028619796, %v7660_v23  ;;  %v7672_v13 = vadd.f32 0.001143296, %v7671_v31  ;;  %v7541_v1 = vadd.f32 0.00028619796, %v7540_v4  ;;  %8355 = vmatpush.bf16.msra.mxu1 %v9774_v34  ;;  %vm7367_vm15 = vweird.f32 %v13050_v55 }
0x1831   : > { %v7242_v15 = vmul.f32 %v13126_v20, %v13067_v14  ;;  %v7626_v57 = vmul.f32 %v7625_v6, %v12997_v5  ;;  %v7372_v19 = vand.u32 2147483648, %v13007_v61  ;;  %v13153_v7 = vadd.f32 1.0, %v7639_v39  ;;  %v9773_v9 = vld [vmem:[%s13433_s1 + $0x3e8] sm:$0xff]  ;;  %v9750_v49 = vld [vmem:[%s13433_s1 + $0x330] sm:$0xff]  ;;  %vm13166_vm11 = vmor %vm7366_vm13, %vm7367_vm15  ;;  %8264 = vmatmul.bf16.vlgmr.msrb.gmra.mxu2 %v7859_v32  ;;  %8278 = vmatmul.bf16.vlgmr.msrb.gmra.mxu3 %v7860_v30 }
0x1832   : > { %v7662_v46 = vmul.f32 %v7661_v44, %v13116_v58  ;;  %v7673_v51 = vmul.f32 %v7672_v13, %v13116_v58  ;;  %v9186_v12 = vclamps-f32 %v7335_v54, 1.0  ;;  %v7228_v43 = vmul.f32 %v7227_v62, %v12928_v47  ;;  %8312 = vmatpush.bf16.msra.mxu2 %v9751_v42  ;;  %8326 = vmatpush.bf16.msra.mxu3 %v9759_v63  ;;  %v9758_v34 = vld [vmem:[%s13433_s1 + $0x370] sm:$0xff]  ;;  %v9772_v21 = vld [vmem:[%s13433_s1 + $0x3e0] sm:$0xff]  ;;  %v9757_v61 = vld [vmem:[%s13433_s1 + $0x368] sm:$0xff] }
0x1833   : > { %v7279_v6 = vmul.f32 %v7278_v35, %v12965_v22  ;;  %v7552_v16 = vadd.f32 0.001143296, %v7551_v10  ;;  %v7266_v31 = vmul.f32 %v7265_v8, %v12965_v22  ;;  %10242 = vrcp.f32 %v13153_v7  ;;  %8342 = vmatpush.bf16.msra.mxu0 %v9765_v3  ;;  %v9764_v8 = vld [vmem:[%s13433_s1 + $0x3a0] sm:$0xff]  ;;  %v9771_v42 = vld [vmem:[%s13433_s1 + $0x3d8] sm:$0xff] }
0x1834   : > { %v7542_v47 = vmul.f32 %v7541_v1, %v13118_v17  ;;  %v13175_v62 = vadd.f32 %v6995_v48, %v6820_v24  ;;  %8356 = vmatpush.bf16.msra.mxu1 %v9773_v9  ;;  %v7369_v4 = vsel %vm13166_vm11, %v13050_v55, %v7365_v45  ;;  %v7243_v54 = vsub.f32 1.0, %v7242_v15  ;;  %v9763_v48 = vld [vmem:[%s13433_s1 + $0x398] sm:$0xff] }
0x1835   : > { %v7627_v35 = vadd.f32 0.18741608, %v7626_v57  ;;  %v7674_v39 = vadd.f32 0.014752088, %v7673_v51  ;;  %vm7371_vm14 = vcmp.eq.f32.partialorder %v7370_v53, 8.507059e+37  ;;  %v7373_v56 = vor.u32 1.1754944e-38, %v7372_v19 }
0x1836   : > { %v7663_v24 = vadd.f32 0.0036580483, %v7662_v46  ;;  %v7553_v10 = vmul.f32 %v7552_v16, %v13118_v17  ;;  %v13188_v55 = vadd.f32 1.0, %v9186_v12  ;;  %v13190_v0 = vadd.f32 1.1283791, %v7228_v43  ;;  %8313 = vmatpush.bf16.msra.mxu2 %v9750_v49  ;;  %8327 = vmatpush.bf16.msra.mxu3 %v9758_v34  ;;  %v9748_v12 = vld [vmem:[%s13433_s1 + $0x320] sm:$0xff] }
0x1837   : > { %v13192_v44 = vadd.f32 1.0, %v7279_v6  ;;  %v7675_v13 = vmul.f32 %v7674_v39, %v13116_v58  ;;  %v7374_v38 = vsel %vm7371_vm14, %v7373_v56, %v7369_v4  ;;  %v7543_v32 = vadd.f32 0.0036580483, %v7542_v47  ;;  %8343 = vmatpush.bf16.msra.mxu0 %v9764_v8  ;;  %v9756_v43 = vld [vmem:[%s13433_s1 + $0x360] sm:$0xff]  ;;  %v9762_v4 = vld [vmem:[%s13433_s1 + $0x390] sm:$0xff] }
0x1838   : > { %v7554_v53 = vadd.f32 0.014752088, %v7553_v10  ;;  %v13198_v30 = vmul.f32 0.70710677, %v13175_v62  ;;  %8357 = vmatpush.bf16.msra.mxu1 %v9772_v21  ;;  %v7244_v1 = vmul.f32 %v13126_v20, %v7243_v54  ;;  %v13201_v45 = vadd.f32 0.18741608, %v7266_v31 }
0x1839   : > { %v7628_v15 = vmul.f32 %v7627_v35, %v12997_v5  ;;  %v7676_v57 = vadd.f32 0.112945676, %v7675_v13  ;;  %v13206_v63 = vpop.eup %10242  ;;  %v7252_v3 = vand.u32 2147483648, %v13067_v14  ;;  %v7664_v19 = vmul.f32 %v7663_v24, %v13116_v58  ;;  %v9770_v54 = vld [vmem:[%s13433_s1 + $0x3d0] sm:$0xff]  ;;  %v9747_v13 = vld [vmem:[%s13433_s1 + $0x318] sm:$0xff] }
0x183a   : > { %v7555_v46 = vmul.f32 %v7554_v53, %v13118_v17  ;;  %v7578_v51 = vmul.f32 %v13198_v30, %v13198_v30  ;;  %v13214_v9 = vmul.f32 %v7374_v38, %v13121_v27  ;;  %vm7247_vm12 = vweird.f32 %v13126_v20  ;;  %8314 = vmatpush.bf16.msra.mxu2 %v9749_v40  ;;  %8328 = vmatpush.bf16.msra.mxu3 %v9757_v61  ;;  %v9755_v40 = vld [vmem:[%s13433_s1 + $0x358] sm:$0xff] }
0x183b   : > { %10244 = vrcp.f32 %v13192_v44  ;;  %v7642_v5 = vmul.f32 %v13206_v63, %v13153_v7  ;;  %v7677_v6 = vmul.f32 %v7676_v57, %v13116_v58  ;;  %v7544_v16 = vmul.f32 %v7543_v32, %v13118_v17  ;;  %8344 = vmatpush.bf16.msra.mxu0 %v9763_v48 }
0x183c   : > { %v7556_v49 = vadd.f32 0.112945676, %v7555_v46  ;;  %v13224_v27 = vmin.f32 %v7578_v51, 16.0  ;;  %8358 = vmatpush.bf16.msra.mxu1 %v9771_v42  ;;  %v13227_v34 = vadd.f32 %v13126_v20, %v7244_v1  ;;  %v7629_v23 = vadd.f32 1.1283791, %v7628_v15  ;;  %v9761_v42 = vld [vmem:[%s13433_s1 + $0x388] sm:$0xff] }
0x183d   : > { %v7643_v31 = vsub.f32 1.0, %v7642_v5  ;;  %v7652_v47 = vand.u32 2147483648, %v13153_v7  ;;  %v7665_v35 = vadd.f32 0.05243302, %v7664_v19  ;;  %v7678_v39 = vadd.f32 0.4994258, %v7677_v6 }
0x183e   : > { %v7557_v8 = vmul.f32 %v7556_v49, %v13118_v17  ;;  %v7580_v56 = vmul.f32 2.1237322e-06, %v13224_v27  ;;  %vm7647_vm8 = vweird.f32 %v13206_v63  ;;  %v7650_v10 = vand.u32 2147483647, %v13153_v7  ;;  %8315 = vmatpush.bf16.msra.mxu2 %v9748_v12  ;;  %8329 = vmatpush.bf16.msra.mxu3 %v9756_v43  ;;  %v9769_v19 = vld [vmem:[%s13433_s1 + $0x3c8] sm:$0xff]  ;;  %v9746_v6 = vld [vmem:[%s13433_s1 + $0x310] sm:$0xff] }
0x183f   : > { %v7644_v24 = vmul.f32 %v13206_v63, %v7643_v31  ;;  %v7591_v21 = vmul.f32 3.8918573e-05, %v13224_v27  ;;  %v7679_v61 = vmul.f32 %v7678_v39, %v13116_v58  ;;  %v7545_v38 = vadd.f32 0.05243302, %v7544_v16  ;;  %8345 = vmatpush.bf16.msra.mxu0 %v9762_v4  ;;  %v9754_v16 = vld [vmem:[%s13433_s1 + $0x350] sm:$0xff] }
0x1840   : > { %v7558_v32 = vadd.f32 0.4994258, %v7557_v8  ;;  %v7581_v53 = vadd.f32 0.00028619796, %v7580_v56  ;;  %8359 = vmatpush.bf16.msra.mxu1 %v9770_v54  ;;  %v7630_v15 = vmul.f32 %v7629_v23, %v12946_v50  ;;  %vm7646_vm1 = vweird.f32 %v13153_v7  ;;  %v9760_v54 = vld [vmem:[%s13433_s1 + $0x380] sm:$0xff] }
0x1841   : > { %v13241_v1 = vpop.eup %10244  ;;  %v7645_v57 = vadd.f32 %v13206_v63, %v7644_v24  ;;  %v7592_v48 = vadd.f32 0.001143296, %v7591_v21  ;;  %vm7648_vm10 = vmor %vm7646_vm1, %vm7647_vm8  ;;  %v7653_v46 = vor.u32 1.1754944e-38, %v7652_v47  ;;  %v7666_v51 = vmul.f32 %v7665_v35, %v13116_v58  ;;  %v9768_v35 = vld [vmem:[%s13433_s1 + $0x3c0] sm:$0xff] }
0x1842   : > { %v13251_v5 = vadd.f32 1.0, %v7679_v61  ;;  %v7559_v12 = vmul.f32 %v7558_v32, %v13118_v17  ;;  %vm7651_vm0 = vcmp.eq.f32.partialorder %v7650_v10, 8.507059e+37  ;;  %v7582_v43 = vmul.f32 %v7581_v53, %v13224_v27  ;;  %8316 = vmatpush.bf16.msra.mxu2 %v9747_v13  ;;  %8330 = vmatpush.bf16.msra.mxu3 %v9755_v40  ;;  %v9745_v61 = vld [vmem:[%s13433_s1 + $0x308] sm:$0xff] }
0x1843   : > { %v7649_v50 = vsel %vm7648_vm10, %v13206_v63, %v7645_v57  ;;  %v7593_v7 = vmul.f32 %v7592_v48, %v13224_v27  ;;  %v7282_v49 = vmul.f32 %v13241_v1, %v13192_v44  ;;  %v7546_v31 = vmul.f32 %v7545_v38, %v13118_v17  ;;  %8346 = vmatpush.bf16.msra.mxu0 %v9761_v42  ;;  %v9753_v38 = vld [vmem:[%s13433_s1 + $0x348] sm:$0xff] }
0x1844   : > { %v7654_v23 = vsel %vm7651_vm0, %v7653_v46, %v7649_v50  ;;  %10246 = vrcp.f32 %v13251_v5  ;;  %8360 = vmatpush.bf16.msra.mxu1 %v9769_v19  ;;  %vm7246_vm2 = vweird.f32 %v13067_v14  ;;  %v7250_v63 = vand.u32 2147483647, %v13067_v14 }
0x1845   : > { %v7655_v47 = vmul.f32 %v7654_v23, %v7630_v15  ;;  %v13265_v4 = vadd.f32 1.0, %v7559_v12  ;;  %vm13271_vm4 = vmor %vm7246_vm2, %vm7247_vm12  ;;  %v7253_v8 = vor.u32 1.1754944e-38, %v7252_v3  ;;  %v7040_v56 = vmul.f32 0.5, %v12916_v37 }
0x1846   : > { %v7667_v24 = vadd.f32 0.18741608, %v7666_v51  ;;  %v7594_v10 = vadd.f32 0.014752088, %v7593_v7  ;;  %v7249_v21 = vsel %vm13271_vm4, %v13126_v20, %v13227_v34  ;;  %v7583_v40 = vadd.f32 0.0036580483, %v7582_v43  ;;  %8317 = vmatpush.bf16.msra.mxu2 %v9746_v6  ;;  %8331 = vmatpush.bf16.msra.mxu3 %v9754_v16 }
0x1847   : > { %v9194_v13 = vclamps-f32 %v7655_v47, 1.0  ;;  %10248 = vrcp.f32 %v13265_v4  ;;  %v9187_v14 = vclamps-f32 %v13214_v9, 1.0  ;;  %v7283_v3 = vsub.f32 1.0, %v7282_v49  ;;  %8347 = vmatpush.bf16.msra.mxu0 %v9760_v54 }
0x1848   : > { %v7547_v32 = vadd.f32 0.18741608, %v7546_v31  ;;  %v7595_v37 = vmul.f32 %v7594_v10, %v13224_v27  ;;  %8361 = vmatpush.bf16.msra.mxu1 %v9768_v35  ;;  %v7720_v20 = vmul.f32 %v13188_v55, %v13027_v11  ;;  %v7230_v34 = vmul.f32 %v13190_v0, %v12890_v29  ;;  %v9744_v29 = vld [vmem:[%s13433_s1 + $0x300] sm:$0xff] }
0x1849   : > { %vm7251_vm5 = vcmp.eq.f32.partialorder %v7250_v63, 8.507059e+37  ;;  %v7712_v53 = vadd.f32 1.0, %v9194_v13  ;;  %v13293_v9 = vmul.f32 %v13201_v45, %v12965_v22  ;;  %v7668_v48 = vmul.f32 %v7667_v24, %v13116_v58  ;;  %v9752_v45 = vld [vmem:[%s13433_s1 + $0x340] sm:$0xff] }
0x184a   : > { %v10247_v15 = vpop.eup %10246  ;;  %v7254_v57 = vsel %vm7251_vm5, %v7253_v8, %v7249_v21  ;;  %v7596_v42 = vadd.f32 0.112945676, %v7595_v37  ;;  %v7584_v11 = vmul.f32 %v7583_v40, %v13224_v27  ;;  %8318 = vmatpush.bf16.msra.mxu2 %v9745_v61  ;;  %8332 = vmatpush.bf16.msra.mxu3 %v9753_v38  ;;  %v13299_v55 = vadd.f32 1.0, %v9187_v14 }
0x184b   : > { %v7728_v19 = vmul.f32 %v7712_v53, %v7040_v56  ;;  %v7682_v46 = vmul.f32 %v10247_v15, %v13251_v5  ;;  %v7284_v0 = vmul.f32 %v13241_v1, %v7283_v3  ;;  %v7548_v51 = vmul.f32 %v7547_v32, %v13118_v17 }
0x184c   : > { %v7597_v22 = vmul.f32 %v7596_v42, %v13224_v27  ;;  %vm7287_vm7 = vweird.f32 %v13241_v1  ;;  %v7692_v43 = vand.u32 2147483648, %v13251_v5  ;;  %v7255_v7 = vmul.f32 %v7254_v57, %v7230_v34 }
0x184d   : > { %v10249_v12 = vpop.eup %10248  ;;  %v7865_v58 = vpack.c.bf16 %v7728_v19, %v7720_v20  ;;  %v7683_v50 = vsub.f32 1.0, %v7682_v46  ;;  %vm7286_vm13 = vweird.f32 %v13192_v44  ;;  %v7669_v6 = vadd.f32 1.1283791, %v7668_v48 }
0x184e   : > { %v7562_v16 = vmul.f32 %v10249_v12, %v13265_v4  ;;  %v7598_v49 = vadd.f32 0.4994258, %v7597_v22  ;;  %vm7687_vm15 = vweird.f32 %v10247_v15  ;;  %v7690_v17 = vand.u32 2147483647, %v13251_v5  ;;  %8319 = vmatpush.bf16.msra.mxu2 %v9744_v29  ;;  %8333 = vmatpush.bf16.msra.mxu3 %v9752_v45  ;;  %vm13328_vm2 = vmor %vm7286_vm13, %vm7287_vm7 }
0x184f   : > { %v7684_v23 = vmul.f32 %v10247_v15, %v7683_v50  ;;  %v7585_v31 = vadd.f32 0.05243302, %v7584_v11  ;;  %8348 = vmatmul.bf16.vlgmr.msra.gmra.mxu0 %v7865_v58  ;;  %v7285_v63 = vadd.f32 %v13241_v1, %v7284_v0  ;;  %v7549_v47 = vadd.f32 1.1283791, %v7548_v51 }
0x1850   : > { %v7563_v54 = vsub.f32 1.0, %v7562_v16  ;;  %v7599_v35 = vmul.f32 %v7598_v49, %v13224_v27  ;;  %vm7686_vm11 = vweird.f32 %v13251_v5  ;;  %v7693_v8 = vor.u32 1.1754944e-38, %v7692_v43 }
0x1851   : > { %v7685_v39 = vadd.f32 %v10247_v15, %v7684_v23  ;;  %v7572_v56 = vand.u32 2147483648, %v13265_v4  ;;  %vm7688_vm14 = vmor %vm7686_vm11, %vm7687_vm15  ;;  %vm7567_vm12 = vweird.f32 %v10249_v12  ;;  %v7570_v10 = vand.u32 2147483647, %v13265_v4 }
0x1852   : > { %v7564_v24 = vmul.f32 %v10249_v12, %v7563_v54  ;;  %v13315_v21 = vadd.f32 1.0, %v7599_v35  ;;  %v7670_v13 = vmul.f32 %v7669_v6, %v13088_v2  ;;  %vm7691_vm8 = vcmp.eq.f32.partialorder %v7690_v17, 8.507059e+37 }
0x1853   : > { %v7689_v40 = vsel %vm7688_vm14, %v10247_v15, %v7685_v39  ;;  %v7586_v61 = vmul.f32 %v7585_v31, %v13224_v27  ;;  %vm7566_vm1 = vweird.f32 %v13265_v4  ;;  %v7290_v5 = vand.u32 2147483647, %v13192_v44 }
0x1854   : > { %v7694_v38 = vsel %vm7691_vm8, %v7693_v8, %v7689_v40  ;;  %v7565_v14 = vadd.f32 %v10249_v12, %v7564_v24  ;;  %10250 = vrcp.f32 %v13315_v21  ;;  %v7292_v3 = vand.u32 2147483648, %v13192_v44  ;;  %vm7568_vm10 = vmor %vm7566_vm1, %vm7567_vm12 }
0x1855   : > { %v7695_v32 = vmul.f32 %v7694_v38, %v7670_v13  ;;  %v7573_v37 = vor.u32 1.1754944e-38, %v7572_v56  ;;  %v9184_v20 = vclamps-f32 %v7255_v7, 1.0  ;;  %v7550_v2 = vmul.f32 %v7549_v47, %v13091_v59  ;;  %v10107_v38 = vld [vmem:[%s13472_s28 + $0x1] ss:$0 sm:$0xff] }
0x1856   : > { %v7569_v34 = vsel %vm7568_vm10, %v10249_v12, %v7565_v14  ;;  %vm7571_vm0 = vcmp.eq.f32.partialorder %v7570_v10, 8.507059e+37  ;;  %v7587_v57 = vadd.f32 0.18741608, %v7586_v61  ;;  %v7033_v48 = vmul.f32 0.5, %v12772_v60 }
0x1857   : > { %v9195_v53 = vclamps-f32 %v7695_v32, 1.0  ;;  %v7574_v15 = vsel %vm7571_vm0, %v7573_v37, %v7569_v34  ;;  %v7269_v42 = vadd.f32 1.1283791, %v13293_v9  ;;  %v7289_v59 = vsel %vm13328_vm2, %v13241_v1, %v7285_v63 }
0x1858   : > { %v7575_v19 = vmul.f32 %v7574_v15, %v7550_v2  ;;  %v7293_v46 = vor.u32 1.1754944e-38, %v7292_v3  ;;  %v7041_v11 = vmul.f32 0.5, %v13048_v52  ;;  %v7721_v0 = vmul.f32 %v13299_v55, %v7033_v48 }
0x1859   : > { %v7713_v44 = vadd.f32 1.0, %v9195_v53  ;;  %v7702_v51 = vadd.f32 1.0, %v9184_v20  ;;  %vm7291_vm4 = vcmp.eq.f32.partialorder %v7290_v5, 8.507059e+37  ;;  %v7588_v60 = vmul.f32 %v7587_v57, %v13224_v27 }
0x185a   : > { %v10251_v29 = vpop.eup %10250  ;;  %v9192_v22 = vclamps-f32 %v7575_v19, 1.0  ;;  %v7294_v45 = vsel %vm7291_vm4, %v7293_v46, %v7289_v59  ;;  %v7030_v58 = vmul.f32 0.5, %v12875_v25  ;;  %v7270_v1 = vmul.f32 %v7269_v42, %v12936_v28 }
0x185b   : > { %v7729_v12 = vmul.f32 %v7713_v44, %v7041_v11  ;;  %v7602_v9 = vmul.f32 %v10251_v29, %v13315_v21  ;;  %v7038_v50 = vmul.f32 0.5, %v13056_v41  ;;  %v7612_v49 = vand.u32 2147483648, %v13315_v21 }
0x185c   : > { %v7710_v52 = vadd.f32 1.0, %v9192_v22  ;;  %v7718_v6 = vmul.f32 %v7702_v51, %v7030_v58  ;;  %v7295_v55 = vmul.f32 %v7294_v45, %v7270_v1  ;;  %v7589_v23 = vadd.f32 1.1283791, %v7588_v60 }
0x185d   : > { %v7866_v43 = vpack.c.bf16 %v7729_v12, %v7721_v0  ;;  %v7603_v7 = vsub.f32 1.0, %v7602_v9  ;;  %vm7607_vm5 = vweird.f32 %v10251_v29  ;;  %v7610_v27 = vand.u32 2147483647, %v13315_v21 }
0x185e   : > { %v7726_v16 = vmul.f32 %v7710_v52, %v7038_v50  ;;  %vm7606_vm7 = vweird.f32 %v13315_v21  ;;  %v7613_v28 = vor.u32 1.1754944e-38, %v7612_v49  ;;  %v9185_v41 = vclamps-f32 %v7295_v55, 1.0 }
0x185f   : > { %v7604_v17 = vmul.f32 %v10251_v29, %v7603_v7  ;;  %8362 = vmatmul.bf16.vlgmr.msra.gmra.mxu1 %v7866_v43  ;;  %vm7608_vm13 = vmor %vm7606_vm7, %vm7607_vm5  ;;  %v7590_v63 = vmul.f32 %v7589_v23, %v13198_v30  ;;  %vm7611_vm15 = vcmp.eq.f32.partialorder %v7610_v27, 8.507059e+37  ;;  %v7031_v56 = vmul.f32 0.5, %v12910_v33 }
0x1860   : > { %v7863_v31 = vpack.c.bf16 %v7726_v16, %v7718_v6  ;;  %v7703_v39 = vadd.f32 1.0, %v9185_v41  ;;  %v7039_v24 = vmul.f32 0.5, %v13175_v62 }
0x1861   : > { %v7605_v25 = vadd.f32 %v10251_v29, %v7604_v17 }
0x1862   : > { %8320 = vmatmul.bf16.vlgmr.msra.gmra.mxu2 %v7863_v31  ;;  %v7719_v13 = vmul.f32 %v7703_v39, %v7031_v56 }
0x1863   : > { %v7609_v47 = vsel %vm7608_vm13, %v10251_v29, %v7605_v25 }
0x1864   : > { %v7614_v54 = vsel %vm7611_vm15, %v7613_v28, %v7609_v47  ;;  %v9777_v28 = vld [vmem:[%s10441_s24 + $0x8] sm:$0xff] }
0x1865   : > { %v7615_v35 = vmul.f32 %v7614_v54, %v7590_v63  ;;  %8456 = vmatpush.bf16.msrb.mxu2 %v9777_v28  ;;  %v9776_v63 = vld [vmem:[%s10441_s24] sm:$0xff] }
0x1867   : > { %v9193_v8 = vclamps-f32 %v7615_v35, 1.0 }
0x1869   : > { %v7711_v10 = vadd.f32 1.0, %v9193_v8  ;;  %8457 = vmatpush.bf16.msrb.mxu2 %v9776_v63 }
0x186b   : > { %v7727_v21 = vmul.f32 %v7711_v10, %v7039_v24 }
0x186d   : > { %v7864_v40 = vpack.c.bf16 %v7727_v21, %v7719_v13 }
0x186f   : > { %8334 = vmatmul.bf16.vlgmr.msra.gmra.mxu3 %v7864_v40 }
0x18a7   : > { %v8293_v14 = vpop.f32.mrf.mxu0 }
0x18a8   : > { %v8307_v30 = vpop.f32.mrf.mxu1 }
0x18af   : > { %v8295_v20 = vpop.f32.mrf.mxu0 }
0x18b0   : > { %v8309_v33 = vpop.f32.mrf.mxu1 }
0x18b4   : > { %v8265_v61 = vpop.f32.mrf.mxu2  ;;  %v8279_v5 = vpop.f32.mrf.mxu3 }
0x18b5   : > { %v8266_v32 = vadd.f32 %v10107_v38, %v8265_v61  ;;  %v10108_v61 = vld [vmem:[%s13473_s3 + $0x1] ss:$0 sm:$0xff] }
0x18b7   : > { %v8280_v37 = vadd.f32 %v8279_v5, %v8266_v32 }
0x18b9   : > { %v8294_v34 = vadd.f32 %v8293_v14, %v8280_v37 }
0x18bb   : > { %v8308_v15 = vadd.f32 %v8307_v30, %v8294_v34 }
0x18bc   : > { %v8267_v3 = vpop.f32.mrf.mxu2  ;;  %v8281_v2 = vpop.f32.mrf.mxu3 }
0x18bd   : > { %v8268_v4 = vadd.f32 %v10107_v38, %v8267_v3 }
0x18bf   : > { %v8282_v62 = vadd.f32 %v8281_v2, %v8268_v4 }
0x18c1   : > { %v8296_v48 = vadd.f32 %v8295_v20, %v8282_v62  ;;  %v8434_v62 = vld [vmem:[%s10446_s6] sm:$0x1] }
0x18c3   : > { %v8310_v29 = vadd.f32 %v8309_v33, %v8296_v48 }
0x18cc   : > { %v8349_v42 = vpop.f32.mrf.mxu0 }
0x18d4   : > { %v8351_v9 = vpop.f32.mrf.mxu0 }
0x18dc   : > { %v8363_v46 = vpop.f32.mrf.mxu1 }
0x18e4   : > { %v8365_v1 = vpop.f32.mrf.mxu1 }
0x18e5   : > { %v8321_v53 = vpop.f32.mrf.mxu2 }
0x18e6   : > { %v8322_v57 = vadd.f32 %v8321_v53, %v8308_v15 }
0x18ed   : > { %v8323_v11 = vpop.f32.mrf.mxu2 }
0x18ee   : > { %v8324_v0 = vadd.f32 %v8323_v11, %v8310_v29 }
0x18f2   : > { %v8335_v59 = vpop.f32.mrf.mxu3 }
0x18f3   : > { %v8336_v19 = vadd.f32 %v8335_v59, %v8322_v57 }
0x18f5   : > { %v8350_v44 = vadd.f32 %v8349_v42, %v8336_v19 }
0x18f7   : > { %v8364_v51 = vadd.f32 %v8363_v46, %v8350_v44 }
0x18f9   : > { %v8368_v22 = vadd.f32 %v8364_v51, %v12433_v18 }
0x18fa   : > { %v8337_v45 = vpop.f32.mrf.mxu3 }
0x18fb   : > { %v8338_v12 = vadd.f32 %v8337_v45, %v8324_v0  ;;  %v8374_v60 = vsel %vm977_vm3, %v8368_v22, 0.0 }
0x18fc   : > { %8375 = vadd.xlane.f32.xlu0 %v8374_v60 }
0x18fd   : > { %v8352_v58 = vadd.f32 %v8351_v9, %v8338_v12 }
0x18ff   : > { %v8366_v50 = vadd.f32 %v8365_v1, %v8352_v58 }
0x1901   : > { %v8369_v52 = vadd.f32 %v8366_v50, %v12435_v26 }
0x1903   : > { %v8377_v43 = vsel %vm3072_vm9, %v8369_v52, 0.0 }
0x1904   : > { %8378 = vadd.xlane.f32.xlu1 %v8377_v43 }
0x196f   : > { %v8376_v7 = vpop.xlane.xlu0 %8375 }
0x1970   : > { %v8380_v6 = vmul.f32 %v8376_v7, %v10942_v36 }
0x1972   : > { %v8382_v55 = vsub.f32 %v8368_v22, %v8380_v6 }
0x1974   : > { %v8384_v18 = vmul.f32 %v8382_v55, %v8382_v55 }
0x1976   : > { %v8386_v16 = vsel %vm977_vm3, %v8384_v18, 0.0 }
0x1977   : > { %v8379_v49 = vpop.xlane.xlu1 %8378  ;;  %8387 = vadd.xlane.f32.xlu1 %v8386_v16 }
0x1978   : > { %v8381_v23 = vmul.f32 %v8379_v49, %v10942_v36 }
0x197a   : > { %v8383_v17 = vsub.f32 %v8369_v52, %v8381_v23 }
0x197c   : > { %v8385_v27 = vmul.f32 %v8383_v17, %v8383_v17 }
0x197e   : > { %v8389_v26 = vsel %vm3072_vm9, %v8385_v27, 0.0 }
0x197f   : > { %8390 = vadd.xlane.f32.xlu2 %v8389_v26 }
0x19ea   : > { %v8388_v31 = vpop.xlane.xlu1 %8387 }
0x19eb   : > { %v8392_v25 = vmul.f32 %v8388_v31, %v10942_v36 }
0x19ed   : > { %v8394_v41 = vadd.f32 1e-05, %v8392_v25 }
0x19ef   : > { %10252 = vrsqrt.f32 %v8394_v41  ;;  %vm8402_vm11 = vweird.f32 %v8394_v41 }
0x19f2   : > { %v8391_v47 = vpop.xlane.xlu2 %8390 }
0x19f3   : > { %v8393_v54 = vmul.f32 %v8391_v47, %v10942_v36  ;;  %v10109_v36 = vld [vmem:[%s13474_s5 + $0x1] ss:$0 sm:$0xff] }
0x19f5   : > { %v10253_v35 = vpop.eup %10252  ;;  %v8395_v39 = vadd.f32 1e-05, %v8393_v54 }
0x19f6   : > { %v8397_v8 = vmul.f32 %v10253_v35, %v8394_v41  ;;  %vm8403_vm9 = vweird.f32 %v10253_v35 }
0x19f7   : > { %10254 = vrsqrt.f32 %v8395_v39  ;;  %vm8404_vm14 = vmor %vm8402_vm11, %vm8403_vm9  ;;  %vm8412_vm8 = vweird.f32 %v8395_v39 }
0x19f8   : > { %v8398_v56 = vmul.f32 %v10253_v35, %v8397_v8 }
0x19fa   : > { %v8399_v24 = vmul.f32 0.5, %v8398_v56 }
0x19fc   : > { %v8400_v10 = vsub.f32 1.5, %v8399_v24 }
0x19fd   : > { %v10255_v13 = vpop.eup %10254 }
0x19fe   : > { %v8401_v21 = vmul.f32 %v10253_v35, %v8400_v10  ;;  %v8407_v40 = vmul.f32 %v10255_v13, %v8395_v39  ;;  %vm8413_vm12 = vweird.f32 %v10255_v13 }
0x19ff   : > { %vm8414_vm1 = vmor %vm8412_vm8, %vm8413_vm12 }
0x1a00   : > { %v8405_v38 = vsel %vm8404_vm14, %v10253_v35, %v8401_v21  ;;  %v8408_v14 = vmul.f32 %v10255_v13, %v8407_v40 }
0x1a01   : > { %v8416_v5 = vmul.f32 %v8405_v38, %v8382_v55 }
0x1a02   : > { %v8409_v30 = vmul.f32 0.5, %v8408_v14 }
0x1a03   : > { %v8421_v3 = vmul.f32 %v10108_v61, %v8416_v5 }
0x1a04   : > { %v8410_v32 = vsub.f32 1.5, %v8409_v30 }
0x1a05   : > { %v8426_v37 = vadd.f32 %v10109_v36, %v8421_v3 }
0x1a06   : > { %v8411_v20 = vmul.f32 %v10255_v13, %v8410_v32 }
0x1a07   : > { %8428 = vst.msk [vmem:[%s948_s9] sm:$0xff] %vm977_vm3, %v8426_v37 }
0x1a08   : > { %v8415_v2 = vsel %vm8414_vm1, %v10255_v13, %v8411_v20 }
0x1a09   : > { %v8417_v34 = vmul.f32 %v8415_v2, %v8383_v17 }
0x1a0b   : > { %v8422_v4 = vmul.f32 %v10108_v61, %v8417_v34 }
0x1a0d   : > { %v8427_v33 = vadd.f32 %v10109_v36, %v8422_v4 }
0x1a0f   : > { %v8433_v53 = vpack.c.bf16 %v8427_v33, %v8427_v33 }
0x1a11   : > { %9591 = vmatmul.msk.bf16.vlgmr.msrb.gmra.mxu2 %vm977_vm3, %v8433_v53 }
0x1a94   : > { %v8459_v15 = vpop.f32.mrf.mxu2 }
0x1a95   : > { %v8460_v57 = vadd.f32 %v8459_v15, %v8434_v62 }
0x1a97   : > { %8463 = vst.msk [vmem:[%s951_s8] sm:$0x1] %vm2101_vm6, %v8460_v57 }
0x1a9c   : > { %v8461_v48 = vpop.f32.mrf.mxu2 }
0x1a9d PF: > { %s70_s7 = sadd.s32 1, %s10262_s7  }
0x1a9e   : > { %p67_p4 = scmp.ge.s32.totalorder %s70_s7, 4  }
0x1aa0   :  { %69 = sbr.rel (!%p67_p4) target bundleno = 48 (0x30), region = 228 }

</bundles_post_ra>
